<compile_context>
chip_gen: v7x
topology: tpu7x:2x2x1
jax: 0.10.0
libtpu: 0.0.40
codegen_flags: <defaults>
</compile_context>

<pallas_src>
import numpy as np
import jax
import jax.numpy as jnp
from jax.experimental import pallas as pl
from jax.experimental.pallas import tpu as pltpu

NUM_CLASSES = 10
IN_H = IN_W = 128          # forced by fc11 = Linear(512, .): 32ch * 4 * 4 after 3 pools


# -----------------------------------------------------------------------------
# Init-time weight preprocessing (NumPy, one-time): fold stride / padding /
# im2col / pool-member offsets into static matrices.
# -----------------------------------------------------------------------------
def _build_stage(w, b, hin, win, stride):
    """w: (Cout, Cin, 3, 3) torch layout, b: (Cout,).

    Returns:
      R: (2, 3, PH, Hin)        row-selection (dy, kh)
      B: (2, 3, Win*Cin, PW*Cout) banded conv weights (dx, kh)
      c: (1, PW*Cout)           bias tiled over output width
    such that for the activation Y (Hin, Win*Cin):
      max_{dy,dx} relu(sum_kh R[dy,kh] @ Y @ B[dx,kh] + c)
        == maxpool2x2(relu(conv3x3_pad1_stride(Y) + b))  in (PH, PW*Cout) layout.
    """
    cout, cin, _, _ = w.shape
    oh = (hin - 1) // stride + 1
    ow = (win - 1) // stride + 1
    ph, pw = oh // 2, ow // 2

    R = np.zeros((2, 3, ph, hin), np.float32)
    for d in range(2):
        for kh in range(3):
            for p in range(ph):
                r = stride * (2 * p + d) + kh - 1          # -1: padding = 1
                if 0 <= r < hin:
                    R[d, kh, p, r] = 1.0

    wk = np.transpose(w, (2, 3, 1, 0))                      # (kh, kw, Cin, Cout)
    B = np.zeros((2, 3, win * cin, pw * cout), np.float32)
    for d in range(2):
        for kh in range(3):
            for kw in range(3):
                for px in range(pw):
                    wi = stride * (2 * px + d) + kw - 1     # -1: padding = 1
                    if 0 <= wi < win:
                        B[d, kh, wi * cin:(wi + 1) * cin,
                          px * cout:(px + 1) * cout] += wk[kh, kw]

    c = np.tile(b.astype(np.float32), pw).reshape(1, pw * cout)
    return R, B, c


def init_params(key):
    ks = jax.random.split(key, 8)

    def u(k, shape, fan_in):
        bound = 1.0 / np.sqrt(float(fan_in))
        return np.asarray(jax.random.uniform(k, shape, jnp.float32, -bound, bound))

    # Torch-layout raw parameters (deterministic placeholders).
    w1, b1 = u(ks[0], (16, 1, 3, 3), 9),    u(ks[1], (16,), 9)
    w2, b2 = u(ks[2], (16, 16, 3, 3), 144), u(ks[3], (16,), 144)
    w3, b3 = u(ks[4], (32, 16, 3, 3), 144), u(ks[5], (32,), 144)
    wfc    = u(ks[6], (NUM_CLASSES, 512), 512)
    bfc    = u(ks[7], (NUM_CLASSES,), 512)

    R1, B1, c1 = _build_stage(w1, b1, 128, 128, 2)   # (128,128,1)  -> (32, 32*16=512)
    R2, B2, c2 = _build_stage(w2, b2, 32, 32, 2)     # (32,32,16)   -> (8,  8*16=128)
    R3, B3, c3 = _build_stage(w3, b3, 8, 8, 1)       # (8,8,16)     -> (4,  4*32=128)

    # Fold PyTorch's NCHW flatten into fc11's weights:
    #   logits[n] = sum_{h,w,c} act[h, w*32 + c] * wfc[n, c*16 + h*4 + w]
    wfc_k = wfc.reshape(NUM_CLASSES, 32, 4, 4).transpose(2, 3, 1, 0) \
               .reshape(4, 4 * 32, NUM_CLASSES)

    kernel_params = {k: jnp.asarray(v) for k, v in dict(
        R1=R1, B1=B1, c1=c1, R2=R2, B2=B2, c2=c2, R3=R3, B3=B3, c3=c3,
        wfc_k=wfc_k, bfc=bfc.reshape(1, NUM_CLASSES)).items()}
    raw_params = {k: jnp.asarray(v) for k, v in dict(
        w1=w1, b1=b1, w2=w2, b2=b2, w3=w3, b3=b3, wfc=wfc, bfc=bfc).items()}
    return kernel_params, raw_params


# -----------------------------------------------------------------------------
# Fused Pallas kernel: one batch element per grid step, everything in VMEM.
# -----------------------------------------------------------------------------
def _fused_model3_kernel(x_ref,
                         r1_ref, b1_ref, c1_ref,
                         r2_ref, b2_ref, c2_ref,
                         r3_ref, b3_ref, c3_ref,
                         wfc_ref, bfc_ref,
                         o_ref):
    def conv_relu_pool(y, r_ref, b_ref, bias_ref):
        bias = bias_ref[...]                                   # (1, PW*Cout)
        pooled = None
        for dy in range(2):
            # Row gather (stride + vertical pad + pool offset) via MXU matmul.
            t = [jnp.dot(r_ref[dy, kh], y, preferred_element_type=jnp.float32)
                 for kh in range(3)]                           # (PH, Win*Cin)
            for dx in range(2):
                m = bias
                for kh in range(3):
                    m = m + jnp.dot(t[kh], b_ref[dx, kh],
                                    preferred_element_type=jnp.float32)
                m = jnp.maximum(m, 0.0)                        # ReLU
                pooled = m if pooled is None else jnp.maximum(pooled, m)
        return pooled                                          # (PH, PW*Cout)

    y = x_ref[0]                                               # (128, 128)
    y = conv_relu_pool(y, r1_ref, b1_ref, c1_ref)              # (32, 512)
    y = conv_relu_pool(y, r2_ref, b2_ref, c2_ref)              # (8, 128)
    y = conv_relu_pool(y, r3_ref, b3_ref, c3_ref)              # (4, 128)

    # fc11 with the NCHW flatten folded into wfc_k (4, 128, NUM_CLASSES).
    logits = bfc_ref[...]                                      # (1, NUM_CLASSES)
    for h in range(4):
        logits = logits + jnp.dot(y[h:h + 1, :], wfc_ref[h],
                                  preferred_element_type=jnp.float32)
    o_ref[...] = logits[None].astype(o_ref.dtype)              # (1, 1, NUM_CLASSES)


def _replicated_spec(shape):
    zeros = (0,) * len(shape)
    return pl.BlockSpec(shape, lambda i: zeros)


@jax.jit
def model3_forward(params, x):
    """x: (B, H, W) single-channel, matching the PyTorch forward
    (unsqueeze_(0) + permute(1,0,2,3) -> (B, 1, H, W))."""
    B = x.shape[0]
    n_cls = params["bfc"].shape[-1]
    weights = (params["R1"], params["B1"], params["c1"],
               params["R2"], params["B2"], params["c2"],
               params["R3"], params["B3"], params["c3"],
               params["wfc_k"], params["bfc"])
    in_specs = [pl.BlockSpec((1,) + tuple(x.shape[1:]), lambda i: (i, 0, 0))]
    in_specs += [_replicated_spec(w.shape) for w in weights]

    out = pl.pallas_call(
        _fused_model3_kernel,
        grid=(B,),
        in_specs=in_specs,
        out_specs=pl.BlockSpec((1, 1, n_cls), lambda i: (i, 0, 0)),
        out_shape=jax.ShapeDtypeStruct((B, 1, n_cls), jnp.float32),
        compiler_params=pltpu.CompilerParams(
            dimension_semantics=("parallel",)),      # v7x: one image per TensorCore
    )(x, *weights)
    return out.reshape(B, n_cls)


# -----------------------------------------------------------------------------
# Pure-JAX reference (straight transcription of the PyTorch module) for checking.
# -----------------------------------------------------------------------------
def reference_forward(raw, x):
    h = x[:, None, :, :]                                       # NCHW

    def stage(h, w, b, s):
        y = jax.lax.conv_general_dilated(
            h, w, (s, s), ((1, 1), (1, 1)),
            dimension_numbers=("NCHW", "OIHW", "NCHW"),
            precision=jax.lax.Precision.HIGHEST)
        y = jnp.maximum(y + b[None, :, None, None], 0.0)
        return jax.lax.reduce_window(y, -jnp.inf, jax.lax.max,
                                     (1, 1, 2, 2), (1, 1, 2, 2), "VALID")

    h = stage(h, raw["w1"], raw["b1"], 2)
    h = stage(h, raw["w2"], raw["b2"], 2)
    h = stage(h, raw["w3"], raw["b3"], 1)
    h = h.reshape(h.shape[0], -1)                              # NCHW flatten -> (B, 512)
    return jnp.dot(h, raw["wfc"].T, precision=jax.lax.Precision.HIGHEST) + raw["bfc"]


if __name__ == "__main__":
    key = jax.random.PRNGKey(0)
    pkey, xkey = jax.random.split(key)
    params, raw = init_params(pkey)

    # Smallest input consistent with fc11(512, .): batch=2, 128x128 grayscale.
    x = jax.random.normal(xkey, (2, IN_H, IN_W), jnp.float32)

    out = jax.block_until_ready(model3_forward(params, x))
    assert out.shape == (2, NUM_CLASSES), out.shape
    assert bool(jnp.all(jnp.isfinite(out)))

    ref = reference_forward(raw, x)
    err = float(jnp.max(jnp.abs(out - ref)))
    assert bool(jnp.allclose(out, ref, rtol=2e-2, atol=2e-2)), err

    print("KERNEL_OK")
</pallas_src>

<mosaic_0001>
module attributes {stable_mosaic.version = 11 : i64} {
  func.func @_fused_model3_kernel(%arg0: i32, %arg1: memref<1x128x128xf32, #tpu.memory_space<vmem>>, %arg2: memref<2x3x32x128xf32, #tpu.memory_space<vmem>>, %arg3: memref<2x3x128x512xf32, #tpu.memory_space<vmem>>, %arg4: memref<1x512xf32, #tpu.memory_space<vmem>>, %arg5: memref<2x3x8x32xf32, #tpu.memory_space<vmem>>, %arg6: memref<2x3x512x128xf32, #tpu.memory_space<vmem>>, %arg7: memref<1x128xf32, #tpu.memory_space<vmem>>, %arg8: memref<2x3x4x8xf32, #tpu.memory_space<vmem>>, %arg9: memref<2x3x128x128xf32, #tpu.memory_space<vmem>>, %arg10: memref<1x128xf32, #tpu.memory_space<vmem>>, %arg11: memref<4x128x10xf32, #tpu.memory_space<vmem>>, %arg12: memref<1x10xf32, #tpu.memory_space<vmem>>, %arg13: memref<1x1x10xf32, #tpu.memory_space<vmem>>) attributes {dimension_semantics = [#tpu.dimension_semantics<parallel>], iteration_bounds = array<i64: 2>, scalar_prefetch = 0 : i64, scratch_operands = 0 : i64, tpu.core_type = #tpu.core_type<tc>, window_params = [{transform_indices = @transform_0, window_bounds = array<i64: 1, 128, 128>}, {pipeline_mode = #tpu.pipeline_mode<synchronous>, transform_indices = @transform_1, window_bounds = array<i64: 2, 3, 32, 128>}, {pipeline_mode = #tpu.pipeline_mode<synchronous>, transform_indices = @transform_2, window_bounds = array<i64: 2, 3, 128, 512>}, {pipeline_mode = #tpu.pipeline_mode<synchronous>, transform_indices = @transform_3, window_bounds = array<i64: 1, 512>}, {pipeline_mode = #tpu.pipeline_mode<synchronous>, transform_indices = @transform_4, window_bounds = array<i64: 2, 3, 8, 32>}, {pipeline_mode = #tpu.pipeline_mode<synchronous>, transform_indices = @transform_5, window_bounds = array<i64: 2, 3, 512, 128>}, {pipeline_mode = #tpu.pipeline_mode<synchronous>, transform_indices = @transform_6, window_bounds = array<i64: 1, 128>}, {pipeline_mode = #tpu.pipeline_mode<synchronous>, transform_indices = @transform_7, window_bounds = array<i64: 2, 3, 4, 8>}, {pipeline_mode = #tpu.pipeline_mode<synchronous>, transform_indices = @transform_8, window_bounds = array<i64: 2, 3, 128, 128>}, {pipeline_mode = #tpu.pipeline_mode<synchronous>, transform_indices = @transform_9, window_bounds = array<i64: 1, 128>}, {pipeline_mode = #tpu.pipeline_mode<synchronous>, transform_indices = @transform_10, window_bounds = array<i64: 4, 128, 10>}, {pipeline_mode = #tpu.pipeline_mode<synchronous>, transform_indices = @transform_11, window_bounds = array<i64: 1, 10>}, {transform_indices = @transform_12, window_bounds = array<i64: 1, 1, 10>}]} {
    %c0 = arith.constant 0 : index
    %c0_0 = arith.constant 0 : index
    %c0_1 = arith.constant 0 : index
    %0 = vector.load %arg1[%c0, %c0_0, %c0_1] : memref<1x128x128xf32, #tpu.memory_space<vmem>>, vector<1x128x128xf32>
    %1 = vector.shape_cast %0 : vector<1x128x128xf32> to vector<128x128xf32>
    %c0_2 = arith.constant 0 : index
    %c0_3 = arith.constant 0 : index
    %2 = vector.load %arg4[%c0_2, %c0_3] : memref<1x512xf32, #tpu.memory_space<vmem>>, vector<1x512xf32>
    %c0_4 = arith.constant 0 : index
    %c0_5 = arith.constant 0 : index
    %c0_6 = arith.constant 0 : index
    %c0_7 = arith.constant 0 : index
    %3 = vector.load %arg2[%c0_4, %c0_5, %c0_6, %c0_7] : memref<2x3x32x128xf32, #tpu.memory_space<vmem>>, vector<1x1x32x128xf32>
    %4 = vector.shape_cast %3 : vector<1x1x32x128xf32> to vector<32x128xf32>
    %cst = arith.constant dense<0.000000e+00> : vector<32x128xf32>
    %5 = tpu.matmul %4, %1, %cst {dimension_numbers = #tpu.dot_dimension_numbers<[1], [0], [0], [1], [0, 0, 1, 1], [], []>} : vector<32x128xf32>, vector<128x128xf32>, vector<32x128xf32> -> vector<32x128xf32>
    %c0_8 = arith.constant 0 : index
    %c1 = arith.constant 1 : index
    %c0_9 = arith.constant 0 : index
    %c0_10 = arith.constant 0 : index
    %6 = vector.load %arg2[%c0_8, %c1, %c0_9, %c0_10] : memref<2x3x32x128xf32, #tpu.memory_space<vmem>>, vector<1x1x32x128xf32>
    %7 = vector.shape_cast %6 : vector<1x1x32x128xf32> to vector<32x128xf32>
    %cst_11 = arith.constant dense<0.000000e+00> : vector<32x128xf32>
    %8 = tpu.matmul %7, %1, %cst_11 {dimension_numbers = #tpu.dot_dimension_numbers<[1], [0], [0], [1], [0, 0, 1, 1], [], []>} : vector<32x128xf32>, vector<128x128xf32>, vector<32x128xf32> -> vector<32x128xf32>
    %c0_12 = arith.constant 0 : index
    %c2 = arith.constant 2 : index
    %c0_13 = arith.constant 0 : index
    %c0_14 = arith.constant 0 : index
    %9 = vector.load %arg2[%c0_12, %c2, %c0_13, %c0_14] : memref<2x3x32x128xf32, #tpu.memory_space<vmem>>, vector<1x1x32x128xf32>
    %10 = vector.shape_cast %9 : vector<1x1x32x128xf32> to vector<32x128xf32>
    %cst_15 = arith.constant dense<0.000000e+00> : vector<32x128xf32>
    %11 = tpu.matmul %10, %1, %cst_15 {dimension_numbers = #tpu.dot_dimension_numbers<[1], [0], [0], [1], [0, 0, 1, 1], [], []>} : vector<32x128xf32>, vector<128x128xf32>, vector<32x128xf32> -> vector<32x128xf32>
    %c0_16 = arith.constant 0 : index
    %c0_17 = arith.constant 0 : index
    %c0_18 = arith.constant 0 : index
    %c0_19 = arith.constant 0 : index
    %12 = vector.load %arg3[%c0_16, %c0_17, %c0_18, %c0_19] : memref<2x3x128x512xf32, #tpu.memory_space<vmem>>, vector<1x1x128x512xf32>
    %13 = vector.shape_cast %12 : vector<1x1x128x512xf32> to vector<128x512xf32>
    %cst_20 = arith.constant dense<0.000000e+00> : vector<32x512xf32>
    %14 = tpu.matmul %5, %13, %cst_20 {dimension_numbers = #tpu.dot_dimension_numbers<[1], [0], [0], [1], [0, 0, 1, 1], [], []>} : vector<32x128xf32>, vector<128x512xf32>, vector<32x512xf32> -> vector<32x512xf32>
    %15 = vector.broadcast %2 : vector<1x512xf32> to vector<32x512xf32>
    %16 = arith.addf %15, %14 : vector<32x512xf32>
    %c0_21 = arith.constant 0 : index
    %c1_22 = arith.constant 1 : index
    %c0_23 = arith.constant 0 : index
    %c0_24 = arith.constant 0 : index
    %17 = vector.load %arg3[%c0_21, %c1_22, %c0_23, %c0_24] : memref<2x3x128x512xf32, #tpu.memory_space<vmem>>, vector<1x1x128x512xf32>
    %18 = vector.shape_cast %17 : vector<1x1x128x512xf32> to vector<128x512xf32>
    %cst_25 = arith.constant dense<0.000000e+00> : vector<32x512xf32>
    %19 = tpu.matmul %8, %18, %cst_25 {dimension_numbers = #tpu.dot_dimension_numbers<[1], [0], [0], [1], [0, 0, 1, 1], [], []>} : vector<32x128xf32>, vector<128x512xf32>, vector<32x512xf32> -> vector<32x512xf32>
    %20 = arith.addf %16, %19 : vector<32x512xf32>
    %c0_26 = arith.constant 0 : index
    %c2_27 = arith.constant 2 : index
    %c0_28 = arith.constant 0 : index
    %c0_29 = arith.constant 0 : index
    %21 = vector.load %arg3[%c0_26, %c2_27, %c0_28, %c0_29] : memref<2x3x128x512xf32, #tpu.memory_space<vmem>>, vector<1x1x128x512xf32>
    %22 = vector.shape_cast %21 : vector<1x1x128x512xf32> to vector<128x512xf32>
    %cst_30 = arith.constant dense<0.000000e+00> : vector<32x512xf32>
    %23 = tpu.matmul %11, %22, %cst_30 {dimension_numbers = #tpu.dot_dimension_numbers<[1], [0], [0], [1], [0, 0, 1, 1], [], []>} : vector<32x128xf32>, vector<128x512xf32>, vector<32x512xf32> -> vector<32x512xf32>
    %24 = arith.addf %20, %23 : vector<32x512xf32>
    %cst_31 = arith.constant 0.000000e+00 : f32
    %25 = vector.broadcast %cst_31 : f32 to vector<32x512xf32>
    %26 = arith.maximumf %24, %25 : vector<32x512xf32>
    %c1_32 = arith.constant 1 : index
    %c0_33 = arith.constant 0 : index
    %c0_34 = arith.constant 0 : index
    %c0_35 = arith.constant 0 : index
    %27 = vector.load %arg3[%c1_32, %c0_33, %c0_34, %c0_35] : memref<2x3x128x512xf32, #tpu.memory_space<vmem>>, vector<1x1x128x512xf32>
    %28 = vector.shape_cast %27 : vector<1x1x128x512xf32> to vector<128x512xf32>
    %cst_36 = arith.constant dense<0.000000e+00> : vector<32x512xf32>
    %29 = tpu.matmul %5, %28, %cst_36 {dimension_numbers = #tpu.dot_dimension_numbers<[1], [0], [0], [1], [0, 0, 1, 1], [], []>} : vector<32x128xf32>, vector<128x512xf32>, vector<32x512xf32> -> vector<32x512xf32>
    %30 = vector.broadcast %2 : vector<1x512xf32> to vector<32x512xf32>
    %31 = arith.addf %30, %29 : vector<32x512xf32>
    %c1_37 = arith.constant 1 : index
    %c1_38 = arith.constant 1 : index
    %c0_39 = arith.constant 0 : index
    %c0_40 = arith.constant 0 : index
    %32 = vector.load %arg3[%c1_37, %c1_38, %c0_39, %c0_40] : memref<2x3x128x512xf32, #tpu.memory_space<vmem>>, vector<1x1x128x512xf32>
    %33 = vector.shape_cast %32 : vector<1x1x128x512xf32> to vector<128x512xf32>
    %cst_41 = arith.constant dense<0.000000e+00> : vector<32x512xf32>
    %34 = tpu.matmul %8, %33, %cst_41 {dimension_numbers = #tpu.dot_dimension_numbers<[1], [0], [0], [1], [0, 0, 1, 1], [], []>} : vector<32x128xf32>, vector<128x512xf32>, vector<32x512xf32> -> vector<32x512xf32>
    %35 = arith.addf %31, %34 : vector<32x512xf32>
    %c1_42 = arith.constant 1 : index
    %c2_43 = arith.constant 2 : index
    %c0_44 = arith.constant 0 : index
    %c0_45 = arith.constant 0 : index
    %36 = vector.load %arg3[%c1_42, %c2_43, %c0_44, %c0_45] : memref<2x3x128x512xf32, #tpu.memory_space<vmem>>, vector<1x1x128x512xf32>
    %37 = vector.shape_cast %36 : vector<1x1x128x512xf32> to vector<128x512xf32>
    %cst_46 = arith.constant dense<0.000000e+00> : vector<32x512xf32>
    %38 = tpu.matmul %11, %37, %cst_46 {dimension_numbers = #tpu.dot_dimension_numbers<[1], [0], [0], [1], [0, 0, 1, 1], [], []>} : vector<32x128xf32>, vector<128x512xf32>, vector<32x512xf32> -> vector<32x512xf32>
    %39 = arith.addf %35, %38 : vector<32x512xf32>
    %cst_47 = arith.constant 0.000000e+00 : f32
    %40 = vector.broadcast %cst_47 : f32 to vector<32x512xf32>
    %41 = arith.maximumf %39, %40 : vector<32x512xf32>
    %42 = arith.maximumf %26, %41 : vector<32x512xf32>
    %c1_48 = arith.constant 1 : index
    %c0_49 = arith.constant 0 : index
    %c0_50 = arith.constant 0 : index
    %c0_51 = arith.constant 0 : index
    %43 = vector.load %arg2[%c1_48, %c0_49, %c0_50, %c0_51] : memref<2x3x32x128xf32, #tpu.memory_space<vmem>>, vector<1x1x32x128xf32>
    %44 = vector.shape_cast %43 : vector<1x1x32x128xf32> to vector<32x128xf32>
    %cst_52 = arith.constant dense<0.000000e+00> : vector<32x128xf32>
    %45 = tpu.matmul %44, %1, %cst_52 {dimension_numbers = #tpu.dot_dimension_numbers<[1], [0], [0], [1], [0, 0, 1, 1], [], []>} : vector<32x128xf32>, vector<128x128xf32>, vector<32x128xf32> -> vector<32x128xf32>
    %c1_53 = arith.constant 1 : index
    %c1_54 = arith.constant 1 : index
    %c0_55 = arith.constant 0 : index
    %c0_56 = arith.constant 0 : index
    %46 = vector.load %arg2[%c1_53, %c1_54, %c0_55, %c0_56] : memref<2x3x32x128xf32, #tpu.memory_space<vmem>>, vector<1x1x32x128xf32>
    %47 = vector.shape_cast %46 : vector<1x1x32x128xf32> to vector<32x128xf32>
    %cst_57 = arith.constant dense<0.000000e+00> : vector<32x128xf32>
    %48 = tpu.matmul %47, %1, %cst_57 {dimension_numbers = #tpu.dot_dimension_numbers<[1], [0], [0], [1], [0, 0, 1, 1], [], []>} : vector<32x128xf32>, vector<128x128xf32>, vector<32x128xf32> -> vector<32x128xf32>
    %c1_58 = arith.constant 1 : index
    %c2_59 = arith.constant 2 : index
    %c0_60 = arith.constant 0 : index
    %c0_61 = arith.constant 0 : index
    %49 = vector.load %arg2[%c1_58, %c2_59, %c0_60, %c0_61] : memref<2x3x32x128xf32, #tpu.memory_space<vmem>>, vector<1x1x32x128xf32>
    %50 = vector.shape_cast %49 : vector<1x1x32x128xf32> to vector<32x128xf32>
    %cst_62 = arith.constant dense<0.000000e+00> : vector<32x128xf32>
    %51 = tpu.matmul %50, %1, %cst_62 {dimension_numbers = #tpu.dot_dimension_numbers<[1], [0], [0], [1], [0, 0, 1, 1], [], []>} : vector<32x128xf32>, vector<128x128xf32>, vector<32x128xf32> -> vector<32x128xf32>
    %c0_63 = arith.constant 0 : index
    %c0_64 = arith.constant 0 : index
    %c0_65 = arith.constant 0 : index
    %c0_66 = arith.constant 0 : index
    %52 = vector.load %arg3[%c0_63, %c0_64, %c0_65, %c0_66] : memref<2x3x128x512xf32, #tpu.memory_space<vmem>>, vector<1x1x128x512xf32>
    %53 = vector.shape_cast %52 : vector<1x1x128x512xf32> to vector<128x512xf32>
    %cst_67 = arith.constant dense<0.000000e+00> : vector<32x512xf32>
    %54 = tpu.matmul %45, %53, %cst_67 {dimension_numbers = #tpu.dot_dimension_numbers<[1], [0], [0], [1], [0, 0, 1, 1], [], []>} : vector<32x128xf32>, vector<128x512xf32>, vector<32x512xf32> -> vector<32x512xf32>
    %55 = vector.broadcast %2 : vector<1x512xf32> to vector<32x512xf32>
    %56 = arith.addf %55, %54 : vector<32x512xf32>
    %c0_68 = arith.constant 0 : index
    %c1_69 = arith.constant 1 : index
    %c0_70 = arith.constant 0 : index
    %c0_71 = arith.constant 0 : index
    %57 = vector.load %arg3[%c0_68, %c1_69, %c0_70, %c0_71] : memref<2x3x128x512xf32, #tpu.memory_space<vmem>>, vector<1x1x128x512xf32>
    %58 = vector.shape_cast %57 : vector<1x1x128x512xf32> to vector<128x512xf32>
    %cst_72 = arith.constant dense<0.000000e+00> : vector<32x512xf32>
    %59 = tpu.matmul %48, %58, %cst_72 {dimension_numbers = #tpu.dot_dimension_numbers<[1], [0], [0], [1], [0, 0, 1, 1], [], []>} : vector<32x128xf32>, vector<128x512xf32>, vector<32x512xf32> -> vector<32x512xf32>
    %60 = arith.addf %56, %59 : vector<32x512xf32>
    %c0_73 = arith.constant 0 : index
    %c2_74 = arith.constant 2 : index
    %c0_75 = arith.constant 0 : index
    %c0_76 = arith.constant 0 : index
    %61 = vector.load %arg3[%c0_73, %c2_74, %c0_75, %c0_76] : memref<2x3x128x512xf32, #tpu.memory_space<vmem>>, vector<1x1x128x512xf32>
    %62 = vector.shape_cast %61 : vector<1x1x128x512xf32> to vector<128x512xf32>
    %cst_77 = arith.constant dense<0.000000e+00> : vector<32x512xf32>
    %63 = tpu.matmul %51, %62, %cst_77 {dimension_numbers = #tpu.dot_dimension_numbers<[1], [0], [0], [1], [0, 0, 1, 1], [], []>} : vector<32x128xf32>, vector<128x512xf32>, vector<32x512xf32> -> vector<32x512xf32>
    %64 = arith.addf %60, %63 : vector<32x512xf32>
    %cst_78 = arith.constant 0.000000e+00 : f32
    %65 = vector.broadcast %cst_78 : f32 to vector<32x512xf32>
    %66 = arith.maximumf %64, %65 : vector<32x512xf32>
    %67 = arith.maximumf %42, %66 : vector<32x512xf32>
    %c1_79 = arith.constant 1 : index
    %c0_80 = arith.constant 0 : index
    %c0_81 = arith.constant 0 : index
    %c0_82 = arith.constant 0 : index
    %68 = vector.load %arg3[%c1_79, %c0_80, %c0_81, %c0_82] : memref<2x3x128x512xf32, #tpu.memory_space<vmem>>, vector<1x1x128x512xf32>
    %69 = vector.shape_cast %68 : vector<1x1x128x512xf32> to vector<128x512xf32>
    %cst_83 = arith.constant dense<0.000000e+00> : vector<32x512xf32>
    %70 = tpu.matmul %45, %69, %cst_83 {dimension_numbers = #tpu.dot_dimension_numbers<[1], [0], [0], [1], [0, 0, 1, 1], [], []>} : vector<32x128xf32>, vector<128x512xf32>, vector<32x512xf32> -> vector<32x512xf32>
    %71 = vector.broadcast %2 : vector<1x512xf32> to vector<32x512xf32>
    %72 = arith.addf %71, %70 : vector<32x512xf32>
    %c1_84 = arith.constant 1 : index
    %c1_85 = arith.constant 1 : index
    %c0_86 = arith.constant 0 : index
    %c0_87 = arith.constant 0 : index
    %73 = vector.load %arg3[%c1_84, %c1_85, %c0_86, %c0_87] : memref<2x3x128x512xf32, #tpu.memory_space<vmem>>, vector<1x1x128x512xf32>
    %74 = vector.shape_cast %73 : vector<1x1x128x512xf32> to vector<128x512xf32>
    %cst_88 = arith.constant dense<0.000000e+00> : vector<32x512xf32>
    %75 = tpu.matmul %48, %74, %cst_88 {dimension_numbers = #tpu.dot_dimension_numbers<[1], [0], [0], [1], [0, 0, 1, 1], [], []>} : vector<32x128xf32>, vector<128x512xf32>, vector<32x512xf32> -> vector<32x512xf32>
    %76 = arith.addf %72, %75 : vector<32x512xf32>
    %c1_89 = arith.constant 1 : index
    %c2_90 = arith.constant 2 : index
    %c0_91 = arith.constant 0 : index
    %c0_92 = arith.constant 0 : index
    %77 = vector.load %arg3[%c1_89, %c2_90, %c0_91, %c0_92] : memref<2x3x128x512xf32, #tpu.memory_space<vmem>>, vector<1x1x128x512xf32>
    %78 = vector.shape_cast %77 : vector<1x1x128x512xf32> to vector<128x512xf32>
    %cst_93 = arith.constant dense<0.000000e+00> : vector<32x512xf32>
    %79 = tpu.matmul %51, %78, %cst_93 {dimension_numbers = #tpu.dot_dimension_numbers<[1], [0], [0], [1], [0, 0, 1, 1], [], []>} : vector<32x128xf32>, vector<128x512xf32>, vector<32x512xf32> -> vector<32x512xf32>
    %80 = arith.addf %76, %79 : vector<32x512xf32>
    %cst_94 = arith.constant 0.000000e+00 : f32
    %81 = vector.broadcast %cst_94 : f32 to vector<32x512xf32>
    %82 = arith.maximumf %80, %81 : vector<32x512xf32>
    %83 = arith.maximumf %67, %82 : vector<32x512xf32>
    %c0_95 = arith.constant 0 : index
    %c0_96 = arith.constant 0 : index
    %84 = vector.load %arg7[%c0_95, %c0_96] : memref<1x128xf32, #tpu.memory_space<vmem>>, vector<1x128xf32>
    %c0_97 = arith.constant 0 : index
    %c0_98 = arith.constant 0 : index
    %c0_99 = arith.constant 0 : index
    %c0_100 = arith.constant 0 : index
    %85 = vector.load %arg5[%c0_97, %c0_98, %c0_99, %c0_100] : memref<2x3x8x32xf32, #tpu.memory_space<vmem>>, vector<1x1x8x32xf32>
    %86 = vector.shape_cast %85 : vector<1x1x8x32xf32> to vector<8x32xf32>
    %cst_101 = arith.constant dense<0.000000e+00> : vector<8x512xf32>
    %87 = tpu.matmul %86, %83, %cst_101 {dimension_numbers = #tpu.dot_dimension_numbers<[1], [0], [0], [1], [0, 0, 1, 1], [], []>} : vector<8x32xf32>, vector<32x512xf32>, vector<8x512xf32> -> vector<8x512xf32>
    %c0_102 = arith.constant 0 : index
    %c1_103 = arith.constant 1 : index
    %c0_104 = arith.constant 0 : index
    %c0_105 = arith.constant 0 : index
    %88 = vector.load %arg5[%c0_102, %c1_103, %c0_104, %c0_105] : memref<2x3x8x32xf32, #tpu.memory_space<vmem>>, vector<1x1x8x32xf32>
    %89 = vector.shape_cast %88 : vector<1x1x8x32xf32> to vector<8x32xf32>
    %cst_106 = arith.constant dense<0.000000e+00> : vector<8x512xf32>
    %90 = tpu.matmul %89, %83, %cst_106 {dimension_numbers = #tpu.dot_dimension_numbers<[1], [0], [0], [1], [0, 0, 1, 1], [], []>} : vector<8x32xf32>, vector<32x512xf32>, vector<8x512xf32> -> vector<8x512xf32>
    %c0_107 = arith.constant 0 : index
    %c2_108 = arith.constant 2 : index
    %c0_109 = arith.constant 0 : index
    %c0_110 = arith.constant 0 : index
    %91 = vector.load %arg5[%c0_107, %c2_108, %c0_109, %c0_110] : memref<2x3x8x32xf32, #tpu.memory_space<vmem>>, vector<1x1x8x32xf32>
    %92 = vector.shape_cast %91 : vector<1x1x8x32xf32> to vector<8x32xf32>
    %cst_111 = arith.constant dense<0.000000e+00> : vector<8x512xf32>
    %93 = tpu.matmul %92, %83, %cst_111 {dimension_numbers = #tpu.dot_dimension_numbers<[1], [0], [0], [1], [0, 0, 1, 1], [], []>} : vector<8x32xf32>, vector<32x512xf32>, vector<8x512xf32> -> vector<8x512xf32>
    %c0_112 = arith.constant 0 : index
    %c0_113 = arith.constant 0 : index
    %c0_114 = arith.constant 0 : index
    %c0_115 = arith.constant 0 : index
    %94 = vector.load %arg6[%c0_112, %c0_113, %c0_114, %c0_115] : memref<2x3x512x128xf32, #tpu.memory_space<vmem>>, vector<1x1x512x128xf32>
    %95 = vector.shape_cast %94 : vector<1x1x512x128xf32> to vector<512x128xf32>
    %cst_116 = arith.constant dense<0.000000e+00> : vector<8x128xf32>
    %96 = tpu.matmul %87, %95, %cst_116 {dimension_numbers = #tpu.dot_dimension_numbers<[1], [0], [0], [1], [0, 0, 1, 1], [], []>} : vector<8x512xf32>, vector<512x128xf32>, vector<8x128xf32> -> vector<8x128xf32>
    %97 = vector.broadcast %84 : vector<1x128xf32> to vector<8x128xf32>
    %98 = arith.addf %97, %96 : vector<8x128xf32>
    %c0_117 = arith.constant 0 : index
    %c1_118 = arith.constant 1 : index
    %c0_119 = arith.constant 0 : index
    %c0_120 = arith.constant 0 : index
    %99 = vector.load %arg6[%c0_117, %c1_118, %c0_119, %c0_120] : memref<2x3x512x128xf32, #tpu.memory_space<vmem>>, vector<1x1x512x128xf32>
    %100 = vector.shape_cast %99 : vector<1x1x512x128xf32> to vector<512x128xf32>
    %cst_121 = arith.constant dense<0.000000e+00> : vector<8x128xf32>
    %101 = tpu.matmul %90, %100, %cst_121 {dimension_numbers = #tpu.dot_dimension_numbers<[1], [0], [0], [1], [0, 0, 1, 1], [], []>} : vector<8x512xf32>, vector<512x128xf32>, vector<8x128xf32> -> vector<8x128xf32>
    %102 = arith.addf %98, %101 : vector<8x128xf32>
    %c0_122 = arith.constant 0 : index
    %c2_123 = arith.constant 2 : index
    %c0_124 = arith.constant 0 : index
    %c0_125 = arith.constant 0 : index
    %103 = vector.load %arg6[%c0_122, %c2_123, %c0_124, %c0_125] : memref<2x3x512x128xf32, #tpu.memory_space<vmem>>, vector<1x1x512x128xf32>
    %104 = vector.shape_cast %103 : vector<1x1x512x128xf32> to vector<512x128xf32>
    %cst_126 = arith.constant dense<0.000000e+00> : vector<8x128xf32>
    %105 = tpu.matmul %93, %104, %cst_126 {dimension_numbers = #tpu.dot_dimension_numbers<[1], [0], [0], [1], [0, 0, 1, 1], [], []>} : vector<8x512xf32>, vector<512x128xf32>, vector<8x128xf32> -> vector<8x128xf32>
    %106 = arith.addf %102, %105 : vector<8x128xf32>
    %cst_127 = arith.constant 0.000000e+00 : f32
    %107 = vector.broadcast %cst_127 : f32 to vector<8x128xf32>
    %108 = arith.maximumf %106, %107 : vector<8x128xf32>
    %c1_128 = arith.constant 1 : index
    %c0_129 = arith.constant 0 : index
    %c0_130 = arith.constant 0 : index
    %c0_131 = arith.constant 0 : index
    %109 = vector.load %arg6[%c1_128, %c0_129, %c0_130, %c0_131] : memref<2x3x512x128xf32, #tpu.memory_space<vmem>>, vector<1x1x512x128xf32>
    %110 = vector.shape_cast %109 : vector<1x1x512x128xf32> to vector<512x128xf32>
    %cst_132 = arith.constant dense<0.000000e+00> : vector<8x128xf32>
    %111 = tpu.matmul %87, %110, %cst_132 {dimension_numbers = #tpu.dot_dimension_numbers<[1], [0], [0], [1], [0, 0, 1, 1], [], []>} : vector<8x512xf32>, vector<512x128xf32>, vector<8x128xf32> -> vector<8x128xf32>
    %112 = vector.broadcast %84 : vector<1x128xf32> to vector<8x128xf32>
    %113 = arith.addf %112, %111 : vector<8x128xf32>
    %c1_133 = arith.constant 1 : index
    %c1_134 = arith.constant 1 : index
    %c0_135 = arith.constant 0 : index
    %c0_136 = arith.constant 0 : index
    %114 = vector.load %arg6[%c1_133, %c1_134, %c0_135, %c0_136] : memref<2x3x512x128xf32, #tpu.memory_space<vmem>>, vector<1x1x512x128xf32>
    %115 = vector.shape_cast %114 : vector<1x1x512x128xf32> to vector<512x128xf32>
    %cst_137 = arith.constant dense<0.000000e+00> : vector<8x128xf32>
    %116 = tpu.matmul %90, %115, %cst_137 {dimension_numbers = #tpu.dot_dimension_numbers<[1], [0], [0], [1], [0, 0, 1, 1], [], []>} : vector<8x512xf32>, vector<512x128xf32>, vector<8x128xf32> -> vector<8x128xf32>
    %117 = arith.addf %113, %116 : vector<8x128xf32>
    %c1_138 = arith.constant 1 : index
    %c2_139 = arith.constant 2 : index
    %c0_140 = arith.constant 0 : index
    %c0_141 = arith.constant 0 : index
    %118 = vector.load %arg6[%c1_138, %c2_139, %c0_140, %c0_141] : memref<2x3x512x128xf32, #tpu.memory_space<vmem>>, vector<1x1x512x128xf32>
    %119 = vector.shape_cast %118 : vector<1x1x512x128xf32> to vector<512x128xf32>
    %cst_142 = arith.constant dense<0.000000e+00> : vector<8x128xf32>
    %120 = tpu.matmul %93, %119, %cst_142 {dimension_numbers = #tpu.dot_dimension_numbers<[1], [0], [0], [1], [0, 0, 1, 1], [], []>} : vector<8x512xf32>, vector<512x128xf32>, vector<8x128xf32> -> vector<8x128xf32>
    %121 = arith.addf %117, %120 : vector<8x128xf32>
    %cst_143 = arith.constant 0.000000e+00 : f32
    %122 = vector.broadcast %cst_143 : f32 to vector<8x128xf32>
    %123 = arith.maximumf %121, %122 : vector<8x128xf32>
    %124 = arith.maximumf %108, %123 : vector<8x128xf32>
    %c1_144 = arith.constant 1 : index
    %c0_145 = arith.constant 0 : index
    %c0_146 = arith.constant 0 : index
    %c0_147 = arith.constant 0 : index
    %125 = vector.load %arg5[%c1_144, %c0_145, %c0_146, %c0_147] : memref<2x3x8x32xf32, #tpu.memory_space<vmem>>, vector<1x1x8x32xf32>
    %126 = vector.shape_cast %125 : vector<1x1x8x32xf32> to vector<8x32xf32>
    %cst_148 = arith.constant dense<0.000000e+00> : vector<8x512xf32>
    %127 = tpu.matmul %126, %83, %cst_148 {dimension_numbers = #tpu.dot_dimension_numbers<[1], [0], [0], [1], [0, 0, 1, 1], [], []>} : vector<8x32xf32>, vector<32x512xf32>, vector<8x512xf32> -> vector<8x512xf32>
    %c1_149 = arith.constant 1 : index
    %c1_150 = arith.constant 1 : index
    %c0_151 = arith.constant 0 : index
    %c0_152 = arith.constant 0 : index
    %128 = vector.load %arg5[%c1_149, %c1_150, %c0_151, %c0_152] : memref<2x3x8x32xf32, #tpu.memory_space<vmem>>, vector<1x1x8x32xf32>
    %129 = vector.shape_cast %128 : vector<1x1x8x32xf32> to vector<8x32xf32>
    %cst_153 = arith.constant dense<0.000000e+00> : vector<8x512xf32>
    %130 = tpu.matmul %129, %83, %cst_153 {dimension_numbers = #tpu.dot_dimension_numbers<[1], [0], [0], [1], [0, 0, 1, 1], [], []>} : vector<8x32xf32>, vector<32x512xf32>, vector<8x512xf32> -> vector<8x512xf32>
    %c1_154 = arith.constant 1 : index
    %c2_155 = arith.constant 2 : index
    %c0_156 = arith.constant 0 : index
    %c0_157 = arith.constant 0 : index
    %131 = vector.load %arg5[%c1_154, %c2_155, %c0_156, %c0_157] : memref<2x3x8x32xf32, #tpu.memory_space<vmem>>, vector<1x1x8x32xf32>
    %132 = vector.shape_cast %131 : vector<1x1x8x32xf32> to vector<8x32xf32>
    %cst_158 = arith.constant dense<0.000000e+00> : vector<8x512xf32>
    %133 = tpu.matmul %132, %83, %cst_158 {dimension_numbers = #tpu.dot_dimension_numbers<[1], [0], [0], [1], [0, 0, 1, 1], [], []>} : vector<8x32xf32>, vector<32x512xf32>, vector<8x512xf32> -> vector<8x512xf32>
    %c0_159 = arith.constant 0 : index
    %c0_160 = arith.constant 0 : index
    %c0_161 = arith.constant 0 : index
    %c0_162 = arith.constant 0 : index
    %134 = vector.load %arg6[%c0_159, %c0_160, %c0_161, %c0_162] : memref<2x3x512x128xf32, #tpu.memory_space<vmem>>, vector<1x1x512x128xf32>
    %135 = vector.shape_cast %134 : vector<1x1x512x128xf32> to vector<512x128xf32>
    %cst_163 = arith.constant dense<0.000000e+00> : vector<8x128xf32>
    %136 = tpu.matmul %127, %135, %cst_163 {dimension_numbers = #tpu.dot_dimension_numbers<[1], [0], [0], [1], [0, 0, 1, 1], [], []>} : vector<8x512xf32>, vector<512x128xf32>, vector<8x128xf32> -> vector<8x128xf32>
    %137 = vector.broadcast %84 : vector<1x128xf32> to vector<8x128xf32>
    %138 = arith.addf %137, %136 : vector<8x128xf32>
    %c0_164 = arith.constant 0 : index
    %c1_165 = arith.constant 1 : index
    %c0_166 = arith.constant 0 : index
    %c0_167 = arith.constant 0 : index
    %139 = vector.load %arg6[%c0_164, %c1_165, %c0_166, %c0_167] : memref<2x3x512x128xf32, #tpu.memory_space<vmem>>, vector<1x1x512x128xf32>
    %140 = vector.shape_cast %139 : vector<1x1x512x128xf32> to vector<512x128xf32>
    %cst_168 = arith.constant dense<0.000000e+00> : vector<8x128xf32>
    %141 = tpu.matmul %130, %140, %cst_168 {dimension_numbers = #tpu.dot_dimension_numbers<[1], [0], [0], [1], [0, 0, 1, 1], [], []>} : vector<8x512xf32>, vector<512x128xf32>, vector<8x128xf32> -> vector<8x128xf32>
    %142 = arith.addf %138, %141 : vector<8x128xf32>
    %c0_169 = arith.constant 0 : index
    %c2_170 = arith.constant 2 : index
    %c0_171 = arith.constant 0 : index
    %c0_172 = arith.constant 0 : index
    %143 = vector.load %arg6[%c0_169, %c2_170, %c0_171, %c0_172] : memref<2x3x512x128xf32, #tpu.memory_space<vmem>>, vector<1x1x512x128xf32>
    %144 = vector.shape_cast %143 : vector<1x1x512x128xf32> to vector<512x128xf32>
    %cst_173 = arith.constant dense<0.000000e+00> : vector<8x128xf32>
    %145 = tpu.matmul %133, %144, %cst_173 {dimension_numbers = #tpu.dot_dimension_numbers<[1], [0], [0], [1], [0, 0, 1, 1], [], []>} : vector<8x512xf32>, vector<512x128xf32>, vector<8x128xf32> -> vector<8x128xf32>
    %146 = arith.addf %142, %145 : vector<8x128xf32>
    %cst_174 = arith.constant 0.000000e+00 : f32
    %147 = vector.broadcast %cst_174 : f32 to vector<8x128xf32>
    %148 = arith.maximumf %146, %147 : vector<8x128xf32>
    %149 = arith.maximumf %124, %148 : vector<8x128xf32>
    %c1_175 = arith.constant 1 : index
    %c0_176 = arith.constant 0 : index
    %c0_177 = arith.constant 0 : index
    %c0_178 = arith.constant 0 : index
    %150 = vector.load %arg6[%c1_175, %c0_176, %c0_177, %c0_178] : memref<2x3x512x128xf32, #tpu.memory_space<vmem>>, vector<1x1x512x128xf32>
    %151 = vector.shape_cast %150 : vector<1x1x512x128xf32> to vector<512x128xf32>
    %cst_179 = arith.constant dense<0.000000e+00> : vector<8x128xf32>
    %152 = tpu.matmul %127, %151, %cst_179 {dimension_numbers = #tpu.dot_dimension_numbers<[1], [0], [0], [1], [0, 0, 1, 1], [], []>} : vector<8x512xf32>, vector<512x128xf32>, vector<8x128xf32> -> vector<8x128xf32>
    %153 = vector.broadcast %84 : vector<1x128xf32> to vector<8x128xf32>
    %154 = arith.addf %153, %152 : vector<8x128xf32>
    %c1_180 = arith.constant 1 : index
    %c1_181 = arith.constant 1 : index
    %c0_182 = arith.constant 0 : index
    %c0_183 = arith.constant 0 : index
    %155 = vector.load %arg6[%c1_180, %c1_181, %c0_182, %c0_183] : memref<2x3x512x128xf32, #tpu.memory_space<vmem>>, vector<1x1x512x128xf32>
    %156 = vector.shape_cast %155 : vector<1x1x512x128xf32> to vector<512x128xf32>
    %cst_184 = arith.constant dense<0.000000e+00> : vector<8x128xf32>
    %157 = tpu.matmul %130, %156, %cst_184 {dimension_numbers = #tpu.dot_dimension_numbers<[1], [0], [0], [1], [0, 0, 1, 1], [], []>} : vector<8x512xf32>, vector<512x128xf32>, vector<8x128xf32> -> vector<8x128xf32>
    %158 = arith.addf %154, %157 : vector<8x128xf32>
    %c1_185 = arith.constant 1 : index
    %c2_186 = arith.constant 2 : index
    %c0_187 = arith.constant 0 : index
    %c0_188 = arith.constant 0 : index
    %159 = vector.load %arg6[%c1_185, %c2_186, %c0_187, %c0_188] : memref<2x3x512x128xf32, #tpu.memory_space<vmem>>, vector<1x1x512x128xf32>
    %160 = vector.shape_cast %159 : vector<1x1x512x128xf32> to vector<512x128xf32>
    %cst_189 = arith.constant dense<0.000000e+00> : vector<8x128xf32>
    %161 = tpu.matmul %133, %160, %cst_189 {dimension_numbers = #tpu.dot_dimension_numbers<[1], [0], [0], [1], [0, 0, 1, 1], [], []>} : vector<8x512xf32>, vector<512x128xf32>, vector<8x128xf32> -> vector<8x128xf32>
    %162 = arith.addf %158, %161 : vector<8x128xf32>
    %cst_190 = arith.constant 0.000000e+00 : f32
    %163 = vector.broadcast %cst_190 : f32 to vector<8x128xf32>
    %164 = arith.maximumf %162, %163 : vector<8x128xf32>
    %165 = arith.maximumf %149, %164 : vector<8x128xf32>
    %c0_191 = arith.constant 0 : index
    %c0_192 = arith.constant 0 : index
    %166 = vector.load %arg10[%c0_191, %c0_192] : memref<1x128xf32, #tpu.memory_space<vmem>>, vector<1x128xf32>
    %c0_193 = arith.constant 0 : index
    %c0_194 = arith.constant 0 : index
    %c0_195 = arith.constant 0 : index
    %c0_196 = arith.constant 0 : index
    %167 = vector.load %arg8[%c0_193, %c0_194, %c0_195, %c0_196] : memref<2x3x4x8xf32, #tpu.memory_space<vmem>>, vector<1x1x4x8xf32>
    %168 = vector.shape_cast %167 : vector<1x1x4x8xf32> to vector<4x8xf32>
    %cst_197 = arith.constant dense<0.000000e+00> : vector<4x128xf32>
    %169 = tpu.matmul %168, %165, %cst_197 {dimension_numbers = #tpu.dot_dimension_numbers<[1], [0], [0], [1], [0, 0, 1, 1], [], []>} : vector<4x8xf32>, vector<8x128xf32>, vector<4x128xf32> -> vector<4x128xf32>
    %c0_198 = arith.constant 0 : index
    %c1_199 = arith.constant 1 : index
    %c0_200 = arith.constant 0 : index
    %c0_201 = arith.constant 0 : index
    %170 = vector.load %arg8[%c0_198, %c1_199, %c0_200, %c0_201] : memref<2x3x4x8xf32, #tpu.memory_space<vmem>>, vector<1x1x4x8xf32>
    %171 = vector.shape_cast %170 : vector<1x1x4x8xf32> to vector<4x8xf32>
    %cst_202 = arith.constant dense<0.000000e+00> : vector<4x128xf32>
    %172 = tpu.matmul %171, %165, %cst_202 {dimension_numbers = #tpu.dot_dimension_numbers<[1], [0], [0], [1], [0, 0, 1, 1], [], []>} : vector<4x8xf32>, vector<8x128xf32>, vector<4x128xf32> -> vector<4x128xf32>
    %c0_203 = arith.constant 0 : index
    %c2_204 = arith.constant 2 : index
    %c0_205 = arith.constant 0 : index
    %c0_206 = arith.constant 0 : index
    %173 = vector.load %arg8[%c0_203, %c2_204, %c0_205, %c0_206] : memref<2x3x4x8xf32, #tpu.memory_space<vmem>>, vector<1x1x4x8xf32>
    %174 = vector.shape_cast %173 : vector<1x1x4x8xf32> to vector<4x8xf32>
    %cst_207 = arith.constant dense<0.000000e+00> : vector<4x128xf32>
    %175 = tpu.matmul %174, %165, %cst_207 {dimension_numbers = #tpu.dot_dimension_numbers<[1], [0], [0], [1], [0, 0, 1, 1], [], []>} : vector<4x8xf32>, vector<8x128xf32>, vector<4x128xf32> -> vector<4x128xf32>
    %c0_208 = arith.constant 0 : index
    %c0_209 = arith.constant 0 : index
    %c0_210 = arith.constant 0 : index
    %c0_211 = arith.constant 0 : index
    %176 = vector.load %arg9[%c0_208, %c0_209, %c0_210, %c0_211] : memref<2x3x128x128xf32, #tpu.memory_space<vmem>>, vector<1x1x128x128xf32>
    %177 = vector.shape_cast %176 : vector<1x1x128x128xf32> to vector<128x128xf32>
    %cst_212 = arith.constant dense<0.000000e+00> : vector<4x128xf32>
    %178 = tpu.matmul %169, %177, %cst_212 {dimension_numbers = #tpu.dot_dimension_numbers<[1], [0], [0], [1], [0, 0, 1, 1], [], []>} : vector<4x128xf32>, vector<128x128xf32>, vector<4x128xf32> -> vector<4x128xf32>
    %179 = vector.broadcast %166 : vector<1x128xf32> to vector<4x128xf32>
    %180 = arith.addf %179, %178 : vector<4x128xf32>
    %c0_213 = arith.constant 0 : index
    %c1_214 = arith.constant 1 : index
    %c0_215 = arith.constant 0 : index
    %c0_216 = arith.constant 0 : index
    %181 = vector.load %arg9[%c0_213, %c1_214, %c0_215, %c0_216] : memref<2x3x128x128xf32, #tpu.memory_space<vmem>>, vector<1x1x128x128xf32>
    %182 = vector.shape_cast %181 : vector<1x1x128x128xf32> to vector<128x128xf32>
    %cst_217 = arith.constant dense<0.000000e+00> : vector<4x128xf32>
    %183 = tpu.matmul %172, %182, %cst_217 {dimension_numbers = #tpu.dot_dimension_numbers<[1], [0], [0], [1], [0, 0, 1, 1], [], []>} : vector<4x128xf32>, vector<128x128xf32>, vector<4x128xf32> -> vector<4x128xf32>
    %184 = arith.addf %180, %183 : vector<4x128xf32>
    %c0_218 = arith.constant 0 : index
    %c2_219 = arith.constant 2 : index
    %c0_220 = arith.constant 0 : index
    %c0_221 = arith.constant 0 : index
    %185 = vector.load %arg9[%c0_218, %c2_219, %c0_220, %c0_221] : memref<2x3x128x128xf32, #tpu.memory_space<vmem>>, vector<1x1x128x128xf32>
    %186 = vector.shape_cast %185 : vector<1x1x128x128xf32> to vector<128x128xf32>
    %cst_222 = arith.constant dense<0.000000e+00> : vector<4x128xf32>
    %187 = tpu.matmul %175, %186, %cst_222 {dimension_numbers = #tpu.dot_dimension_numbers<[1], [0], [0], [1], [0, 0, 1, 1], [], []>} : vector<4x128xf32>, vector<128x128xf32>, vector<4x128xf32> -> vector<4x128xf32>
    %188 = arith.addf %184, %187 : vector<4x128xf32>
    %cst_223 = arith.constant 0.000000e+00 : f32
    %189 = vector.broadcast %cst_223 : f32 to vector<4x128xf32>
    %190 = arith.maximumf %188, %189 : vector<4x128xf32>
    %c1_224 = arith.constant 1 : index
    %c0_225 = arith.constant 0 : index
    %c0_226 = arith.constant 0 : index
    %c0_227 = arith.constant 0 : index
    %191 = vector.load %arg9[%c1_224, %c0_225, %c0_226, %c0_227] : memref<2x3x128x128xf32, #tpu.memory_space<vmem>>, vector<1x1x128x128xf32>
    %192 = vector.shape_cast %191 : vector<1x1x128x128xf32> to vector<128x128xf32>
    %cst_228 = arith.constant dense<0.000000e+00> : vector<4x128xf32>
    %193 = tpu.matmul %169, %192, %cst_228 {dimension_numbers = #tpu.dot_dimension_numbers<[1], [0], [0], [1], [0, 0, 1, 1], [], []>} : vector<4x128xf32>, vector<128x128xf32>, vector<4x128xf32> -> vector<4x128xf32>
    %194 = vector.broadcast %166 : vector<1x128xf32> to vector<4x128xf32>
    %195 = arith.addf %194, %193 : vector<4x128xf32>
    %c1_229 = arith.constant 1 : index
    %c1_230 = arith.constant 1 : index
    %c0_231 = arith.constant 0 : index
    %c0_232 = arith.constant 0 : index
    %196 = vector.load %arg9[%c1_229, %c1_230, %c0_231, %c0_232] : memref<2x3x128x128xf32, #tpu.memory_space<vmem>>, vector<1x1x128x128xf32>
    %197 = vector.shape_cast %196 : vector<1x1x128x128xf32> to vector<128x128xf32>
    %cst_233 = arith.constant dense<0.000000e+00> : vector<4x128xf32>
    %198 = tpu.matmul %172, %197, %cst_233 {dimension_numbers = #tpu.dot_dimension_numbers<[1], [0], [0], [1], [0, 0, 1, 1], [], []>} : vector<4x128xf32>, vector<128x128xf32>, vector<4x128xf32> -> vector<4x128xf32>
    %199 = arith.addf %195, %198 : vector<4x128xf32>
    %c1_234 = arith.constant 1 : index
    %c2_235 = arith.constant 2 : index
    %c0_236 = arith.constant 0 : index
    %c0_237 = arith.constant 0 : index
    %200 = vector.load %arg9[%c1_234, %c2_235, %c0_236, %c0_237] : memref<2x3x128x128xf32, #tpu.memory_space<vmem>>, vector<1x1x128x128xf32>
    %201 = vector.shape_cast %200 : vector<1x1x128x128xf32> to vector<128x128xf32>
    %cst_238 = arith.constant dense<0.000000e+00> : vector<4x128xf32>
    %202 = tpu.matmul %175, %201, %cst_238 {dimension_numbers = #tpu.dot_dimension_numbers<[1], [0], [0], [1], [0, 0, 1, 1], [], []>} : vector<4x128xf32>, vector<128x128xf32>, vector<4x128xf32> -> vector<4x128xf32>
    %203 = arith.addf %199, %202 : vector<4x128xf32>
    %cst_239 = arith.constant 0.000000e+00 : f32
    %204 = vector.broadcast %cst_239 : f32 to vector<4x128xf32>
    %205 = arith.maximumf %203, %204 : vector<4x128xf32>
    %206 = arith.maximumf %190, %205 : vector<4x128xf32>
    %c1_240 = arith.constant 1 : index
    %c0_241 = arith.constant 0 : index
    %c0_242 = arith.constant 0 : index
    %c0_243 = arith.constant 0 : index
    %207 = vector.load %arg8[%c1_240, %c0_241, %c0_242, %c0_243] : memref<2x3x4x8xf32, #tpu.memory_space<vmem>>, vector<1x1x4x8xf32>
    %208 = vector.shape_cast %207 : vector<1x1x4x8xf32> to vector<4x8xf32>
    %cst_244 = arith.constant dense<0.000000e+00> : vector<4x128xf32>
    %209 = tpu.matmul %208, %165, %cst_244 {dimension_numbers = #tpu.dot_dimension_numbers<[1], [0], [0], [1], [0, 0, 1, 1], [], []>} : vector<4x8xf32>, vector<8x128xf32>, vector<4x128xf32> -> vector<4x128xf32>
    %c1_245 = arith.constant 1 : index
    %c1_246 = arith.constant 1 : index
    %c0_247 = arith.constant 0 : index
    %c0_248 = arith.constant 0 : index
    %210 = vector.load %arg8[%c1_245, %c1_246, %c0_247, %c0_248] : memref<2x3x4x8xf32, #tpu.memory_space<vmem>>, vector<1x1x4x8xf32>
    %211 = vector.shape_cast %210 : vector<1x1x4x8xf32> to vector<4x8xf32>
    %cst_249 = arith.constant dense<0.000000e+00> : vector<4x128xf32>
    %212 = tpu.matmul %211, %165, %cst_249 {dimension_numbers = #tpu.dot_dimension_numbers<[1], [0], [0], [1], [0, 0, 1, 1], [], []>} : vector<4x8xf32>, vector<8x128xf32>, vector<4x128xf32> -> vector<4x128xf32>
    %c1_250 = arith.constant 1 : index
    %c2_251 = arith.constant 2 : index
    %c0_252 = arith.constant 0 : index
    %c0_253 = arith.constant 0 : index
    %213 = vector.load %arg8[%c1_250, %c2_251, %c0_252, %c0_253] : memref<2x3x4x8xf32, #tpu.memory_space<vmem>>, vector<1x1x4x8xf32>
    %214 = vector.shape_cast %213 : vector<1x1x4x8xf32> to vector<4x8xf32>
    %cst_254 = arith.constant dense<0.000000e+00> : vector<4x128xf32>
    %215 = tpu.matmul %214, %165, %cst_254 {dimension_numbers = #tpu.dot_dimension_numbers<[1], [0], [0], [1], [0, 0, 1, 1], [], []>} : vector<4x8xf32>, vector<8x128xf32>, vector<4x128xf32> -> vector<4x128xf32>
    %c0_255 = arith.constant 0 : index
    %c0_256 = arith.constant 0 : index
    %c0_257 = arith.constant 0 : index
    %c0_258 = arith.constant 0 : index
    %216 = vector.load %arg9[%c0_255, %c0_256, %c0_257, %c0_258] : memref<2x3x128x128xf32, #tpu.memory_space<vmem>>, vector<1x1x128x128xf32>
    %217 = vector.shape_cast %216 : vector<1x1x128x128xf32> to vector<128x128xf32>
    %cst_259 = arith.constant dense<0.000000e+00> : vector<4x128xf32>
    %218 = tpu.matmul %209, %217, %cst_259 {dimension_numbers = #tpu.dot_dimension_numbers<[1], [0], [0], [1], [0, 0, 1, 1], [], []>} : vector<4x128xf32>, vector<128x128xf32>, vector<4x128xf32> -> vector<4x128xf32>
    %219 = vector.broadcast %166 : vector<1x128xf32> to vector<4x128xf32>
    %220 = arith.addf %219, %218 : vector<4x128xf32>
    %c0_260 = arith.constant 0 : index
    %c1_261 = arith.constant 1 : index
    %c0_262 = arith.constant 0 : index
    %c0_263 = arith.constant 0 : index
    %221 = vector.load %arg9[%c0_260, %c1_261, %c0_262, %c0_263] : memref<2x3x128x128xf32, #tpu.memory_space<vmem>>, vector<1x1x128x128xf32>
    %222 = vector.shape_cast %221 : vector<1x1x128x128xf32> to vector<128x128xf32>
    %cst_264 = arith.constant dense<0.000000e+00> : vector<4x128xf32>
    %223 = tpu.matmul %212, %222, %cst_264 {dimension_numbers = #tpu.dot_dimension_numbers<[1], [0], [0], [1], [0, 0, 1, 1], [], []>} : vector<4x128xf32>, vector<128x128xf32>, vector<4x128xf32> -> vector<4x128xf32>
    %224 = arith.addf %220, %223 : vector<4x128xf32>
    %c0_265 = arith.constant 0 : index
    %c2_266 = arith.constant 2 : index
    %c0_267 = arith.constant 0 : index
    %c0_268 = arith.constant 0 : index
    %225 = vector.load %arg9[%c0_265, %c2_266, %c0_267, %c0_268] : memref<2x3x128x128xf32, #tpu.memory_space<vmem>>, vector<1x1x128x128xf32>
    %226 = vector.shape_cast %225 : vector<1x1x128x128xf32> to vector<128x128xf32>
    %cst_269 = arith.constant dense<0.000000e+00> : vector<4x128xf32>
    %227 = tpu.matmul %215, %226, %cst_269 {dimension_numbers = #tpu.dot_dimension_numbers<[1], [0], [0], [1], [0, 0, 1, 1], [], []>} : vector<4x128xf32>, vector<128x128xf32>, vector<4x128xf32> -> vector<4x128xf32>
    %228 = arith.addf %224, %227 : vector<4x128xf32>
    %cst_270 = arith.constant 0.000000e+00 : f32
    %229 = vector.broadcast %cst_270 : f32 to vector<4x128xf32>
    %230 = arith.maximumf %228, %229 : vector<4x128xf32>
    %231 = arith.maximumf %206, %230 : vector<4x128xf32>
    %c1_271 = arith.constant 1 : index
    %c0_272 = arith.constant 0 : index
    %c0_273 = arith.constant 0 : index
    %c0_274 = arith.constant 0 : index
    %232 = vector.load %arg9[%c1_271, %c0_272, %c0_273, %c0_274] : memref<2x3x128x128xf32, #tpu.memory_space<vmem>>, vector<1x1x128x128xf32>
    %233 = vector.shape_cast %232 : vector<1x1x128x128xf32> to vector<128x128xf32>
    %cst_275 = arith.constant dense<0.000000e+00> : vector<4x128xf32>
    %234 = tpu.matmul %209, %233, %cst_275 {dimension_numbers = #tpu.dot_dimension_numbers<[1], [0], [0], [1], [0, 0, 1, 1], [], []>} : vector<4x128xf32>, vector<128x128xf32>, vector<4x128xf32> -> vector<4x128xf32>
    %235 = vector.broadcast %166 : vector<1x128xf32> to vector<4x128xf32>
    %236 = arith.addf %235, %234 : vector<4x128xf32>
    %c1_276 = arith.constant 1 : index
    %c1_277 = arith.constant 1 : index
    %c0_278 = arith.constant 0 : index
    %c0_279 = arith.constant 0 : index
    %237 = vector.load %arg9[%c1_276, %c1_277, %c0_278, %c0_279] : memref<2x3x128x128xf32, #tpu.memory_space<vmem>>, vector<1x1x128x128xf32>
    %238 = vector.shape_cast %237 : vector<1x1x128x128xf32> to vector<128x128xf32>
    %cst_280 = arith.constant dense<0.000000e+00> : vector<4x128xf32>
    %239 = tpu.matmul %212, %238, %cst_280 {dimension_numbers = #tpu.dot_dimension_numbers<[1], [0], [0], [1], [0, 0, 1, 1], [], []>} : vector<4x128xf32>, vector<128x128xf32>, vector<4x128xf32> -> vector<4x128xf32>
    %240 = arith.addf %236, %239 : vector<4x128xf32>
    %c1_281 = arith.constant 1 : index
    %c2_282 = arith.constant 2 : index
    %c0_283 = arith.constant 0 : index
    %c0_284 = arith.constant 0 : index
    %241 = vector.load %arg9[%c1_281, %c2_282, %c0_283, %c0_284] : memref<2x3x128x128xf32, #tpu.memory_space<vmem>>, vector<1x1x128x128xf32>
    %242 = vector.shape_cast %241 : vector<1x1x128x128xf32> to vector<128x128xf32>
    %cst_285 = arith.constant dense<0.000000e+00> : vector<4x128xf32>
    %243 = tpu.matmul %215, %242, %cst_285 {dimension_numbers = #tpu.dot_dimension_numbers<[1], [0], [0], [1], [0, 0, 1, 1], [], []>} : vector<4x128xf32>, vector<128x128xf32>, vector<4x128xf32> -> vector<4x128xf32>
    %244 = arith.addf %240, %243 : vector<4x128xf32>
    %cst_286 = arith.constant 0.000000e+00 : f32
    %245 = vector.broadcast %cst_286 : f32 to vector<4x128xf32>
    %246 = arith.maximumf %244, %245 : vector<4x128xf32>
    %247 = arith.maximumf %231, %246 : vector<4x128xf32>
    %c0_287 = arith.constant 0 : index
    %c0_288 = arith.constant 0 : index
    %248 = vector.load %arg12[%c0_287, %c0_288] : memref<1x10xf32, #tpu.memory_space<vmem>>, vector<1x10xf32>
    %249 = vector.extract_strided_slice %247 {offsets = [0, 0], sizes = [1, 128], strides = [1, 1]} : vector<4x128xf32> to vector<1x128xf32>
    %c0_289 = arith.constant 0 : index
    %c0_290 = arith.constant 0 : index
    %c0_291 = arith.constant 0 : index
    %250 = vector.load %arg11[%c0_289, %c0_290, %c0_291] : memref<4x128x10xf32, #tpu.memory_space<vmem>>, vector<1x128x10xf32>
    %251 = vector.shape_cast %250 : vector<1x128x10xf32> to vector<128x10xf32>
    %cst_292 = arith.constant dense<0.000000e+00> : vector<1x10xf32>
    %252 = tpu.matmul %249, %251, %cst_292 {dimension_numbers = #tpu.dot_dimension_numbers<[1], [0], [0], [1], [0, 0, 1, 1], [], []>} : vector<1x128xf32>, vector<128x10xf32>, vector<1x10xf32> -> vector<1x10xf32>
    %253 = arith.addf %248, %252 : vector<1x10xf32>
    %254 = vector.extract_strided_slice %247 {offsets = [1, 0], sizes = [1, 128], strides = [1, 1]} : vector<4x128xf32> to vector<1x128xf32>
    %c1_293 = arith.constant 1 : index
    %c0_294 = arith.constant 0 : index
    %c0_295 = arith.constant 0 : index
    %255 = vector.load %arg11[%c1_293, %c0_294, %c0_295] : memref<4x128x10xf32, #tpu.memory_space<vmem>>, vector<1x128x10xf32>
    %256 = vector.shape_cast %255 : vector<1x128x10xf32> to vector<128x10xf32>
    %cst_296 = arith.constant dense<0.000000e+00> : vector<1x10xf32>
    %257 = tpu.matmul %254, %256, %cst_296 {dimension_numbers = #tpu.dot_dimension_numbers<[1], [0], [0], [1], [0, 0, 1, 1], [], []>} : vector<1x128xf32>, vector<128x10xf32>, vector<1x10xf32> -> vector<1x10xf32>
    %258 = arith.addf %253, %257 : vector<1x10xf32>
    %259 = vector.extract_strided_slice %247 {offsets = [2, 0], sizes = [1, 128], strides = [1, 1]} : vector<4x128xf32> to vector<1x128xf32>
    %c2_297 = arith.constant 2 : index
    %c0_298 = arith.constant 0 : index
    %c0_299 = arith.constant 0 : index
    %260 = vector.load %arg11[%c2_297, %c0_298, %c0_299] : memref<4x128x10xf32, #tpu.memory_space<vmem>>, vector<1x128x10xf32>
    %261 = vector.shape_cast %260 : vector<1x128x10xf32> to vector<128x10xf32>
    %cst_300 = arith.constant dense<0.000000e+00> : vector<1x10xf32>
    %262 = tpu.matmul %259, %261, %cst_300 {dimension_numbers = #tpu.dot_dimension_numbers<[1], [0], [0], [1], [0, 0, 1, 1], [], []>} : vector<1x128xf32>, vector<128x10xf32>, vector<1x10xf32> -> vector<1x10xf32>
    %263 = arith.addf %258, %262 : vector<1x10xf32>
    %264 = vector.extract_strided_slice %247 {offsets = [3, 0], sizes = [1, 128], strides = [1, 1]} : vector<4x128xf32> to vector<1x128xf32>
    %c3 = arith.constant 3 : index
    %c0_301 = arith.constant 0 : index
    %c0_302 = arith.constant 0 : index
    %265 = vector.load %arg11[%c3, %c0_301, %c0_302] : memref<4x128x10xf32, #tpu.memory_space<vmem>>, vector<1x128x10xf32>
    %266 = vector.shape_cast %265 : vector<1x128x10xf32> to vector<128x10xf32>
    %cst_303 = arith.constant dense<0.000000e+00> : vector<1x10xf32>
    %267 = tpu.matmul %264, %266, %cst_303 {dimension_numbers = #tpu.dot_dimension_numbers<[1], [0], [0], [1], [0, 0, 1, 1], [], []>} : vector<1x128xf32>, vector<128x10xf32>, vector<1x10xf32> -> vector<1x10xf32>
    %268 = arith.addf %263, %267 : vector<1x10xf32>
    %269 = vector.shape_cast %268 : vector<1x10xf32> to vector<1x1x10xf32>
    %c0_304 = arith.constant 0 : index
    %c0_305 = arith.constant 0 : index
    %c0_306 = arith.constant 0 : index
    %270 = vector.load %arg13[%c0_304, %c0_305, %c0_306] : memref<1x1x10xf32, #tpu.memory_space<vmem>>, vector<1x1x10xf32>
    tpu.vector_store %arg13[%c0_304, %c0_305, %c0_306], %269 {strides = array<i32>} : memref<1x1x10xf32, #tpu.memory_space<vmem>>, vector<1x1x10xf32>,
    return
  }
  func.func @transform_0(%arg0: i32) -> (i32, i32, i32) {
    %c0_i32 = arith.constant 0 : i32
    %c0_i32_0 = arith.constant 0 : i32
    %c0_i32_1 = arith.constant 0 : i32
    return %arg0, %c0_i32, %c0_i32_0 : i32, i32, i32
  }
  func.func @transform_1(%arg0: i32) -> (i32, i32, i32, i32) {
    %c0_i32 = arith.constant 0 : i32
    %c0_i32_0 = arith.constant 0 : i32
    %c0_i32_1 = arith.constant 0 : i32
    %c0_i32_2 = arith.constant 0 : i32
    %c0_i32_3 = arith.constant 0 : i32
    return %c0_i32, %c0_i32_0, %c0_i32_1, %c0_i32_2 : i32, i32, i32, i32
  }
  func.func @transform_2(%arg0: i32) -> (i32, i32, i32, i32) {
    %c0_i32 = arith.constant 0 : i32
    %c0_i32_0 = arith.constant 0 : i32
    %c0_i32_1 = arith.constant 0 : i32
    %c0_i32_2 = arith.constant 0 : i32
    %c0_i32_3 = arith.constant 0 : i32
    return %c0_i32, %c0_i32_0, %c0_i32_1, %c0_i32_2 : i32, i32, i32, i32
  }
  func.func @transform_3(%arg0: i32) -> (i32, i32) {
    %c0_i32 = arith.constant 0 : i32
    %c0_i32_0 = arith.constant 0 : i32
    %c0_i32_1 = arith.constant 0 : i32
    return %c0_i32, %c0_i32_0 : i32, i32
  }
  func.func @transform_4(%arg0: i32) -> (i32, i32, i32, i32) {
    %c0_i32 = arith.constant 0 : i32
    %c0_i32_0 = arith.constant 0 : i32
    %c0_i32_1 = arith.constant 0 : i32
    %c0_i32_2 = arith.constant 0 : i32
    %c0_i32_3 = arith.constant 0 : i32
    return %c0_i32, %c0_i32_0, %c0_i32_1, %c0_i32_2 : i32, i32, i32, i32
  }
  func.func @transform_5(%arg0: i32) -> (i32, i32, i32, i32) {
    %c0_i32 = arith.constant 0 : i32
    %c0_i32_0 = arith.constant 0 : i32
    %c0_i32_1 = arith.constant 0 : i32
    %c0_i32_2 = arith.constant 0 : i32
    %c0_i32_3 = arith.constant 0 : i32
    return %c0_i32, %c0_i32_0, %c0_i32_1, %c0_i32_2 : i32, i32, i32, i32
  }
  func.func @transform_6(%arg0: i32) -> (i32, i32) {
    %c0_i32 = arith.constant 0 : i32
    %c0_i32_0 = arith.constant 0 : i32
    %c0_i32_1 = arith.constant 0 : i32
    return %c0_i32, %c0_i32_0 : i32, i32
  }
  func.func @transform_7(%arg0: i32) -> (i32, i32, i32, i32) {
    %c0_i32 = arith.constant 0 : i32
    %c0_i32_0 = arith.constant 0 : i32
    %c0_i32_1 = arith.constant 0 : i32
    %c0_i32_2 = arith.constant 0 : i32
    %c0_i32_3 = arith.constant 0 : i32
    return %c0_i32, %c0_i32_0, %c0_i32_1, %c0_i32_2 : i32, i32, i32, i32
  }
  func.func @transform_8(%arg0: i32) -> (i32, i32, i32, i32) {
    %c0_i32 = arith.constant 0 : i32
    %c0_i32_0 = arith.constant 0 : i32
    %c0_i32_1 = arith.constant 0 : i32
    %c0_i32_2 = arith.constant 0 : i32
    %c0_i32_3 = arith.constant 0 : i32
    return %c0_i32, %c0_i32_0, %c0_i32_1, %c0_i32_2 : i32, i32, i32, i32
  }
  func.func @transform_9(%arg0: i32) -> (i32, i32) {
    %c0_i32 = arith.constant 0 : i32
    %c0_i32_0 = arith.constant 0 : i32
    %c0_i32_1 = arith.constant 0 : i32
    return %c0_i32, %c0_i32_0 : i32, i32
  }
  func.func @transform_10(%arg0: i32) -> (i32, i32, i32) {
    %c0_i32 = arith.constant 0 : i32
    %c0_i32_0 = arith.constant 0 : i32
    %c0_i32_1 = arith.constant 0 : i32
    %c0_i32_2 = arith.constant 0 : i32
    return %c0_i32, %c0_i32_0, %c0_i32_1 : i32, i32, i32
  }
  func.func @transform_11(%arg0: i32) -> (i32, i32) {
    %c0_i32 = arith.constant 0 : i32
    %c0_i32_0 = arith.constant 0 : i32
    %c0_i32_1 = arith.constant 0 : i32
    return %c0_i32, %c0_i32_0 : i32, i32
  }
  func.func @transform_12(%arg0: i32) -> (i32, i32, i32) {
    %c0_i32 = arith.constant 0 : i32
    %c0_i32_0 = arith.constant 0 : i32
    %c0_i32_1 = arith.constant 0 : i32
    return %arg0, %c0_i32, %c0_i32_0 : i32, i32, i32
  }
}

</mosaic_0001>

<bundles_post_ra>
// kernel: model3_forward.1
= control target key start
LH: loop header
LB: loop body
LE: loop exit
PB: predicated region body
PF: predicated region fallthrough
CT: control target
= control target key end

     0   :  { %s17456_s0 = inlined_call_operand.hbm [shape: f32[2,128,128], index: 0, kind: input, shape index: {}]   ;;  %s17457_s1 = inlined_call_operand.hbm [shape: f32[2,3,32,128], index: 1, kind: input, shape index: {}]   ;;  %s17458_s2 = inlined_call_operand.hbm [shape: f32[2,3,128,512], index: 2, kind: input, shape index: {}]   ;;  %s17459_s3 = inlined_call_operand.hbm [shape: f32[1,512], index: 3, kind: input, shape index: {}]   ;;  %s17460_s4 = inlined_call_operand.hbm [shape: f32[2,3,8,32], index: 4, kind: input, shape index: {}]   ;;  %s17461_s5 = inlined_call_operand.hbm [shape: f32[2,3,512,128], index: 5, kind: input, shape index: {}]   ;;  %s17462_s6 = inlined_call_operand.hbm [shape: f32[1,128], index: 6, kind: input, shape index: {}]   ;;  %s17463_s7 = inlined_call_operand.hbm [shape: f32[2,3,4,8], index: 7, kind: input, shape index: {}]   ;;  %s17464_s8 = inlined_call_operand.hbm [shape: f32[2,3,128,128], index: 8, kind: input, shape index: {}]   ;;  %s17465_s9 = inlined_call_operand.hbm [shape: f32[1,128], index: 9, kind: input, shape index: {}]   ;;  %s17466_s10 = inlined_call_operand.vmem [shape: f32[4,128,10], index: 10, kind: input, shape index: {}]   ;;  %s17467_s11 = inlined_call_operand.hbm [shape: f32[1,10], index: 11, kind: input, shape index: {}]   ;;  %s17468_s12 = inlined_call_operand.hbm [shape: f32[2,1,10], index: 12, kind: output, shape index: {}]  }
   0x1   :  { %17782 = sst [smem:[#allocation180_spill]] %s17456_s0 }
   0x2   :  { %17783 = sst [smem:[#allocation181_spill]] %s17457_s1 }
   0x3   :  { %17784 = sst [smem:[#allocation182_spill]] %s17458_s2 }
   0x4   :  { %17785 = sst [smem:[#allocation183_spill]] %s17459_s3 }
   0x5   :  { %17786 = sst [smem:[#allocation184_spill]] %s17466_s10 }
   0x6   :  { %17787 = sst [smem:[#allocation185_spill]] %s17468_s12 }
   0x7   :  { %17 = vsyncpa [#allocation3], 0 }
   0x8   :  { %19 = vsyncpa [#allocation3 + $0x1], 0 }
   0x9   :  { %20 = vsyncpa [#allocation6], 0 }
   0xa   :  { %21 = vsyncpa [#allocation9], 0 }
   0xb   :  { %22 = vsyncpa [#allocation12], 0 }
   0xc   :  { %23 = vsyncpa [#allocation15], 0 }
   0xd   :  { %24 = vsyncpa [#allocation18], 0 }
   0xe   :  { %25 = vsyncpa [#allocation4], 0 }
   0xf   :  { %27 = vsyncpa [#allocation4 + $0x1], 0  ;;  %s14132_s21 = smov 0   ;;  %s14134_s22 = smov 0  }
  0x10   :  { %s14136_s23 = smov 0   ;;  %s14138_s24 = smov 0  }
  0x11 LB: > { %s14046_s25 = smov [#allocation5]   ;;  %s14153_s27 = sadd.s32 4294967295, %s14044_s24   ;;  %s14044_s24 = sphi %s14138_s24, %s18425_s24   ;;  %s14040_s23 = sphi %s14136_s23, %s18424_s23   ;;  %s14036_s22 = sphi %s14134_s22, %s18423_s22   ;;  %s14032_s21 = sphi %s14132_s21, %s18422_s21  }
  0x12   : > { %s333_s26 = sshll.u32 %s14046_s25, 4  ;;  %p8904_p0 = scmp.ge.s32.totalorder %s14044_s24, 1  ;;  %s14158_s26 = int_to_ptr.vmem [resolvable:$true] %s333_s26 }
  0x13   : > { %p17473_p1 = scmp.eq.s32.totalorder %s14153_s27, 0  ;;  %p321_p2 = scmp.lt.s32.totalorder %s14044_s24, 3 }
  0x14   : > { %s14047_s29 = smov [#allocation8]   ;;  %s14048_s14 = smov [#allocation11]  }
  0x15   : > { %p14160_p3 = pnand %p8904_p0, %p321_p2  ;;  %s360_s30 = sshll.u32 %s14047_s29, 4  ;;  %s14173_s30 = int_to_ptr.vmem [resolvable:$true] %s360_s30 }
  0x16   : > { %s383_s15 = sshll.u32 %s14048_s14, 4  ;;  %s17791_s1 = sld [smem:[#allocation181_spill]]  ;;  %s14175_s15 = int_to_ptr.vmem [resolvable:$true] %s383_s15 }
  0x17   : > { %s17788_s28 = scalar_select %p14160_p3, 1, 0 }
  0x18   : > { %p13536_p5 = pneg %p14160_p3 }
  0x19   : > { %17789 = sst [smem:[#allocation28_spill]] %s17788_s28 }
  0x1a   : > { %p14169_p6 = pnand %p13536_p5, %p17473_p1 }
  0x1c   : > { %s13648_s18 = scalar_lea.hbm %s17791_s1, 3072  ;;  %p14185_p8 = pneg %p14169_p6 }
  0x1d   : > { %p13649_p7 = scmp.ne.s32.totalorder %s17791_s1, %s13648_s18  ;;  %p13655_p11 = scmp.lt.u32.totalorder %s13648_s18, %s17791_s1 }
  0x1f   : > { %p13651_p9 = pnand %p14185_p8, %p13649_p7 }
  0x21   : > { %p13652_p10 = pneg %p13651_p9 }
  0x23   : > { %p13657_p12 = pnand %p13655_p11, %p13652_p10 }
  0x25   : > { %13660 = shalt.err (!%p13657_p12)
}
  0x26   : > { %s13661_s16 = scalar_lea.vmem %s14158_s26, 3072  ;;  %p13669_p5 = scmp.lt.s32.totalorder %s14158_s26, %s14158_s26 }
  0x27   : > { %p13662_p13 = scmp.ne.s32.totalorder %s14158_s26, %s13661_s16  ;;  %p13670_p4 = scmp.lt.s32.totalorder %s13661_s16, %s13661_s16 }
  0x29   : > { %p13664_p0 = pnand %p13662_p13, %p14185_p8  ;;  %p13671_p7 = por %p13670_p4, %p13669_p5 }
  0x2b   : > { %p13665_p2 = pneg %p13664_p0 }
  0x2d   : > { %p13672_p9 = pnand %p13671_p7, %p13665_p2 }
  0x2f   : > { %13675 = shalt.err (!%p13672_p9)
}
  0x30   : > { %s17475_s17 = smov 128   ;;  %s17477_s18 = smov 8  }
  0x31   : > { %13539 = dma.hbm_to_vmem [thread:$0]  (!%p14169_p6), %s17791_s1, 3072, %s14158_s26, [#allocation6], %s17475_s17, %s17475_s17, %s17477_s18  }
  0x32   : > { %s17793_s3 = sld [smem:[#allocation183_spill]] }
  0x38   : > { %s13676_s16 = scalar_lea.hbm %s17793_s3, 64 }
  0x39   : > { %p13677_p4 = scmp.ne.s32.totalorder %s17793_s3, %s13676_s16  ;;  %p13683_p12 = scmp.lt.u32.totalorder %s13676_s16, %s17793_s3 }
  0x3b   : > { %p13679_p10 = pnand %p13677_p4, %p14185_p8 }
  0x3d   : > { %p13680_p11 = pneg %p13679_p10 }
  0x3f   : > { %p13685_p13 = pnand %p13683_p12, %p13680_p11 }
  0x41   : > { %13688 = shalt.err (!%p13685_p13)
}
  0x42   : > { %s13689_s26 = scalar_lea.vmem %s14173_s30, 64  ;;  %p13697_p7 = scmp.lt.s32.totalorder %s14173_s30, %s14173_s30 }
  0x43   : > { %p13690_p0 = scmp.ne.s32.totalorder %s14173_s30, %s13689_s26  ;;  %p13698_p9 = scmp.lt.s32.totalorder %s13689_s26, %s13689_s26 }
  0x45   : > { %p13692_p2 = pnand %p13690_p0, %p14185_p8  ;;  %p13699_p4 = por %p13698_p9, %p13697_p7 }
  0x47   : > { %p13693_p5 = pneg %p13692_p2 }
  0x49   : > { %p13700_p10 = pnand %p13699_p4, %p13693_p5 }
  0x4b   : > { %13703 = shalt.err (!%p13700_p10)
}
  0x4c   : > { %13545 = dma.hbm_to_vmem [thread:$0]  (!%p14169_p6), %s17793_s3, 64, %s14173_s30, [#allocation9]  }
  0x4d   : > { %s13704_s19 = scalar_lea.hbm %s17461_s5, 49152 }
  0x4e   : > { %p13705_p11 = scmp.ne.s32.totalorder %s17461_s5, %s13704_s19  ;;  %p13711_p0 = scmp.lt.u32.totalorder %s13704_s19, %s17461_s5 }
  0x50   : > { %p13707_p12 = pnand %p13705_p11, %p14185_p8 }
  0x52   : > { %p13708_p13 = pneg %p13707_p12 }
  0x54   : > { %p13713_p2 = pnand %p13711_p0, %p13708_p13 }
  0x56   : > { %13716 = shalt.err (!%p13713_p2)
}
  0x57   : > { %s13717_s30 = scalar_lea.vmem %s14175_s15, 49152  ;;  %p13725_p4 = scmp.lt.s32.totalorder %s14175_s15, %s14175_s15 }
  0x58   : > { %p13718_p5 = scmp.ne.s32.totalorder %s14175_s15, %s13717_s30  ;;  %p13726_p10 = scmp.lt.s32.totalorder %s13717_s30, %s13717_s30 }
  0x5a   : > { %p13720_p7 = pnand %p13718_p5, %p14185_p8  ;;  %p13727_p11 = por %p13726_p10, %p13725_p4 }
  0x5c   : > { %p13721_p9 = pneg %p13720_p7 }
  0x5e   : > { %p13728_p12 = pnand %p13727_p11, %p13721_p9 }
  0x60   : > { %13731 = shalt.err (!%p13728_p12)
}
  0x61   : > { %13551 = dma.hbm_to_vmem [thread:$0]  (!%p14169_p6), %s17461_s5, 49152, %s14175_s15, [#allocation12], %s17475_s17, %s17475_s17, %s17477_s18  }
  0x62   : > { %s14051_s10 = smov [#allocation14]   ;;  %s13732_s20 = scalar_lea.hbm %s17463_s7, 384 }
  0x63   : > { %s407_s12 = sshll.u32 %s14051_s10, 4  ;;  %p13733_p13 = scmp.ne.s32.totalorder %s17463_s7, %s13732_s20  ;;  %s408_s12 = int_to_ptr.vmem [resolvable:$true] %s407_s12 }
  0x64   : > { %p13739_p5 = scmp.lt.u32.totalorder %s13732_s20, %s17463_s7 }
  0x65   : > { %p13735_p0 = pnand %p13733_p13, %p14185_p8 }
  0x67   : > { %p13736_p2 = pneg %p13735_p0 }
  0x69   : > { %p13741_p7 = pnand %p13739_p5, %p13736_p2 }
  0x6b   : > { %13744 = shalt.err (!%p13741_p7)
}
  0x6c   : > { %s13745_s15 = scalar_lea.vmem %s408_s12, 384  ;;  %p13753_p11 = scmp.lt.s32.totalorder %s408_s12, %s408_s12 }
  0x6d   : > { %p13746_p9 = scmp.ne.s32.totalorder %s408_s12, %s13745_s15  ;;  %p13754_p12 = scmp.lt.s32.totalorder %s13745_s15, %s13745_s15 }
  0x6f   : > { %p13748_p4 = pnand %p13746_p9, %p14185_p8  ;;  %p13755_p1 = por %p13754_p12, %p13753_p11 }
  0x71   : > { %p13749_p10 = pneg %p13748_p4 }
  0x73   : > { %p13756_p3 = pnand %p13755_p1, %p13749_p10 }
  0x75   : > { %13759 = shalt.err (!%p13756_p3)
}
  0x76   : > { %s14052_s26 = smov 64   ;;  %s14053_s0 = smov 4  }
  0x77   : > { %13557 = dma.hbm_to_vmem [thread:$0]  (!%p14169_p6), %s17463_s7, 384, %s408_s12, [#allocation15], %s14052_s26, %s14052_s26, %s14053_s0  }
  0x78   : > { %s14054_s19 = smov [#allocation17]   ;;  %s14055_s29 = smov [#allocation7]  }
  0x79   : > { %s434_s20 = sshll.u32 %s14054_s19, 4  ;;  %s346_s14 = sshll.u32 %s14055_s29, 4  ;;  %s435_s20 = int_to_ptr.vmem [resolvable:$true] %s434_s20  ;;  %s14276_s14 = int_to_ptr.vmem [resolvable:$true] %s346_s14 }
  0x7a   : > { %s13760_s15 = scalar_lea.hbm %s17465_s9, 16 }
  0x7b   : > { %p13761_p1 = scmp.ne.s32.totalorder %s17465_s9, %s13760_s15  ;;  %p13767_p0 = scmp.lt.u32.totalorder %s13760_s15, %s17465_s9 }
  0x7d   : > { %p13763_p3 = pnand %p13761_p1, %p14185_p8 }
  0x7f   : > { %p13764_p13 = pneg %p13763_p3 }
  0x81   : > { %p13769_p2 = pnand %p13767_p0, %p13764_p13 }
  0x83   : > { %13772 = shalt.err (!%p13769_p2)
}
  0x84   : > { %s13773_s26 = scalar_lea.vmem %s435_s20, 16  ;;  %s13780_s0 = scalar_lea.vmem %s435_s20, 32 }
  0x85   : > { %p13774_p5 = scmp.ne.s32.totalorder %s435_s20, %s13773_s26  ;;  %p13781_p4 = scmp.lt.s32.totalorder %s435_s20, %s435_s20 }
  0x86   : > { %p13782_p10 = scmp.lt.s32.totalorder %s13780_s0, %s13773_s26 }
  0x87   : > { %p13776_p7 = pnand %p13774_p5, %p14185_p8 }
  0x88   : > { %p13783_p11 = por %p13782_p10, %p13781_p4 }
  0x89   : > { %p13777_p9 = pneg %p13776_p7 }
  0x8b   : > { %p13784_p12 = pnand %p13783_p11, %p13777_p9 }
  0x8d   : > { %13787 = shalt.err (!%p13784_p12)
}
  0x8e   : > { %13563 = dma.hbm_to_vmem [thread:$0]  (!%p14169_p6), %s17465_s9, 16, %s435_s20, [#allocation18]  }
  0x8f   : > { %s17794_s2 = sld [smem:[#allocation182_spill]] }
  0x95   : > { %s13788_s29 = scalar_lea.hbm %s17794_s2, 49152 }
  0x96   : > { %p13789_p1 = scmp.ne.s32.totalorder %s17794_s2, %s13788_s29  ;;  %p13795_p0 = scmp.lt.u32.totalorder %s13788_s29, %s17794_s2 }
  0x98   : > { %p13791_p3 = pnand %p13789_p1, %p14185_p8 }
  0x9a   : > { %p13792_p13 = pneg %p13791_p3 }
  0x9c   : > { %p13797_p2 = pnand %p13795_p0, %p13792_p13 }
  0x9e   : > { %13800 = shalt.err (!%p13797_p2)
}
  0x9f   : > { %s13801_s20 = scalar_lea.vmem %s14276_s14, 49152  ;;  %p13809_p4 = scmp.lt.s32.totalorder %s14276_s14, %s14276_s14 }
  0xa0   : > { %p13802_p5 = scmp.ne.s32.totalorder %s14276_s14, %s13801_s20  ;;  %p13810_p10 = scmp.lt.s32.totalorder %s13801_s20, %s13801_s20 }
  0xa2   : > { %p13804_p7 = pnand %p13802_p5, %p14185_p8  ;;  %p13811_p11 = por %p13810_p10, %p13809_p4 }
  0xa4   : > { %p13805_p9 = pneg %p13804_p7 }
  0xa6   : > { %p13812_p12 = pnand %p13811_p11, %p13805_p9 }
  0xa8   : > { %13815 = shalt.err (!%p13812_p12)
}
  0xa9   : > { %s14056_s12 = smov 512   ;;  %s14057_s26 = smov 32  }
  0xaa   : > { %13542 = dma.hbm_to_vmem [thread:$0]  (!%p14169_p6), %s17794_s2, 49152, %s14276_s14, [#allocation6], %s14056_s12, %s14056_s12, %s14057_s26  }
  0xab   : > { %s14058_s18 = smov [#allocation10]   ;;  %s14059_s19 = smov [#allocation13]  }
  0xac   : > { %s370_s28 = sshll.u32 %s14058_s18, 4  ;;  %s397_s29 = sshll.u32 %s14059_s19, 4  ;;  %s371_s28 = int_to_ptr.vmem [resolvable:$true] %s370_s28  ;;  %s14319_s29 = int_to_ptr.vmem [resolvable:$true] %s397_s29 }
  0xad   : > { %s13816_s15 = scalar_lea.hbm %s17460_s4, 768 }
  0xae   : > { %p13817_p1 = scmp.ne.s32.totalorder %s17460_s4, %s13816_s15  ;;  %p13823_p0 = scmp.lt.u32.totalorder %s13816_s15, %s17460_s4 }
  0xb0   : > { %p13819_p3 = pnand %p13817_p1, %p14185_p8 }
  0xb2   : > { %p13820_p13 = pneg %p13819_p3 }
  0xb4   : > { %p13825_p2 = pnand %p13823_p0, %p13820_p13 }
  0xb6   : > { %13828 = shalt.err (!%p13825_p2)
}
  0xb7   : > { %s13829_s12 = scalar_lea.vmem %s371_s28, 768  ;;  %p13837_p4 = scmp.lt.s32.totalorder %s371_s28, %s371_s28 }
  0xb8   : > { %p13830_p5 = scmp.ne.s32.totalorder %s371_s28, %s13829_s12  ;;  %p13838_p10 = scmp.lt.s32.totalorder %s13829_s12, %s13829_s12 }
  0xba   : > { %p13832_p7 = pnand %p13830_p5, %p14185_p8  ;;  %p13839_p11 = por %p13838_p10, %p13837_p4 }
  0xbc   : > { %p13833_p9 = pneg %p13832_p7 }
  0xbe   : > { %p13840_p12 = pnand %p13839_p11, %p13833_p9 }
  0xc0   : > { %13843 = shalt.err (!%p13840_p12)
}
  0xc1   : > { %s17795_s26 = smov 8   ;;  %s17796_s17 = smov 128  }
  0xc2   : > { %13548 = dma.hbm_to_vmem [thread:$0]  (!%p14169_p6), %s17460_s4, 768, %s371_s28, [#allocation9], %s17796_s17, %s17796_s17, %s17795_s26  }
  0xc3   : > { %s13844_s15 = scalar_lea.hbm %s17462_s6, 16 }
  0xc4   : > { %p13845_p1 = scmp.ne.s32.totalorder %s17462_s6, %s13844_s15  ;;  %p13851_p0 = scmp.lt.u32.totalorder %s13844_s15, %s17462_s6 }
  0xc6   : > { %p13847_p3 = pnand %p13845_p1, %p14185_p8 }
  0xc8   : > { %p13848_p13 = pneg %p13847_p3 }
  0xca   : > { %p13853_p2 = pnand %p13851_p0, %p13848_p13 }
  0xcc   : > { %13856 = shalt.err (!%p13853_p2)
}
  0xcd   : > { %s13857_s28 = scalar_lea.vmem %s14319_s29, 16  ;;  %s13864_s12 = scalar_lea.vmem %s14319_s29, 32 }
  0xce   : > { %p13858_p5 = scmp.ne.s32.totalorder %s14319_s29, %s13857_s28  ;;  %p13865_p4 = scmp.lt.s32.totalorder %s14319_s29, %s14319_s29 }
  0xcf   : > { %p13866_p10 = scmp.lt.s32.totalorder %s13864_s12, %s13857_s28 }
  0xd0   : > { %p13860_p7 = pnand %p13858_p5, %p14185_p8 }
  0xd1   : > { %p13867_p11 = por %p13866_p10, %p13865_p4 }
  0xd2   : > { %p13861_p9 = pneg %p13860_p7 }
  0xd4   : > { %p13868_p12 = pnand %p13867_p11, %p13861_p9 }
  0xd6   : > { %13871 = shalt.err (!%p13868_p12)
}
  0xd7   : > { %13554 = dma.hbm_to_vmem [thread:$0]  (!%p14169_p6), %s17462_s6, 16, %s14319_s29, [#allocation12]  }
  0xd8   : > { %s14060_s16 = smov [#allocation16]   ;;  %s14061_s15 = smov [#allocation19]  }
  0xd9   : > { %s420_s30 = sshll.u32 %s14060_s16, 4  ;;  %s448_s10 = sshll.u32 %s14061_s15, 4  ;;  %s421_s30 = int_to_ptr.vmem [resolvable:$true] %s420_s30  ;;  %s14366_s10 = int_to_ptr.vmem [resolvable:$true] %s448_s10 }
  0xda   : > { %s13872_s14 = scalar_lea.hbm %s17464_s8, 12288 }
  0xdb   : > { %p13873_p1 = scmp.ne.s32.totalorder %s17464_s8, %s13872_s14  ;;  %p13879_p0 = scmp.lt.u32.totalorder %s13872_s14, %s17464_s8 }
  0xdd   : > { %p13875_p3 = pnand %p13873_p1, %p14185_p8 }
  0xdf   : > { %p13876_p13 = pneg %p13875_p3 }
  0xe1   : > { %p13881_p2 = pnand %p13879_p0, %p13876_p13 }
  0xe3   : > { %13884 = shalt.err (!%p13881_p2)
}
  0xe4   : > { %s13885_s19 = scalar_lea.vmem %s421_s30, 12288  ;;  %p13893_p4 = scmp.lt.s32.totalorder %s421_s30, %s421_s30 }
  0xe5   : > { %p13886_p5 = scmp.ne.s32.totalorder %s421_s30, %s13885_s19  ;;  %p13894_p10 = scmp.lt.s32.totalorder %s13885_s19, %s13885_s19 }
  0xe7   : > { %p13888_p7 = pnand %p13886_p5, %p14185_p8  ;;  %p13895_p11 = por %p13894_p10, %p13893_p4 }
  0xe9   : > { %p13889_p9 = pneg %p13888_p7 }
  0xeb   : > { %p13896_p12 = pnand %p13895_p11, %p13889_p9 }
  0xed   : > { %13899 = shalt.err (!%p13896_p12)
}
  0xee   : > { %13560 = dma.hbm_to_vmem [thread:$0]  (!%p14169_p6), %s17464_s8, 12288, %s421_s30, [#allocation15], %s17796_s17, %s17796_s17, %s17795_s26  }
  0xef   : > { %s13900_s14 = scalar_lea.hbm %s17467_s11, 16 }
  0xf0   : > { %p13901_p1 = scmp.ne.s32.totalorder %s17467_s11, %s13900_s14  ;;  %p13907_p0 = scmp.lt.u32.totalorder %s13900_s14, %s17467_s11 }
  0xf2   : > { %p13903_p3 = pnand %p13901_p1, %p14185_p8 }
  0xf4   : > { %p13904_p13 = pneg %p13903_p3 }
  0xf6   : > { %p13909_p2 = pnand %p13907_p0, %p13904_p13 }
  0xf8   : > { %13912 = shalt.err (!%p13909_p2)
}
  0xf9   : > { %s13913_s30 = scalar_lea.vmem %s14366_s10, 16  ;;  %s13920_s19 = scalar_lea.vmem %s14366_s10, 32 }
  0xfa   : > { %p13914_p5 = scmp.ne.s32.totalorder %s14366_s10, %s13913_s30  ;;  %p13921_p4 = scmp.lt.s32.totalorder %s14366_s10, %s14366_s10 }
  0xfb   : > { %p13922_p10 = scmp.lt.s32.totalorder %s13920_s19, %s13913_s30 }
  0xfc   : > { %p13916_p7 = pnand %p13914_p5, %p14185_p8 }
  0xfd   : > { %p13923_p11 = por %p13922_p10, %p13921_p4 }
  0xfe   : > { %p13917_p9 = pneg %p13916_p7 }
 0x100   : > { %p13924_p12 = pnand %p13923_p11, %p13917_p9 }
 0x102   : > { %13927 = shalt.err (!%p13924_p12)
}
 0x103   : > { %13566 = dma.hbm_to_vmem [thread:$0]  (!%p14169_p6), %s17467_s11, 16, %s14366_s10, [#allocation18]  }
 0x104   : > { %s8903_s13 = sadd.s32 4294967294, %s14044_s24   ;;  %s14415_s25 = sadd.s32 1, %s14044_s24  }
 0x105   : > { %s37_s20 = ssub.s32 %s14044_s24, %s14415_s25  ;;  %s40_s0 = sadd.s32 1, %s14040_s23 }
 0x106   : > { %p38_p8 = scmp.eq.s32.totalorder %s37_s20, 0  ;;  %p47_p1 = scmp.ne.s32.totalorder %s14040_s23, %s14036_s22 }
 0x107   : > { %p48_p3 = scmp.eq.s32.totalorder %s14044_s24, 0  ;;  %p53_p13 = scmp.ne.s32.totalorder %s14036_s22, %s14032_s21 }
 0x108   : > { %s14426_s14 = scalar_select %p38_p8, %s14040_s23, %s40_s0  }
 0x109   : > { %p14428_p0 = por %p48_p3, %p47_p1  ;;  %p17798_p2 = scmp.eq.s32.totalorder %s14153_s27, 0 }
 0x10a   : > { %p308_p5 = scmp.eq.s32.totalorder %s14153_s27, 1  ;;  %p314_p7 = scmp.eq.s32.totalorder %s8903_s13, 1 }
 0x10b   : > { %p14434_p6 = por %p17798_p2, %p53_p13  ;;  %p13585_p9 = scmp.lt.s32.totalorder %s14044_s24, 2 }
 0x10c   : > { %s459_s12 = sand.u32 1, %s14040_s23   ;;  %p14441_p4 = por %p308_p5, %p47_p1 }
 0x10d   : > { %p14445_p10 = por %p314_p7, %p53_p13  ;;  %s8916_s30 = sshll.u32 %s459_s12, 7 }
 0x10e   : > { %s17800_s18 = scalar_select %p14441_p4, 1, 0 }
 0x10f   : > { %s17801_s29 = scalar_select %p14445_p10, 1, 0 }
 0x110   : > { %s9002_s19 = sshll.u32 %s14044_s24, 11  ;;  %s17802_s20 = sld [smem:[#allocation180_spill]] }
 0x111   : > { %s463_s13 = scalar_lea.vmem [#allocation2], %s8916_s30  ;;  %p14459_p11 = pnand %p13585_p9, %p14428_p0 }
 0x112   : > { %s470_s1 = sshll.u32 %s463_s13, 4  ;;  %s14463_s3 = scalar_lea.sflag [#allocation3], %s459_s12  ;;  %s14455_s1 = int_to_ptr.vmem [resolvable:$true] %s470_s1 }
 0x113   : > { %p13930_p8 = pneg %p14459_p11 }
 0x116   : > { %s14453_s0 = scalar_lea.hbm %s17802_s20, %s9002_s19  ;;  %s13933_s28 = scalar_lea.hbm %s17802_s20, 4096 }
 0x117   : > { %s13928_s16 = scalar_lea.hbm %s14453_s0, 2048  ;;  %p13934_p13 = scmp.lt.u32.totalorder %s14453_s0, %s17802_s20 }
 0x118   : > { %p13929_p12 = scmp.ne.s32.totalorder %s14453_s0, %s13928_s16  ;;  %p13935_p0 = scmp.lt.u32.totalorder %s13933_s28, %s13928_s16 }
 0x119   : > { %p13937_p5 = scmp.lt.u32.totalorder %s13928_s16, %s14453_s0 }
 0x11a   : > { %p13931_p1 = pnand %p13930_p8, %p13929_p12  ;;  %p13936_p2 = por %p13935_p0, %p13934_p13 }
 0x11c   : > { %p13932_p3 = pneg %p13931_p1  ;;  %p13938_p7 = por %p13937_p5, %p13936_p2 }
 0x11e   : > { %p13939_p9 = pnand %p13938_p7, %p13932_p3 }
 0x120   : > { %13942 = shalt.err (!%p13939_p9)
}
 0x121   : > { %s13943_s12 = scalar_lea.vmem %s14455_s1, 2048  ;;  %s14062_s30 = smov [#allocation2]  }
 0x122   : > { %p13944_p12 = scmp.ne.s32.totalorder %s14455_s1, %s13943_s12  ;;  %s13948_s19 = sshll.u32 %s14062_s30, 4  ;;  %s13949_s19 = int_to_ptr.vmem [resolvable:$false] %s13948_s19 }
 0x123   : > { %s13950_s15 = scalar_lea.vmem %s13949_s19, 4096  ;;  %p13951_p4 = scmp.lt.s32.totalorder %s14455_s1, %s13949_s19 }
 0x124   : > { %p13946_p1 = pnand %p13944_p12, %p13930_p8  ;;  %p13952_p13 = scmp.lt.s32.totalorder %s13950_s15, %s13943_s12 }
 0x126   : > { %p13947_p10 = pneg %p13946_p1  ;;  %p13953_p0 = por %p13952_p13, %p13951_p4 }
 0x128   : > { %p13954_p2 = pnand %p13953_p0, %p13947_p10 }
 0x12a   : > { %13957 = shalt.err (!%p13954_p2)
}
 0x12b   : > { %13570 = dma.hbm_to_vmem [thread:$0]  (!%p14459_p11), %s14453_s0, 2048, %s14455_s1, %s14463_s3, %s17796_s17, %s17796_s17, %s17795_s26  }
 0x12c   : > { %s17804_s16 = sld [smem:[#allocation28_spill]] }
 0x132   : > { %p17805_p8 = scmp.ne.s32.totalorder %s17804_s16, 0 }
 0x134   : > { %482 = sbr.rel (%p17805_p8) target bundleno = 3466 (0xd8a), region = 68 }
 0x13b   : > { %s14497_s28 = sand.u32 1, %s14036_s22  }
 0x13c   : > { %s8920_s13 = sshll.u32 %s14497_s28, 7  ;;  %s485_s12 = scalar_lea.sflag [#allocation3], %s14497_s28 }
 0x13d   : > { %s14501_s30 = scalar_lea.vmem [#allocation2], %s8920_s13 }
 0x13e   : > { %14003 = dma.done.wait (%p14434_p6), %s485_s12, 2048  }
 0x13f   : > { %14005 = vsyncadd (%p14434_p6), %s485_s12, 4294965248  ;;  %p17806_p4 = scmp.eq.s32.totalorder %s14153_s27, 0 }
 0x141   : > { %14007 = dma.done.wait (%p17806_p4), [#allocation6], 52224   ;;  %p17807_p10 = pmov %p17806_p4 }
 0x142   : > { %p17808_p11 = pmov %p17806_p4 }
 0x143   : > { %14009 = vsyncadd (%p17807_p10), [#allocation6], 4294915072 }
 0x144   : > { %14011 = dma.done.wait (%p17808_p11), [#allocation9], 832   ;;  %p17809_p3 = pmov %p17806_p4 }
 0x146   : > { %14013 = vsyncadd (%p17809_p3), [#allocation9], 4294966464  ;;  %p17810_p5 = pmov %p17809_p3 }
 0x147   : > { %p17811_p7 = pmov %p17809_p3 }
 0x148   : > { %14015 = dma.done.wait (%p17810_p5), [#allocation12], 49168  }
 0x149   : > { %14017 = vsyncadd (%p17811_p7), [#allocation12], 4294918128  ;;  %p17812_p6 = pmov %p17809_p3 }
 0x14a   : > { %p17813_p9 = pmov %p17809_p3 }
 0x14b   : > { %14019 = dma.done.wait (%p17812_p6), [#allocation15], 12672  }
 0x14c   : > { %14021 = vsyncadd (%p17813_p9), [#allocation15], 4294954624  ;;  %p17814_p12 = pmov %p17809_p3 }
 0x14d   : > { %p17815_p1 = pmov %p17809_p3 }
 0x14e   : > { %14023 = dma.done.wait (%p17814_p12), [#allocation18], 32  }
 0x14f   : > { %14025 = vsyncadd (%p17815_p1), [#allocation18], 4294967264  ;;  %v568_v0 = vld [vmem:[%s14501_s30] sm:$0xff]  ;;  %v569_v1 = vld [vmem:[%s14501_s30 + $0x8] sm:$0xff]  ;;  %vm3976_vm0 = vcmask 261120   ;;  %vm14064_vm1 = vmmov 0  }
 0x150   : > { %v570_v2 = vld [vmem:[%s14501_s30 + $0x10] sm:$0xff]  ;;  %v14530_v3 = vpack.c.bf16 %v569_v1, %v568_v0  ;;  %v571_v4 = vld [vmem:[%s14501_s30 + $0x18] sm:$0xff]  ;;  %v572_v6 = vld [vmem:[%s14501_s30 + $0x20] sm:$0xff]  ;;  %vm6953_vm2 = vcmask 64512   ;;  %s18417_s3 = sld [smem:[#allocation184_spill]]  ;;  %s8999_s16 = sshll.u32 %s14153_s27, 4 }
 0x151   : > { %v14533_v5 = vpack.c.bf16 %v571_v4, %v570_v2  ;;  %v573_v7 = vld [vmem:[%s14501_s30 + $0x28] sm:$0xff]  ;;  %v585_v9 = vld [vmem:[#allocation5] sm:$0xff]  ;;  %v574_v10 = vld [vmem:[%s14501_s30 + $0x30] sm:$0xff]  ;;  %s567_s13 = scalar_lea.vmem [#allocation20], %s14497_s28  ;;  %vm8727_vm3 = vcmask 73728   ;;  %s18418_s2 = sld [smem:[#allocation185_spill]] }
 0x152   : > { %11066 = vmatprep.subr.bf16.mxu1 %v14530_v3  ;;  %v14540_v8 = vpack.c.bf16 %v573_v7, %v572_v6  ;;  %v575_v11 = vld [vmem:[%s14501_s30 + $0x38] sm:$0xff]  ;;  %10279 = vmatprep.mubr.f32.mxu1 %v585_v9  ;;  %v576_v13 = vld [vmem:[%s14501_s30 + $0x40] sm:$0xff]  ;;  %v577_v14 = vld [vmem:[%s14501_s30 + $0x48] sm:$0xff]  ;;  %s8742_s12 = sshll.u32 %s567_s13, 4  ;;  %s8730_s17 = scalar_lea.sflag [#allocation4], %s14497_s28  ;;  %s17414_s12 = int_to_ptr.vmem [resolvable:$true] %s8742_s12 }
 0x153   : > { %11068 = vmatpush3.bf16.msra.mxu1 %v14530_v3  ;;  %v14546_v12 = vpack.c.bf16 %v575_v11, %v574_v10  ;;  %v857_v15 = vld [vmem:[#allocation7 + $0x18] sm:$0xff]  ;;  %v856_v18 = vld [vmem:[#allocation7 + $0x10] sm:$0xff]  ;;  %v14556_v22 = vpack.c.bf16 %v577_v14, %v576_v13  ;;  %v580_v35 = vld [vmem:[%s14501_s30 + $0x60] sm:$0xff]  ;;  %s13958_s10 = scalar_lea.vmem %s17414_s12, 16  ;;  %p18419_p0 = scmp.ne.s32.totalorder %s17800_s18, 0 }
 0x154   : > { %11070 = vmatprep.subr.bf16.mxu1 %v14533_v5  ;;  %v861_v16 = vld [vmem:[#allocation7 + $0x38] sm:$0xff]  ;;  %v860_v19 = vld [vmem:[#allocation7 + $0x30] sm:$0xff]  ;;  %v581_v37 = vld [vmem:[%s14501_s30 + $0x68] sm:$0xff]  ;;  %p13959_p13 = scmp.ne.s32.totalorder %s17414_s12, %s13958_s10  ;;  %s14066_s27 = smov [#allocation20]  }
 0x155   : > { %v14550_v17 = vpack.c.bf16 %v861_v16, %v857_v15  ;;  %v14553_v20 = vpack.c.bf16 %v860_v19, %v856_v18  ;;  %v865_v21 = vld [vmem:[#allocation7 + $0x58] sm:$0xff]  ;;  %v578_v23 = vld [vmem:[%s14501_s30 + $0x50] sm:$0xff]  ;;  %v14583_v45 = vpack.c.bf16 %v581_v37, %v580_v35  ;;  %v586_v2 = vld [vmem:[#allocation5 + $0x8] sm:$0xff]  ;;  %s13962_s0 = sshll.u32 %s14066_s27, 4  ;;  %s13963_s0 = int_to_ptr.vmem [resolvable:$false] %s13962_s0 }
 0x156   : > { %v869_v24 = vld [vmem:[#allocation7 + $0x78] sm:$0xff]  ;;  %v864_v27 = vld [vmem:[#allocation7 + $0x50] sm:$0xff]  ;;  %v675_v15 = vld [vmem:[#allocation5 + $0x20] sm:$0xff]  ;;  %p13960_p2 = pnand %p13959_p13, %p18419_p0  ;;  %s13964_s19 = scalar_lea.vmem %s13963_s0, 32 }
 0x157   : > { %11072 = vmatpush3.bf16.msra.mxu1 %v14533_v5  ;;  %11194 = vmatprep.subr.bf16.mxu0 %v14550_v17  ;;  %v579_v25 = vld [vmem:[%s14501_s30 + $0x58] sm:$0xff]  ;;  %v14562_v26 = vpack.c.bf16 %v869_v24, %v865_v21  ;;  %v868_v28 = vld [vmem:[#allocation7 + $0x70] sm:$0xff]  ;;  %v676_v18 = vld [vmem:[#allocation5 + $0x28] sm:$0xff]  ;;  %s17412_s26 = scalar_lea.hbm %s18418_s2, %s8999_s16  ;;  %p13965_p4 = scmp.lt.s32.totalorder %s17414_s12, %s13963_s0 }
 0x158   : > { %11074 = vmatprep.subr.bf16.mxu1 %v14540_v8  ;;  %11196 = vmatpush1.bf16.msra.mxu0 %v14553_v20  ;;  %v14564_v29 = vpack.c.bf16 %v868_v28, %v864_v27  ;;  %v873_v30 = vld [vmem:[#allocation7 + $0x98] sm:$0xff]  ;;  %v872_v33 = vld [vmem:[#allocation7 + $0x90] sm:$0xff]  ;;  %v14571_v34 = vpack.c.bf16 %v579_v25, %v578_v23  ;;  %v765_v23 = vld [vmem:[#allocation5 + $0x40] sm:$0xff]  ;;  %p13961_p8 = pneg %p13960_p2  ;;  %p13966_p10 = scmp.lt.s32.totalorder %s13964_s19, %s13958_s10 }
 0x159   : > { %v877_v31 = vld [vmem:[#allocation7 + $0xb8] sm:$0xff]  ;;  %11198 = vmatprep.subr.bf16.mxu0 %v14562_v26  ;;  %v876_v36 = vld [vmem:[#allocation7 + $0xb0] sm:$0xff]  ;;  %v855_v24 = vld [vmem:[#allocation7 + $0x8] sm:$0xff] }
 0x15a   : > { %v14568_v32 = vpack.c.bf16 %v877_v31, %v873_v30  ;;  %v14576_v38 = vpack.c.bf16 %v876_v36, %v872_v33  ;;  %v881_v39 = vld [vmem:[#allocation7 + $0xd8] sm:$0xff]  ;;  %v880_v42 = vld [vmem:[#allocation7 + $0xd0] sm:$0xff]  ;;  %v859_v25 = vld [vmem:[#allocation7 + $0x28] sm:$0xff]  ;;  %p13967_p11 = por %p13966_p10, %p13965_p4 }
 0x15b   : > { %11076 = vmatpush3.bf16.msra.mxu1 %v14540_v8  ;;  %v885_v40 = vld [vmem:[#allocation7 + $0xf8] sm:$0xff]  ;;  %v884_v43 = vld [vmem:[#allocation7 + $0xf0] sm:$0xff]  ;;  %v14654_v27 = vpack.c.bf16 %v859_v25, %v855_v24  ;;  %v854_v28 = vld [vmem:[#allocation7] sm:$0xff] }
 0x15c   : > { %11078 = vmatprep.subr.bf16.mxu1 %v14546_v12  ;;  %17816 = vst [vmem:[#allocation29_spill] sm:$0xff] %v14568_v32  ;;  %11200 = vmatpush1.bf16.msra.mxu0 %v14564_v29  ;;  %17817 = vst [vmem:[#allocation30_spill] sm:$0xff] %v14576_v38  ;;  %v14579_v41 = vpack.c.bf16 %v885_v40, %v881_v39  ;;  %v889_v44 = vld [vmem:[#allocation7 + $0x118] sm:$0xff]  ;;  %v582_v47 = vld [vmem:[%s14501_s30 + $0x70] sm:$0xff]  ;;  %v14588_v49 = vpack.c.bf16 %v884_v43, %v880_v42  ;;  %p13968_p3 = pnand %p13967_p11, %p13961_p8 }
 0x15d   : > { %11202 = vmatprep.subr.bf16.mxu0 %v14568_v32  ;;  %v893_v46 = vld [vmem:[#allocation7 + $0x138] sm:$0xff]  ;;  %v888_v51 = vld [vmem:[#allocation7 + $0x110] sm:$0xff]  ;;  %v858_v30 = vld [vmem:[#allocation7 + $0x20] sm:$0xff] }
 0x15e   : > { %17818 = vst [vmem:[#allocation31_spill] sm:$0xff] %v14579_v41  ;;  %v583_v48 = vld [vmem:[%s14501_s30 + $0x78] sm:$0xff]  ;;  %17819 = vst [vmem:[#allocation32_spill] sm:$0xff] %v14588_v49  ;;  %v14591_v50 = vpack.c.bf16 %v893_v46, %v889_v44  ;;  %v892_v52 = vld [vmem:[#allocation7 + $0x130] sm:$0xff]  ;;  %v14657_v36 = vpack.c.bf16 %v858_v30, %v854_v28 }
 0x15f   : > { %11080 = vmatpush3.bf16.msra.mxu1 %v14546_v12  ;;  %v897_v53 = vld [vmem:[#allocation7 + $0x158] sm:$0xff]  ;;  %v14595_v55 = vpack.c.bf16 %v583_v48, %v582_v47  ;;  %v14598_v56 = vpack.c.bf16 %v892_v52, %v888_v51  ;;  %v896_v58 = vld [vmem:[#allocation7 + $0x150] sm:$0xff]  ;;  %v863_v31 = vld [vmem:[#allocation7 + $0x48] sm:$0xff] }
 0x160   : > { %11082 = vmatprep.subr.bf16.mxu1 %v14556_v22  ;;  %11204 = vmatpush1.bf16.msra.mxu0 %v14576_v38  ;;  %17820 = vst [vmem:[#allocation33_spill] sm:$0xff] %v14591_v50  ;;  %v901_v54 = vld [vmem:[#allocation7 + $0x178] sm:$0xff]  ;;  %v900_v59 = vld [vmem:[#allocation7 + $0x170] sm:$0xff]  ;;  %v867_v33 = vld [vmem:[#allocation7 + $0x68] sm:$0xff] }
 0x161   : > { %11206 = vmatprep.subr.bf16.mxu0 %v14579_v41  ;;  %17821 = vst [vmem:[#allocation34_spill] sm:$0xff] %v14598_v56  ;;  %v14601_v57 = vpack.c.bf16 %v901_v54, %v897_v53  ;;  %v905_v60 = vld [vmem:[#allocation7 + $0x198] sm:$0xff]  ;;  %v14606_v62 = vpack.c.bf16 %v900_v59, %v896_v58  ;;  %v904_v0 = vld [vmem:[#allocation7 + $0x190] sm:$0xff]  ;;  %v766_v35 = vld [vmem:[#allocation5 + $0x48] sm:$0xff]  ;;  %v14660_v39 = vpack.c.bf16 %v867_v33, %v863_v31 }
 0x162   : > { %v909_v61 = vld [vmem:[#allocation7 + $0x1b8] sm:$0xff]  ;;  %v908_v1 = vld [vmem:[#allocation7 + $0x1b0] sm:$0xff]  ;;  %v862_v40 = vld [vmem:[#allocation7 + $0x40] sm:$0xff] }
 0x163   : > { %11084 = vmatpush3.bf16.msra.mxu1 %v14556_v22  ;;  %17822 = vst [vmem:[#allocation35_spill] sm:$0xff] %v14601_v57  ;;  %17823 = vst [vmem:[#allocation36_spill] sm:$0xff] %v14606_v62  ;;  %v14609_v63 = vpack.c.bf16 %v909_v61, %v905_v60  ;;  %v913_v4 = vld [vmem:[#allocation7 + $0x1d8] sm:$0xff]  ;;  %v587_v7 = vld [vmem:[#allocation5 + $0x10] sm:$0xff]  ;;  %v14614_v9 = vpack.c.bf16 %v908_v1, %v904_v0 }
 0x164   : > { %11086 = vmatprep.subr.bf16.mxu1 %v14571_v34  ;;  %11208 = vmatpush1.bf16.msra.mxu0 %v14588_v49  ;;  %v917_v6 = vld [vmem:[#allocation7 + $0x1f8] sm:$0xff]  ;;  %v912_v11 = vld [vmem:[#allocation7 + $0x1d0] sm:$0xff]  ;;  %v866_v42 = vld [vmem:[#allocation7 + $0x60] sm:$0xff] }
 0x165   : > { %11210 = vmatprep.subr.bf16.mxu0 %v14591_v50  ;;  %17824 = vst [vmem:[#allocation37_spill] sm:$0xff] %v14609_v63  ;;  %17825 = vst [vmem:[#allocation38_spill] sm:$0xff] %v14614_v9  ;;  %v14617_v10 = vpack.c.bf16 %v917_v6, %v913_v4  ;;  %v916_v13 = vld [vmem:[#allocation7 + $0x1f0] sm:$0xff]  ;;  %v588_v14 = vld [vmem:[#allocation5 + $0x18] sm:$0xff]  ;;  %v14663_v47 = vpack.c.bf16 %v866_v42, %v862_v40  ;;  %v17480_v42 = vmov 0.0  }
 0x166   : > { %v14622_v16 = vpack.c.bf16 %v916_v13, %v912_v11  ;;  %v677_v19 = vld [vmem:[#allocation5 + $0x30] sm:$0xff]  ;;  %v678_v21 = vld [vmem:[#allocation5 + $0x38] sm:$0xff]  ;;  %v871_v43 = vld [vmem:[#allocation7 + $0x88] sm:$0xff]  ;;  %1071 = vmatprep.mubr.f32.mxu0 %v17480_v42 }
 0x167   : > { %11088 = vmatpush3.bf16.msra.mxu1 %v14571_v34  ;;  %17826 = vst [vmem:[#allocation39_spill] sm:$0xff] %v14617_v10  ;;  %v767_v37 = vld [vmem:[#allocation5 + $0x50] sm:$0xff]  ;;  %v875_v44 = vld [vmem:[#allocation7 + $0xa8] sm:$0xff]  ;;  %v768_v46 = vld [vmem:[#allocation5 + $0x58] sm:$0xff] }
 0x168   : > { %11090 = vmatprep.subr.bf16.mxu1 %v14583_v45  ;;  %11212 = vmatpush1.bf16.msra.mxu0 %v14598_v56  ;;  %17827 = vst [vmem:[#allocation40_spill] sm:$0xff] %v14622_v16  ;;  %v14666_v48 = vpack.c.bf16 %v875_v44, %v871_v43  ;;  %v870_v51 = vld [vmem:[#allocation7 + $0x80] sm:$0xff]  ;;  %v879_v53 = vld [vmem:[#allocation7 + $0xc8] sm:$0xff]  ;;  %v1137_v25 = vld [vmem:[#allocation7 + $0x218] sm:$0xff] }
 0x169   : > { %11214 = vmatprep.subr.bf16.mxu0 %v14601_v57  ;;  %v874_v52 = vld [vmem:[#allocation7 + $0xa0] sm:$0xff]  ;;  %v883_v54 = vld [vmem:[#allocation7 + $0xe8] sm:$0xff]  ;;  %v1141_v33 = vld [vmem:[#allocation7 + $0x238] sm:$0xff] }
 0x16a   : > { %v14669_v58 = vpack.c.bf16 %v874_v52, %v870_v51  ;;  %v14672_v59 = vpack.c.bf16 %v883_v54, %v879_v53  ;;  %v878_v60 = vld [vmem:[#allocation7 + $0xc0] sm:$0xff]  ;;  %v887_v0 = vld [vmem:[#allocation7 + $0x108] sm:$0xff]  ;;  %v14692_v40 = vpack.c.bf16 %v1141_v33, %v1137_v25  ;;  %v1148_v33 = vld [vmem:[#allocation7 + $0x270] sm:$0xff] }
 0x16b   : > { %11092 = vmatpush3.bf16.msra.mxu1 %v14583_v45  ;;  %v882_v61 = vld [vmem:[#allocation7 + $0xe0] sm:$0xff]  ;;  %v891_v1 = vld [vmem:[#allocation7 + $0x128] sm:$0xff]  ;;  %v1423_v57 = vld [vmem:[#allocation7 + $0x4f0] sm:$0xff] }
 0x16c   : > { %11094 = vmatprep.subr.bf16.mxu1 %v14595_v55  ;;  %11216 = vmatpush1.bf16.msra.mxu0 %v14606_v62  ;;  %v14678_v4 = vpack.c.bf16 %v891_v1, %v887_v0  ;;  %v886_v6 = vld [vmem:[#allocation7 + $0x100] sm:$0xff]  ;;  %v895_v11 = vld [vmem:[#allocation7 + $0x148] sm:$0xff]  ;;  %17828 = vst [vmem:[#allocation41_spill] sm:$0xff] %v14692_v40  ;;  %v1136_v1 = vld [vmem:[#allocation7 + $0x210] sm:$0xff] }
 0x16d   : > { %11218 = vmatprep.subr.bf16.mxu0 %v14609_v63  ;;  %v899_v13 = vld [vmem:[#allocation7 + $0x168] sm:$0xff]  ;;  %v902_v30 = vld [vmem:[#allocation7 + $0x180] sm:$0xff]  ;;  %v1169_v63 = vld [vmem:[#allocation7 + $0x318] sm:$0xff] }
 0x16e   : > { %v906_v31 = vld [vmem:[#allocation7 + $0x1a0] sm:$0xff]  ;;  %v1135_v52 = vld [vmem:[#allocation7 + $0x208] sm:$0xff]  ;;  %v1428_v50 = vld [vmem:[#allocation7 + $0x518] sm:$0xff] }
 0x16f   : > { %11096 = vmatpush3.bf16.msra.mxu1 %v14595_v55  ;;  %v14697_v43 = vpack.c.bf16 %v906_v31, %v902_v30  ;;  %v914_v51 = vld [vmem:[#allocation7 + $0x1e0] sm:$0xff]  ;;  %v1139_v53 = vld [vmem:[#allocation7 + $0x228] sm:$0xff]  ;;  %v1144_v31 = vld [vmem:[#allocation7 + $0x250] sm:$0xff] }
 0x170   : > { %11098 = vmatprep.subr.bf16.mxu1 %v14530_v3  ;;  %11220 = vmatpush1.bf16.msra.mxu0 %v14614_v9  ;;  %v1138_v0 = vld [vmem:[#allocation7 + $0x220] sm:$0xff]  ;;  %v1167_v9 = vld [vmem:[#allocation7 + $0x308] sm:$0xff]  ;;  %v1706_v41 = vld [vmem:[#allocation7 + $0x730] sm:$0xff] }
 0x171   : > { %11222 = vmatprep.subr.bf16.mxu0 %v14617_v10  ;;  %v1146_v25 = vld [vmem:[#allocation7 + $0x260] sm:$0xff]  ;;  %v1164_v10 = vld [vmem:[#allocation7 + $0x2f0] sm:$0xff]  ;;  %v1418_v62 = vld [vmem:[#allocation7 + $0x4c8] sm:$0xff] }
 0x172   : > { %10280 = vmatmul.mubr.f32.vlgmr.msra.gmra.mrb[0].mxu1 %v586_v2  ;;  %v14675_v2 = vpack.c.bf16 %v882_v61, %v878_v60  ;;  %v14707_v60 = vpack.c.bf16 %v1139_v53, %v1135_v52  ;;  %v1134_v61 = vld [vmem:[#allocation7 + $0x200] sm:$0xff]  ;;  %v1155_v52 = vld [vmem:[#allocation7 + $0x2a8] sm:$0xff]  ;;  %v1153_v53 = vld [vmem:[#allocation7 + $0x298] sm:$0xff] }
 0x173   : > { %11100 = vmatpush3.bf16.msra.mxu1 %v14530_v3  ;;  %10282 = vmatprep.mubr.f32.mxu1 %v587_v7  ;;  %v890_v7 = vld [vmem:[#allocation7 + $0x120] sm:$0xff]  ;;  %v1426_v56 = vld [vmem:[#allocation7 + $0x508] sm:$0xff]  ;;  %v1719_v32 = vld [vmem:[#allocation7 + $0x798] sm:$0xff] }
 0x174   : > { %11102 = vmatprep.subr.bf16.mxu1 %v14533_v5  ;;  %11224 = vmatpush1.bf16.msra.mxu0 %v14622_v16  ;;  %v1159_v16 = vld [vmem:[#allocation7 + $0x2c8] sm:$0xff] }
 0x175   : > { %11258 = vmatprep.subr.bf16.mxu0 %v14692_v40  ;;  %v1156_v40 = vld [vmem:[#allocation7 + $0x2b0] sm:$0xff]  ;;  %v1701_v49 = vld [vmem:[#allocation7 + $0x708] sm:$0xff] }
 0x176   : > { %10283 = vmatmul.mubr.f32.gmra.mrb[2].mxu1 %v588_v14  ;;  %v14681_v14 = vpack.c.bf16 %v890_v7, %v886_v6  ;;  %v1140_v6 = vld [vmem:[#allocation7 + $0x230] sm:$0xff]  ;;  %v1143_v7 = vld [vmem:[#allocation7 + $0x248] sm:$0xff] }
 0x177   : > { %11104 = vmatpush3.bf16.msra.mxu1 %v14533_v5  ;;  %10317 = vmatprep.mubr.f32.mxu1 %v675_v15  ;;  %v14684_v15 = vpack.c.bf16 %v899_v13, %v895_v11  ;;  %v1147_v11 = vld [vmem:[#allocation7 + $0x268] sm:$0xff]  ;;  %v1145_v13 = vld [vmem:[#allocation7 + $0x258] sm:$0xff] }
 0x178   : > { %11106 = vmatprep.subr.bf16.mxu1 %v14540_v8  ;;  %v1709_v38 = vld [vmem:[#allocation7 + $0x748] sm:$0xff] }
 0x17b   : > { %11108 = vmatpush3.bf16.msra.mxu1 %v14540_v8 }
 0x17c   : > { %11110 = vmatprep.subr.bf16.mxu1 %v14546_v12 }
 0x17f   : > { %11112 = vmatpush3.bf16.msra.mxu1 %v14546_v12 }
 0x180   : > { %11114 = vmatprep.subr.bf16.mxu1 %v14556_v22 }
 0x183   : > { %11116 = vmatpush3.bf16.msra.mxu1 %v14556_v22 }
 0x184   : > { %11118 = vmatprep.subr.bf16.mxu1 %v14571_v34 }
 0x187   : > { %11120 = vmatpush3.bf16.msra.mxu1 %v14571_v34 }
 0x188   : > { %11122 = vmatprep.subr.bf16.mxu1 %v14583_v45 }
 0x18b   : > { %11124 = vmatpush3.bf16.msra.mxu1 %v14583_v45 }
 0x18c   : > { %11126 = vmatprep.subr.bf16.mxu1 %v14595_v55 }
 0x18f   : > { %11128 = vmatpush3.bf16.msra.mxu1 %v14595_v55 }
 0x190   : > { %11130 = vmatprep.subr.bf16.mxu1 %v14530_v3 }
 0x192   : > { %10318 = vmatmul.mubr.f32.vlgmr.msra.gmra.mrb[4].mxu1 %v676_v18  ;;  %v894_v18 = vld [vmem:[#allocation7 + $0x140] sm:$0xff] }
 0x193   : > { %11132 = vmatpush3.bf16.msra.mxu1 %v14530_v3  ;;  %10320 = vmatprep.mubr.f32.mxu1 %v677_v19  ;;  %v898_v19 = vld [vmem:[#allocation7 + $0x160] sm:$0xff] }
 0x194   : > { %11134 = vmatprep.subr.bf16.mxu1 %v14533_v5  ;;  %v14687_v24 = vpack.c.bf16 %v898_v19, %v894_v18  ;;  %v1149_v18 = vld [vmem:[#allocation7 + $0x278] sm:$0xff]  ;;  %v14711_v19 = vpack.c.bf16 %v1138_v0, %v1134_v61  ;;  %v14729_v0 = vpack.c.bf16 %v1148_v33, %v1144_v31 }
 0x195   : > { %v1165_v31 = vld [vmem:[#allocation7 + $0x2f8] sm:$0xff] }
 0x196   : > { %10321 = vmatmul.mubr.f32.gmra.mrb[6].mxu1 %v678_v21  ;;  %v903_v21 = vld [vmem:[#allocation7 + $0x188] sm:$0xff]  ;;  %17829 = vst [vmem:[#allocation42_spill] sm:$0xff] %v14711_v19  ;;  %17834 = vst [vmem:[#allocation47_spill] sm:$0xff] %v14729_v0 }
 0x197   : > { %11136 = vmatpush3.bf16.msra.mxu1 %v14533_v5  ;;  %10355 = vmatprep.mubr.f32.mxu1 %v765_v23  ;;  %v907_v23 = vld [vmem:[#allocation7 + $0x1a8] sm:$0xff] }
 0x198   : > { %11138 = vmatprep.subr.bf16.mxu1 %v14540_v8  ;;  %v14690_v28 = vpack.c.bf16 %v907_v23, %v903_v21  ;;  %v14713_v21 = vpack.c.bf16 %v1140_v6, %v1136_v1  ;;  %v1142_v23 = vld [vmem:[#allocation7 + $0x240] sm:$0xff] }
 0x199   : > { %v14727_v61 = vpack.c.bf16 %v1146_v25, %v1142_v23  ;;  %v1150_v1 = vld [vmem:[#allocation7 + $0x280] sm:$0xff]  ;;  %v1163_v23 = vld [vmem:[#allocation7 + $0x2e8] sm:$0xff]  ;;  %v1161_v25 = vld [vmem:[#allocation7 + $0x2d8] sm:$0xff] }
 0x19a   : > { %17830 = vst [vmem:[#allocation43_spill] sm:$0xff] %v14713_v21  ;;  %v1154_v6 = vld [vmem:[#allocation7 + $0x2a0] sm:$0xff] }
 0x19b   : > { %11140 = vmatpush3.bf16.msra.mxu1 %v14540_v8  ;;  %17833 = vst [vmem:[#allocation46_spill] sm:$0xff] %v14727_v61 }
 0x19c   : > { %11142 = vmatprep.subr.bf16.mxu1 %v14546_v12 }
 0x19f   : > { %11144 = vmatpush3.bf16.msra.mxu1 %v14546_v12 }
 0x1a0   : > { %11146 = vmatprep.subr.bf16.mxu1 %v14556_v22 }
 0x1a3   : > { %11148 = vmatpush3.bf16.msra.mxu1 %v14556_v22 }
 0x1a4   : > { %11150 = vmatprep.subr.bf16.mxu1 %v14571_v34 }
 0x1a7   : > { %11152 = vmatpush3.bf16.msra.mxu1 %v14571_v34 }
 0x1a8   : > { %11154 = vmatprep.subr.bf16.mxu1 %v14583_v45 }
 0x1ab   : > { %11156 = vmatpush3.bf16.msra.mxu1 %v14583_v45 }
 0x1ac   : > { %11158 = vmatprep.subr.bf16.mxu1 %v14595_v55 }
 0x1af   : > { %11160 = vmatpush3.bf16.msra.mxu1 %v14595_v55 }
 0x1b0   : > { %11162 = vmatprep.subr.bf16.mxu1 %v14654_v27 }
 0x1b2   : > { %10356 = vmatmul.mubr.f32.vlgmr.msra.gmra.mrb[8].mxu1 %v766_v35  ;;  %v911_v35 = vld [vmem:[#allocation7 + $0x1c8] sm:$0xff] }
 0x1b3   : > { %10358 = vmatprep.mubr.f32.mxu1 %v767_v37  ;;  %11164 = vmatpush1.bf16.msra.mxu1 %v14657_v36  ;;  %v915_v37 = vld [vmem:[#allocation7 + $0x1e8] sm:$0xff] }
 0x1b4   : > { %11166 = vmatprep.subr.bf16.mxu1 %v14660_v39  ;;  %v14701_v44 = vpack.c.bf16 %v915_v37, %v911_v35  ;;  %v1151_v35 = vld [vmem:[#allocation7 + $0x288] sm:$0xff] }
 0x1b6   : > { %10359 = vmatmul.mubr.f32.gmra.mrb[10].mxu1 %v768_v46  ;;  %v910_v46 = vld [vmem:[#allocation7 + $0x1c0] sm:$0xff] }
 0x1b7   : > { %11168 = vmatpush1.bf16.msra.mxu1 %v14663_v47  ;;  %982 = vmatprep.mubr.f32.mxu1 %v17480_v42  ;;  %v14704_v54 = vpack.c.bf16 %v914_v51, %v910_v46  ;;  %v14719_v46 = vpack.c.bf16 %v1147_v11, %v1143_v7  ;;  %v14721_v51 = vpack.c.bf16 %v1149_v18, %v1145_v13  ;;  %v1157_v42 = vld [vmem:[#allocation7 + $0x2b8] sm:$0xff]  ;;  %v17835_v7 = vmov 0.0   ;;  %v1152_v18 = vld [vmem:[#allocation7 + $0x290] sm:$0xff] }
 0x1b8   : > { %11170 = vmatprep.subr.bf16.mxu1 %v14666_v48  ;;  %v14733_v11 = vpack.c.bf16 %v1155_v52, %v1151_v35  ;;  %v14735_v13 = vpack.c.bf16 %v1157_v42, %v1153_v53  ;;  %v14747_v42 = vpack.c.bf16 %v1154_v6, %v1150_v1  ;;  %v14749_v35 = vpack.c.bf16 %v1156_v40, %v1152_v18  ;;  %v1158_v52 = vld [vmem:[#allocation7 + $0x2c0] sm:$0xff] }
 0x1b9   : > { %17831 = vst [vmem:[#allocation44_spill] sm:$0xff] %v14719_v46  ;;  %17832 = vst [vmem:[#allocation45_spill] sm:$0xff] %v14721_v51  ;;  %v1162_v53 = vld [vmem:[#allocation7 + $0x2e0] sm:$0xff] }
 0x1ba   : > { %17836 = vst [vmem:[#allocation48_spill] sm:$0xff] %v14733_v11  ;;  %17837 = vst [vmem:[#allocation49_spill] sm:$0xff] %v14735_v13  ;;  %v1166_v1 = vld [vmem:[#allocation7 + $0x300] sm:$0xff] }
 0x1bb   : > { %11172 = vmatpush1.bf16.msra.mxu1 %v14669_v58  ;;  %17838 = vst [vmem:[#allocation50_spill] sm:$0xff] %v14747_v42  ;;  %17839 = vst [vmem:[#allocation51_spill] sm:$0xff] %v14749_v35  ;;  %v1170_v6 = vld [vmem:[#allocation7 + $0x320] sm:$0xff] }
 0x1bc   : > { %11174 = vmatprep.subr.bf16.mxu1 %v14672_v59 }
 0x1bf   : > { %11176 = vmatpush1.bf16.msra.mxu1 %v14675_v2 }
 0x1c0   : > { %11178 = vmatprep.subr.bf16.mxu1 %v14678_v4 }
 0x1c3   : > { %11180 = vmatpush1.bf16.msra.mxu1 %v14681_v14 }
 0x1c4   : > { %11182 = vmatprep.subr.bf16.mxu1 %v14684_v15 }
 0x1c7   : > { %11184 = vmatpush1.bf16.msra.mxu1 %v14687_v24 }
 0x1c8   : > { %11186 = vmatprep.subr.bf16.mxu1 %v14690_v28 }
 0x1cb   : > { %11188 = vmatpush1.bf16.msra.mxu1 %v14697_v43 }
 0x1cc   : > { %11190 = vmatprep.subr.bf16.mxu1 %v14701_v44 }
 0x1cf   : > { %11192 = vmatpush1.bf16.msra.mxu1 %v14704_v54 }
 0x1d0   : > { %11226 = vmatprep.subr.bf16.mxu1 %v14707_v60 }
 0x245   : > { %v14715_v30 = vpop.f32.mrb[0].mxu1 }
 0x246   : > { %v14717_v37 = vpop.f32.mrb[1].mxu1 }
 0x247   : > { %983 = vmatmul.mubr.f32.vlgmr.msra.gmra.mrb[12].mxu1 %v14717_v37  ;;  %1072 = vmatmul.mubr.f32.vlgmr.msra.gmra.mrb[0].mxu0 %v14717_v37 }
 0x248   : > { %11228 = vmatpush1.bf16.msra.mxu1 %v14711_v19  ;;  %11260 = vmatpush1.bf16.msra.mxu0 %v14713_v21  ;;  %v1160_v21 = vld [vmem:[#allocation7 + $0x2d0] sm:$0xff] }
 0x249   : > { %988 = vmatprep.mubr.f32.mxu1 %v17835_v7  ;;  %1077 = vmatprep.mubr.f32.mxu0 %v17835_v7  ;;  %v14737_v19 = vpop.f32.mrb[2].mxu1  ;;  %v14765_v40 = vpack.c.bf16 %v1164_v10, %v1160_v21  ;;  %v1174_v10 = vld [vmem:[#allocation7 + $0x340] sm:$0xff] }
 0x24a   : > { %11230 = vmatprep.subr.bf16.mxu1 %v14719_v46  ;;  %11262 = vmatprep.subr.bf16.mxu0 %v14721_v51  ;;  %v14741_v33 = vpop.f32.mrb[3].mxu1  ;;  %v14753_v51 = vpack.c.bf16 %v1163_v23, %v1159_v16  ;;  %v14755_v46 = vpack.c.bf16 %v1165_v31, %v1161_v25  ;;  %v14763_v16 = vpack.c.bf16 %v1162_v53, %v1158_v52  ;;  %v1168_v25 = vld [vmem:[#allocation7 + $0x310] sm:$0xff]  ;;  %v1178_v21 = vld [vmem:[#allocation7 + $0x360] sm:$0xff] }
 0x24b   : > { %989 = vmatmul.mubr.f32.gmra.mrb[14].mxu1 %v14715_v30  ;;  %1078 = vmatmul.mubr.f32.gmra.mrb[2].mxu0 %v14715_v30  ;;  %17843 = vst [vmem:[#allocation55_spill] sm:$0xff] %v14765_v40  ;;  %v1172_v31 = vld [vmem:[#allocation7 + $0x330] sm:$0xff] }
 0x24c   : > { %11232 = vmatpush1.bf16.msra.mxu1 %v14727_v61  ;;  %11264 = vmatpush1.bf16.msra.mxu0 %v14729_v0  ;;  %17840 = vst [vmem:[#allocation52_spill] sm:$0xff] %v14753_v51  ;;  %17841 = vst [vmem:[#allocation53_spill] sm:$0xff] %v14755_v46  ;;  %v1171_v61 = vld [vmem:[#allocation7 + $0x328] sm:$0xff]  ;;  %v1173_v0 = vld [vmem:[#allocation7 + $0x338] sm:$0xff] }
 0x24d   : > { %11234 = vmatprep.subr.bf16.mxu1 %v14733_v11  ;;  %11266 = vmatprep.subr.bf16.mxu0 %v14735_v13  ;;  %17842 = vst [vmem:[#allocation54_spill] sm:$0xff] %v14763_v16  ;;  %v14769_v18 = vpack.c.bf16 %v1171_v61, %v1167_v9  ;;  %v14771_v23 = vpack.c.bf16 %v1173_v0, %v1169_v63  ;;  %v1175_v13 = vld [vmem:[#allocation7 + $0x348] sm:$0xff]  ;;  %v1177_v11 = vld [vmem:[#allocation7 + $0x358] sm:$0xff]  ;;  %v1176_v52 = vld [vmem:[#allocation7 + $0x350] sm:$0xff] }
 0x24e   : > { %994 = vmatprep.mubr.f32.mxu1 %v17835_v7  ;;  %1083 = vmatprep.mubr.f32.mxu0 %v17835_v7  ;;  %v14779_v63 = vpack.c.bf16 %v1170_v6, %v1166_v1  ;;  %v14781_v9 = vpack.c.bf16 %v1172_v31, %v1168_v25  ;;  %v1180_v53 = vld [vmem:[#allocation7 + $0x370] sm:$0xff]  ;;  %v14793_v1 = vpack.c.bf16 %v1178_v21, %v1174_v10 }
 0x24f   : > { %995 = vmatmul.mubr.f32.gmra.mrb[16].mxu1 %v14741_v33  ;;  %1084 = vmatmul.mubr.f32.gmra.mrb[4].mxu0 %v14741_v33  ;;  %17844 = vst [vmem:[#allocation56_spill] sm:$0xff] %v14769_v18  ;;  %17845 = vst [vmem:[#allocation57_spill] sm:$0xff] %v14771_v23  ;;  %v1184_v25 = vld [vmem:[#allocation7 + $0x390] sm:$0xff] }
 0x250   : > { %11236 = vmatpush1.bf16.msra.mxu1 %v14747_v42  ;;  %11268 = vmatpush1.bf16.msra.mxu0 %v14749_v35  ;;  %v1179_v42 = vld [vmem:[#allocation7 + $0x368] sm:$0xff]  ;;  %v1181_v35 = vld [vmem:[#allocation7 + $0x378] sm:$0xff]  ;;  %17846 = vst [vmem:[#allocation58_spill] sm:$0xff] %v14779_v63  ;;  %17847 = vst [vmem:[#allocation59_spill] sm:$0xff] %v14781_v9 }
 0x251   : > { %11238 = vmatprep.subr.bf16.mxu1 %v14753_v51  ;;  %11270 = vmatprep.subr.bf16.mxu0 %v14755_v46  ;;  %v14785_v61 = vpack.c.bf16 %v1179_v42, %v1175_v13  ;;  %v14787_v0 = vpack.c.bf16 %v1181_v35, %v1177_v11  ;;  %v1183_v46 = vld [vmem:[#allocation7 + $0x388] sm:$0xff]  ;;  %v1185_v51 = vld [vmem:[#allocation7 + $0x398] sm:$0xff]  ;;  %17850 = vst [vmem:[#allocation62_spill] sm:$0xff] %v14793_v1  ;;  %v1182_v11 = vld [vmem:[#allocation7 + $0x380] sm:$0xff] }
 0x252   : > { %1000 = vmatprep.mubr.f32.mxu1 %v17835_v7  ;;  %1089 = vmatprep.mubr.f32.mxu0 %v17835_v7  ;;  %v14795_v13 = vpack.c.bf16 %v1180_v53, %v1176_v52  ;;  %v1186_v42 = vld [vmem:[#allocation7 + $0x3a0] sm:$0xff]  ;;  %v1188_v31 = vld [vmem:[#allocation7 + $0x3b0] sm:$0xff] }
 0x253   : > { %1001 = vmatmul.mubr.f32.gmra.mrb[18].mxu1 %v14737_v19  ;;  %1090 = vmatmul.mubr.f32.gmra.mrb[6].mxu0 %v14737_v19  ;;  %17848 = vst [vmem:[#allocation60_spill] sm:$0xff] %v14785_v61  ;;  %17849 = vst [vmem:[#allocation61_spill] sm:$0xff] %v14787_v0  ;;  %v14805_v10 = vpack.c.bf16 %v1186_v42, %v1182_v11  ;;  %v14807_v21 = vpack.c.bf16 %v1188_v31, %v1184_v25  ;;  %v1190_v52 = vld [vmem:[#allocation7 + $0x3c0] sm:$0xff]  ;;  %v1399_v31 = vld [vmem:[#allocation7 + $0x430] sm:$0xff] }
 0x254   : > { %11240 = vmatpush1.bf16.msra.mxu1 %v14763_v16  ;;  %11272 = vmatpush1.bf16.msra.mxu0 %v14765_v40  ;;  %v1187_v16 = vld [vmem:[#allocation7 + $0x3a8] sm:$0xff]  ;;  %v1189_v40 = vld [vmem:[#allocation7 + $0x3b8] sm:$0xff]  ;;  %17851 = vst [vmem:[#allocation63_spill] sm:$0xff] %v14795_v13  ;;  %v1194_v53 = vld [vmem:[#allocation7 + $0x3e0] sm:$0xff] }
 0x255   : > { %11242 = vmatprep.subr.bf16.mxu1 %v14769_v18  ;;  %11274 = vmatprep.subr.bf16.mxu0 %v14771_v23  ;;  %v14799_v35 = vpack.c.bf16 %v1187_v16, %v1183_v46  ;;  %v14801_v6 = vpack.c.bf16 %v1189_v40, %v1185_v51  ;;  %v1191_v23 = vld [vmem:[#allocation7 + $0x3c8] sm:$0xff]  ;;  %v1193_v18 = vld [vmem:[#allocation7 + $0x3d8] sm:$0xff]  ;;  %17854 = vst [vmem:[#allocation66_spill] sm:$0xff] %v14805_v10  ;;  %17855 = vst [vmem:[#allocation67_spill] sm:$0xff] %v14807_v21 }
 0x256   : > { %1262 = vmatprep.mubr.f32.mxu1 %v17835_v7  ;;  %1351 = vmatprep.mubr.f32.mxu0 %v17835_v7  ;;  %v1192_v16 = vld [vmem:[#allocation7 + $0x3d0] sm:$0xff]  ;;  %v14817_v11 = vpack.c.bf16 %v1194_v53, %v1190_v52  ;;  %v1393_v25 = vld [vmem:[#allocation7 + $0x400] sm:$0xff] }
 0x257   : > { %17852 = vst [vmem:[#allocation64_spill] sm:$0xff] %v14799_v35  ;;  %17853 = vst [vmem:[#allocation65_spill] sm:$0xff] %v14801_v6  ;;  %v1196_v40 = vld [vmem:[#allocation7 + $0x3f0] sm:$0xff] }
 0x258   : > { %11244 = vmatpush1.bf16.msra.mxu1 %v14779_v63  ;;  %11276 = vmatpush1.bf16.msra.mxu0 %v14781_v9  ;;  %v1195_v63 = vld [vmem:[#allocation7 + $0x3e8] sm:$0xff]  ;;  %v1197_v9 = vld [vmem:[#allocation7 + $0x3f8] sm:$0xff]  ;;  %17858 = vst [vmem:[#allocation70_spill] sm:$0xff] %v14817_v11  ;;  %v14819_v42 = vpack.c.bf16 %v1196_v40, %v1192_v16  ;;  %v1401_v16 = vld [vmem:[#allocation7 + $0x440] sm:$0xff] }
 0x259   : > { %11246 = vmatprep.subr.bf16.mxu1 %v14785_v61  ;;  %11278 = vmatprep.subr.bf16.mxu0 %v14787_v0  ;;  %v14811_v46 = vpack.c.bf16 %v1195_v63, %v1191_v23  ;;  %v14813_v51 = vpack.c.bf16 %v1197_v9, %v1193_v18  ;;  %v1394_v0 = vld [vmem:[#allocation7 + $0x408] sm:$0xff]  ;;  %v1396_v61 = vld [vmem:[#allocation7 + $0x418] sm:$0xff]  ;;  %v1397_v63 = vld [vmem:[#allocation7 + $0x420] sm:$0xff] }
 0x25a   : > { %17859 = vst [vmem:[#allocation71_spill] sm:$0xff] %v14819_v42  ;;  %v1395_v9 = vld [vmem:[#allocation7 + $0x410] sm:$0xff]  ;;  %v14829_v52 = vpack.c.bf16 %v1397_v63, %v1393_v25  ;;  %v1410_v40 = vld [vmem:[#allocation7 + $0x488] sm:$0xff]  ;;  %v1412_v63 = vld [vmem:[#allocation7 + $0x498] sm:$0xff] }
 0x25b   : > { %17856 = vst [vmem:[#allocation68_spill] sm:$0xff] %v14811_v46  ;;  %17857 = vst [vmem:[#allocation69_spill] sm:$0xff] %v14813_v51  ;;  %v14831_v53 = vpack.c.bf16 %v1399_v31, %v1395_v9  ;;  %v1414_v25 = vld [vmem:[#allocation7 + $0x4a8] sm:$0xff]  ;;  %v1416_v9 = vld [vmem:[#allocation7 + $0x4b8] sm:$0xff] }
 0x25c   : > { %11248 = vmatpush1.bf16.msra.mxu1 %v14793_v1  ;;  %11280 = vmatpush1.bf16.msra.mxu0 %v14795_v13  ;;  %v1398_v1 = vld [vmem:[#allocation7 + $0x428] sm:$0xff]  ;;  %v1400_v13 = vld [vmem:[#allocation7 + $0x438] sm:$0xff]  ;;  %17862 = vst [vmem:[#allocation74_spill] sm:$0xff] %v14829_v52 }
 0x25d   : > { %11250 = vmatprep.subr.bf16.mxu1 %v14799_v35  ;;  %11282 = vmatprep.subr.bf16.mxu0 %v14801_v6  ;;  %v14823_v18 = vpack.c.bf16 %v1398_v1, %v1394_v0  ;;  %v14825_v23 = vpack.c.bf16 %v1400_v13, %v1396_v61  ;;  %v1402_v6 = vld [vmem:[#allocation7 + $0x448] sm:$0xff]  ;;  %v1404_v35 = vld [vmem:[#allocation7 + $0x458] sm:$0xff]  ;;  %17863 = vst [vmem:[#allocation75_spill] sm:$0xff] %v14831_v53  ;;  %v1405_v0 = vld [vmem:[#allocation7 + $0x460] sm:$0xff] }
 0x25e   : > { %v1403_v61 = vld [vmem:[#allocation7 + $0x450] sm:$0xff]  ;;  %v14847_v31 = vpack.c.bf16 %v1405_v0, %v1401_v16  ;;  %v1422_v16 = vld [vmem:[#allocation7 + $0x4e8] sm:$0xff]  ;;  %v1420_v0 = vld [vmem:[#allocation7 + $0x4d8] sm:$0xff] }
 0x25f   : > { %17860 = vst [vmem:[#allocation72_spill] sm:$0xff] %v14823_v18  ;;  %17861 = vst [vmem:[#allocation73_spill] sm:$0xff] %v14825_v23  ;;  %v1407_v13 = vld [vmem:[#allocation7 + $0x470] sm:$0xff] }
 0x260   : > { %11252 = vmatpush1.bf16.msra.mxu1 %v14805_v10  ;;  %11284 = vmatpush1.bf16.msra.mxu0 %v14807_v21  ;;  %v1406_v10 = vld [vmem:[#allocation7 + $0x468] sm:$0xff]  ;;  %v1408_v21 = vld [vmem:[#allocation7 + $0x478] sm:$0xff]  ;;  %17866 = vst [vmem:[#allocation78_spill] sm:$0xff] %v14847_v31 }
 0x261   : > { %11254 = vmatprep.subr.bf16.mxu1 %v14811_v46  ;;  %11286 = vmatprep.subr.bf16.mxu0 %v14813_v51  ;;  %v1415_v46 = vld [vmem:[#allocation7 + $0x4b0] sm:$0xff] }
 0x264   : > { %11256 = vmatpush1.bf16.msra.mxu1 %v14817_v11  ;;  %11288 = vmatpush1.bf16.msra.mxu0 %v14819_v42  ;;  %v14839_v11 = vpack.c.bf16 %v1406_v10, %v1402_v6  ;;  %v14841_v42 = vpack.c.bf16 %v1408_v21, %v1404_v35  ;;  %v1413_v6 = vld [vmem:[#allocation7 + $0x4a0] sm:$0xff]  ;;  %v14853_v35 = vpack.c.bf16 %v1414_v25, %v1410_v40  ;;  %v1411_v21 = vld [vmem:[#allocation7 + $0x490] sm:$0xff] }
 0x265   : > { %v14833_v1 = vpop.f32.mrb[4].mxu1  ;;  %11290 = vmatprep.subr.bf16.mxu1 %v14823_v18  ;;  %11322 = vmatprep.subr.bf16.mxu0 %v14825_v23  ;;  %v14849_v23 = vpack.c.bf16 %v1407_v13, %v1403_v61  ;;  %v1409_v18 = vld [vmem:[#allocation7 + $0x480] sm:$0xff]  ;;  %v14855_v10 = vpack.c.bf16 %v1416_v9, %v1412_v63  ;;  %v1424_v61 = vld [vmem:[#allocation7 + $0x4f8] sm:$0xff]  ;;  %v14869_v25 = vpack.c.bf16 %v1415_v46, %v1411_v21 }
 0x266   : > { %v14837_v51 = vpop.f32.mrb[5].mxu1  ;;  %17864 = vst [vmem:[#allocation76_spill] sm:$0xff] %v14839_v11  ;;  %17865 = vst [vmem:[#allocation77_spill] sm:$0xff] %v14841_v42  ;;  %v14867_v40 = vpack.c.bf16 %v1413_v6, %v1409_v18  ;;  %v1417_v63 = vld [vmem:[#allocation7 + $0x4c0] sm:$0xff] }
 0x267   : > { %1263 = vmatmul.mubr.f32.vlgmr.msra.gmra.mrb[12].mxu1 %v14837_v51  ;;  %1352 = vmatmul.mubr.f32.vlgmr.msra.gmra.mrb[0].mxu0 %v14837_v51  ;;  %17867 = vst [vmem:[#allocation79_spill] sm:$0xff] %v14849_v23  ;;  %17868 = vst [vmem:[#allocation80_spill] sm:$0xff] %v14853_v35  ;;  %v1421_v9 = vld [vmem:[#allocation7 + $0x4e0] sm:$0xff] }
 0x268   : > { %11292 = vmatpush1.bf16.msra.mxu1 %v14829_v52  ;;  %11324 = vmatpush1.bf16.msra.mxu0 %v14831_v53  ;;  %17869 = vst [vmem:[#allocation81_spill] sm:$0xff] %v14855_v10  ;;  %17870 = vst [vmem:[#allocation82_spill] sm:$0xff] %v14867_v40  ;;  %v1419_v53 = vld [vmem:[#allocation7 + $0x4d0] sm:$0xff]  ;;  %v1425_v18 = vld [vmem:[#allocation7 + $0x500] sm:$0xff] }
 0x269   : > { %1268 = vmatprep.mubr.f32.mxu1 %v17835_v7  ;;  %1357 = vmatprep.mubr.f32.mxu0 %v17835_v7  ;;  %v14857_v52 = vpop.f32.mrb[6].mxu1  ;;  %17871 = vst [vmem:[#allocation83_spill] sm:$0xff] %v14869_v25  ;;  %v14885_v46 = vpack.c.bf16 %v1423_v57, %v1419_v53  ;;  %v1429_v6 = vld [vmem:[#allocation7 + $0x520] sm:$0xff] }
 0x26a   : > { %11294 = vmatprep.subr.bf16.mxu1 %v14839_v11  ;;  %11326 = vmatprep.subr.bf16.mxu0 %v14841_v42  ;;  %v14861_v13 = vpop.f32.mrb[7].mxu1  ;;  %v14873_v42 = vpack.c.bf16 %v1422_v16, %v1418_v62  ;;  %v14875_v11 = vpack.c.bf16 %v1424_v61, %v1420_v0  ;;  %v14883_v62 = vpack.c.bf16 %v1421_v9, %v1417_v63  ;;  %v1427_v0 = vld [vmem:[#allocation7 + $0x510] sm:$0xff]  ;;  %v1433_v57 = vld [vmem:[#allocation7 + $0x540] sm:$0xff] }
 0x26b   : > { %1269 = vmatmul.mubr.f32.gmra.mrb[14].mxu1 %v14833_v1  ;;  %1358 = vmatmul.mubr.f32.gmra.mrb[2].mxu0 %v14833_v1  ;;  %17875 = vst [vmem:[#allocation87_spill] sm:$0xff] %v14885_v46  ;;  %v1431_v61 = vld [vmem:[#allocation7 + $0x530] sm:$0xff] }
 0x26c   : > { %11296 = vmatpush1.bf16.msra.mxu1 %v14847_v31  ;;  %11328 = vmatpush1.bf16.msra.mxu0 %v14849_v23  ;;  %17872 = vst [vmem:[#allocation84_spill] sm:$0xff] %v14873_v42  ;;  %17873 = vst [vmem:[#allocation85_spill] sm:$0xff] %v14875_v11  ;;  %v1430_v31 = vld [vmem:[#allocation7 + $0x528] sm:$0xff]  ;;  %v1432_v23 = vld [vmem:[#allocation7 + $0x538] sm:$0xff] }
 0x26d   : > { %11298 = vmatprep.subr.bf16.mxu1 %v14853_v35  ;;  %11330 = vmatprep.subr.bf16.mxu0 %v14855_v10  ;;  %17874 = vst [vmem:[#allocation86_spill] sm:$0xff] %v14883_v62  ;;  %v14889_v21 = vpack.c.bf16 %v1430_v31, %v1426_v56  ;;  %v14891_v16 = vpack.c.bf16 %v1432_v23, %v1428_v50  ;;  %v1434_v10 = vld [vmem:[#allocation7 + $0x548] sm:$0xff]  ;;  %v1436_v35 = vld [vmem:[#allocation7 + $0x558] sm:$0xff]  ;;  %v1437_v23 = vld [vmem:[#allocation7 + $0x560] sm:$0xff] }
 0x26e   : > { %1274 = vmatprep.mubr.f32.mxu1 %v17835_v7  ;;  %1363 = vmatprep.mubr.f32.mxu0 %v17835_v7  ;;  %v14899_v50 = vpack.c.bf16 %v1429_v6, %v1425_v18  ;;  %v14901_v56 = vpack.c.bf16 %v1431_v61, %v1427_v0  ;;  %v1435_v63 = vld [vmem:[#allocation7 + $0x550] sm:$0xff]  ;;  %v14913_v18 = vpack.c.bf16 %v1437_v23, %v1433_v57 }
 0x26f   : > { %1275 = vmatmul.mubr.f32.gmra.mrb[16].mxu1 %v14861_v13  ;;  %1364 = vmatmul.mubr.f32.gmra.mrb[4].mxu0 %v14861_v13  ;;  %17876 = vst [vmem:[#allocation88_spill] sm:$0xff] %v14889_v21  ;;  %17877 = vst [vmem:[#allocation89_spill] sm:$0xff] %v14891_v16  ;;  %v1439_v9 = vld [vmem:[#allocation7 + $0x570] sm:$0xff] }
 0x270   : > { %11300 = vmatpush1.bf16.msra.mxu1 %v14867_v40  ;;  %11332 = vmatpush1.bf16.msra.mxu0 %v14869_v25  ;;  %v1438_v40 = vld [vmem:[#allocation7 + $0x568] sm:$0xff]  ;;  %v1440_v25 = vld [vmem:[#allocation7 + $0x578] sm:$0xff]  ;;  %17878 = vst [vmem:[#allocation90_spill] sm:$0xff] %v14899_v50  ;;  %17879 = vst [vmem:[#allocation91_spill] sm:$0xff] %v14901_v56 }
 0x271   : > { %11302 = vmatprep.subr.bf16.mxu1 %v14873_v42  ;;  %11334 = vmatprep.subr.bf16.mxu0 %v14875_v11  ;;  %v14905_v53 = vpack.c.bf16 %v1438_v40, %v1434_v10  ;;  %v14907_v31 = vpack.c.bf16 %v1440_v25, %v1436_v35  ;;  %v1442_v11 = vld [vmem:[#allocation7 + $0x588] sm:$0xff]  ;;  %v1444_v42 = vld [vmem:[#allocation7 + $0x598] sm:$0xff]  ;;  %17882 = vst [vmem:[#allocation94_spill] sm:$0xff] %v14913_v18  ;;  %v1441_v35 = vld [vmem:[#allocation7 + $0x580] sm:$0xff] }
 0x272   : > { %1280 = vmatprep.mubr.f32.mxu1 %v17835_v7  ;;  %1369 = vmatprep.mubr.f32.mxu0 %v17835_v7  ;;  %v14915_v10 = vpack.c.bf16 %v1439_v9, %v1435_v63  ;;  %v1445_v40 = vld [vmem:[#allocation7 + $0x5a0] sm:$0xff]  ;;  %v1443_v0 = vld [vmem:[#allocation7 + $0x590] sm:$0xff] }
 0x273   : > { %1281 = vmatmul.mubr.f32.gmra.mrb[18].mxu1 %v14857_v52  ;;  %1370 = vmatmul.mubr.f32.gmra.mrb[6].mxu0 %v14857_v52  ;;  %17880 = vst [vmem:[#allocation92_spill] sm:$0xff] %v14905_v53  ;;  %17881 = vst [vmem:[#allocation93_spill] sm:$0xff] %v14907_v31  ;;  %v1447_v61 = vld [vmem:[#allocation7 + $0x5b0] sm:$0xff]  ;;  %v14925_v57 = vpack.c.bf16 %v1445_v40, %v1441_v35  ;;  %v1449_v63 = vld [vmem:[#allocation7 + $0x5c0] sm:$0xff] }
 0x274   : > { %11304 = vmatpush1.bf16.msra.mxu1 %v14883_v62  ;;  %11336 = vmatpush1.bf16.msra.mxu0 %v14885_v46  ;;  %v1446_v62 = vld [vmem:[#allocation7 + $0x5a8] sm:$0xff]  ;;  %v1448_v46 = vld [vmem:[#allocation7 + $0x5b8] sm:$0xff]  ;;  %17883 = vst [vmem:[#allocation95_spill] sm:$0xff] %v14915_v10  ;;  %v14927_v23 = vpack.c.bf16 %v1447_v61, %v1443_v0  ;;  %v1453_v9 = vld [vmem:[#allocation7 + $0x5e0] sm:$0xff] }
 0x275   : > { %11306 = vmatprep.subr.bf16.mxu1 %v14889_v21  ;;  %11338 = vmatprep.subr.bf16.mxu0 %v14891_v16  ;;  %v14919_v25 = vpack.c.bf16 %v1446_v62, %v1442_v11  ;;  %v14921_v6 = vpack.c.bf16 %v1448_v46, %v1444_v42  ;;  %v1450_v16 = vld [vmem:[#allocation7 + $0x5c8] sm:$0xff]  ;;  %v1452_v21 = vld [vmem:[#allocation7 + $0x5d8] sm:$0xff]  ;;  %17886 = vst [vmem:[#allocation98_spill] sm:$0xff] %v14925_v57  ;;  %v1451_v62 = vld [vmem:[#allocation7 + $0x5d0] sm:$0xff] }
 0x276   : > { %1521 = vmatprep.mubr.f32.mxu1 %v17835_v7  ;;  %1610 = vmatprep.mubr.f32.mxu0 %v17835_v7  ;;  %17887 = vst [vmem:[#allocation99_spill] sm:$0xff] %v14927_v23  ;;  %v1455_v46 = vld [vmem:[#allocation7 + $0x5f0] sm:$0xff]  ;;  %v14937_v35 = vpack.c.bf16 %v1453_v9, %v1449_v63  ;;  %v1668_v0 = vld [vmem:[#allocation7 + $0x600] sm:$0xff] }
 0x277   : > { %17884 = vst [vmem:[#allocation96_spill] sm:$0xff] %v14919_v25  ;;  %17885 = vst [vmem:[#allocation97_spill] sm:$0xff] %v14921_v6  ;;  %v14939_v40 = vpack.c.bf16 %v1455_v46, %v1451_v62  ;;  %v1674_v61 = vld [vmem:[#allocation7 + $0x630] sm:$0xff]  ;;  %v1676_v62 = vld [vmem:[#allocation7 + $0x640] sm:$0xff] }
 0x278   : > { %11308 = vmatpush1.bf16.msra.mxu1 %v14899_v50  ;;  %11340 = vmatpush1.bf16.msra.mxu0 %v14901_v56  ;;  %v1454_v50 = vld [vmem:[#allocation7 + $0x5e8] sm:$0xff]  ;;  %v1456_v56 = vld [vmem:[#allocation7 + $0x5f8] sm:$0xff]  ;;  %17890 = vst [vmem:[#allocation102_spill] sm:$0xff] %v14937_v35 }
 0x279   : > { %11310 = vmatprep.subr.bf16.mxu1 %v14905_v53  ;;  %11342 = vmatprep.subr.bf16.mxu0 %v14907_v31  ;;  %v14931_v11 = vpack.c.bf16 %v1454_v50, %v1450_v16  ;;  %v14933_v42 = vpack.c.bf16 %v1456_v56, %v1452_v21  ;;  %v1669_v31 = vld [vmem:[#allocation7 + $0x608] sm:$0xff]  ;;  %v1671_v53 = vld [vmem:[#allocation7 + $0x618] sm:$0xff]  ;;  %17891 = vst [vmem:[#allocation103_spill] sm:$0xff] %v14939_v40  ;;  %v1672_v50 = vld [vmem:[#allocation7 + $0x620] sm:$0xff] }
 0x27a   : > { %v1670_v56 = vld [vmem:[#allocation7 + $0x610] sm:$0xff]  ;;  %v14949_v63 = vpack.c.bf16 %v1672_v50, %v1668_v0  ;;  %v1685_v0 = vld [vmem:[#allocation7 + $0x688] sm:$0xff] }
 0x27b   : > { %17888 = vst [vmem:[#allocation100_spill] sm:$0xff] %v14931_v11  ;;  %17889 = vst [vmem:[#allocation101_spill] sm:$0xff] %v14933_v42  ;;  %v14951_v9 = vpack.c.bf16 %v1674_v61, %v1670_v56  ;;  %v1689_v50 = vld [vmem:[#allocation7 + $0x6a8] sm:$0xff]  ;;  %v1687_v56 = vld [vmem:[#allocation7 + $0x698] sm:$0xff] }
 0x27c   : > { %11312 = vmatpush1.bf16.msra.mxu1 %v14913_v18  ;;  %11344 = vmatpush1.bf16.msra.mxu0 %v14915_v10  ;;  %v1673_v18 = vld [vmem:[#allocation7 + $0x628] sm:$0xff]  ;;  %v1675_v10 = vld [vmem:[#allocation7 + $0x638] sm:$0xff]  ;;  %17894 = vst [vmem:[#allocation106_spill] sm:$0xff] %v14949_v63 }
 0x27d   : > { %11314 = vmatprep.subr.bf16.mxu1 %v14919_v25  ;;  %11346 = vmatprep.subr.bf16.mxu0 %v14921_v6  ;;  %v14943_v21 = vpack.c.bf16 %v1673_v18, %v1669_v31  ;;  %v14945_v16 = vpack.c.bf16 %v1675_v10, %v1671_v53  ;;  %v1677_v6 = vld [vmem:[#allocation7 + $0x648] sm:$0xff]  ;;  %v1679_v25 = vld [vmem:[#allocation7 + $0x658] sm:$0xff]  ;;  %17895 = vst [vmem:[#allocation107_spill] sm:$0xff] %v14951_v9  ;;  %v1680_v53 = vld [vmem:[#allocation7 + $0x660] sm:$0xff] }
 0x27e   : > { %v1678_v18 = vld [vmem:[#allocation7 + $0x650] sm:$0xff]  ;;  %v1691_v61 = vld [vmem:[#allocation7 + $0x6b8] sm:$0xff] }
 0x27f   : > { %17892 = vst [vmem:[#allocation104_spill] sm:$0xff] %v14943_v21  ;;  %17893 = vst [vmem:[#allocation105_spill] sm:$0xff] %v14945_v16  ;;  %v1682_v10 = vld [vmem:[#allocation7 + $0x670] sm:$0xff] }
 0x280   : > { %11316 = vmatpush1.bf16.msra.mxu1 %v14925_v57  ;;  %11348 = vmatpush1.bf16.msra.mxu0 %v14927_v23  ;;  %v1681_v57 = vld [vmem:[#allocation7 + $0x668] sm:$0xff]  ;;  %v1683_v23 = vld [vmem:[#allocation7 + $0x678] sm:$0xff] }
 0x281   : > { %11318 = vmatprep.subr.bf16.mxu1 %v14931_v11  ;;  %11350 = vmatprep.subr.bf16.mxu0 %v14933_v42  ;;  %v14959_v42 = vpack.c.bf16 %v1681_v57, %v1677_v6  ;;  %v1684_v6 = vld [vmem:[#allocation7 + $0x680] sm:$0xff]  ;;  %v1699_v11 = vld [vmem:[#allocation7 + $0x6f8] sm:$0xff] }
 0x282   : > { %v1688_v57 = vld [vmem:[#allocation7 + $0x6a0] sm:$0xff] }
 0x283   : > { %17896 = vst [vmem:[#allocation108_spill] sm:$0xff] %v14959_v42 }
 0x284   : > { %11320 = vmatpush1.bf16.msra.mxu1 %v14937_v35  ;;  %11352 = vmatpush1.bf16.msra.mxu0 %v14939_v40  ;;  %v14961_v35 = vpack.c.bf16 %v1683_v23, %v1679_v25  ;;  %v1686_v23 = vld [vmem:[#allocation7 + $0x690] sm:$0xff] }
 0x285   : > { %v14953_v31 = vpop.f32.mrb[8].mxu1  ;;  %11354 = vmatprep.subr.bf16.mxu1 %v14943_v21  ;;  %11386 = vmatprep.subr.bf16.mxu0 %v14945_v16  ;;  %v14967_v16 = vpack.c.bf16 %v1680_v53, %v1676_v62  ;;  %v14969_v21 = vpack.c.bf16 %v1682_v10, %v1678_v18  ;;  %v1690_v40 = vld [vmem:[#allocation7 + $0x6b0] sm:$0xff]  ;;  %v14979_v62 = vpack.c.bf16 %v1689_v50, %v1685_v0  ;;  %v1693_v18 = vld [vmem:[#allocation7 + $0x6c8] sm:$0xff]  ;;  %v1692_v0 = vld [vmem:[#allocation7 + $0x6c0] sm:$0xff] }
 0x286   : > { %v14957_v46 = vpop.f32.mrb[9].mxu1  ;;  %17897 = vst [vmem:[#allocation109_spill] sm:$0xff] %v14961_v35  ;;  %v14981_v53 = vpack.c.bf16 %v1691_v61, %v1687_v56  ;;  %v1697_v10 = vld [vmem:[#allocation7 + $0x6e8] sm:$0xff]  ;;  %v1696_v50 = vld [vmem:[#allocation7 + $0x6e0] sm:$0xff]  ;;  %v1694_v56 = vld [vmem:[#allocation7 + $0x6d0] sm:$0xff] }
 0x287   : > { %1522 = vmatmul.mubr.f32.vlgmr.msra.gmra.mrb[12].mxu1 %v14957_v46  ;;  %1611 = vmatmul.mubr.f32.vlgmr.msra.gmra.mrb[0].mxu0 %v14957_v46  ;;  %17898 = vst [vmem:[#allocation110_spill] sm:$0xff] %v14967_v16  ;;  %17899 = vst [vmem:[#allocation111_spill] sm:$0xff] %v14969_v21  ;;  %v1698_v61 = vld [vmem:[#allocation7 + $0x6f0] sm:$0xff] }
 0x288   : > { %11356 = vmatpush1.bf16.msra.mxu1 %v14949_v63  ;;  %11388 = vmatpush1.bf16.msra.mxu0 %v14951_v9  ;;  %17900 = vst [vmem:[#allocation112_spill] sm:$0xff] %v14979_v62  ;;  %17901 = vst [vmem:[#allocation113_spill] sm:$0xff] %v14981_v53  ;;  %v1695_v9 = vld [vmem:[#allocation7 + $0x6d8] sm:$0xff] }
 0x289   : > { %1527 = vmatprep.mubr.f32.mxu1 %v17835_v7  ;;  %1616 = vmatprep.mubr.f32.mxu0 %v17835_v7  ;;  %v14973_v25 = vpop.f32.mrb[10].mxu1 }
 0x28a   : > { %11358 = vmatprep.subr.bf16.mxu1 %v14959_v42  ;;  %11390 = vmatprep.subr.bf16.mxu0 %v14961_v35  ;;  %v14977_v63 = vpop.f32.mrb[11].mxu1  ;;  %v14987_v42 = vpack.c.bf16 %v1688_v57, %v1684_v6  ;;  %v14989_v35 = vpack.c.bf16 %v1690_v40, %v1686_v23  ;;  %v1705_v6 = vld [vmem:[#allocation7 + $0x728] sm:$0xff]  ;;  %v1703_v40 = vld [vmem:[#allocation7 + $0x718] sm:$0xff]  ;;  %v15003_v23 = vpack.c.bf16 %v1696_v50, %v1692_v0 }
 0x28b   : > { %1528 = vmatmul.mubr.f32.gmra.mrb[14].mxu1 %v14953_v31  ;;  %1617 = vmatmul.mubr.f32.gmra.mrb[2].mxu0 %v14953_v31  ;;  %v1707_v57 = vld [vmem:[#allocation7 + $0x738] sm:$0xff]  ;;  %v1713_v0 = vld [vmem:[#allocation7 + $0x768] sm:$0xff] }
 0x28c   : > { %11360 = vmatpush1.bf16.msra.mxu1 %v14967_v16  ;;  %11392 = vmatpush1.bf16.msra.mxu0 %v14969_v21  ;;  %17902 = vst [vmem:[#allocation114_spill] sm:$0xff] %v14987_v42  ;;  %17903 = vst [vmem:[#allocation115_spill] sm:$0xff] %v14989_v35  ;;  %v14995_v16 = vpack.c.bf16 %v1697_v10, %v1693_v18  ;;  %v14997_v21 = vpack.c.bf16 %v1699_v11, %v1695_v9  ;;  %v1704_v18 = vld [vmem:[#allocation7 + $0x720] sm:$0xff]  ;;  %v1702_v10 = vld [vmem:[#allocation7 + $0x710] sm:$0xff] }
 0x28d   : > { %1533 = vmatprep.mubr.f32.mxu1 %v17835_v7  ;;  %1622 = vmatprep.mubr.f32.mxu0 %v17835_v7  ;;  %17906 = vst [vmem:[#allocation118_spill] sm:$0xff] %v15003_v23  ;;  %v15009_v11 = vpack.c.bf16 %v1705_v6, %v1701_v49  ;;  %v15011_v9 = vpack.c.bf16 %v1707_v57, %v1703_v40  ;;  %v1711_v50 = vld [vmem:[#allocation7 + $0x758] sm:$0xff]  ;;  %v1708_v6 = vld [vmem:[#allocation7 + $0x740] sm:$0xff] }
 0x28e   : > { %11362 = vmatprep.subr.bf16.mxu1 %v14979_v62  ;;  %11394 = vmatprep.subr.bf16.mxu0 %v14981_v53  ;;  %17904 = vst [vmem:[#allocation116_spill] sm:$0xff] %v14995_v16  ;;  %17905 = vst [vmem:[#allocation117_spill] sm:$0xff] %v14997_v21  ;;  %v15005_v62 = vpack.c.bf16 %v1698_v61, %v1694_v56  ;;  %v1700_v53 = vld [vmem:[#allocation7 + $0x700] sm:$0xff]  ;;  %v1715_v56 = vld [vmem:[#allocation7 + $0x778] sm:$0xff]  ;;  %v15021_v61 = vpack.c.bf16 %v1706_v41, %v1702_v10 }
 0x28f   : > { %1534 = vmatmul.mubr.f32.gmra.mrb[16].mxu1 %v14977_v63  ;;  %1623 = vmatmul.mubr.f32.gmra.mrb[4].mxu0 %v14977_v63  ;;  %17908 = vst [vmem:[#allocation120_spill] sm:$0xff] %v15009_v11  ;;  %17909 = vst [vmem:[#allocation121_spill] sm:$0xff] %v15011_v9  ;;  %v15019_v49 = vpack.c.bf16 %v1704_v18, %v1700_v53  ;;  %v1712_v40 = vld [vmem:[#allocation7 + $0x760] sm:$0xff]  ;;  %v15025_v57 = vpack.c.bf16 %v1713_v0, %v1709_v38 }
 0x290   : > { %11364 = vmatpush1.bf16.msra.mxu1 %v14987_v42  ;;  %11396 = vmatpush1.bf16.msra.mxu0 %v14989_v35  ;;  %17907 = vst [vmem:[#allocation119_spill] sm:$0xff] %v15005_v62  ;;  %17911 = vst [vmem:[#allocation123_spill] sm:$0xff] %v15021_v61  ;;  %v1714_v35 = vld [vmem:[#allocation7 + $0x770] sm:$0xff]  ;;  %v1717_v42 = vld [vmem:[#allocation7 + $0x788] sm:$0xff]  ;;  %v15033_v41 = vpack.c.bf16 %v1712_v40, %v1708_v6 }
 0x291   : > { %1539 = vmatprep.mubr.f32.mxu1 %v17835_v7  ;;  %1628 = vmatprep.mubr.f32.mxu0 %v17835_v7  ;;  %17910 = vst [vmem:[#allocation122_spill] sm:$0xff] %v15019_v49  ;;  %17912 = vst [vmem:[#allocation124_spill] sm:$0xff] %v15025_v57  ;;  %v1716_v53 = vld [vmem:[#allocation7 + $0x780] sm:$0xff] }
 0x292   : > { %11366 = vmatprep.subr.bf16.mxu1 %v14995_v16  ;;  %11398 = vmatprep.subr.bf16.mxu0 %v14997_v21  ;;  %v15027_v21 = vpack.c.bf16 %v1715_v56, %v1711_v50  ;;  %v1710_v16 = vld [vmem:[#allocation7 + $0x750] sm:$0xff]  ;;  %17914 = vst [vmem:[#allocation126_spill] sm:$0xff] %v15033_v41  ;;  %v1720_v18 = vld [vmem:[#allocation7 + $0x7a0] sm:$0xff] }
 0x293   : > { %1540 = vmatmul.mubr.f32.gmra.mrb[18].mxu1 %v14973_v25  ;;  %1629 = vmatmul.mubr.f32.gmra.mrb[6].mxu0 %v14973_v25  ;;  %v15035_v38 = vpack.c.bf16 %v1714_v35, %v1710_v16  ;;  %v1718_v50 = vld [vmem:[#allocation7 + $0x790] sm:$0xff]  ;;  %v15045_v35 = vpack.c.bf16 %v1720_v18, %v1716_v53  ;;  %v1724_v6 = vld [vmem:[#allocation7 + $0x7c0] sm:$0xff] }
 0x294   : > { %11368 = vmatpush1.bf16.msra.mxu1 %v15003_v23  ;;  %11400 = vmatpush1.bf16.msra.mxu0 %v15005_v62  ;;  %17913 = vst [vmem:[#allocation125_spill] sm:$0xff] %v15027_v21  ;;  %v1721_v23 = vld [vmem:[#allocation7 + $0x7a8] sm:$0xff]  ;;  %v1723_v62 = vld [vmem:[#allocation7 + $0x7b8] sm:$0xff]  ;;  %v1722_v56 = vld [vmem:[#allocation7 + $0x7b0] sm:$0xff] }
 0x295   : > { %11370 = vmatprep.subr.bf16.mxu1 %v15009_v11  ;;  %11402 = vmatprep.subr.bf16.mxu0 %v15011_v9  ;;  %17915 = vst [vmem:[#allocation127_spill] sm:$0xff] %v15035_v38  ;;  %v15039_v10 = vpack.c.bf16 %v1721_v23, %v1717_v42  ;;  %v15041_v0 = vpack.c.bf16 %v1723_v62, %v1719_v32  ;;  %v1725_v9 = vld [vmem:[#allocation7 + $0x7c8] sm:$0xff]  ;;  %v1727_v11 = vld [vmem:[#allocation7 + $0x7d8] sm:$0xff]  ;;  %17918 = vst [vmem:[#allocation130_spill] sm:$0xff] %v15045_v35 }
 0x296   : > { %1796 = vmatprep.mubr.f32.mxu1 %v17835_v7  ;;  %1885 = vmatprep.mubr.f32.mxu0 %v17835_v7  ;;  %v15047_v16 = vpack.c.bf16 %v1722_v56, %v1718_v50  ;;  %v1728_v40 = vld [vmem:[#allocation7 + $0x7e0] sm:$0xff]  ;;  %v1726_v62 = vld [vmem:[#allocation7 + $0x7d0] sm:$0xff] }
 0x297   : > { %17916 = vst [vmem:[#allocation128_spill] sm:$0xff] %v15039_v10  ;;  %17917 = vst [vmem:[#allocation129_spill] sm:$0xff] %v15041_v0  ;;  %v1730_v23 = vld [vmem:[#allocation7 + $0x7f0] sm:$0xff]  ;;  %v15057_v53 = vpack.c.bf16 %v1728_v40, %v1724_v6  ;;  %v1927_v50 = vld [vmem:[#allocation7 + $0x800] sm:$0xff] }
 0x298   : > { %11372 = vmatpush1.bf16.msra.mxu1 %v15019_v49  ;;  %11404 = vmatpush1.bf16.msra.mxu0 %v15021_v61  ;;  %v1729_v49 = vld [vmem:[#allocation7 + $0x7e8] sm:$0xff]  ;;  %v1731_v61 = vld [vmem:[#allocation7 + $0x7f8] sm:$0xff]  ;;  %17919 = vst [vmem:[#allocation131_spill] sm:$0xff] %v15047_v16  ;;  %v15059_v18 = vpack.c.bf16 %v1730_v23, %v1726_v62  ;;  %v1933_v56 = vld [vmem:[#allocation7 + $0x830] sm:$0xff] }
 0x299   : > { %11374 = vmatprep.subr.bf16.mxu1 %v15025_v57  ;;  %11406 = vmatprep.subr.bf16.mxu0 %v15027_v21  ;;  %v15051_v32 = vpack.c.bf16 %v1729_v49, %v1725_v9  ;;  %v15053_v42 = vpack.c.bf16 %v1731_v61, %v1727_v11  ;;  %v1928_v21 = vld [vmem:[#allocation7 + $0x808] sm:$0xff]  ;;  %v1930_v57 = vld [vmem:[#allocation7 + $0x818] sm:$0xff]  ;;  %v1931_v49 = vld [vmem:[#allocation7 + $0x820] sm:$0xff] }
 0x29a   : > { %v1929_v61 = vld [vmem:[#allocation7 + $0x810] sm:$0xff]  ;;  %v15069_v6 = vpack.c.bf16 %v1931_v49, %v1927_v50  ;;  %v1935_v62 = vld [vmem:[#allocation7 + $0x840] sm:$0xff]  ;;  %v1948_v50 = vld [vmem:[#allocation7 + $0x8a8] sm:$0xff] }
 0x29b   : > { %17920 = vst [vmem:[#allocation132_spill] sm:$0xff] %v15053_v42  ;;  %v15071_v40 = vpack.c.bf16 %v1933_v56, %v1929_v61  ;;  %v1946_v49 = vld [vmem:[#allocation7 + $0x898] sm:$0xff] }
 0x29c   : > { %11376 = vmatpush1.bf16.msra.mxu1 %v15033_v41  ;;  %11408 = vmatpush1.bf16.msra.mxu0 %v15035_v38  ;;  %v1932_v41 = vld [vmem:[#allocation7 + $0x828] sm:$0xff]  ;;  %v1934_v38 = vld [vmem:[#allocation7 + $0x838] sm:$0xff]  ;;  %17922 = vst [vmem:[#allocation134_spill] sm:$0xff] %v15069_v6 }
 0x29d   : > { %11378 = vmatprep.subr.bf16.mxu1 %v15039_v10  ;;  %11410 = vmatprep.subr.bf16.mxu0 %v15041_v0  ;;  %v15063_v11 = vpack.c.bf16 %v1932_v41, %v1928_v21  ;;  %v15065_v9 = vpack.c.bf16 %v1934_v38, %v1930_v57  ;;  %v1936_v0 = vld [vmem:[#allocation7 + $0x848] sm:$0xff]  ;;  %v1938_v10 = vld [vmem:[#allocation7 + $0x858] sm:$0xff]  ;;  %17923 = vst [vmem:[#allocation135_spill] sm:$0xff] %v15071_v40  ;;  %v1939_v21 = vld [vmem:[#allocation7 + $0x860] sm:$0xff] }
 0x29e   : > { %v1937_v57 = vld [vmem:[#allocation7 + $0x850] sm:$0xff]  ;;  %v1950_v61 = vld [vmem:[#allocation7 + $0x8b8] sm:$0xff]  ;;  %v15083_v56 = vpack.c.bf16 %v1939_v21, %v1935_v62  ;;  %v1952_v62 = vld [vmem:[#allocation7 + $0x8c8] sm:$0xff] }
 0x29f   : > { %17921 = vst [vmem:[#allocation133_spill] sm:$0xff] %v15065_v9  ;;  %v1941_v41 = vld [vmem:[#allocation7 + $0x870] sm:$0xff]  ;;  %v1956_v21 = vld [vmem:[#allocation7 + $0x8e8] sm:$0xff] }
 0x2a0   : > { %11380 = vmatpush1.bf16.msra.mxu1 %v15045_v35  ;;  %11412 = vmatpush1.bf16.msra.mxu0 %v15047_v16  ;;  %v1940_v35 = vld [vmem:[#allocation7 + $0x868] sm:$0xff]  ;;  %v1942_v16 = vld [vmem:[#allocation7 + $0x878] sm:$0xff]  ;;  %17926 = vst [vmem:[#allocation138_spill] sm:$0xff] %v15083_v56 }
 0x2a1   : > { %11382 = vmatprep.subr.bf16.mxu1 %v15051_v32  ;;  %11414 = vmatprep.subr.bf16.mxu0 %v15053_v42  ;;  %v15075_v38 = vpack.c.bf16 %v1940_v35, %v1936_v0  ;;  %v15077_v23 = vpack.c.bf16 %v1942_v16, %v1938_v10  ;;  %v1944_v42 = vld [vmem:[#allocation7 + $0x888] sm:$0xff]  ;;  %v1943_v0 = vld [vmem:[#allocation7 + $0x880] sm:$0xff]  ;;  %v1945_v35 = vld [vmem:[#allocation7 + $0x890] sm:$0xff] }
 0x2a2   : > { %v1947_v10 = vld [vmem:[#allocation7 + $0x8a0] sm:$0xff]  ;;  %v1949_v16 = vld [vmem:[#allocation7 + $0x8b0] sm:$0xff] }
 0x2a3   : > { %17924 = vst [vmem:[#allocation136_spill] sm:$0xff] %v15075_v38  ;;  %17925 = vst [vmem:[#allocation137_spill] sm:$0xff] %v15077_v23 }
 0x2a4   : > { %11384 = vmatpush1.bf16.msra.mxu1 %v15057_v53  ;;  %11416 = vmatpush1.bf16.msra.mxu0 %v15059_v18 }
 0x2a5   : > { %11418 = vmatprep.subr.bf16.mxu1 %v15063_v11  ;;  %11450 = vmatprep.subr.bf16.mxu0 %v15065_v9  ;;  %v15085_v9 = vpack.c.bf16 %v1941_v41, %v1937_v57  ;;  %v1954_v57 = vld [vmem:[#allocation7 + $0x8d8] sm:$0xff] }
 0x2a6   : > { %v1958_v41 = vld [vmem:[#allocation7 + $0x8f8] sm:$0xff] }
 0x2a7   : > { %1797 = vmatmul.mubr.f32.vlgmr.msra.gmra.mrb[20].mxu1 %v14717_v37  ;;  %1886 = vmatmul.mubr.f32.vlgmr.msra.gmra.mrb[8].mxu0 %v14717_v37  ;;  %17927 = vst [vmem:[#allocation139_spill] sm:$0xff] %v15085_v9  ;;  %v15091_v37 = vpack.c.bf16 %v1948_v50, %v1944_v42  ;;  %v1951_v42 = vld [vmem:[#allocation7 + $0x8c0] sm:$0xff] }
 0x2a8   : > { %11420 = vmatpush1.bf16.msra.mxu1 %v15069_v6  ;;  %11452 = vmatpush1.bf16.msra.mxu0 %v15071_v40  ;;  %v15093_v6 = vpack.c.bf16 %v1950_v61, %v1946_v49  ;;  %v15099_v40 = vpack.c.bf16 %v1947_v10, %v1943_v0  ;;  %v1955_v50 = vld [vmem:[#allocation7 + $0x8e0] sm:$0xff]  ;;  %v1953_v49 = vld [vmem:[#allocation7 + $0x8d0] sm:$0xff]  ;;  %v1964_v0 = vld [vmem:[#allocation7 + $0x928] sm:$0xff] }
 0x2a9   : > { %1802 = vmatprep.mubr.f32.mxu1 %v17835_v7  ;;  %1891 = vmatprep.mubr.f32.mxu0 %v17835_v7  ;;  %17928 = vst [vmem:[#allocation140_spill] sm:$0xff] %v15091_v37  ;;  %v1957_v61 = vld [vmem:[#allocation7 + $0x8f0] sm:$0xff]  ;;  %v1962_v10 = vld [vmem:[#allocation7 + $0x918] sm:$0xff] }
 0x2aa   : > { %11422 = vmatprep.subr.bf16.mxu1 %v15075_v38  ;;  %11454 = vmatprep.subr.bf16.mxu0 %v15077_v23  ;;  %17929 = vst [vmem:[#allocation141_spill] sm:$0xff] %v15093_v6  ;;  %17930 = vst [vmem:[#allocation142_spill] sm:$0xff] %v15099_v40  ;;  %v15101_v38 = vpack.c.bf16 %v1949_v16, %v1945_v35  ;;  %v1966_v35 = vld [vmem:[#allocation7 + $0x938] sm:$0xff]  ;;  %v15115_v16 = vpack.c.bf16 %v1955_v50, %v1951_v42  ;;  %v1968_v23 = vld [vmem:[#allocation7 + $0x948] sm:$0xff] }
 0x2ab   : > { %1803 = vmatmul.mubr.f32.gmra.mrb[22].mxu1 %v14715_v30  ;;  %1892 = vmatmul.mubr.f32.gmra.mrb[10].mxu0 %v14715_v30  ;;  %v1960_v30 = vld [vmem:[#allocation7 + $0x908] sm:$0xff]  ;;  %v1970_v50 = vld [vmem:[#allocation7 + $0x958] sm:$0xff] }
 0x2ac   : > { %11424 = vmatpush1.bf16.msra.mxu1 %v15083_v56  ;;  %11456 = vmatpush1.bf16.msra.mxu0 %v15085_v9  ;;  %17931 = vst [vmem:[#allocation143_spill] sm:$0xff] %v15101_v38  ;;  %v15107_v56 = vpack.c.bf16 %v1956_v21, %v1952_v62  ;;  %v15109_v9 = vpack.c.bf16 %v1958_v41, %v1954_v57  ;;  %17934 = vst [vmem:[#allocation146_spill] sm:$0xff] %v15115_v16  ;;  %v1963_v62 = vld [vmem:[#allocation7 + $0x920] sm:$0xff]  ;;  %v1961_v41 = vld [vmem:[#allocation7 + $0x910] sm:$0xff] }
 0x2ad   : > { %1808 = vmatprep.mubr.f32.mxu1 %v17835_v7  ;;  %1897 = vmatprep.mubr.f32.mxu0 %v17835_v7  ;;  %v15121_v21 = vpack.c.bf16 %v1964_v0, %v1960_v30  ;;  %v15123_v57 = vpack.c.bf16 %v1966_v35, %v1962_v10  ;;  %v1972_v42 = vld [vmem:[#allocation7 + $0x968] sm:$0xff]  ;;  %v1967_v0 = vld [vmem:[#allocation7 + $0x940] sm:$0xff] }
 0x2ae   : > { %11426 = vmatprep.subr.bf16.mxu1 %v15091_v37  ;;  %11458 = vmatprep.subr.bf16.mxu0 %v15093_v6  ;;  %17932 = vst [vmem:[#allocation144_spill] sm:$0xff] %v15107_v56  ;;  %17933 = vst [vmem:[#allocation145_spill] sm:$0xff] %v15109_v9  ;;  %v15117_v37 = vpack.c.bf16 %v1957_v61, %v1953_v49  ;;  %v1959_v6 = vld [vmem:[#allocation7 + $0x900] sm:$0xff]  ;;  %v1974_v49 = vld [vmem:[#allocation7 + $0x978] sm:$0xff]  ;;  %v15137_v35 = vpack.c.bf16 %v1972_v42, %v1968_v23 }
 0x2af   : > { %1809 = vmatmul.mubr.f32.gmra.mrb[24].mxu1 %v14741_v33  ;;  %1898 = vmatmul.mubr.f32.gmra.mrb[12].mxu0 %v14741_v33  ;;  %17936 = vst [vmem:[#allocation148_spill] sm:$0xff] %v15121_v21  ;;  %17937 = vst [vmem:[#allocation149_spill] sm:$0xff] %v15123_v57  ;;  %v1965_v33 = vld [vmem:[#allocation7 + $0x930] sm:$0xff]  ;;  %v15131_v61 = vpack.c.bf16 %v1963_v62, %v1959_v6  ;;  %v1971_v10 = vld [vmem:[#allocation7 + $0x960] sm:$0xff] }
 0x2b0   : > { %11428 = vmatpush1.bf16.msra.mxu1 %v15099_v40  ;;  %11460 = vmatpush1.bf16.msra.mxu0 %v15101_v38  ;;  %17935 = vst [vmem:[#allocation147_spill] sm:$0xff] %v15117_v37  ;;  %v15133_v30 = vpack.c.bf16 %v1965_v33, %v1961_v41  ;;  %17940 = vst [vmem:[#allocation152_spill] sm:$0xff] %v15137_v35  ;;  %v1976_v38 = vld [vmem:[#allocation7 + $0x988] sm:$0xff]  ;;  %v1978_v40 = vld [vmem:[#allocation7 + $0x998] sm:$0xff]  ;;  %v15145_v6 = vpack.c.bf16 %v1971_v10, %v1967_v0 }
 0x2b1   : > { %1814 = vmatprep.mubr.f32.mxu1 %v17835_v7  ;;  %1903 = vmatprep.mubr.f32.mxu0 %v17835_v7  ;;  %17938 = vst [vmem:[#allocation150_spill] sm:$0xff] %v15131_v61  ;;  %v1975_v62 = vld [vmem:[#allocation7 + $0x980] sm:$0xff] }
 0x2b2   : > { %11430 = vmatprep.subr.bf16.mxu1 %v15107_v56  ;;  %11462 = vmatprep.subr.bf16.mxu0 %v15109_v9  ;;  %17939 = vst [vmem:[#allocation151_spill] sm:$0xff] %v15133_v30  ;;  %v15139_v9 = vpack.c.bf16 %v1974_v49, %v1970_v50  ;;  %v1969_v56 = vld [vmem:[#allocation7 + $0x950] sm:$0xff]  ;;  %17942 = vst [vmem:[#allocation154_spill] sm:$0xff] %v15145_v6  ;;  %v1979_v41 = vld [vmem:[#allocation7 + $0x9a0] sm:$0xff] }
 0x2b3   : > { %1815 = vmatmul.mubr.f32.gmra.mrb[26].mxu1 %v14737_v19  ;;  %1904 = vmatmul.mubr.f32.gmra.mrb[14].mxu0 %v14737_v19  ;;  %v1973_v19 = vld [vmem:[#allocation7 + $0x970] sm:$0xff]  ;;  %v1983_v10 = vld [vmem:[#allocation7 + $0x9c0] sm:$0xff] }
 0x2b4   : > { %11432 = vmatpush1.bf16.msra.mxu1 %v15115_v16  ;;  %11464 = vmatpush1.bf16.msra.mxu0 %v15117_v37  ;;  %17941 = vst [vmem:[#allocation153_spill] sm:$0xff] %v15139_v9  ;;  %v1980_v16 = vld [vmem:[#allocation7 + $0x9a8] sm:$0xff]  ;;  %v1982_v37 = vld [vmem:[#allocation7 + $0x9b8] sm:$0xff]  ;;  %v15147_v23 = vpack.c.bf16 %v1973_v19, %v1969_v56  ;;  %v1977_v50 = vld [vmem:[#allocation7 + $0x990] sm:$0xff]  ;;  %v15157_v56 = vpack.c.bf16 %v1979_v41, %v1975_v62 }
 0x2b5   : > { %11434 = vmatprep.subr.bf16.mxu1 %v15121_v21  ;;  %11466 = vmatprep.subr.bf16.mxu0 %v15123_v57  ;;  %v15151_v33 = vpack.c.bf16 %v1980_v16, %v1976_v38  ;;  %v15153_v42 = vpack.c.bf16 %v1982_v37, %v1978_v40  ;;  %v1981_v49 = vld [vmem:[#allocation7 + $0x9b0] sm:$0xff]  ;;  %v1984_v57 = vld [vmem:[#allocation7 + $0x9c8] sm:$0xff]  ;;  %v1986_v21 = vld [vmem:[#allocation7 + $0x9d8] sm:$0xff] }
 0x2b6   : > { %2055 = vmatprep.mubr.f32.mxu1 %v17835_v7  ;;  %2144 = vmatprep.mubr.f32.mxu0 %v17835_v7  ;;  %17943 = vst [vmem:[#allocation155_spill] sm:$0xff] %v15147_v23  ;;  %17946 = vst [vmem:[#allocation158_spill] sm:$0xff] %v15157_v56  ;;  %v15159_v0 = vpack.c.bf16 %v1981_v49, %v1977_v50  ;;  %v1987_v19 = vld [vmem:[#allocation7 + $0x9e0] sm:$0xff]  ;;  %v1985_v37 = vld [vmem:[#allocation7 + $0x9d0] sm:$0xff] }
 0x2b7   : > { %17944 = vst [vmem:[#allocation156_spill] sm:$0xff] %v15151_v33  ;;  %17945 = vst [vmem:[#allocation157_spill] sm:$0xff] %v15153_v42  ;;  %v1989_v16 = vld [vmem:[#allocation7 + $0x9f0] sm:$0xff]  ;;  %v15169_v62 = vpack.c.bf16 %v1987_v19, %v1983_v10  ;;  %v2186_v50 = vld [vmem:[#allocation7 + $0xa00] sm:$0xff] }
 0x2b8   : > { %11436 = vmatpush1.bf16.msra.mxu1 %v15131_v61  ;;  %11468 = vmatpush1.bf16.msra.mxu0 %v15133_v30  ;;  %v1988_v61 = vld [vmem:[#allocation7 + $0x9e8] sm:$0xff]  ;;  %v1990_v30 = vld [vmem:[#allocation7 + $0x9f8] sm:$0xff]  ;;  %17947 = vst [vmem:[#allocation159_spill] sm:$0xff] %v15159_v0  ;;  %v15171_v41 = vpack.c.bf16 %v1989_v16, %v1985_v37  ;;  %v2192_v49 = vld [vmem:[#allocation7 + $0xa30] sm:$0xff] }
 0x2b9   : > { %11438 = vmatprep.subr.bf16.mxu1 %v15137_v35  ;;  %11470 = vmatprep.subr.bf16.mxu0 %v15139_v9  ;;  %v15163_v40 = vpack.c.bf16 %v1988_v61, %v1984_v57  ;;  %v15165_v38 = vpack.c.bf16 %v1990_v30, %v1986_v21  ;;  %v2187_v9 = vld [vmem:[#allocation7 + $0xa08] sm:$0xff]  ;;  %v2189_v35 = vld [vmem:[#allocation7 + $0xa18] sm:$0xff]  ;;  %v2190_v61 = vld [vmem:[#allocation7 + $0xa20] sm:$0xff] }
 0x2ba   : > { %v2188_v30 = vld [vmem:[#allocation7 + $0xa10] sm:$0xff]  ;;  %v15181_v10 = vpack.c.bf16 %v2190_v61, %v2186_v50  ;;  %v2194_v37 = vld [vmem:[#allocation7 + $0xa40] sm:$0xff]  ;;  %v2207_v50 = vld [vmem:[#allocation7 + $0xaa8] sm:$0xff] }
 0x2bb   : > { %17948 = vst [vmem:[#allocation160_spill] sm:$0xff] %v15165_v38  ;;  %v15183_v19 = vpack.c.bf16 %v2192_v49, %v2188_v30  ;;  %v2205_v61 = vld [vmem:[#allocation7 + $0xa98] sm:$0xff] }
 0x2bc   : > { %11440 = vmatpush1.bf16.msra.mxu1 %v15145_v6  ;;  %11472 = vmatpush1.bf16.msra.mxu0 %v15147_v23  ;;  %v2191_v6 = vld [vmem:[#allocation7 + $0xa28] sm:$0xff]  ;;  %v2193_v23 = vld [vmem:[#allocation7 + $0xa38] sm:$0xff]  ;;  %17950 = vst [vmem:[#allocation162_spill] sm:$0xff] %v15181_v10 }
 0x2bd   : > { %11442 = vmatprep.subr.bf16.mxu1 %v15151_v33  ;;  %11474 = vmatprep.subr.bf16.mxu0 %v15153_v42  ;;  %v15175_v21 = vpack.c.bf16 %v2191_v6, %v2187_v9  ;;  %v15177_v57 = vpack.c.bf16 %v2193_v23, %v2189_v35  ;;  %v2195_v42 = vld [vmem:[#allocation7 + $0xa48] sm:$0xff]  ;;  %v2197_v33 = vld [vmem:[#allocation7 + $0xa58] sm:$0xff]  ;;  %17951 = vst [vmem:[#allocation163_spill] sm:$0xff] %v15183_v19  ;;  %v2198_v9 = vld [vmem:[#allocation7 + $0xa60] sm:$0xff] }
 0x2be   : > { %v2196_v35 = vld [vmem:[#allocation7 + $0xa50] sm:$0xff]  ;;  %v2209_v30 = vld [vmem:[#allocation7 + $0xab8] sm:$0xff]  ;;  %v15195_v49 = vpack.c.bf16 %v2198_v9, %v2194_v37  ;;  %v2211_v37 = vld [vmem:[#allocation7 + $0xac8] sm:$0xff] }
 0x2bf   : > { %17949 = vst [vmem:[#allocation161_spill] sm:$0xff] %v15177_v57  ;;  %v2200_v6 = vld [vmem:[#allocation7 + $0xa70] sm:$0xff]  ;;  %v2215_v9 = vld [vmem:[#allocation7 + $0xae8] sm:$0xff] }
 0x2c0   : > { %11444 = vmatpush1.bf16.msra.mxu1 %v15157_v56  ;;  %11476 = vmatpush1.bf16.msra.mxu0 %v15159_v0  ;;  %v2199_v56 = vld [vmem:[#allocation7 + $0xa68] sm:$0xff]  ;;  %v2201_v0 = vld [vmem:[#allocation7 + $0xa78] sm:$0xff]  ;;  %17954 = vst [vmem:[#allocation166_spill] sm:$0xff] %v15195_v49 }
 0x2c1   : > { %11446 = vmatprep.subr.bf16.mxu1 %v15163_v40  ;;  %11478 = vmatprep.subr.bf16.mxu0 %v15165_v38  ;;  %v15187_v23 = vpack.c.bf16 %v2199_v56, %v2195_v42  ;;  %v15189_v16 = vpack.c.bf16 %v2201_v0, %v2197_v33  ;;  %v2203_v38 = vld [vmem:[#allocation7 + $0xa88] sm:$0xff]  ;;  %v2202_v42 = vld [vmem:[#allocation7 + $0xa80] sm:$0xff]  ;;  %v2204_v56 = vld [vmem:[#allocation7 + $0xa90] sm:$0xff] }
 0x2c2   : > { %v2206_v33 = vld [vmem:[#allocation7 + $0xaa0] sm:$0xff]  ;;  %v2208_v0 = vld [vmem:[#allocation7 + $0xab0] sm:$0xff] }
 0x2c3   : > { %17952 = vst [vmem:[#allocation164_spill] sm:$0xff] %v15187_v23  ;;  %17953 = vst [vmem:[#allocation165_spill] sm:$0xff] %v15189_v16 }
 0x2c4   : > { %11448 = vmatpush1.bf16.msra.mxu1 %v15169_v62  ;;  %11480 = vmatpush1.bf16.msra.mxu0 %v15171_v41 }
 0x2c5   : > { %11482 = vmatprep.subr.bf16.mxu1 %v15175_v21  ;;  %11514 = vmatprep.subr.bf16.mxu0 %v15177_v57  ;;  %v15197_v57 = vpack.c.bf16 %v2200_v6, %v2196_v35  ;;  %v2213_v35 = vld [vmem:[#allocation7 + $0xad8] sm:$0xff] }
 0x2c6   : > { %v2217_v6 = vld [vmem:[#allocation7 + $0xaf8] sm:$0xff] }
 0x2c7   : > { %2056 = vmatmul.mubr.f32.vlgmr.msra.gmra.mrb[20].mxu1 %v14837_v51  ;;  %2145 = vmatmul.mubr.f32.vlgmr.msra.gmra.mrb[8].mxu0 %v14837_v51  ;;  %17955 = vst [vmem:[#allocation167_spill] sm:$0xff] %v15197_v57  ;;  %v15203_v51 = vpack.c.bf16 %v2207_v50, %v2203_v38  ;;  %v2210_v38 = vld [vmem:[#allocation7 + $0xac0] sm:$0xff] }
 0x2c8   : > { %11484 = vmatpush1.bf16.msra.mxu1 %v15181_v10  ;;  %11516 = vmatpush1.bf16.msra.mxu0 %v15183_v19  ;;  %v15205_v10 = vpack.c.bf16 %v2209_v30, %v2205_v61  ;;  %v15211_v19 = vpack.c.bf16 %v2206_v33, %v2202_v42  ;;  %v2214_v50 = vld [vmem:[#allocation7 + $0xae0] sm:$0xff]  ;;  %v2212_v61 = vld [vmem:[#allocation7 + $0xad0] sm:$0xff]  ;;  %v2223_v42 = vld [vmem:[#allocation7 + $0xb28] sm:$0xff] }
 0x2c9   : > { %2061 = vmatprep.mubr.f32.mxu1 %v17835_v7  ;;  %2150 = vmatprep.mubr.f32.mxu0 %v17835_v7  ;;  %17956 = vst [vmem:[#allocation168_spill] sm:$0xff] %v15203_v51  ;;  %v2216_v30 = vld [vmem:[#allocation7 + $0xaf0] sm:$0xff]  ;;  %v2221_v33 = vld [vmem:[#allocation7 + $0xb18] sm:$0xff] }
 0x2ca   : > { %11486 = vmatprep.subr.bf16.mxu1 %v15187_v23  ;;  %11518 = vmatprep.subr.bf16.mxu0 %v15189_v16  ;;  %17957 = vst [vmem:[#allocation169_spill] sm:$0xff] %v15205_v10  ;;  %17958 = vst [vmem:[#allocation170_spill] sm:$0xff] %v15211_v19  ;;  %v15213_v23 = vpack.c.bf16 %v2208_v0, %v2204_v56  ;;  %v2225_v56 = vld [vmem:[#allocation7 + $0xb38] sm:$0xff]  ;;  %v15227_v0 = vpack.c.bf16 %v2214_v50, %v2210_v38  ;;  %v2227_v16 = vld [vmem:[#allocation7 + $0xb48] sm:$0xff] }
 0x2cb   : > { %2062 = vmatmul.mubr.f32.gmra.mrb[22].mxu1 %v14833_v1  ;;  %2151 = vmatmul.mubr.f32.gmra.mrb[10].mxu0 %v14833_v1  ;;  %v2219_v1 = vld [vmem:[#allocation7 + $0xb08] sm:$0xff]  ;;  %v2229_v50 = vld [vmem:[#allocation7 + $0xb58] sm:$0xff] }
 0x2cc   : > { %11488 = vmatpush1.bf16.msra.mxu1 %v15195_v49  ;;  %11520 = vmatpush1.bf16.msra.mxu0 %v15197_v57  ;;  %17959 = vst [vmem:[#allocation171_spill] sm:$0xff] %v15213_v23  ;;  %v15219_v49 = vpack.c.bf16 %v2215_v9, %v2211_v37  ;;  %v15221_v57 = vpack.c.bf16 %v2217_v6, %v2213_v35  ;;  %17962 = vst [vmem:[#allocation174_spill] sm:$0xff] %v15227_v0  ;;  %v2222_v37 = vld [vmem:[#allocation7 + $0xb20] sm:$0xff]  ;;  %v2220_v6 = vld [vmem:[#allocation7 + $0xb10] sm:$0xff] }
 0x2cd   : > { %2067 = vmatprep.mubr.f32.mxu1 %v17835_v7  ;;  %2156 = vmatprep.mubr.f32.mxu0 %v17835_v7  ;;  %v15233_v9 = vpack.c.bf16 %v2223_v42, %v2219_v1  ;;  %v15235_v35 = vpack.c.bf16 %v2225_v56, %v2221_v33  ;;  %v2231_v38 = vld [vmem:[#allocation7 + $0xb68] sm:$0xff]  ;;  %v2226_v42 = vld [vmem:[#allocation7 + $0xb40] sm:$0xff] }
 0x2ce   : > { %11490 = vmatprep.subr.bf16.mxu1 %v15203_v51  ;;  %11522 = vmatprep.subr.bf16.mxu0 %v15205_v10  ;;  %17960 = vst [vmem:[#allocation172_spill] sm:$0xff] %v15219_v49  ;;  %17961 = vst [vmem:[#allocation173_spill] sm:$0xff] %v15221_v57  ;;  %v15229_v51 = vpack.c.bf16 %v2216_v30, %v2212_v61  ;;  %v2218_v10 = vld [vmem:[#allocation7 + $0xb00] sm:$0xff]  ;;  %v2233_v61 = vld [vmem:[#allocation7 + $0xb78] sm:$0xff]  ;;  %v15249_v56 = vpack.c.bf16 %v2231_v38, %v2227_v16 }
 0x2cf   : > { %2068 = vmatmul.mubr.f32.gmra.mrb[24].mxu1 %v14861_v13  ;;  %2157 = vmatmul.mubr.f32.gmra.mrb[12].mxu0 %v14861_v13  ;;  %17964 = vst [vmem:[#allocation176_spill] sm:$0xff] %v15233_v9  ;;  %17965 = vst [vmem:[#allocation177_spill] sm:$0xff] %v15235_v35  ;;  %v2224_v13 = vld [vmem:[#allocation7 + $0xb30] sm:$0xff]  ;;  %v15243_v30 = vpack.c.bf16 %v2222_v37, %v2218_v10  ;;  %v2230_v33 = vld [vmem:[#allocation7 + $0xb60] sm:$0xff] }
 0x2d0   : > { %11492 = vmatpush1.bf16.msra.mxu1 %v15211_v19  ;;  %11524 = vmatpush1.bf16.msra.mxu0 %v15213_v23  ;;  %17963 = vst [vmem:[#allocation175_spill] sm:$0xff] %v15229_v51  ;;  %v15245_v1 = vpack.c.bf16 %v2224_v13, %v2220_v6  ;;  %v2235_v23 = vld [vmem:[#allocation7 + $0xb88] sm:$0xff]  ;;  %v2237_v19 = vld [vmem:[#allocation7 + $0xb98] sm:$0xff]  ;;  %v15257_v10 = vpack.c.bf16 %v2230_v33, %v2226_v42  ;;  %v2234_v37 = vld [vmem:[#allocation7 + $0xb80] sm:$0xff] }
 0x2d1   : > { %2073 = vmatprep.mubr.f32.mxu1 %v17835_v7  ;;  %2162 = vmatprep.mubr.f32.mxu0 %v17835_v7  ;;  %17966 = vst [vmem:[#allocation178_spill] sm:$0xff] %v15243_v30  ;;  %v2238_v6 = vld [vmem:[#allocation7 + $0xba0] sm:$0xff] }
 0x2d2   : > { %11494 = vmatprep.subr.bf16.mxu1 %v15219_v49  ;;  %11526 = vmatprep.subr.bf16.mxu0 %v15221_v57  ;;  %17967 = vst [vmem:[#allocation179_spill] sm:$0xff] %v15245_v1  ;;  %v15251_v57 = vpack.c.bf16 %v2233_v61, %v2229_v50  ;;  %v2228_v49 = vld [vmem:[#allocation7 + $0xb50] sm:$0xff]  ;;  %v2242_v33 = vld [vmem:[#allocation7 + $0xbc0] sm:$0xff] }
 0x2d3   : > { %2074 = vmatmul.mubr.f32.gmra.mrb[26].mxu1 %v14857_v52  ;;  %2163 = vmatmul.mubr.f32.gmra.mrb[14].mxu0 %v14857_v52  ;;  %v2232_v52 = vld [vmem:[#allocation7 + $0xb70] sm:$0xff] }
 0x2d4   : > { %11496 = vmatpush1.bf16.msra.mxu1 %v15227_v0  ;;  %11528 = vmatpush1.bf16.msra.mxu0 %v15229_v51  ;;  %v2239_v0 = vld [vmem:[#allocation7 + $0xba8] sm:$0xff]  ;;  %v2241_v51 = vld [vmem:[#allocation7 + $0xbb8] sm:$0xff]  ;;  %v15259_v16 = vpack.c.bf16 %v2232_v52, %v2228_v49  ;;  %v2236_v50 = vld [vmem:[#allocation7 + $0xb90] sm:$0xff]  ;;  %v15269_v49 = vpack.c.bf16 %v2238_v6, %v2234_v37 }
 0x2d5   : > { %11498 = vmatprep.subr.bf16.mxu1 %v15233_v9  ;;  %11530 = vmatprep.subr.bf16.mxu0 %v15235_v35  ;;  %v15263_v13 = vpack.c.bf16 %v2239_v0, %v2235_v23  ;;  %v15265_v38 = vpack.c.bf16 %v2241_v51, %v2237_v19  ;;  %v2240_v61 = vld [vmem:[#allocation7 + $0xbb0] sm:$0xff]  ;;  %v2243_v35 = vld [vmem:[#allocation7 + $0xbc8] sm:$0xff]  ;;  %v2245_v9 = vld [vmem:[#allocation7 + $0xbd8] sm:$0xff] }
 0x2d6   : > { %2314 = vmatprep.mubr.f32.mxu1 %v17835_v7  ;;  %2403 = vmatprep.mubr.f32.mxu0 %v17835_v7  ;;  %v15271_v42 = vpack.c.bf16 %v2240_v61, %v2236_v50  ;;  %v2246_v51 = vld [vmem:[#allocation7 + $0xbe0] sm:$0xff]  ;;  %v2244_v0 = vld [vmem:[#allocation7 + $0xbd0] sm:$0xff]  ;;  %v2570_v50 = vld [vmem:[#allocation5 + $0x98] sm:$0xff] }
 0x2d7   : > { %v2248_v52 = vld [vmem:[#allocation7 + $0xbf0] sm:$0xff]  ;;  %v15281_v37 = vpack.c.bf16 %v2246_v51, %v2242_v33 }
 0x2d8   : > { %11500 = vmatpush1.bf16.msra.mxu1 %v15243_v30  ;;  %11532 = vmatpush1.bf16.msra.mxu0 %v15245_v1  ;;  %v2247_v30 = vld [vmem:[#allocation7 + $0xbe8] sm:$0xff]  ;;  %v2249_v1 = vld [vmem:[#allocation7 + $0xbf8] sm:$0xff]  ;;  %v15283_v6 = vpack.c.bf16 %v2248_v52, %v2244_v0  ;;  %v1097_v0 = vlaneseq }
 0x2d9   : > { %11502 = vmatprep.subr.bf16.mxu1 %v15249_v56  ;;  %11534 = vmatprep.subr.bf16.mxu0 %v15251_v57  ;;  %v15275_v19 = vpack.c.bf16 %v2247_v30, %v2243_v35  ;;  %v15277_v23 = vpack.c.bf16 %v2249_v1, %v2245_v9  ;;  %v2480_v9 = vld [vmem:[#allocation5 + $0x78] sm:$0xff]  ;;  %v2657_v35 = vld [vmem:[#allocation5 + $0xa0] sm:$0xff]  ;;  %v2568_v30 = vld [vmem:[#allocation5 + $0x88] sm:$0xff] }
 0x2da   : > { %v2569_v1 = vld [vmem:[#allocation5 + $0x90] sm:$0xff]  ;;  %v1098_v52 = vshrl.u32 %v1097_v0, 7 }
 0x2dc   : > { %11504 = vmatpush1.bf16.msra.mxu1 %v15257_v10  ;;  %11536 = vmatpush1.bf16.msra.mxu0 %v15259_v16 }
 0x2dd   : > { %11506 = vmatprep.subr.bf16.mxu1 %v15263_v13  ;;  %11538 = vmatprep.subr.bf16.mxu0 %v15265_v38 }
 0x2e0   : > { %11508 = vmatpush1.bf16.msra.mxu1 %v15269_v49  ;;  %11540 = vmatpush1.bf16.msra.mxu0 %v15271_v42 }
 0x2e1   : > { %11510 = vmatprep.subr.bf16.mxu1 %v15275_v19  ;;  %11542 = vmatprep.subr.bf16.mxu0 %v15277_v23 }
 0x2e4   : > { %11512 = vmatpush1.bf16.msra.mxu1 %v15281_v37  ;;  %11544 = vmatpush1.bf16.msra.mxu0 %v15283_v6 }
 0x2e5   : > { %11546 = vmatprep.subr.bf16.mxu1 %v14530_v3  ;;  %11578 = vmatprep.subr.bf16.mxu0 %v14530_v3 }
 0x2e7   : > { %2315 = vmatmul.mubr.f32.vlgmr.msra.gmra.mrb[20].mxu1 %v14957_v46  ;;  %2404 = vmatmul.mubr.f32.vlgmr.msra.gmra.mrb[8].mxu0 %v14957_v46  ;;  %v2567_v46 = vld [vmem:[#allocation5 + $0x80] sm:$0xff] }
 0x2e8   : > { %11548 = vmatpush3.bf16.msra.mxu1 %v14530_v3  ;;  %2320 = vmatprep.mubr.f32.mxu1 %v17835_v7 }
 0x2e9   : > { %2409 = vmatprep.mubr.f32.mxu0 %v17835_v7  ;;  %11550 = vmatprep.subr.bf16.mxu1 %v14533_v5 }
 0x2ea   : > { %11580 = vmatpush3.bf16.msra.mxu0 %v14530_v3 }
 0x2eb   : > { %2321 = vmatmul.mubr.f32.gmra.mrb[22].mxu1 %v14953_v31  ;;  %2410 = vmatmul.mubr.f32.gmra.mrb[10].mxu0 %v14953_v31  ;;  %v2477_v31 = vld [vmem:[#allocation5 + $0x60] sm:$0xff] }
 0x2ec   : > { %11552 = vmatpush3.bf16.msra.mxu1 %v14533_v5  ;;  %2326 = vmatprep.mubr.f32.mxu1 %v17835_v7 }
 0x2ed   : > { %2415 = vmatprep.mubr.f32.mxu0 %v17835_v7  ;;  %11554 = vmatprep.subr.bf16.mxu1 %v14540_v8 }
 0x2ee   : > { %11582 = vmatprep.subr.bf16.mxu0 %v14533_v5 }
 0x2ef   : > { %2327 = vmatmul.mubr.f32.gmra.mrb[24].mxu1 %v14977_v63  ;;  %2416 = vmatmul.mubr.f32.gmra.mrb[12].mxu0 %v14977_v63  ;;  %v2478_v63 = vld [vmem:[#allocation5 + $0x68] sm:$0xff] }
 0x2f0   : > { %11556 = vmatpush3.bf16.msra.mxu1 %v14540_v8  ;;  %2332 = vmatprep.mubr.f32.mxu1 %v17835_v7 }
 0x2f1   : > { %2421 = vmatprep.mubr.f32.mxu0 %v17835_v7  ;;  %11558 = vmatprep.subr.bf16.mxu1 %v14546_v12 }
 0x2f2   : > { %11584 = vmatpush3.bf16.msra.mxu0 %v14533_v5 }
 0x2f3   : > { %2333 = vmatmul.mubr.f32.gmra.mrb[26].mxu1 %v14973_v25  ;;  %2422 = vmatmul.mubr.f32.gmra.mrb[14].mxu0 %v14973_v25  ;;  %v2479_v25 = vld [vmem:[#allocation5 + $0x70] sm:$0xff] }
 0x2f4   : > { %11560 = vmatpush3.bf16.msra.mxu1 %v14546_v12  ;;  %10393 = vmatprep.mubr.f32.mxu1 %v2477_v31  ;;  %v1099_v31 = vsub.s32 0, %v1098_v52 }
 0x2f5   : > { %11562 = vmatprep.subr.bf16.mxu1 %v14556_v22  ;;  %11586 = vmatprep.subr.bf16.mxu0 %v14540_v8 }
 0x2f6   : > { %11588 = vmatpush3.bf16.msra.mxu0 %v14540_v8  ;;  %10431 = vmatprep.mubr.f32.mxu0 %v2567_v46  ;;  %v1107_v46 = vsub.s32 2, %v1098_v52 }
 0x2f7   : > { %11590 = vmatprep.subr.bf16.mxu0 %v14546_v12 }
 0x2f8   : > { %11564 = vmatpush3.bf16.msra.mxu1 %v14556_v22 }
 0x2f9   : > { %11566 = vmatprep.subr.bf16.mxu1 %v14571_v34 }
 0x2fa   : > { %11592 = vmatpush3.bf16.msra.mxu0 %v14546_v12 }
 0x2fb   : > { %11594 = vmatprep.subr.bf16.mxu0 %v14556_v22 }
 0x2fc   : > { %11568 = vmatpush3.bf16.msra.mxu1 %v14571_v34 }
 0x2fd   : > { %11570 = vmatprep.subr.bf16.mxu1 %v14583_v45 }
 0x2fe   : > { %11596 = vmatpush3.bf16.msra.mxu0 %v14556_v22 }
 0x2ff   : > { %11598 = vmatprep.subr.bf16.mxu0 %v14571_v34 }
 0x300   : > { %11572 = vmatpush3.bf16.msra.mxu1 %v14583_v45 }
 0x301   : > { %11574 = vmatprep.subr.bf16.mxu1 %v14595_v55 }
 0x302   : > { %11600 = vmatpush3.bf16.msra.mxu0 %v14571_v34 }
 0x303   : > { %11602 = vmatprep.subr.bf16.mxu0 %v14583_v45 }
 0x304   : > { %11576 = vmatpush3.bf16.msra.mxu1 %v14595_v55 }
 0x305   : > { %11610 = vmatprep.subr.bf16.mxu1 %v14530_v3 }
 0x306   : > { %11604 = vmatpush3.bf16.msra.mxu0 %v14583_v45 }
 0x307   : > { %10394 = vmatmul.mubr.f32.vlgmr.msra.gmra.mrb[28].mxu1 %v2478_v63  ;;  %11606 = vmatprep.subr.bf16.mxu0 %v14595_v55  ;;  %v1103_v63 = vsub.s32 1, %v1098_v52 }
 0x308   : > { %10396 = vmatprep.mubr.f32.mxu1 %v2479_v25  ;;  %11612 = vmatpush3.bf16.msra.mxu1 %v14530_v3  ;;  %v2658_v3 = vld [vmem:[#allocation5 + $0xa8] sm:$0xff]  ;;  %v1111_v25 = vsub.s32 3, %v1098_v52 }
 0x309   : > { %11614 = vmatprep.subr.bf16.mxu1 %v14533_v5 }
 0x30a   : > { %11608 = vmatpush3.bf16.msra.mxu0 %v14595_v55 }
 0x30b   : > { %10397 = vmatmul.mubr.f32.gmra.mrb[30].mxu1 %v2480_v9  ;;  %11642 = vmatprep.subr.bf16.mxu0 %v14654_v27  ;;  %v17976_v27 = vld [vmem:[#allocation37_spill] sm:$0xff]  ;;  %v584_v9 = vld [vmem:[#allocation8] sm:$0xf] }
 0x30c   : > { %11616 = vmatpush3.bf16.msra.mxu1 %v14533_v5  ;;  %10469 = vmatprep.mubr.f32.mxu1 %v2657_v35  ;;  %v2659_v5 = vld [vmem:[#allocation5 + $0xb0] sm:$0xff]  ;;  %v15395_v35 = vrot.slane %v584_v9, %v1099_v31 }
 0x30d   : > { %10432 = vmatmul.mubr.f32.vlgmr.msra.gmra.mrb[16].mxu0 %v2568_v30  ;;  %11618 = vmatprep.subr.bf16.mxu1 %v14540_v8  ;;  %v15397_v30 = vrot.slane %v584_v9, %v1107_v46 }
 0x30e   : > { %10434 = vmatprep.mubr.f32.mxu0 %v2569_v1  ;;  %11644 = vmatpush1.bf16.msra.mxu0 %v14657_v36  ;;  %v17978_v36 = vld [vmem:[#allocation39_spill] sm:$0xff]  ;;  %v15399_v1 = vrot.slane %v584_v9, %v1103_v63 }
 0x30f   : > { %11646 = vmatprep.subr.bf16.mxu0 %v14660_v39  ;;  %v17979_v39 = vld [vmem:[#allocation40_spill] sm:$0xff] }
 0x310   : > { %11620 = vmatpush3.bf16.msra.mxu1 %v14540_v8  ;;  %v2660_v8 = vld [vmem:[#allocation5 + $0xb8] sm:$0xff] }
 0x311   : > { %11622 = vmatprep.subr.bf16.mxu1 %v14546_v12  ;;  %10435 = vmatmul.mubr.f32.gmra.mrb[18].mxu0 %v2570_v50  ;;  %v15401_v50 = vrot.slane %v584_v9, %v1111_v25 }
 0x312   : > { %11648 = vmatpush1.bf16.msra.mxu0 %v14663_v47  ;;  %2810 = vmatprep.mubr.f32.mxu0 %v17835_v7  ;;  %v17980_v47 = vld [vmem:[#allocation41_spill] sm:$0xff] }
 0x313   : > { %11650 = vmatprep.subr.bf16.mxu0 %v14666_v48 }
 0x314   : > { %11624 = vmatpush3.bf16.msra.mxu1 %v14546_v12  ;;  %v17968_v12 = vld [vmem:[#allocation29_spill] sm:$0xff] }
 0x315   : > { %11626 = vmatprep.subr.bf16.mxu1 %v14556_v22 }
 0x316   : > { %11652 = vmatpush1.bf16.msra.mxu0 %v14669_v58 }
 0x317   : > { %11654 = vmatprep.subr.bf16.mxu0 %v14672_v59 }
 0x318   : > { %11628 = vmatpush3.bf16.msra.mxu1 %v14556_v22  ;;  %v17970_v22 = vld [vmem:[#allocation31_spill] sm:$0xff] }
 0x319   : > { %11630 = vmatprep.subr.bf16.mxu1 %v14571_v34 }
 0x31a   : > { %11656 = vmatpush1.bf16.msra.mxu0 %v14675_v2 }
 0x31b   : > { %11658 = vmatprep.subr.bf16.mxu0 %v14678_v4 }
 0x31c   : > { %11632 = vmatpush3.bf16.msra.mxu1 %v14571_v34  ;;  %v17971_v34 = vld [vmem:[#allocation32_spill] sm:$0xff] }
 0x31d   : > { %11634 = vmatprep.subr.bf16.mxu1 %v14583_v45 }
 0x31e   : > { %11660 = vmatpush1.bf16.msra.mxu0 %v14681_v14 }
 0x31f   : > { %11662 = vmatprep.subr.bf16.mxu0 %v14684_v15 }
 0x320   : > { %11636 = vmatpush3.bf16.msra.mxu1 %v14583_v45  ;;  %v17974_v45 = vld [vmem:[#allocation35_spill] sm:$0xff] }
 0x321   : > { %11638 = vmatprep.subr.bf16.mxu1 %v14595_v55 }
 0x322   : > { %11664 = vmatpush1.bf16.msra.mxu0 %v14687_v24 }
 0x323   : > { %11666 = vmatprep.subr.bf16.mxu0 %v14690_v28 }
 0x324   : > { %11640 = vmatpush3.bf16.msra.mxu1 %v14595_v55  ;;  %v17975_v55 = vld [vmem:[#allocation36_spill] sm:$0xff] }
 0x325   : > { %11674 = vmatprep.subr.bf16.mxu1 %v14550_v17  ;;  %v17969_v17 = vld [vmem:[#allocation30_spill] sm:$0xff] }
 0x326   : > { %11668 = vmatpush1.bf16.msra.mxu0 %v14697_v43 }
 0x327   : > { %10470 = vmatmul.mubr.f32.vlgmr.msra.gmra.mrb[32].mxu1 %v2658_v3  ;;  %11670 = vmatprep.subr.bf16.mxu0 %v14701_v44 }
 0x328   : > { %10472 = vmatprep.mubr.f32.mxu1 %v2659_v5  ;;  %11676 = vmatpush1.bf16.msra.mxu1 %v14553_v20  ;;  %v17972_v20 = vld [vmem:[#allocation33_spill] sm:$0xff] }
 0x329   : > { %11678 = vmatprep.subr.bf16.mxu1 %v14562_v26  ;;  %v17973_v26 = vld [vmem:[#allocation34_spill] sm:$0xff] }
 0x32a   : > { %11672 = vmatpush1.bf16.msra.mxu0 %v14704_v54 }
 0x32b   : > { %10473 = vmatmul.mubr.f32.gmra.mrb[34].mxu1 %v2660_v8  ;;  %11706 = vmatprep.subr.bf16.mxu0 %v14707_v60 }
 0x32c   : > { %11680 = vmatpush1.bf16.msra.mxu1 %v14564_v29  ;;  %2899 = vmatprep.mubr.f32.mxu1 %v17835_v7  ;;  %v17977_v29 = vld [vmem:[#allocation38_spill] sm:$0xff] }
 0x32d   : > { %11682 = vmatprep.subr.bf16.mxu1 %v17968_v12 }
 0x330   : > { %11684 = vmatpush1.bf16.msra.mxu1 %v17969_v17 }
 0x331   : > { %11686 = vmatprep.subr.bf16.mxu1 %v17970_v22 }
 0x334   : > { %11688 = vmatpush1.bf16.msra.mxu1 %v17971_v34 }
 0x335   : > { %11690 = vmatprep.subr.bf16.mxu1 %v17972_v20 }
 0x338   : > { %11692 = vmatpush1.bf16.msra.mxu1 %v17973_v26 }
 0x339   : > { %11694 = vmatprep.subr.bf16.mxu1 %v17974_v45 }
 0x33c   : > { %11696 = vmatpush1.bf16.msra.mxu1 %v17975_v55 }
 0x33d   : > { %11698 = vmatprep.subr.bf16.mxu1 %v17976_v27 }
 0x340   : > { %11700 = vmatpush1.bf16.msra.mxu1 %v17977_v29 }
 0x341   : > { %11702 = vmatprep.subr.bf16.mxu1 %v17978_v36 }
 0x344   : > { %11704 = vmatpush1.bf16.msra.mxu1 %v17979_v39 }
 0x345   : > { %11738 = vmatprep.subr.bf16.mxu1 %v17980_v47 }
 0x35a   : > { %v1523_v48 = vpop.f32.mrb[12].mxu1  ;;  %v1612_v58 = vpop.f32.mrb[0].mxu0 }
 0x35b   : > { %v1525_v59 = vpop.f32.mrb[13].mxu1  ;;  %v1614_v2 = vpop.f32.mrb[1].mxu0  ;;  %v13273_v3 = vadd.f32 %v1523_v48, %v15395_v35  ;;  %v13281_v5 = vadd.f32 %v1612_v58, %v15397_v30 }
 0x35c   : > { %v13274_v8 = vadd.f32 %v1525_v59, %v15399_v1  ;;  %v13282_v12 = vadd.f32 %v1614_v2, %v15401_v50 }
 0x35d   : > { %v1651_v26 = vmax.f32 %v13273_v3, 0.0  ;;  %v1653_v45 = vmax.f32 %v13281_v5, 0.0 }
 0x35e   : > { %v1529_v4 = vpop.f32.mrb[14].mxu1  ;;  %v1618_v14 = vpop.f32.mrb[2].mxu0  ;;  %v1652_v55 = vmax.f32 %v13274_v8, 0.0  ;;  %v1654_v27 = vmax.f32 %v13282_v12, 0.0 }
 0x35f   : > { %v1531_v15 = vpop.f32.mrb[15].mxu1  ;;  %v1620_v24 = vpop.f32.mrb[3].mxu0  ;;  %v13275_v17 = vadd.f32 %v1529_v4, %v15395_v35  ;;  %v13283_v22 = vadd.f32 %v1618_v14, %v15397_v30 }
 0x360   : > { %v13276_v34 = vadd.f32 %v1531_v15, %v15399_v1  ;;  %v13284_v20 = vadd.f32 %v1620_v24, %v15401_v50 }
 0x361   : > { %v1655_v39 = vmax.f32 %v13275_v17, 0.0  ;;  %v1657_v47 = vmax.f32 %v13283_v22, 0.0 }
 0x362   : > { %v1535_v28 = vpop.f32.mrb[16].mxu1  ;;  %v1624_v43 = vpop.f32.mrb[4].mxu0  ;;  %v1656_v4 = vmax.f32 %v13276_v34, 0.0  ;;  %v1658_v14 = vmax.f32 %v13284_v20, 0.0 }
 0x363   : > { %v1537_v44 = vpop.f32.mrb[17].mxu1  ;;  %v1626_v54 = vpop.f32.mrb[5].mxu0  ;;  %v13277_v0 = vadd.f32 %v1535_v28, %v15395_v35  ;;  %v13285_v52 = vadd.f32 %v1624_v43, %v15397_v30 }
 0x364   : > { %v13278_v63 = vadd.f32 %v1537_v44, %v15399_v1  ;;  %v13286_v25 = vadd.f32 %v1626_v54, %v15401_v50 }
 0x366   : > { %v15387_v60 = vpop.f32.mrb[18].mxu1  ;;  %v15389_v61 = vpop.f32.mrb[6].mxu0 }
 0x367   : > { %v15391_v33 = vpop.f32.mrb[19].mxu1  ;;  %v15393_v51 = vpop.f32.mrb[7].mxu0 }
 0x3ba   : > { %v2316_v29 = vpop.f32.mrb[20].mxu1  ;;  %v2405_v36 = vpop.f32.mrb[8].mxu0 }
 0x3bb   : > { %v13289_v48 = vadd.f32 %v2316_v29, %v15395_v35  ;;  %v13297_v58 = vadd.f32 %v2405_v36, %v15397_v30  ;;  %v2318_v59 = vpop.f32.mrb[21].mxu1  ;;  %v2407_v2 = vpop.f32.mrb[9].mxu0  ;;  %v1659_v36 = vmax.f32 %v13277_v0, 0.0 }
 0x3bc   : > { %v13290_v15 = vadd.f32 %v2318_v59, %v15399_v1  ;;  %v13298_v24 = vadd.f32 %v2407_v2, %v15401_v50  ;;  %v1662_v59 = vmax.f32 %v13286_v25, 0.0 }
 0x3bd   : > { %v2444_v31 = vmax.f32 %v13289_v48, 0.0  ;;  %v2446_v46 = vmax.f32 %v13297_v58, 0.0  ;;  %v1661_v48 = vmax.f32 %v13285_v52, 0.0 }
 0x3be   : > { %v2445_v9 = vmax.f32 %v13290_v15, 0.0  ;;  %v2447_v3 = vmax.f32 %v13298_v24, 0.0  ;;  %v2322_v5 = vpop.f32.mrb[22].mxu1  ;;  %v2411_v8 = vpop.f32.mrb[10].mxu0 }
 0x3bf   : > { %v15419_v12 = vmax.f32 %v1651_v26, %v2444_v31  ;;  %v15421_v17 = vmax.f32 %v1653_v45, %v2446_v46  ;;  %v13291_v22 = vadd.f32 %v2322_v5, %v15395_v35  ;;  %v13299_v28 = vadd.f32 %v2411_v8, %v15397_v30  ;;  %v2324_v34 = vpop.f32.mrb[23].mxu1  ;;  %v2413_v43 = vpop.f32.mrb[11].mxu0 }
 0x3c0   : > { %v15425_v20 = vmax.f32 %v1652_v55, %v2445_v9  ;;  %v15427_v29 = vmax.f32 %v1654_v27, %v2447_v3  ;;  %v13292_v44 = vadd.f32 %v2324_v34, %v15399_v1  ;;  %v13300_v54 = vadd.f32 %v2413_v43, %v15401_v50 }
 0x3c1   : > { %v2448_v26 = vmax.f32 %v13291_v22, 0.0  ;;  %v2450_v58 = vmax.f32 %v13299_v28, 0.0  ;;  %v1660_v45 = vmax.f32 %v13278_v63, 0.0  ;;  %v13280_v28 = vadd.f32 %v15391_v33, %v15399_v1 }
 0x3c2   : > { %v2449_v2 = vmax.f32 %v13292_v44, 0.0  ;;  %v2451_v15 = vmax.f32 %v13300_v54, 0.0  ;;  %v2328_v24 = vpop.f32.mrb[24].mxu1  ;;  %v2417_v31 = vpop.f32.mrb[12].mxu0 }
 0x3c3   : > { %v15431_v46 = vmax.f32 %v1655_v39, %v2448_v26  ;;  %v15433_v55 = vmax.f32 %v1657_v47, %v2450_v58  ;;  %v13293_v27 = vadd.f32 %v2328_v24, %v15395_v35  ;;  %v13301_v9 = vadd.f32 %v2417_v31, %v15397_v30  ;;  %v2330_v3 = vpop.f32.mrb[25].mxu1  ;;  %v2419_v5 = vpop.f32.mrb[13].mxu0 }
 0x3c4   : > { %v15437_v0 = vmax.f32 %v1656_v4, %v2449_v2  ;;  %v15439_v52 = vmax.f32 %v1658_v14, %v2451_v15  ;;  %v13294_v63 = vadd.f32 %v2330_v3, %v15399_v1  ;;  %v13302_v25 = vadd.f32 %v2419_v5, %v15401_v50 }
 0x3c5   : > { %v13279_v39 = vadd.f32 %v15387_v60, %v15395_v35  ;;  %v13287_v47 = vadd.f32 %v15389_v61, %v15397_v30  ;;  %v2452_v8 = vmax.f32 %v13293_v27, 0.0  ;;  %v2454_v22 = vmax.f32 %v13301_v9, 0.0 }
 0x3c6   : > { %v13288_v4 = vadd.f32 %v15393_v51, %v15401_v50  ;;  %v2453_v14 = vmax.f32 %v13294_v63, 0.0  ;;  %v2455_v34 = vmax.f32 %v13302_v25, 0.0  ;;  %v2334_v43 = vpop.f32.mrb[26].mxu1  ;;  %v2423_v44 = vpop.f32.mrb[14].mxu0 }
 0x3c7   : > { %v15451_v54 = vmax.f32 %v1659_v36, %v2452_v8  ;;  %v15453_v26 = vmax.f32 %v1661_v48, %v2454_v22  ;;  %v13295_v60 = vadd.f32 %v2334_v43, %v15395_v35  ;;  %v13303_v61 = vadd.f32 %v2423_v44, %v15397_v30  ;;  %v2336_v58 = vpop.f32.mrb[27].mxu1  ;;  %v2425_v2 = vpop.f32.mrb[15].mxu0 }
 0x3c8   : > { %v15457_v15 = vmax.f32 %v1660_v45, %v2453_v14  ;;  %v15459_v33 = vmax.f32 %v1662_v59, %v2455_v34  ;;  %v13296_v51 = vadd.f32 %v2336_v58, %v15399_v1  ;;  %v13304_v24 = vadd.f32 %v2425_v2, %v15401_v50  ;;  %v17984_v34 = vld [vmem:[#allocation45_spill] sm:$0xff]  ;;  %v17987_v2 = vld [vmem:[#allocation48_spill] sm:$0xff] }
 0x3c9   : > { %v1663_v31 = vmax.f32 %v13279_v39, 0.0  ;;  %v1665_v27 = vmax.f32 %v13287_v47, 0.0  ;;  %v2456_v36 = vmax.f32 %v13295_v60, 0.0  ;;  %v2458_v9 = vmax.f32 %v13303_v61, 0.0  ;;  %v17981_v39 = vld [vmem:[#allocation42_spill] sm:$0xff]  ;;  %v17982_v47 = vld [vmem:[#allocation43_spill] sm:$0xff] }
 0x3ca   : > { %v1664_v48 = vmax.f32 %v13280_v28, 0.0  ;;  %v1666_v3 = vmax.f32 %v13288_v4, 0.0  ;;  %v2457_v5 = vmax.f32 %v13296_v51, 0.0  ;;  %v2459_v63 = vmax.f32 %v13304_v24, 0.0  ;;  %v17983_v4 = vld [vmem:[#allocation44_spill] sm:$0xff]  ;;  %v17985_v60 = vld [vmem:[#allocation46_spill] sm:$0xff] }
 0x3cb   : > { %v15463_v25 = vmax.f32 %v1663_v31, %v2456_v36  ;;  %v15465_v8 = vmax.f32 %v1665_v27, %v2458_v9  ;;  %v17986_v61 = vld [vmem:[#allocation47_spill] sm:$0xff]  ;;  %v17988_v51 = vld [vmem:[#allocation49_spill] sm:$0xff]  ;;  %v17989_v31 = vld [vmem:[#allocation50_spill] sm:$0xff] }
 0x3cc   : > { %v15467_v45 = vmax.f32 %v1664_v48, %v2457_v5  ;;  %v15469_v59 = vmax.f32 %v1666_v3, %v2459_v63  ;;  %v17990_v27 = vld [vmem:[#allocation51_spill] sm:$0xff]  ;;  %v17991_v9 = vld [vmem:[#allocation52_spill] sm:$0xff]  ;;  %v17992_v48 = vld [vmem:[#allocation53_spill] sm:$0xff] }
 0x3cd   : > { %v17993_v3 = vld [vmem:[#allocation54_spill] sm:$0xff]  ;;  %v17994_v5 = vld [vmem:[#allocation55_spill] sm:$0xff]  ;;  %v17995_v63 = vld [vmem:[#allocation56_spill] sm:$0xff] }
 0x3da   : > { %v15471_v22 = vpop.f32.mrb[28].mxu1 }
 0x3db   : > { %v15473_v14 = vpop.f32.mrb[29].mxu1 }
 0x3dc   : > { %2811 = vmatmul.mubr.f32.vlgmr.msra.gmra.mrb[20].mxu0 %v15473_v14  ;;  %2900 = vmatmul.mubr.f32.vlgmr.msra.gmra.mrb[36].mxu1 %v15473_v14 }
 0x3dd   : > { %11708 = vmatpush1.bf16.msra.mxu0 %v17981_v39  ;;  %11740 = vmatpush1.bf16.msra.mxu1 %v17982_v47  ;;  %v17996_v39 = vld [vmem:[#allocation57_spill] sm:$0xff]  ;;  %v17997_v47 = vld [vmem:[#allocation58_spill] sm:$0xff] }
 0x3de   : > { %2816 = vmatprep.mubr.f32.mxu0 %v17835_v7  ;;  %2905 = vmatprep.mubr.f32.mxu1 %v17835_v7  ;;  %v15481_v28 = vpop.f32.mrb[30].mxu1 }
 0x3df   : > { %11710 = vmatprep.subr.bf16.mxu0 %v17983_v4  ;;  %11742 = vmatprep.subr.bf16.mxu1 %v17984_v34  ;;  %v15485_v43 = vpop.f32.mrb[31].mxu1  ;;  %v17998_v4 = vld [vmem:[#allocation59_spill] sm:$0xff]  ;;  %v17999_v34 = vld [vmem:[#allocation60_spill] sm:$0xff] }
 0x3e0   : > { %2817 = vmatmul.mubr.f32.gmra.mrb[22].mxu0 %v15471_v22  ;;  %2906 = vmatmul.mubr.f32.gmra.mrb[38].mxu1 %v15471_v22  ;;  %v15489_v44 = vpop.f32.mrb[16].mxu0 }
 0x3e1   : > { %11712 = vmatpush1.bf16.msra.mxu0 %v17985_v60  ;;  %11744 = vmatpush1.bf16.msra.mxu1 %v17986_v61  ;;  %v15493_v58 = vpop.f32.mrb[17].mxu0  ;;  %v18000_v60 = vld [vmem:[#allocation61_spill] sm:$0xff]  ;;  %v18001_v61 = vld [vmem:[#allocation62_spill] sm:$0xff] }
 0x3e2   : > { %11714 = vmatprep.subr.bf16.mxu0 %v17987_v2  ;;  %11746 = vmatprep.subr.bf16.mxu1 %v17988_v51  ;;  %v18002_v2 = vld [vmem:[#allocation63_spill] sm:$0xff]  ;;  %v18003_v51 = vld [vmem:[#allocation64_spill] sm:$0xff] }
 0x3e3   : > { %2822 = vmatprep.mubr.f32.mxu0 %v17835_v7  ;;  %2911 = vmatprep.mubr.f32.mxu1 %v17835_v7 }
 0x3e4   : > { %2823 = vmatmul.mubr.f32.gmra.mrb[24].mxu0 %v15485_v43  ;;  %2912 = vmatmul.mubr.f32.gmra.mrb[40].mxu1 %v15485_v43  ;;  %v15501_v24 = vpop.f32.mrb[18].mxu0 }
 0x3e5   : > { %11716 = vmatpush1.bf16.msra.mxu0 %v17989_v31  ;;  %11748 = vmatpush1.bf16.msra.mxu1 %v17990_v27  ;;  %v15505_v36 = vpop.f32.mrb[19].mxu0  ;;  %v18004_v31 = vld [vmem:[#allocation65_spill] sm:$0xff]  ;;  %v18005_v27 = vld [vmem:[#allocation66_spill] sm:$0xff] }
 0x3e6   : > { %11718 = vmatprep.subr.bf16.mxu0 %v17991_v9  ;;  %11750 = vmatprep.subr.bf16.mxu1 %v17992_v48  ;;  %v18006_v9 = vld [vmem:[#allocation67_spill] sm:$0xff]  ;;  %v18007_v48 = vld [vmem:[#allocation68_spill] sm:$0xff] }
 0x3e7   : > { %2828 = vmatprep.mubr.f32.mxu0 %v17835_v7  ;;  %2917 = vmatprep.mubr.f32.mxu1 %v17835_v7 }
 0x3e8   : > { %2829 = vmatmul.mubr.f32.gmra.mrb[26].mxu0 %v15481_v28  ;;  %2918 = vmatmul.mubr.f32.gmra.mrb[42].mxu1 %v15481_v28 }
 0x3e9   : > { %11720 = vmatpush1.bf16.msra.mxu0 %v17993_v3  ;;  %11752 = vmatpush1.bf16.msra.mxu1 %v17994_v5  ;;  %v18008_v3 = vld [vmem:[#allocation69_spill] sm:$0xff]  ;;  %v18009_v5 = vld [vmem:[#allocation70_spill] sm:$0xff] }
 0x3ea   : > { %11722 = vmatprep.subr.bf16.mxu0 %v17995_v63  ;;  %11754 = vmatprep.subr.bf16.mxu1 %v17996_v39  ;;  %v18010_v63 = vld [vmem:[#allocation71_spill] sm:$0xff]  ;;  %v18011_v39 = vld [vmem:[#allocation72_spill] sm:$0xff] }
 0x3eb   : > { %3004 = vmatprep.mubr.f32.mxu0 %v17835_v7  ;;  %3093 = vmatprep.mubr.f32.mxu1 %v17835_v7 }
 0x3ed   : > { %11724 = vmatpush1.bf16.msra.mxu0 %v17997_v47  ;;  %11756 = vmatpush1.bf16.msra.mxu1 %v17998_v4  ;;  %v18012_v47 = vld [vmem:[#allocation73_spill] sm:$0xff] }
 0x3ee   : > { %11726 = vmatprep.subr.bf16.mxu0 %v17999_v34  ;;  %11758 = vmatprep.subr.bf16.mxu1 %v18000_v60  ;;  %v18013_v60 = vld [vmem:[#allocation74_spill] sm:$0xff] }
 0x3f1   : > { %11728 = vmatpush1.bf16.msra.mxu0 %v18001_v61  ;;  %11760 = vmatpush1.bf16.msra.mxu1 %v18002_v2  ;;  %v18014_v61 = vld [vmem:[#allocation75_spill] sm:$0xff] }
 0x3f2   : > { %11730 = vmatprep.subr.bf16.mxu0 %v18003_v51  ;;  %11762 = vmatprep.subr.bf16.mxu1 %v18004_v31  ;;  %v18015_v51 = vld [vmem:[#allocation76_spill] sm:$0xff]  ;;  %v18016_v31 = vld [vmem:[#allocation77_spill] sm:$0xff] }
 0x3f5   : > { %11732 = vmatpush1.bf16.msra.mxu0 %v18005_v27  ;;  %11764 = vmatpush1.bf16.msra.mxu1 %v18006_v9  ;;  %v18017_v9 = vld [vmem:[#allocation78_spill] sm:$0xff] }
 0x3f6   : > { %11734 = vmatprep.subr.bf16.mxu0 %v18007_v48  ;;  %11766 = vmatprep.subr.bf16.mxu1 %v18008_v3  ;;  %v18018_v48 = vld [vmem:[#allocation79_spill] sm:$0xff]  ;;  %v18019_v3 = vld [vmem:[#allocation80_spill] sm:$0xff] }
 0x3f9   : > { %11736 = vmatpush1.bf16.msra.mxu0 %v18009_v5  ;;  %11768 = vmatpush1.bf16.msra.mxu1 %v18010_v63  ;;  %v18020_v5 = vld [vmem:[#allocation81_spill] sm:$0xff]  ;;  %v18021_v63 = vld [vmem:[#allocation82_spill] sm:$0xff] }
 0x3fa   : > { %11770 = vmatprep.subr.bf16.mxu0 %v18011_v39  ;;  %11802 = vmatprep.subr.bf16.mxu1 %v18012_v47  ;;  %v15535_v4 = vpop.f32.mrb[32].mxu1  ;;  %v18022_v39 = vld [vmem:[#allocation83_spill] sm:$0xff]  ;;  %v18023_v47 = vld [vmem:[#allocation84_spill] sm:$0xff] }
 0x3fb   : > { %v15537_v34 = vpop.f32.mrb[33].mxu1 }
 0x3fc   : > { %3005 = vmatmul.mubr.f32.vlgmr.msra.gmra.mrb[20].mxu0 %v15493_v58  ;;  %3094 = vmatmul.mubr.f32.vlgmr.msra.gmra.mrb[36].mxu1 %v15493_v58 }
 0x3fd   : > { %11772 = vmatpush1.bf16.msra.mxu0 %v18013_v60  ;;  %11804 = vmatpush1.bf16.msra.mxu1 %v18014_v61  ;;  %v18024_v60 = vld [vmem:[#allocation85_spill] sm:$0xff]  ;;  %v18025_v61 = vld [vmem:[#allocation86_spill] sm:$0xff] }
 0x3fe   : > { %3010 = vmatprep.mubr.f32.mxu0 %v17835_v7  ;;  %3099 = vmatprep.mubr.f32.mxu1 %v17835_v7  ;;  %v15545_v2 = vpop.f32.mrb[34].mxu1 }
 0x3ff   : > { %11774 = vmatprep.subr.bf16.mxu0 %v18015_v51  ;;  %11806 = vmatprep.subr.bf16.mxu1 %v18016_v31  ;;  %v15549_v27 = vpop.f32.mrb[35].mxu1  ;;  %v18026_v51 = vld [vmem:[#allocation87_spill] sm:$0xff]  ;;  %v18027_v31 = vld [vmem:[#allocation88_spill] sm:$0xff] }
 0x400   : > { %3011 = vmatmul.mubr.f32.gmra.mrb[22].mxu0 %v15489_v44  ;;  %3100 = vmatmul.mubr.f32.gmra.mrb[38].mxu1 %v15489_v44 }
 0x401   : > { %11776 = vmatpush1.bf16.msra.mxu0 %v18017_v9  ;;  %11808 = vmatpush1.bf16.msra.mxu1 %v18018_v48  ;;  %v18028_v9 = vld [vmem:[#allocation89_spill] sm:$0xff]  ;;  %v18029_v48 = vld [vmem:[#allocation90_spill] sm:$0xff] }
 0x402   : > { %11778 = vmatprep.subr.bf16.mxu0 %v18019_v3  ;;  %11810 = vmatprep.subr.bf16.mxu1 %v18020_v5  ;;  %v18030_v3 = vld [vmem:[#allocation91_spill] sm:$0xff]  ;;  %v18031_v5 = vld [vmem:[#allocation92_spill] sm:$0xff] }
 0x403   : > { %3016 = vmatprep.mubr.f32.mxu0 %v17835_v7  ;;  %3105 = vmatprep.mubr.f32.mxu1 %v17835_v7 }
 0x404   : > { %3017 = vmatmul.mubr.f32.gmra.mrb[24].mxu0 %v15505_v36  ;;  %3106 = vmatmul.mubr.f32.gmra.mrb[40].mxu1 %v15505_v36 }
 0x405   : > { %11780 = vmatpush1.bf16.msra.mxu0 %v18021_v63  ;;  %11812 = vmatpush1.bf16.msra.mxu1 %v18022_v39  ;;  %v18032_v63 = vld [vmem:[#allocation93_spill] sm:$0xff]  ;;  %v18033_v39 = vld [vmem:[#allocation94_spill] sm:$0xff] }
 0x406   : > { %11782 = vmatprep.subr.bf16.mxu0 %v18023_v47  ;;  %11814 = vmatprep.subr.bf16.mxu1 %v18024_v60  ;;  %v18034_v47 = vld [vmem:[#allocation95_spill] sm:$0xff]  ;;  %v18035_v60 = vld [vmem:[#allocation96_spill] sm:$0xff] }
 0x407   : > { %3022 = vmatprep.mubr.f32.mxu0 %v17835_v7  ;;  %3111 = vmatprep.mubr.f32.mxu1 %v17835_v7 }
 0x408   : > { %3023 = vmatmul.mubr.f32.gmra.mrb[26].mxu0 %v15501_v24  ;;  %3112 = vmatmul.mubr.f32.gmra.mrb[42].mxu1 %v15501_v24 }
 0x409   : > { %11784 = vmatpush1.bf16.msra.mxu0 %v18025_v61  ;;  %11816 = vmatpush1.bf16.msra.mxu1 %v18026_v51  ;;  %v18036_v61 = vld [vmem:[#allocation97_spill] sm:$0xff]  ;;  %v18037_v51 = vld [vmem:[#allocation98_spill] sm:$0xff] }
 0x40a   : > { %11786 = vmatprep.subr.bf16.mxu0 %v18027_v31  ;;  %11818 = vmatprep.subr.bf16.mxu1 %v18028_v9  ;;  %v18038_v31 = vld [vmem:[#allocation99_spill] sm:$0xff]  ;;  %v18039_v9 = vld [vmem:[#allocation100_spill] sm:$0xff] }
 0x40b   : > { %3198 = vmatprep.mubr.f32.mxu0 %v17835_v7  ;;  %3287 = vmatprep.mubr.f32.mxu1 %v17835_v7 }
 0x40d   : > { %11788 = vmatpush1.bf16.msra.mxu0 %v18029_v48  ;;  %11820 = vmatpush1.bf16.msra.mxu1 %v18030_v3  ;;  %v18040_v48 = vld [vmem:[#allocation101_spill] sm:$0xff]  ;;  %v18041_v3 = vld [vmem:[#allocation102_spill] sm:$0xff] }
 0x40e   : > { %11790 = vmatprep.subr.bf16.mxu0 %v18031_v5  ;;  %11822 = vmatprep.subr.bf16.mxu1 %v18032_v63  ;;  %v18042_v5 = vld [vmem:[#allocation103_spill] sm:$0xff]  ;;  %v18043_v63 = vld [vmem:[#allocation104_spill] sm:$0xff] }
 0x411   : > { %11792 = vmatpush1.bf16.msra.mxu0 %v18033_v39  ;;  %11824 = vmatpush1.bf16.msra.mxu1 %v18034_v47  ;;  %v18044_v39 = vld [vmem:[#allocation105_spill] sm:$0xff]  ;;  %v18045_v47 = vld [vmem:[#allocation106_spill] sm:$0xff] }
 0x412   : > { %11794 = vmatprep.subr.bf16.mxu0 %v18035_v60  ;;  %11826 = vmatprep.subr.bf16.mxu1 %v18036_v61  ;;  %v18046_v60 = vld [vmem:[#allocation107_spill] sm:$0xff]  ;;  %v18047_v61 = vld [vmem:[#allocation108_spill] sm:$0xff] }
 0x415   : > { %11796 = vmatpush1.bf16.msra.mxu0 %v18037_v51  ;;  %11828 = vmatpush1.bf16.msra.mxu1 %v18038_v31  ;;  %v18048_v51 = vld [vmem:[#allocation109_spill] sm:$0xff]  ;;  %v18049_v31 = vld [vmem:[#allocation110_spill] sm:$0xff] }
 0x416   : > { %11798 = vmatprep.subr.bf16.mxu0 %v18039_v9  ;;  %11830 = vmatprep.subr.bf16.mxu1 %v18040_v48  ;;  %v18050_v9 = vld [vmem:[#allocation111_spill] sm:$0xff]  ;;  %v18051_v48 = vld [vmem:[#allocation112_spill] sm:$0xff] }
 0x419   : > { %11800 = vmatpush1.bf16.msra.mxu0 %v18041_v3  ;;  %11832 = vmatpush1.bf16.msra.mxu1 %v18042_v5  ;;  %v18052_v3 = vld [vmem:[#allocation113_spill] sm:$0xff]  ;;  %v18053_v5 = vld [vmem:[#allocation114_spill] sm:$0xff] }
 0x41a   : > { %11834 = vmatprep.subr.bf16.mxu0 %v18043_v63  ;;  %11866 = vmatprep.subr.bf16.mxu1 %v18044_v39  ;;  %v18054_v63 = vld [vmem:[#allocation115_spill] sm:$0xff]  ;;  %v18055_v39 = vld [vmem:[#allocation116_spill] sm:$0xff] }
 0x41c   : > { %3199 = vmatmul.mubr.f32.vlgmr.msra.gmra.mrb[20].mxu0 %v15537_v34  ;;  %3288 = vmatmul.mubr.f32.vlgmr.msra.gmra.mrb[36].mxu1 %v15537_v34 }
 0x41d   : > { %11836 = vmatpush1.bf16.msra.mxu0 %v18045_v47  ;;  %11868 = vmatpush1.bf16.msra.mxu1 %v18046_v60  ;;  %v18056_v47 = vld [vmem:[#allocation117_spill] sm:$0xff]  ;;  %v18057_v60 = vld [vmem:[#allocation118_spill] sm:$0xff] }
 0x41e   : > { %3204 = vmatprep.mubr.f32.mxu0 %v17835_v7  ;;  %3293 = vmatprep.mubr.f32.mxu1 %v17835_v7 }
 0x41f   : > { %11838 = vmatprep.subr.bf16.mxu0 %v18047_v61  ;;  %11870 = vmatprep.subr.bf16.mxu1 %v18048_v51  ;;  %v18058_v61 = vld [vmem:[#allocation119_spill] sm:$0xff]  ;;  %v18059_v51 = vld [vmem:[#allocation120_spill] sm:$0xff] }
 0x420   : > { %3205 = vmatmul.mubr.f32.gmra.mrb[22].mxu0 %v15535_v4  ;;  %3294 = vmatmul.mubr.f32.gmra.mrb[38].mxu1 %v15535_v4 }
 0x421   : > { %11840 = vmatpush1.bf16.msra.mxu0 %v18049_v31  ;;  %11872 = vmatpush1.bf16.msra.mxu1 %v18050_v9  ;;  %v18060_v31 = vld [vmem:[#allocation121_spill] sm:$0xff]  ;;  %v18061_v9 = vld [vmem:[#allocation122_spill] sm:$0xff] }
 0x422   : > { %3210 = vmatprep.mubr.f32.mxu0 %v17835_v7  ;;  %3299 = vmatprep.mubr.f32.mxu1 %v17835_v7 }
 0x423   : > { %11842 = vmatprep.subr.bf16.mxu0 %v18051_v48  ;;  %11874 = vmatprep.subr.bf16.mxu1 %v18052_v3  ;;  %v18062_v48 = vld [vmem:[#allocation123_spill] sm:$0xff]  ;;  %v18063_v3 = vld [vmem:[#allocation124_spill] sm:$0xff] }
 0x424   : > { %3211 = vmatmul.mubr.f32.gmra.mrb[24].mxu0 %v15549_v27  ;;  %3300 = vmatmul.mubr.f32.gmra.mrb[40].mxu1 %v15549_v27 }
 0x425   : > { %11844 = vmatpush1.bf16.msra.mxu0 %v18053_v5  ;;  %11876 = vmatpush1.bf16.msra.mxu1 %v18054_v63  ;;  %v18064_v5 = vld [vmem:[#allocation125_spill] sm:$0xff]  ;;  %v18065_v63 = vld [vmem:[#allocation126_spill] sm:$0xff] }
 0x426   : > { %3216 = vmatprep.mubr.f32.mxu0 %v17835_v7  ;;  %3305 = vmatprep.mubr.f32.mxu1 %v17835_v7 }
 0x427   : > { %11846 = vmatprep.subr.bf16.mxu0 %v18055_v39  ;;  %11878 = vmatprep.subr.bf16.mxu1 %v18056_v47  ;;  %v18066_v39 = vld [vmem:[#allocation127_spill] sm:$0xff]  ;;  %v18067_v47 = vld [vmem:[#allocation128_spill] sm:$0xff] }
 0x428   : > { %3217 = vmatmul.mubr.f32.gmra.mrb[26].mxu0 %v15545_v2  ;;  %3306 = vmatmul.mubr.f32.gmra.mrb[42].mxu1 %v15545_v2 }
 0x429   : > { %11848 = vmatpush1.bf16.msra.mxu0 %v18057_v60  ;;  %11880 = vmatpush1.bf16.msra.mxu1 %v18058_v61  ;;  %v18068_v60 = vld [vmem:[#allocation129_spill] sm:$0xff]  ;;  %v18069_v61 = vld [vmem:[#allocation130_spill] sm:$0xff] }
 0x42a   : > { %11850 = vmatprep.subr.bf16.mxu0 %v18059_v51  ;;  %11882 = vmatprep.subr.bf16.mxu1 %v18060_v31  ;;  %v18070_v51 = vld [vmem:[#allocation131_spill] sm:$0xff]  ;;  %v18071_v31 = vld [vmem:[#allocation132_spill] sm:$0xff] }
 0x42b   : > { %3424 = vmatprep.mubr.f32.mxu0 %v17835_v7  ;;  %3513 = vmatprep.mubr.f32.mxu1 %v17835_v7 }
 0x42d   : > { %11852 = vmatpush1.bf16.msra.mxu0 %v18061_v9  ;;  %11884 = vmatpush1.bf16.msra.mxu1 %v18062_v48  ;;  %v18072_v9 = vld [vmem:[#allocation133_spill] sm:$0xff]  ;;  %v18073_v48 = vld [vmem:[#allocation134_spill] sm:$0xff] }
 0x42e   : > { %11854 = vmatprep.subr.bf16.mxu0 %v18063_v3  ;;  %11886 = vmatprep.subr.bf16.mxu1 %v18064_v5  ;;  %v18074_v3 = vld [vmem:[#allocation135_spill] sm:$0xff]  ;;  %v18080_v5 = vld [vmem:[#allocation141_spill] sm:$0xff] }
 0x431   : > { %11856 = vmatpush1.bf16.msra.mxu0 %v18065_v63  ;;  %11888 = vmatpush1.bf16.msra.mxu1 %v18066_v39  ;;  %v18081_v63 = vld [vmem:[#allocation142_spill] sm:$0xff]  ;;  %v18082_v39 = vld [vmem:[#allocation143_spill] sm:$0xff] }
 0x432   : > { %11858 = vmatprep.subr.bf16.mxu0 %v18067_v47  ;;  %11890 = vmatprep.subr.bf16.mxu1 %v18068_v60  ;;  %v18084_v47 = vld [vmem:[#allocation145_spill] sm:$0xff]  ;;  %v18085_v60 = vld [vmem:[#allocation146_spill] sm:$0xff] }
 0x435   : > { %11860 = vmatpush1.bf16.msra.mxu0 %v18069_v61  ;;  %11892 = vmatpush1.bf16.msra.mxu1 %v18070_v51  ;;  %v18086_v61 = vld [vmem:[#allocation147_spill] sm:$0xff]  ;;  %v18088_v51 = vld [vmem:[#allocation149_spill] sm:$0xff] }
 0x436   : > { %11862 = vmatprep.subr.bf16.mxu0 %v15051_v32  ;;  %11894 = vmatprep.subr.bf16.mxu1 %v18071_v31  ;;  %v18075_v32 = vld [vmem:[#allocation136_spill] sm:$0xff]  ;;  %v18089_v31 = vld [vmem:[#allocation150_spill] sm:$0xff] }
 0x439   : > { %11864 = vmatpush1.bf16.msra.mxu0 %v15057_v53  ;;  %11896 = vmatpush1.bf16.msra.mxu1 %v15059_v18  ;;  %v18076_v53 = vld [vmem:[#allocation137_spill] sm:$0xff]  ;;  %v18077_v18 = vld [vmem:[#allocation138_spill] sm:$0xff] }
 0x43a   : > { %11898 = vmatprep.subr.bf16.mxu0 %v15063_v11  ;;  %11930 = vmatprep.subr.bf16.mxu1 %v18072_v9  ;;  %v18078_v11 = vld [vmem:[#allocation139_spill] sm:$0xff] }
 0x43b   : > { %v18090_v9 = vld [vmem:[#allocation151_spill] sm:$0xff] }
 0x43c   : > { %3425 = vmatmul.mubr.f32.vlgmr.msra.gmra.mrb[28].mxu0 %v15473_v14  ;;  %3514 = vmatmul.mubr.f32.vlgmr.msra.gmra.mrb[44].mxu1 %v15473_v14  ;;  %v18079_v14 = vld [vmem:[#allocation140_spill] sm:$0xff] }
 0x43d   : > { %11900 = vmatpush1.bf16.msra.mxu0 %v18073_v48  ;;  %11932 = vmatpush1.bf16.msra.mxu1 %v18074_v3  ;;  %v18091_v48 = vld [vmem:[#allocation152_spill] sm:$0xff]  ;;  %v18092_v3 = vld [vmem:[#allocation153_spill] sm:$0xff] }
 0x43e   : > { %3430 = vmatprep.mubr.f32.mxu0 %v17835_v7  ;;  %3519 = vmatprep.mubr.f32.mxu1 %v17835_v7 }
 0x43f   : > { %11902 = vmatprep.subr.bf16.mxu0 %v18075_v32  ;;  %11934 = vmatprep.subr.bf16.mxu1 %v18076_v53  ;;  %v18094_v32 = vld [vmem:[#allocation155_spill] sm:$0xff]  ;;  %v18095_v53 = vld [vmem:[#allocation156_spill] sm:$0xff] }
 0x440   : > { %3431 = vmatmul.mubr.f32.gmra.mrb[30].mxu0 %v15471_v22  ;;  %3520 = vmatmul.mubr.f32.gmra.mrb[46].mxu1 %v15471_v22  ;;  %v18083_v22 = vld [vmem:[#allocation144_spill] sm:$0xff] }
 0x441   : > { %11904 = vmatpush1.bf16.msra.mxu0 %v18077_v18  ;;  %11936 = vmatpush1.bf16.msra.mxu1 %v18078_v11  ;;  %v18096_v18 = vld [vmem:[#allocation157_spill] sm:$0xff]  ;;  %v18097_v11 = vld [vmem:[#allocation158_spill] sm:$0xff] }
 0x442   : > { %3436 = vmatprep.mubr.f32.mxu0 %v17835_v7  ;;  %3525 = vmatprep.mubr.f32.mxu1 %v17835_v7 }
 0x443   : > { %11906 = vmatprep.subr.bf16.mxu0 %v18079_v14  ;;  %11938 = vmatprep.subr.bf16.mxu1 %v18080_v5  ;;  %v18098_v14 = vld [vmem:[#allocation159_spill] sm:$0xff]  ;;  %v18099_v5 = vld [vmem:[#allocation160_spill] sm:$0xff] }
 0x444   : > { %3437 = vmatmul.mubr.f32.gmra.mrb[32].mxu0 %v15485_v43  ;;  %3526 = vmatmul.mubr.f32.gmra.mrb[48].mxu1 %v15485_v43  ;;  %v18087_v43 = vld [vmem:[#allocation148_spill] sm:$0xff] }
 0x445   : > { %11908 = vmatpush1.bf16.msra.mxu0 %v18081_v63  ;;  %11940 = vmatpush1.bf16.msra.mxu1 %v18082_v39  ;;  %v18100_v63 = vld [vmem:[#allocation161_spill] sm:$0xff]  ;;  %v18101_v39 = vld [vmem:[#allocation162_spill] sm:$0xff] }
 0x446   : > { %3442 = vmatprep.mubr.f32.mxu0 %v17835_v7  ;;  %3531 = vmatprep.mubr.f32.mxu1 %v17835_v7 }
 0x447   : > { %11910 = vmatprep.subr.bf16.mxu0 %v18083_v22  ;;  %11942 = vmatprep.subr.bf16.mxu1 %v18084_v47  ;;  %v18102_v22 = vld [vmem:[#allocation163_spill] sm:$0xff]  ;;  %v18108_v47 = vld [vmem:[#allocation169_spill] sm:$0xff] }
 0x448   : > { %3443 = vmatmul.mubr.f32.gmra.mrb[34].mxu0 %v15481_v28  ;;  %3532 = vmatmul.mubr.f32.gmra.mrb[50].mxu1 %v15481_v28  ;;  %v18093_v28 = vld [vmem:[#allocation154_spill] sm:$0xff] }
 0x449   : > { %11912 = vmatpush1.bf16.msra.mxu0 %v18085_v60  ;;  %11944 = vmatpush1.bf16.msra.mxu1 %v18086_v61  ;;  %v18109_v60 = vld [vmem:[#allocation170_spill] sm:$0xff]  ;;  %v18110_v61 = vld [vmem:[#allocation171_spill] sm:$0xff] }
 0x44a   : > { %11914 = vmatprep.subr.bf16.mxu0 %v18087_v43  ;;  %11946 = vmatprep.subr.bf16.mxu1 %v18088_v51  ;;  %v18112_v43 = vld [vmem:[#allocation173_spill] sm:$0xff]  ;;  %v18113_v51 = vld [vmem:[#allocation174_spill] sm:$0xff] }
 0x44b   : > { %3618 = vmatprep.mubr.f32.mxu0 %v17835_v7  ;;  %3707 = vmatprep.mubr.f32.mxu1 %v17835_v7 }
 0x44d   : > { %11916 = vmatpush1.bf16.msra.mxu0 %v18089_v31  ;;  %11948 = vmatpush1.bf16.msra.mxu1 %v18090_v9  ;;  %v18114_v31 = vld [vmem:[#allocation175_spill] sm:$0xff]  ;;  %v18116_v9 = vld [vmem:[#allocation177_spill] sm:$0xff] }
 0x44e   : > { %11918 = vmatprep.subr.bf16.mxu0 %v18091_v48  ;;  %11950 = vmatprep.subr.bf16.mxu1 %v18092_v3  ;;  %v18117_v48 = vld [vmem:[#allocation178_spill] sm:$0xff]  ;;  %v18118_v3 = vld [vmem:[#allocation179_spill] sm:$0xff] }
 0x451   : > { %11920 = vmatpush1.bf16.msra.mxu0 %v18093_v28  ;;  %11952 = vmatpush1.bf16.msra.mxu1 %v18094_v32 }
 0x452   : > { %11922 = vmatprep.subr.bf16.mxu0 %v18095_v53  ;;  %11954 = vmatprep.subr.bf16.mxu1 %v18096_v18 }
 0x455   : > { %11924 = vmatpush1.bf16.msra.mxu0 %v18097_v11  ;;  %11956 = vmatpush1.bf16.msra.mxu1 %v18098_v14 }
 0x456   : > { %11926 = vmatprep.subr.bf16.mxu0 %v15163_v40  ;;  %11958 = vmatprep.subr.bf16.mxu1 %v18099_v5  ;;  %v18103_v40 = vld [vmem:[#allocation164_spill] sm:$0xff] }
 0x459   : > { %11928 = vmatpush1.bf16.msra.mxu0 %v15169_v62  ;;  %11960 = vmatpush1.bf16.msra.mxu1 %v15171_v41  ;;  %v18104_v62 = vld [vmem:[#allocation165_spill] sm:$0xff]  ;;  %v18105_v41 = vld [vmem:[#allocation166_spill] sm:$0xff] }
 0x45a   : > { %11962 = vmatprep.subr.bf16.mxu0 %v15175_v21  ;;  %11994 = vmatprep.subr.bf16.mxu1 %v18100_v63  ;;  %v18106_v21 = vld [vmem:[#allocation167_spill] sm:$0xff] }
 0x45c   : > { %3619 = vmatmul.mubr.f32.vlgmr.msra.gmra.mrb[28].mxu0 %v15493_v58  ;;  %3708 = vmatmul.mubr.f32.vlgmr.msra.gmra.mrb[44].mxu1 %v15493_v58  ;;  %v18107_v58 = vld [vmem:[#allocation168_spill] sm:$0xff] }
 0x45d   : > { %11964 = vmatpush1.bf16.msra.mxu0 %v18101_v39  ;;  %11996 = vmatpush1.bf16.msra.mxu1 %v18102_v22 }
 0x45e   : > { %3624 = vmatprep.mubr.f32.mxu0 %v17835_v7  ;;  %3713 = vmatprep.mubr.f32.mxu1 %v17835_v7 }
 0x45f   : > { %11966 = vmatprep.subr.bf16.mxu0 %v18103_v40  ;;  %11998 = vmatprep.subr.bf16.mxu1 %v18104_v62 }
 0x460   : > { %3625 = vmatmul.mubr.f32.gmra.mrb[30].mxu0 %v15489_v44  ;;  %3714 = vmatmul.mubr.f32.gmra.mrb[46].mxu1 %v15489_v44  ;;  %v18111_v44 = vld [vmem:[#allocation172_spill] sm:$0xff] }
 0x461   : > { %11968 = vmatpush1.bf16.msra.mxu0 %v18105_v41  ;;  %12000 = vmatpush1.bf16.msra.mxu1 %v18106_v21 }
 0x462   : > { %3630 = vmatprep.mubr.f32.mxu0 %v17835_v7  ;;  %3719 = vmatprep.mubr.f32.mxu1 %v17835_v7 }
 0x463   : > { %11970 = vmatprep.subr.bf16.mxu0 %v18107_v58  ;;  %12002 = vmatprep.subr.bf16.mxu1 %v18108_v47 }
 0x464   : > { %3631 = vmatmul.mubr.f32.gmra.mrb[32].mxu0 %v15505_v36  ;;  %3720 = vmatmul.mubr.f32.gmra.mrb[48].mxu1 %v15505_v36  ;;  %v18115_v36 = vld [vmem:[#allocation176_spill] sm:$0xff] }
 0x465   : > { %11972 = vmatpush1.bf16.msra.mxu0 %v18109_v60  ;;  %12004 = vmatpush1.bf16.msra.mxu1 %v18110_v61 }
 0x466   : > { %3636 = vmatprep.mubr.f32.mxu0 %v17835_v7  ;;  %3725 = vmatprep.mubr.f32.mxu1 %v17835_v7 }
 0x467   : > { %11974 = vmatprep.subr.bf16.mxu0 %v18111_v44  ;;  %12006 = vmatprep.subr.bf16.mxu1 %v18112_v43 }
 0x468   : > { %3637 = vmatmul.mubr.f32.gmra.mrb[34].mxu0 %v15501_v24  ;;  %3726 = vmatmul.mubr.f32.gmra.mrb[50].mxu1 %v15501_v24 }
 0x469   : > { %11976 = vmatpush1.bf16.msra.mxu0 %v18113_v51  ;;  %12008 = vmatpush1.bf16.msra.mxu1 %v18114_v31 }
 0x46a   : > { %11978 = vmatprep.subr.bf16.mxu0 %v18115_v36  ;;  %12010 = vmatprep.subr.bf16.mxu1 %v18116_v9 }
 0x46b   : > { %3812 = vmatprep.mubr.f32.mxu0 %v17835_v7  ;;  %3901 = vmatprep.mubr.f32.mxu1 %v17835_v7 }
 0x46d   : > { %11980 = vmatpush1.bf16.msra.mxu0 %v18117_v48  ;;  %12012 = vmatpush1.bf16.msra.mxu1 %v18118_v3 }
 0x46e   : > { %11982 = vmatprep.subr.bf16.mxu0 %v15249_v56  ;;  %12014 = vmatprep.subr.bf16.mxu1 %v15251_v57 }
 0x471   : > { %11984 = vmatpush1.bf16.msra.mxu0 %v15257_v10  ;;  %12016 = vmatpush1.bf16.msra.mxu1 %v15259_v16 }
 0x472   : > { %11986 = vmatprep.subr.bf16.mxu0 %v15263_v13  ;;  %12018 = vmatprep.subr.bf16.mxu1 %v15265_v38 }
 0x475   : > { %11988 = vmatpush1.bf16.msra.mxu0 %v15269_v49  ;;  %12020 = vmatpush1.bf16.msra.mxu1 %v15271_v42 }
 0x476   : > { %11990 = vmatprep.subr.bf16.mxu0 %v15275_v19  ;;  %12022 = vmatprep.subr.bf16.mxu1 %v15277_v23 }
 0x479   : > { %11992 = vmatpush1.bf16.msra.mxu0 %v15281_v37  ;;  %12024 = vmatpush1.bf16.msra.mxu1 %v15283_v6 }
 0x47c   : > { %3813 = vmatmul.mubr.f32.vlgmr.msra.gmra.mrb[28].mxu0 %v15537_v34  ;;  %3902 = vmatmul.mubr.f32.vlgmr.msra.gmra.mrb[44].mxu1 %v15537_v34 }
 0x47d   : > { %3818 = vmatprep.mubr.f32.mxu0 %v17835_v7  ;;  %3907 = vmatprep.mubr.f32.mxu1 %v17835_v7 }
 0x480   : > { %3819 = vmatmul.mubr.f32.gmra.mrb[30].mxu0 %v15535_v4  ;;  %3908 = vmatmul.mubr.f32.gmra.mrb[46].mxu1 %v15535_v4 }
 0x481   : > { %3824 = vmatprep.mubr.f32.mxu0 %v17835_v7  ;;  %3913 = vmatprep.mubr.f32.mxu1 %v17835_v7 }
 0x484   : > { %3825 = vmatmul.mubr.f32.gmra.mrb[32].mxu0 %v15549_v27  ;;  %3914 = vmatmul.mubr.f32.gmra.mrb[48].mxu1 %v15549_v27 }
 0x485   : > { %3830 = vmatprep.mubr.f32.mxu0 %v17835_v7  ;;  %3919 = vmatprep.mubr.f32.mxu1 %v17835_v7 }
 0x488   : > { %3831 = vmatmul.mubr.f32.gmra.mrb[34].mxu0 %v15545_v2  ;;  %3920 = vmatmul.mubr.f32.gmra.mrb[50].mxu1 %v15545_v2 }
 0x489   : > { %4044 = vmatprep.mubr.f32.mxu0 %v17835_v7  ;;  %4115 = vmatprep.mubr.f32.mxu1 %v17835_v7 }
 0x4ef   : > { %v3200_v57 = vpop.f32.mrb[20].mxu0  ;;  %v3289_v56 = vpop.f32.mrb[36].mxu1 }
 0x4f0   : > { %v13305_v10 = vadd.f32 %v3200_v57, %v15395_v35  ;;  %v13313_v16 = vadd.f32 %v3289_v56, %v15397_v30  ;;  %v3202_v13 = vpop.f32.mrb[21].mxu0  ;;  %v3291_v38 = vpop.f32.mrb[37].mxu1 }
 0x4f1   : > { %v13306_v49 = vadd.f32 %v3202_v13, %v15399_v1  ;;  %v13314_v42 = vadd.f32 %v3291_v38, %v15401_v50 }
 0x4f2   : > { %v3328_v19 = vmax.f32 %v13305_v10, 0.0  ;;  %v3330_v23 = vmax.f32 %v13313_v16, 0.0 }
 0x4f3   : > { %v3329_v37 = vmax.f32 %v13306_v49, 0.0  ;;  %v3331_v6 = vmax.f32 %v13314_v42, 0.0  ;;  %v3206_v24 = vpop.f32.mrb[22].mxu0  ;;  %v3295_v4 = vpop.f32.mrb[38].mxu1 }
 0x4f4   : > { %v15754_v34 = vmax.f32 %v15419_v12, %v3328_v19  ;;  %v15757_v2 = vmax.f32 %v15421_v17, %v3330_v23  ;;  %v13307_v27 = vadd.f32 %v3206_v24, %v15395_v35  ;;  %v13315_v28 = vadd.f32 %v3295_v4, %v15397_v30  ;;  %v3208_v32 = vpop.f32.mrb[23].mxu0  ;;  %v3297_v53 = vpop.f32.mrb[39].mxu1 }
 0x4f5   : > { %v15762_v18 = vmax.f32 %v15425_v20, %v3329_v37  ;;  %v15765_v11 = vmax.f32 %v15427_v29, %v3331_v6  ;;  %v13308_v14 = vadd.f32 %v3208_v32, %v15399_v1  ;;  %v13316_v12 = vadd.f32 %v3297_v53, %v15401_v50 }
 0x4f6   : > { %v3332_v5 = vmax.f32 %v13307_v27, 0.0  ;;  %v3334_v63 = vmax.f32 %v13315_v28, 0.0 }
 0x4f7   : > { %v3333_v17 = vmax.f32 %v13308_v14, 0.0  ;;  %v3335_v39 = vmax.f32 %v13316_v12, 0.0  ;;  %v3212_v22 = vpop.f32.mrb[24].mxu0  ;;  %v3301_v40 = vpop.f32.mrb[40].mxu1 }
 0x4f8   : > { %v15770_v62 = vmax.f32 %v15431_v46, %v3332_v5  ;;  %v15773_v41 = vmax.f32 %v15433_v55, %v3334_v63  ;;  %v13309_v20 = vadd.f32 %v3212_v22, %v15395_v35  ;;  %v13317_v29 = vadd.f32 %v3301_v40, %v15397_v30  ;;  %v3214_v21 = vpop.f32.mrb[25].mxu0  ;;  %v3303_v58 = vpop.f32.mrb[41].mxu1 }
 0x4f9   : > { %v15778_v47 = vmax.f32 %v15437_v0, %v3333_v17  ;;  %v15781_v60 = vmax.f32 %v15439_v52, %v3335_v39  ;;  %v13310_v61 = vadd.f32 %v3214_v21, %v15399_v1  ;;  %v13318_v46 = vadd.f32 %v3303_v58, %v15401_v50 }
 0x4fa   : > { %v3336_v44 = vmax.f32 %v13309_v20, 0.0  ;;  %v3338_v43 = vmax.f32 %v13317_v29, 0.0 }
 0x4fb   : > { %v3337_v55 = vmax.f32 %v13310_v61, 0.0  ;;  %v3339_v51 = vmax.f32 %v13318_v46, 0.0  ;;  %v3218_v31 = vpop.f32.mrb[26].mxu0  ;;  %v3307_v36 = vpop.f32.mrb[42].mxu1 }
 0x4fc   : > { %v15786_v9 = vmax.f32 %v15451_v54, %v3336_v44  ;;  %v15789_v48 = vmax.f32 %v15453_v26, %v3338_v43  ;;  %v13311_v0 = vadd.f32 %v3218_v31, %v15395_v35  ;;  %v13319_v52 = vadd.f32 %v3307_v36, %v15397_v30  ;;  %v3220_v3 = vpop.f32.mrb[27].mxu0  ;;  %v3309_v57 = vpop.f32.mrb[43].mxu1 }
 0x4fd   : > { %v15794_v56 = vmax.f32 %v15457_v15, %v3337_v55  ;;  %v15797_v10 = vmax.f32 %v15459_v33, %v3339_v51  ;;  %v13312_v16 = vadd.f32 %v3220_v3, %v15399_v1  ;;  %v13320_v54 = vadd.f32 %v3309_v57, %v15401_v50 }
 0x4fe   : > { %v3340_v13 = vmax.f32 %v13311_v0, 0.0  ;;  %v3342_v38 = vmax.f32 %v13319_v52, 0.0 }
 0x4ff   : > { %v3341_v26 = vmax.f32 %v13312_v16, 0.0  ;;  %v3343_v49 = vmax.f32 %v13320_v54, 0.0 }
 0x500   : > { %v15802_v42 = vmax.f32 %v15463_v25, %v3340_v13  ;;  %v15805_v19 = vmax.f32 %v15465_v8, %v3342_v38 }
 0x501   : > { %v15808_v15 = vmax.f32 %v15467_v45, %v3341_v26  ;;  %v15811_v33 = vmax.f32 %v15469_v59, %v3343_v49 }
 0x54f   : > { %v3814_v23 = vpop.f32.mrb[28].mxu0  ;;  %v3903_v37 = vpop.f32.mrb[44].mxu1 }
 0x550   : > { %v13321_v6 = vadd.f32 %v3814_v23, %v15395_v35  ;;  %v13329_v24 = vadd.f32 %v3903_v37, %v15397_v30  ;;  %v3816_v4 = vpop.f32.mrb[29].mxu0  ;;  %v3905_v27 = vpop.f32.mrb[45].mxu1 }
 0x551   : > { %v13322_v25 = vadd.f32 %v3816_v4, %v15399_v1  ;;  %v13330_v28 = vadd.f32 %v3905_v27, %v15401_v50 }
 0x552   : > { %v3942_v8 = vmax.f32 %v13321_v6, 0.0  ;;  %v3944_v32 = vmax.f32 %v13329_v24, 0.0 }
 0x553   : > { %v3943_v53 = vmax.f32 %v13322_v25, 0.0  ;;  %v3945_v45 = vmax.f32 %v13330_v28, 0.0  ;;  %v3820_v14 = vpop.f32.mrb[30].mxu0  ;;  %v3909_v12 = vpop.f32.mrb[46].mxu1 }
 0x554   : > { %v3958_v59 = vmax.f32 %v15754_v34, %v3942_v8  ;;  %v3960_v5 = vmax.f32 %v15757_v2, %v3944_v32  ;;  %v13323_v63 = vadd.f32 %v3820_v14, %v15395_v35  ;;  %v13331_v17 = vadd.f32 %v3909_v12, %v15397_v30  ;;  %v3822_v39 = vpop.f32.mrb[31].mxu0  ;;  %v3911_v22 = vpop.f32.mrb[47].mxu1  ;;  %v4464_v12 = vld [vmem:[#allocation11 + $0x180] sm:$0xff] }
 0x555   : > { %v3959_v40 = vmax.f32 %v15762_v18, %v3943_v53  ;;  %v3961_v20 = vmax.f32 %v15765_v11, %v3945_v45  ;;  %v13324_v29 = vadd.f32 %v3822_v39, %v15399_v1  ;;  %v13332_v21 = vadd.f32 %v3911_v22, %v15401_v50  ;;  %v4448_v22 = vld [vmem:[#allocation11 + $0x100] sm:$0xff] }
 0x556   : > { %v3946_v58 = vmax.f32 %v13323_v63, 0.0  ;;  %v3948_v61 = vmax.f32 %v13331_v17, 0.0  ;;  %v4417_v63 = vld [vmem:[#allocation11 + $0x8] sm:$0xff] }
 0x557   : > { %v3947_v46 = vmax.f32 %v13324_v29, 0.0  ;;  %v3949_v34 = vmax.f32 %v13332_v21, 0.0  ;;  %v3826_v44 = vpop.f32.mrb[32].mxu0  ;;  %v3915_v2 = vpop.f32.mrb[48].mxu1  ;;  %v4435_v29 = vld [vmem:[#allocation11 + $0x98] sm:$0xff]  ;;  %v4466_v21 = vld [vmem:[#allocation11 + $0x190] sm:$0xff] }
 0x558   : > { %v3962_v43 = vmax.f32 %v15770_v62, %v3946_v58  ;;  %v3964_v55 = vmax.f32 %v15773_v41, %v3948_v61  ;;  %v13325_v51 = vadd.f32 %v3826_v44, %v15395_v35  ;;  %v13333_v18 = vadd.f32 %v3915_v2, %v15397_v30  ;;  %v3828_v31 = vpop.f32.mrb[33].mxu0  ;;  %v3917_v11 = vpop.f32.mrb[49].mxu1  ;;  %v4467_v58 = vld [vmem:[#allocation11 + $0x198] sm:$0xff]  ;;  %v4270_v61 = vld [vmem:[#allocation10 + $0x10] sm:$0xff]  ;;  %v4418_v44 = vld [vmem:[#allocation11 + $0x10] sm:$0xff] }
 0x559   : > { %v3963_v36 = vmax.f32 %v15778_v47, %v3947_v46  ;;  %v3965_v0 = vmax.f32 %v15781_v60, %v3949_v34  ;;  %v13326_v52 = vadd.f32 %v3828_v31, %v15399_v1  ;;  %v13334_v3 = vadd.f32 %v3917_v11, %v15401_v50  ;;  %v4419_v2 = vld [vmem:[#allocation11 + $0x18] sm:$0xff]  ;;  %v4436_v31 = vld [vmem:[#allocation11 + $0xa0] sm:$0xff]  ;;  %v4437_v11 = vld [vmem:[#allocation11 + $0xa8] sm:$0xff] }
 0x55a   : > { %v15833_v57 = vpack.c.bf16 %v3962_v43, %v3958_v59  ;;  %v15835_v16 = vpack.c.bf16 %v3964_v55, %v3960_v5  ;;  %v3950_v62 = vmax.f32 %v13325_v51, 0.0  ;;  %v3952_v41 = vmax.f32 %v13333_v18, 0.0  ;;  %v4465_v59 = vld [vmem:[#allocation11 + $0x188] sm:$0xff]  ;;  %v4416_v5 = vld [vmem:[#allocation11] sm:$0xff]  ;;  %v4450_v51 = vld [vmem:[#allocation11 + $0x110] sm:$0xff] }
 0x55b   : > { %v15837_v54 = vpack.c.bf16 %v3963_v36, %v3959_v40  ;;  %v15839_v13 = vpack.c.bf16 %v3965_v0, %v3961_v20  ;;  %v3951_v38 = vmax.f32 %v13326_v52, 0.0  ;;  %v3953_v26 = vmax.f32 %v13334_v3, 0.0  ;;  %v3832_v49 = vpop.f32.mrb[34].mxu0  ;;  %v3921_v47 = vpop.f32.mrb[50].mxu1  ;;  %v4449_v40 = vld [vmem:[#allocation11 + $0x108] sm:$0xff]  ;;  %v4434_v20 = vld [vmem:[#allocation11 + $0x90] sm:$0xff] }
 0x55c   : > { %v3966_v60 = vmax.f32 %v15786_v9, %v3950_v62  ;;  %v3968_v23 = vmax.f32 %v15789_v48, %v3952_v41  ;;  %v13327_v37 = vadd.f32 %v3832_v49, %v15395_v35  ;;  %v13335_v6 = vadd.f32 %v3921_v47, %v15397_v30  ;;  %v3834_v24 = vpop.f32.mrb[35].mxu0  ;;  %v3923_v4 = vpop.f32.mrb[51].mxu1  ;;  %v4451_v18 = vld [vmem:[#allocation11 + $0x118] sm:$0xff]  ;;  %v4468_v36 = vld [vmem:[#allocation11 + $0x1a0] sm:$0xff]  ;;  %v4469_v0 = vld [vmem:[#allocation11 + $0x1a8] sm:$0xff] }
 0x55d   : > { %v3967_v27 = vmax.f32 %v15794_v56, %v3951_v38  ;;  %v3969_v25 = vmax.f32 %v15797_v10, %v3953_v26  ;;  %v13328_v28 = vadd.f32 %v3834_v24, %v15399_v1  ;;  %v13336_v8 = vadd.f32 %v3923_v4, %v15401_v50  ;;  %12026 = vmatprep.subr.bf16.mxu0 %v15837_v54  ;;  %v4420_v62 = vld [vmem:[#allocation11 + $0x20] sm:$0xff]  ;;  %v4421_v41 = vld [vmem:[#allocation11 + $0x28] sm:$0xff] }
 0x55e   : > { %v3954_v32 = vmax.f32 %v13327_v37, 0.0  ;;  %v3956_v9 = vmax.f32 %v13335_v6, 0.0  ;;  %12034 = vmatprep.subr.bf16.mxu1 %v15839_v13  ;;  %12028 = vmatpush1.bf16.msra.mxu0 %v15833_v57  ;;  %v15891_v39 = vpack.c.bf16 %v4465_v59, %v4464_v12  ;;  %v15897_v46 = vpack.c.bf16 %v4417_v63, %v4416_v5  ;;  %v4452_v49 = vld [vmem:[#allocation11 + $0x120] sm:$0xff]  ;;  %v4453_v47 = vld [vmem:[#allocation11 + $0x128] sm:$0xff]  ;;  %v4470_v37 = vld [vmem:[#allocation11 + $0x1b0] sm:$0xff] }
 0x55f   : > { %v3955_v35 = vmax.f32 %v13328_v28, 0.0  ;;  %v3957_v30 = vmax.f32 %v13336_v8, 0.0  ;;  %12036 = vmatpush1.bf16.msra.mxu1 %v15835_v16  ;;  %v15899_v34 = vpack.c.bf16 %v4449_v40, %v4448_v22  ;;  %v15903_v43 = vpack.c.bf16 %v4435_v29, %v4434_v20  ;;  %v4471_v6 = vld [vmem:[#allocation11 + $0x1b8] sm:$0xff]  ;;  %v4456_v12 = vld [vmem:[#allocation11 + $0x140] sm:$0xff]  ;;  %v4457_v59 = vld [vmem:[#allocation11 + $0x148] sm:$0xff] }
 0x560   : > { %v3970_v48 = vmax.f32 %v15802_v42, %v3954_v32  ;;  %v3972_v56 = vmax.f32 %v15805_v19, %v3956_v9  ;;  %v3975_v42 = vld [vmem:[#allocation10] sm:$0xff]  ;;  %v4123_v19 = vld [vmem:[#allocation10 + $0x8] sm:$0xff]  ;;  %v15905_v55 = vpack.c.bf16 %v4467_v58, %v4466_v21  ;;  %v15911_v52 = vpack.c.bf16 %v4419_v2, %v4418_v44 }
 0x561   : > { %v3971_v1 = vmax.f32 %v15808_v15, %v3955_v35  ;;  %v3973_v50 = vmax.f32 %v15811_v33, %v3957_v30  ;;  %v4432_v15 = vld [vmem:[#allocation11 + $0x80] sm:$0xff]  ;;  %v4433_v33 = vld [vmem:[#allocation11 + $0x88] sm:$0xff]  ;;  %v15913_v3 = vpack.c.bf16 %v4451_v18, %v4450_v51  ;;  %v15917_v38 = vpack.c.bf16 %v4437_v11, %v4436_v31  ;;  %v4454_v32 = vld [vmem:[#allocation11 + $0x130] sm:$0xff] }
 0x562   : > { %v15857_v10 = vpack.c.bf16 %v3970_v48, %v3966_v60  ;;  %v15859_v53 = vpack.c.bf16 %v3972_v56, %v3968_v23  ;;  %v15889_v17 = vpack.c.bf16 %v4433_v33, %v4432_v15  ;;  %v15919_v26 = vpack.c.bf16 %v4469_v0, %v4468_v36  ;;  %v4438_v60 = vld [vmem:[#allocation11 + $0xb0] sm:$0xff]  ;;  %v4439_v23 = vld [vmem:[#allocation11 + $0xb8] sm:$0xff]  ;;  %v4440_v35 = vld [vmem:[#allocation11 + $0xc0] sm:$0xff] }
 0x563   : > { %v15861_v45 = vpack.c.bf16 %v3971_v1, %v3967_v27  ;;  %v15863_v14 = vpack.c.bf16 %v3973_v50, %v3969_v25  ;;  %v15923_v24 = vpack.c.bf16 %v4421_v41, %v4420_v62  ;;  %v15925_v4 = vpack.c.bf16 %v4453_v47, %v4452_v49  ;;  %v4422_v27 = vld [vmem:[#allocation11 + $0x30] sm:$0xff]  ;;  %v4423_v25 = vld [vmem:[#allocation11 + $0x38] sm:$0xff]  ;;  %v4441_v30 = vld [vmem:[#allocation11 + $0xc8] sm:$0xff] }
 0x564   : > { %v15929_v28 = vpack.c.bf16 %v4439_v23, %v4438_v60  ;;  %v15931_v8 = vpack.c.bf16 %v4471_v6, %v4470_v37  ;;  %v4455_v9 = vld [vmem:[#allocation11 + $0x138] sm:$0xff]  ;;  %v4472_v48 = vld [vmem:[#allocation11 + $0x1c0] sm:$0xff]  ;;  %v4473_v56 = vld [vmem:[#allocation11 + $0x1c8] sm:$0xff]  ;;  %v15935_v1 = vpack.c.bf16 %v4423_v25, %v4422_v27  ;;  %v15941_v15 = vpack.c.bf16 %v4441_v30, %v4440_v35 }
 0x565   : > { %12030 = vmatprep.subr.bf16.mxu0 %v15861_v45  ;;  %12038 = vmatprep.subr.bf16.mxu1 %v15863_v14  ;;  %v15937_v50 = vpack.c.bf16 %v4455_v9, %v4454_v32  ;;  %v15943_v33 = vpack.c.bf16 %v4473_v56, %v4472_v48  ;;  %v4442_v5 = vld [vmem:[#allocation11 + $0xd0] sm:$0xff]  ;;  %v4443_v63 = vld [vmem:[#allocation11 + $0xd8] sm:$0xff]  ;;  %v15949_v29 = vpack.c.bf16 %v4457_v59, %v4456_v12  ;;  %v4444_v18 = vld [vmem:[#allocation11 + $0xe0] sm:$0xff] }
 0x566   : > { %12032 = vmatpush1.bf16.msra.mxu0 %v15857_v10  ;;  %12040 = vmatpush1.bf16.msra.mxu1 %v15859_v53  ;;  %v4474_v22 = vld [vmem:[#allocation11 + $0x1d0] sm:$0xff]  ;;  %v4475_v40 = vld [vmem:[#allocation11 + $0x1d8] sm:$0xff]  ;;  %v4445_v31 = vld [vmem:[#allocation11 + $0xe8] sm:$0xff] }
 0x567   : > { %12042 = vmatprep.subr.bf16.mxu0 %v15837_v54  ;;  %12050 = vmatprep.subr.bf16.mxu1 %v15839_v13  ;;  %v4426_v21 = vld [vmem:[#allocation11 + $0x50] sm:$0xff]  ;;  %v4427_v58 = vld [vmem:[#allocation11 + $0x58] sm:$0xff]  ;;  %v15955_v44 = vpack.c.bf16 %v4475_v40, %v4474_v22  ;;  %v4476_v11 = vld [vmem:[#allocation11 + $0x1e0] sm:$0xff]  ;;  %v15965_v47 = vpack.c.bf16 %v4445_v31, %v4444_v18 }
 0x568   : > { %v4458_v2 = vld [vmem:[#allocation11 + $0x150] sm:$0xff]  ;;  %v4459_v51 = vld [vmem:[#allocation11 + $0x158] sm:$0xff]  ;;  %v4477_v36 = vld [vmem:[#allocation11 + $0x1e8] sm:$0xff]  ;;  %v15959_v0 = vpack.c.bf16 %v4427_v58, %v4426_v21 }
 0x569   : > { %8931 = vmatmul.mubr.msk.f32.vlgmr.msra.gmra.mrb[36].mxu0 %vm3976_vm0, %v3975_v42  ;;  %8932 = vmatmul.mubr.msk.f32.vlgmr.msra.gmra.mrb[52].mxu1 %vm3976_vm0, %v3975_v42  ;;  %v4424_v42 = vld [vmem:[#allocation11 + $0x40] sm:$0xff]  ;;  %18119 = vst [vmem:[#allocation29_spill] sm:$0xff] %v15955_v44  ;;  %v15961_v62 = vpack.c.bf16 %v4459_v51, %v4458_v2  ;;  %v4429_v49 = vld [vmem:[#allocation11 + $0x68] sm:$0xff]  ;;  %18122 = vst [vmem:[#allocation32_spill] sm:$0xff] %v15965_v47  ;;  %v15967_v60 = vpack.c.bf16 %v4477_v36, %v4476_v11 }
 0x56a   : > { %12044 = vmatpush1.bf16.msra.mxu0 %v15833_v57  ;;  %12052 = vmatpush1.bf16.msra.mxu1 %v15835_v16  ;;  %18120 = vst [vmem:[#allocation30_spill] sm:$0xff] %v15959_v0  ;;  %v4428_v41 = vld [vmem:[#allocation11 + $0x60] sm:$0xff]  ;;  %v4461_v37 = vld [vmem:[#allocation11 + $0x168] sm:$0xff]  ;;  %v4446_v6 = vld [vmem:[#allocation11 + $0xf0] sm:$0xff] }
 0x56b   : > { %12046 = vmatprep.subr.bf16.mxu0 %v15861_v45  ;;  %12054 = vmatprep.subr.bf16.mxu1 %v15863_v14  ;;  %18121 = vst [vmem:[#allocation31_spill] sm:$0xff] %v15961_v62  ;;  %18123 = vst [vmem:[#allocation33_spill] sm:$0xff] %v15967_v60  ;;  %v4460_v23 = vld [vmem:[#allocation11 + $0x160] sm:$0xff]  ;;  %v4447_v27 = vld [vmem:[#allocation11 + $0xf8] sm:$0xff]  ;;  %v15971_v9 = vpack.c.bf16 %v4429_v49, %v4428_v41 }
 0x56c   : > { %4191 = vmatprep.mubr.f32.mxu0 %v17835_v7  ;;  %4262 = vmatprep.mubr.f32.mxu1 %v17835_v7  ;;  %v4478_v25 = vld [vmem:[#allocation11 + $0x1f0] sm:$0xff]  ;;  %v4479_v32 = vld [vmem:[#allocation11 + $0x1f8] sm:$0xff]  ;;  %v15973_v35 = vpack.c.bf16 %v4461_v37, %v4460_v23  ;;  %v15977_v48 = vpack.c.bf16 %v4447_v27, %v4446_v6  ;;  %v4645_v22 = vld [vmem:[#allocation11 + $0x288] sm:$0xff] }
 0x56d   : > { %18124 = vst [vmem:[#allocation34_spill] sm:$0xff] %v15971_v9  ;;  %v4430_v30 = vld [vmem:[#allocation11 + $0x70] sm:$0xff]  ;;  %v15979_v56 = vpack.c.bf16 %v4479_v32, %v4478_v25  ;;  %v4463_v12 = vld [vmem:[#allocation11 + $0x178] sm:$0xff]  ;;  %v4676_v40 = vld [vmem:[#allocation11 + $0x380] sm:$0xff] }
 0x56e   : > { %12048 = vmatpush1.bf16.msra.mxu0 %v15857_v10  ;;  %12056 = vmatpush1.bf16.msra.mxu1 %v15859_v53  ;;  %18125 = vst [vmem:[#allocation35_spill] sm:$0xff] %v15973_v35  ;;  %18126 = vst [vmem:[#allocation36_spill] sm:$0xff] %v15977_v48  ;;  %v4677_v58 = vld [vmem:[#allocation11 + $0x388] sm:$0xff]  ;;  %v4628_v51 = vld [vmem:[#allocation11 + $0x200] sm:$0xff] }
 0x56f   : > { %12058 = vmatprep.subr.bf16.mxu0 %v15837_v54  ;;  %12066 = vmatprep.subr.bf16.mxu1 %v15839_v13  ;;  %18127 = vst [vmem:[#allocation37_spill] sm:$0xff] %v15979_v56  ;;  %v15993_v2 = vpack.c.bf16 %v4677_v58, %v4676_v40  ;;  %v4629_v18 = vld [vmem:[#allocation11 + $0x208] sm:$0xff]  ;;  %v4660_v31 = vld [vmem:[#allocation11 + $0x300] sm:$0xff]  ;;  %v4646_v36 = vld [vmem:[#allocation11 + $0x290] sm:$0xff] }
 0x570   : > { %v4661_v11 = vld [vmem:[#allocation11 + $0x308] sm:$0xff]  ;;  %v4647_v41 = vld [vmem:[#allocation11 + $0x298] sm:$0xff]  ;;  %v4678_v49 = vld [vmem:[#allocation11 + $0x390] sm:$0xff]  ;;  %v16001_v27 = vpack.c.bf16 %v4629_v18, %v4628_v51 }
 0x571   : > { %8933 = vmatmul.mubr.msk.f32.vlgmr.msra.gmra.mrb[38].mxu0 %vm3976_vm0, %v4123_v19  ;;  %8934 = vmatmul.mubr.msk.f32.vlgmr.msra.gmra.mrb[54].mxu1 %vm3976_vm0, %v4123_v19  ;;  %v4425_v19 = vld [vmem:[#allocation11 + $0x48] sm:$0xff]  ;;  %18131 = vst [vmem:[#allocation41_spill] sm:$0xff] %v15993_v2  ;;  %v4679_v23 = vld [vmem:[#allocation11 + $0x398] sm:$0xff]  ;;  %v16003_v25 = vpack.c.bf16 %v4661_v11, %v4660_v31  ;;  %v4630_v32 = vld [vmem:[#allocation11 + $0x210] sm:$0xff] }
 0x572   : > { %12060 = vmatpush1.bf16.msra.mxu0 %v15833_v57  ;;  %12068 = vmatpush1.bf16.msra.mxu1 %v15835_v16  ;;  %v15947_v20 = vpack.c.bf16 %v4425_v19, %v4424_v42  ;;  %v4431_v42 = vld [vmem:[#allocation11 + $0x78] sm:$0xff]  ;;  %v4462_v19 = vld [vmem:[#allocation11 + $0x170] sm:$0xff]  ;;  %18132 = vst [vmem:[#allocation42_spill] sm:$0xff] %v16001_v27  ;;  %v4648_v58 = vld [vmem:[#allocation11 + $0x2a0] sm:$0xff] }
 0x573   : > { %12062 = vmatprep.subr.bf16.mxu0 %v15861_v45  ;;  %12070 = vmatprep.subr.bf16.mxu1 %v15863_v14  ;;  %v15983_v59 = vpack.c.bf16 %v4431_v42, %v4430_v30  ;;  %18133 = vst [vmem:[#allocation43_spill] sm:$0xff] %v16003_v25  ;;  %v4631_v30 = vld [vmem:[#allocation11 + $0x218] sm:$0xff]  ;;  %v4649_v51 = vld [vmem:[#allocation11 + $0x2a8] sm:$0xff]  ;;  %v4680_v18 = vld [vmem:[#allocation11 + $0x3a0] sm:$0xff] }
 0x574   : > { %4338 = vmatprep.mubr.f32.mxu0 %v17835_v7  ;;  %4409 = vmatprep.mubr.f32.mxu1 %v17835_v7  ;;  %v4663_v40 = vld [vmem:[#allocation11 + $0x318] sm:$0xff]  ;;  %v4681_v31 = vld [vmem:[#allocation11 + $0x3a8] sm:$0xff]  ;;  %v16019_v11 = vpack.c.bf16 %v4631_v30, %v4630_v32 }
 0x575   : > { %18128 = vst [vmem:[#allocation38_spill] sm:$0xff] %v15983_v59 }
 0x576   : > { %12064 = vmatpush1.bf16.msra.mxu0 %v15857_v10  ;;  %12072 = vmatpush1.bf16.msra.mxu1 %v15859_v53  ;;  %18136 = vst [vmem:[#allocation46_spill] sm:$0xff] %v16019_v11 }
 0x577   : > { %12074 = vmatprep.subr.bf16.mxu0 %v15889_v17  ;;  %12106 = vmatprep.subr.bf16.mxu1 %v15891_v39 }
 0x579   : > { %8935 = vmatmul.mubr.msk.f32.vlgmr.msra.gmra.mrb[40].mxu0 %vm3976_vm0, %v4270_v61  ;;  %8936 = vmatmul.mubr.msk.f32.vlgmr.msra.gmra.mrb[56].mxu1 %vm3976_vm0, %v4270_v61  ;;  %v15953_v61 = vpack.c.bf16 %v4443_v63, %v4442_v5  ;;  %v15985_v5 = vpack.c.bf16 %v4463_v12, %v4462_v19  ;;  %v4644_v63 = vld [vmem:[#allocation11 + $0x280] sm:$0xff]  ;;  %v16009_v12 = vpack.c.bf16 %v4647_v41, %v4646_v36 }
 0x57a   : > { %12076 = vmatpush3.bf16.msra.mxu0 %v15897_v46  ;;  %12108 = vmatpush3.bf16.msra.mxu1 %v15899_v34  ;;  %v15991_v21 = vpack.c.bf16 %v4645_v22, %v4644_v63  ;;  %v16011_v63 = vpack.c.bf16 %v4679_v23, %v4678_v49  ;;  %v4662_v22 = vld [vmem:[#allocation11 + $0x310] sm:$0xff]  ;;  %v4632_v41 = vld [vmem:[#allocation11 + $0x220] sm:$0xff]  ;;  %v4633_v49 = vld [vmem:[#allocation11 + $0x228] sm:$0xff]  ;;  %v16025_v23 = vpack.c.bf16 %v4649_v51, %v4648_v58 }
 0x57b   : > { %12078 = vmatprep.subr.bf16.mxu0 %v15903_v43  ;;  %12110 = vmatprep.subr.bf16.mxu1 %v15905_v55  ;;  %18129 = vst [vmem:[#allocation39_spill] sm:$0xff] %v15985_v5  ;;  %18134 = vst [vmem:[#allocation44_spill] sm:$0xff] %v16009_v12  ;;  %v16021_v36 = vpack.c.bf16 %v4663_v40, %v4662_v22  ;;  %v16031_v32 = vpack.c.bf16 %v4633_v49, %v4632_v41  ;;  %v4634_v22 = vld [vmem:[#allocation11 + $0x230] sm:$0xff]  ;;  %v4635_v40 = vld [vmem:[#allocation11 + $0x238] sm:$0xff] }
 0x57c   : > { %18130 = vst [vmem:[#allocation40_spill] sm:$0xff] %v15991_v21  ;;  %18135 = vst [vmem:[#allocation45_spill] sm:$0xff] %v16011_v63  ;;  %v4652_v41 = vld [vmem:[#allocation11 + $0x2c0] sm:$0xff] }
 0x57d   : > { %18137 = vst [vmem:[#allocation47_spill] sm:$0xff] %v16021_v36  ;;  %18138 = vst [vmem:[#allocation48_spill] sm:$0xff] %v16025_v23 }
 0x57e   : > { %12080 = vmatpush3.bf16.msra.mxu0 %v15911_v52  ;;  %12112 = vmatpush3.bf16.msra.mxu1 %v15913_v3  ;;  %18140 = vst [vmem:[#allocation50_spill] sm:$0xff] %v16031_v32 }
 0x57f   : > { %12082 = vmatprep.subr.bf16.mxu0 %v15917_v38  ;;  %12114 = vmatprep.subr.bf16.mxu1 %v15919_v26 }
 0x582   : > { %12084 = vmatpush3.bf16.msra.mxu0 %v15923_v24  ;;  %12116 = vmatpush3.bf16.msra.mxu1 %v15925_v4 }
 0x583   : > { %12086 = vmatprep.subr.bf16.mxu0 %v15929_v28  ;;  %12118 = vmatprep.subr.bf16.mxu1 %v15931_v8 }
 0x586   : > { %12088 = vmatpush3.bf16.msra.mxu0 %v15935_v1  ;;  %12120 = vmatpush3.bf16.msra.mxu1 %v15937_v50 }
 0x587   : > { %12090 = vmatprep.subr.bf16.mxu0 %v15941_v15  ;;  %12122 = vmatprep.subr.bf16.mxu1 %v15943_v33 }
 0x58a   : > { %12092 = vmatpush3.bf16.msra.mxu0 %v15947_v20  ;;  %12124 = vmatpush3.bf16.msra.mxu1 %v15949_v29 }
 0x58b   : > { %12094 = vmatprep.subr.bf16.mxu0 %v15953_v61  ;;  %12126 = vmatprep.subr.bf16.mxu1 %v15955_v44  ;;  %v4690_v44 = vld [vmem:[#allocation11 + $0x3f0] sm:$0xff] }
 0x58e   : > { %12096 = vmatpush3.bf16.msra.mxu0 %v15959_v0  ;;  %12128 = vmatpush3.bf16.msra.mxu1 %v15961_v62  ;;  %v4673_v62 = vld [vmem:[#allocation11 + $0x368] sm:$0xff]  ;;  %v4658_v0 = vld [vmem:[#allocation11 + $0x2f0] sm:$0xff] }
 0x58f   : > { %12098 = vmatprep.subr.bf16.mxu0 %v15965_v47  ;;  %12130 = vmatprep.subr.bf16.mxu1 %v15967_v60  ;;  %v4686_v60 = vld [vmem:[#allocation11 + $0x3d0] sm:$0xff]  ;;  %v4672_v47 = vld [vmem:[#allocation11 + $0x360] sm:$0xff] }
 0x592   : > { %12100 = vmatpush3.bf16.msra.mxu0 %v15971_v9  ;;  %12132 = vmatpush3.bf16.msra.mxu1 %v15973_v35  ;;  %v4669_v35 = vld [vmem:[#allocation11 + $0x348] sm:$0xff]  ;;  %v4654_v9 = vld [vmem:[#allocation11 + $0x2d0] sm:$0xff] }
 0x593   : > { %12102 = vmatprep.subr.bf16.mxu0 %v15977_v48  ;;  %12134 = vmatprep.subr.bf16.mxu1 %v15979_v56  ;;  %v4682_v56 = vld [vmem:[#allocation11 + $0x3b0] sm:$0xff]  ;;  %v4668_v48 = vld [vmem:[#allocation11 + $0x340] sm:$0xff] }
 0x596   : > { %12104 = vmatpush3.bf16.msra.mxu0 %v15983_v59  ;;  %12136 = vmatpush3.bf16.msra.mxu1 %v15985_v5  ;;  %v4665_v5 = vld [vmem:[#allocation11 + $0x328] sm:$0xff]  ;;  %v4650_v59 = vld [vmem:[#allocation11 + $0x2b0] sm:$0xff] }
 0x597   : > { %12138 = vmatprep.subr.bf16.mxu0 %v15991_v21  ;;  %12170 = vmatprep.subr.bf16.mxu1 %v15993_v2  ;;  %v16027_v2 = vpack.c.bf16 %v4681_v31, %v4680_v18  ;;  %v4664_v21 = vld [vmem:[#allocation11 + $0x320] sm:$0xff] }
 0x598   : > { %v16033_v30 = vpack.c.bf16 %v4665_v5, %v4664_v21  ;;  %v4653_v21 = vld [vmem:[#allocation11 + $0x2c8] sm:$0xff] }
 0x599   : > { %18139 = vst [vmem:[#allocation49_spill] sm:$0xff] %v16027_v2 }
 0x59a   : > { %18141 = vst [vmem:[#allocation51_spill] sm:$0xff] %v16033_v30 }
 0x63c   : > { %v15997_v37 = vpop.f32.mrb[36].mxu0  ;;  %v15999_v6 = vpop.f32.mrb[52].mxu1 }
 0x63d   : > { %v16005_v42 = vpop.f32.mrb[37].mxu0  ;;  %v16007_v19 = vpop.f32.mrb[53].mxu1 }
 0x63e   : > { %4544 = vmatprep.mubr.f32.mxu0 %v16005_v42  ;;  %4614 = vmatprep.mubr.f32.mxu1 %v16007_v19 }
 0x63f   : > { %4545 = vmatmul.mubr.f32.vlgmr.msra.gmra.mrb[42].mxu0 %v15997_v37  ;;  %4615 = vmatmul.mubr.f32.vlgmr.msra.gmra.mrb[58].mxu1 %v15999_v6 }
 0x640   : > { %12140 = vmatpush3.bf16.msra.mxu0 %v16001_v27  ;;  %12172 = vmatpush3.bf16.msra.mxu1 %v16003_v25  ;;  %v4651_v27 = vld [vmem:[#allocation11 + $0x2b8] sm:$0xff] }
 0x641   : > { %12142 = vmatprep.subr.bf16.mxu0 %v16009_v12  ;;  %12174 = vmatprep.subr.bf16.mxu1 %v16011_v63  ;;  %v4683_v25 = vld [vmem:[#allocation11 + $0x3b8] sm:$0xff]  ;;  %v16041_v18 = vpack.c.bf16 %v4651_v27, %v4650_v59  ;;  %v4684_v63 = vld [vmem:[#allocation11 + $0x3c0] sm:$0xff]  ;;  %v4685_v12 = vld [vmem:[#allocation11 + $0x3c8] sm:$0xff] }
 0x642   : > { %v16043_v31 = vpack.c.bf16 %v4683_v25, %v4682_v56  ;;  %v16053_v56 = vpack.c.bf16 %v4635_v40, %v4634_v22  ;;  %v4636_v27 = vld [vmem:[#allocation11 + $0x240] sm:$0xff]  ;;  %v4637_v25 = vld [vmem:[#allocation11 + $0x248] sm:$0xff]  ;;  %v4638_v22 = vld [vmem:[#allocation11 + $0x250] sm:$0xff] }
 0x643   : > { %18142 = vst [vmem:[#allocation52_spill] sm:$0xff] %v16041_v18  ;;  %v4639_v40 = vld [vmem:[#allocation11 + $0x258] sm:$0xff] }
 0x644   : > { %12144 = vmatpush3.bf16.msra.mxu0 %v16019_v11  ;;  %12176 = vmatpush3.bf16.msra.mxu1 %v16021_v36  ;;  %v16035_v58 = vpop.f32.mrb[38].mxu0  ;;  %v16037_v51 = vpop.f32.mrb[54].mxu1  ;;  %18143 = vst [vmem:[#allocation53_spill] sm:$0xff] %v16043_v31  ;;  %v4666_v11 = vld [vmem:[#allocation11 + $0x330] sm:$0xff]  ;;  %v4667_v36 = vld [vmem:[#allocation11 + $0x338] sm:$0xff]  ;;  %18144 = vst [vmem:[#allocation54_spill] sm:$0xff] %v16053_v56 }
 0x645   : > { %12146 = vmatprep.subr.bf16.mxu0 %v16025_v23  ;;  %12178 = vmatprep.subr.bf16.mxu1 %v16027_v2  ;;  %v16045_v49 = vpop.f32.mrb[39].mxu0  ;;  %v16047_v5 = vpop.f32.mrb[55].mxu1  ;;  %v16055_v59 = vpack.c.bf16 %v4667_v36, %v4666_v11  ;;  %v16059_v2 = vpack.c.bf16 %v4653_v21, %v4652_v41  ;;  %v16061_v23 = vpack.c.bf16 %v4685_v12, %v4684_v63 }
 0x646   : > { %4756 = vmatprep.mubr.f32.mxu0 %v16045_v49  ;;  %4826 = vmatprep.mubr.f32.mxu1 %v16047_v5  ;;  %v16065_v11 = vpack.c.bf16 %v4637_v25, %v4636_v27  ;;  %v16067_v36 = vpack.c.bf16 %v4669_v35, %v4668_v48  ;;  %v4656_v27 = vld [vmem:[#allocation11 + $0x2e0] sm:$0xff]  ;;  %v4657_v48 = vld [vmem:[#allocation11 + $0x2e8] sm:$0xff] }
 0x647   : > { %18145 = vst [vmem:[#allocation55_spill] sm:$0xff] %v16055_v59  ;;  %18146 = vst [vmem:[#allocation56_spill] sm:$0xff] %v16059_v2 }
 0x648   : > { %12148 = vmatpush3.bf16.msra.mxu0 %v16031_v32  ;;  %12180 = vmatpush3.bf16.msra.mxu1 %v16033_v30  ;;  %18147 = vst [vmem:[#allocation57_spill] sm:$0xff] %v16061_v23  ;;  %v4655_v32 = vld [vmem:[#allocation11 + $0x2d8] sm:$0xff]  ;;  %18148 = vst [vmem:[#allocation58_spill] sm:$0xff] %v16065_v11 }
 0x649   : > { %12150 = vmatprep.subr.bf16.mxu0 %v16041_v18  ;;  %12182 = vmatprep.subr.bf16.mxu1 %v16043_v31  ;;  %v4687_v30 = vld [vmem:[#allocation11 + $0x3d8] sm:$0xff]  ;;  %18149 = vst [vmem:[#allocation59_spill] sm:$0xff] %v16067_v36  ;;  %v16075_v63 = vpack.c.bf16 %v4655_v32, %v4654_v9  ;;  %v4688_v31 = vld [vmem:[#allocation11 + $0x3e0] sm:$0xff]  ;;  %v4689_v18 = vld [vmem:[#allocation11 + $0x3e8] sm:$0xff] }
 0x64a   : > { %v16077_v21 = vpack.c.bf16 %v4687_v30, %v4686_v60  ;;  %v4640_v60 = vld [vmem:[#allocation11 + $0x260] sm:$0xff]  ;;  %v4641_v32 = vld [vmem:[#allocation11 + $0x268] sm:$0xff]  ;;  %v16091_v30 = vpack.c.bf16 %v4657_v48, %v4656_v27  ;;  %v4674_v27 = vld [vmem:[#allocation11 + $0x370] sm:$0xff] }
 0x64b   : > { %18150 = vst [vmem:[#allocation60_spill] sm:$0xff] %v16075_v63  ;;  %v4675_v48 = vld [vmem:[#allocation11 + $0x378] sm:$0xff] }
 0x64c   : > { %12152 = vmatpush3.bf16.msra.mxu0 %v16053_v56  ;;  %12184 = vmatpush3.bf16.msra.mxu1 %v16055_v59  ;;  %v16069_v41 = vpop.f32.mrb[40].mxu0  ;;  %v16071_v12 = vpop.f32.mrb[56].mxu1  ;;  %18151 = vst [vmem:[#allocation61_spill] sm:$0xff] %v16077_v21  ;;  %v4670_v56 = vld [vmem:[#allocation11 + $0x350] sm:$0xff]  ;;  %v4671_v59 = vld [vmem:[#allocation11 + $0x358] sm:$0xff]  ;;  %18154 = vst [vmem:[#allocation64_spill] sm:$0xff] %v16091_v30 }
 0x64d   : > { %12154 = vmatprep.subr.bf16.mxu0 %v16059_v2  ;;  %12186 = vmatprep.subr.bf16.mxu1 %v16061_v23  ;;  %v16079_v25 = vpop.f32.mrb[41].mxu0  ;;  %v16081_v35 = vpop.f32.mrb[57].mxu1  ;;  %v16085_v2 = vpack.c.bf16 %v4639_v40, %v4638_v22  ;;  %v16087_v9 = vpack.c.bf16 %v4671_v59, %v4670_v56  ;;  %v16093_v23 = vpack.c.bf16 %v4689_v18, %v4688_v31  ;;  %v4642_v22 = vld [vmem:[#allocation11 + $0x270] sm:$0xff]  ;;  %v4643_v40 = vld [vmem:[#allocation11 + $0x278] sm:$0xff] }
 0x64e   : > { %v16097_v56 = vpack.c.bf16 %v4641_v32, %v4640_v60  ;;  %v16099_v59 = vpack.c.bf16 %v4673_v62, %v4672_v47  ;;  %v16109_v62 = vpack.c.bf16 %v4643_v40, %v4642_v22  ;;  %v16111_v47 = vpack.c.bf16 %v4675_v48, %v4674_v27  ;;  %v4834_v60 = vld [vmem:[#allocation11 + $0x400] sm:$0xff]  ;;  %v4835_v32 = vld [vmem:[#allocation11 + $0x408] sm:$0xff]  ;;  %v4836_v27 = vld [vmem:[#allocation11 + $0x410] sm:$0xff] }
 0x64f   : > { %18152 = vst [vmem:[#allocation62_spill] sm:$0xff] %v16085_v2  ;;  %18153 = vst [vmem:[#allocation63_spill] sm:$0xff] %v16087_v9  ;;  %v16121_v22 = vpack.c.bf16 %v4835_v32, %v4834_v60  ;;  %v4837_v48 = vld [vmem:[#allocation11 + $0x418] sm:$0xff] }
 0x650   : > { %12156 = vmatpush3.bf16.msra.mxu0 %v16065_v11  ;;  %12188 = vmatpush3.bf16.msra.mxu1 %v16067_v36  ;;  %18155 = vst [vmem:[#allocation65_spill] sm:$0xff] %v16093_v23  ;;  %v4659_v11 = vld [vmem:[#allocation11 + $0x2f8] sm:$0xff]  ;;  %18156 = vst [vmem:[#allocation66_spill] sm:$0xff] %v16097_v56  ;;  %v16135_v60 = vpack.c.bf16 %v4837_v48, %v4836_v27 }
 0x651   : > { %12158 = vmatprep.subr.bf16.mxu0 %v16075_v63  ;;  %12190 = vmatprep.subr.bf16.mxu1 %v16077_v21  ;;  %v4691_v36 = vld [vmem:[#allocation11 + $0x3f8] sm:$0xff]  ;;  %18157 = vst [vmem:[#allocation67_spill] sm:$0xff] %v16099_v59  ;;  %v16103_v18 = vpack.c.bf16 %v4659_v11, %v4658_v0  ;;  %v4850_v21 = vld [vmem:[#allocation11 + $0x480] sm:$0xff]  ;;  %18160 = vst [vmem:[#allocation70_spill] sm:$0xff] %v16109_v62 }
 0x652   : > { %v16105_v31 = vpack.c.bf16 %v4691_v36, %v4690_v44  ;;  %v4882_v63 = vld [vmem:[#allocation11 + $0x580] sm:$0xff]  ;;  %18161 = vst [vmem:[#allocation71_spill] sm:$0xff] %v16111_v47  ;;  %v4867_v36 = vld [vmem:[#allocation11 + $0x508] sm:$0xff]  ;;  %18164 = vst [vmem:[#allocation74_spill] sm:$0xff] %v16121_v22 }
 0x653   : > { %18158 = vst [vmem:[#allocation68_spill] sm:$0xff] %v16103_v18  ;;  %v4866_v11 = vld [vmem:[#allocation11 + $0x500] sm:$0xff]  ;;  %18168 = vst [vmem:[#allocation78_spill] sm:$0xff] %v16135_v60 }
 0x654   : > { %12160 = vmatpush3.bf16.msra.mxu0 %v16085_v2  ;;  %12192 = vmatpush3.bf16.msra.mxu1 %v16087_v9  ;;  %18159 = vst [vmem:[#allocation69_spill] sm:$0xff] %v16105_v31  ;;  %v4851_v2 = vld [vmem:[#allocation11 + $0x488] sm:$0xff]  ;;  %v16123_v40 = vpack.c.bf16 %v4867_v36, %v4866_v11  ;;  %v4870_v11 = vld [vmem:[#allocation11 + $0x520] sm:$0xff] }
 0x655   : > { %12162 = vmatprep.subr.bf16.mxu0 %v16091_v30  ;;  %12194 = vmatprep.subr.bf16.mxu1 %v16093_v23  ;;  %v4883_v9 = vld [vmem:[#allocation11 + $0x588] sm:$0xff]  ;;  %v16115_v44 = vpack.c.bf16 %v4851_v2, %v4850_v21  ;;  %v4852_v23 = vld [vmem:[#allocation11 + $0x490] sm:$0xff] }
 0x656   : > { %v16117_v0 = vpack.c.bf16 %v4883_v9, %v4882_v63  ;;  %v4884_v30 = vld [vmem:[#allocation11 + $0x590] sm:$0xff]  ;;  %18165 = vst [vmem:[#allocation75_spill] sm:$0xff] %v16123_v40  ;;  %v4869_v9 = vld [vmem:[#allocation11 + $0x518] sm:$0xff]  ;;  %v4871_v36 = vld [vmem:[#allocation11 + $0x528] sm:$0xff] }
 0x657   : > { %18162 = vst [vmem:[#allocation72_spill] sm:$0xff] %v16115_v44  ;;  %v4868_v21 = vld [vmem:[#allocation11 + $0x510] sm:$0xff] }
 0x658   : > { %12164 = vmatpush3.bf16.msra.mxu0 %v16097_v56  ;;  %12196 = vmatpush3.bf16.msra.mxu1 %v16099_v59  ;;  %18163 = vst [vmem:[#allocation73_spill] sm:$0xff] %v16117_v0  ;;  %v4853_v56 = vld [vmem:[#allocation11 + $0x498] sm:$0xff] }
 0x659   : > { %12166 = vmatprep.subr.bf16.mxu0 %v16103_v18  ;;  %12198 = vmatprep.subr.bf16.mxu1 %v16105_v31  ;;  %v4885_v59 = vld [vmem:[#allocation11 + $0x598] sm:$0xff]  ;;  %v16127_v2 = vpack.c.bf16 %v4853_v56, %v4852_v23  ;;  %v4854_v31 = vld [vmem:[#allocation11 + $0x4a0] sm:$0xff]  ;;  %v16137_v23 = vpack.c.bf16 %v4869_v9, %v4868_v21  ;;  %v4839_v56 = vld [vmem:[#allocation11 + $0x428] sm:$0xff] }
 0x65a   : > { %v16129_v63 = vpack.c.bf16 %v4885_v59, %v4884_v30  ;;  %v4886_v18 = vld [vmem:[#allocation11 + $0x5a0] sm:$0xff]  ;;  %v4872_v21 = vld [vmem:[#allocation11 + $0x530] sm:$0xff]  ;;  %v4873_v9 = vld [vmem:[#allocation11 + $0x538] sm:$0xff] }
 0x65b   : > { %18166 = vst [vmem:[#allocation76_spill] sm:$0xff] %v16127_v2  ;;  %18169 = vst [vmem:[#allocation79_spill] sm:$0xff] %v16137_v23  ;;  %v4838_v30 = vld [vmem:[#allocation11 + $0x420] sm:$0xff] }
 0x65c   : > { %12168 = vmatpush3.bf16.msra.mxu0 %v16109_v62  ;;  %12200 = vmatpush3.bf16.msra.mxu1 %v16111_v47  ;;  %18167 = vst [vmem:[#allocation77_spill] sm:$0xff] %v16129_v63  ;;  %v4855_v62 = vld [vmem:[#allocation11 + $0x4a8] sm:$0xff]  ;;  %v16149_v27 = vpack.c.bf16 %v4839_v56, %v4838_v30  ;;  %v16163_v56 = vpack.c.bf16 %v4873_v9, %v4872_v21  ;;  %v4844_v21 = vld [vmem:[#allocation11 + $0x450] sm:$0xff]  ;;  %v4845_v9 = vld [vmem:[#allocation11 + $0x458] sm:$0xff] }
 0x65d   : > { %12202 = vmatprep.subr.bf16.mxu0 %v16115_v44  ;;  %12234 = vmatprep.subr.bf16.mxu1 %v16117_v0  ;;  %v4887_v47 = vld [vmem:[#allocation11 + $0x5a8] sm:$0xff]  ;;  %v16141_v59 = vpack.c.bf16 %v4855_v62, %v4854_v31  ;;  %v4856_v0 = vld [vmem:[#allocation11 + $0x4b0] sm:$0xff]  ;;  %v16151_v31 = vpack.c.bf16 %v4871_v36, %v4870_v11  ;;  %v4841_v62 = vld [vmem:[#allocation11 + $0x438] sm:$0xff] }
 0x65e   : > { %v16143_v32 = vpack.c.bf16 %v4887_v47, %v4886_v18  ;;  %v4888_v44 = vld [vmem:[#allocation11 + $0x5b0] sm:$0xff]  ;;  %18172 = vst [vmem:[#allocation82_spill] sm:$0xff] %v16149_v27  ;;  %18177 = vst [vmem:[#allocation87_spill] sm:$0xff] %v16163_v56  ;;  %v4842_v11 = vld [vmem:[#allocation11 + $0x440] sm:$0xff] }
 0x65f   : > { %4757 = vmatmul.mubr.f32.vlgmr.msra.gmra.mrb[44].mxu0 %v16035_v58  ;;  %4827 = vmatmul.mubr.f32.vlgmr.msra.gmra.mrb[60].mxu1 %v16037_v51  ;;  %18170 = vst [vmem:[#allocation80_spill] sm:$0xff] %v16141_v59  ;;  %18173 = vst [vmem:[#allocation83_spill] sm:$0xff] %v16151_v31  ;;  %v4840_v18 = vld [vmem:[#allocation11 + $0x430] sm:$0xff]  ;;  %v4843_v36 = vld [vmem:[#allocation11 + $0x448] sm:$0xff] }
 0x660   : > { %12204 = vmatpush3.bf16.msra.mxu0 %v16121_v22  ;;  %12236 = vmatpush3.bf16.msra.mxu1 %v16123_v40  ;;  %18171 = vst [vmem:[#allocation81_spill] sm:$0xff] %v16143_v32  ;;  %v4857_v22 = vld [vmem:[#allocation11 + $0x4b8] sm:$0xff]  ;;  %v16161_v30 = vpack.c.bf16 %v4841_v62, %v4840_v18  ;;  %v16173_v18 = vpack.c.bf16 %v4843_v36, %v4842_v11 }
 0x661   : > { %12206 = vmatprep.subr.bf16.mxu0 %v16127_v2  ;;  %12238 = vmatprep.subr.bf16.mxu1 %v16129_v63  ;;  %v4889_v40 = vld [vmem:[#allocation11 + $0x5b8] sm:$0xff]  ;;  %v16155_v47 = vpack.c.bf16 %v4857_v22, %v4856_v0  ;;  %v4858_v63 = vld [vmem:[#allocation11 + $0x4c0] sm:$0xff]  ;;  %v16185_v11 = vpack.c.bf16 %v4845_v9, %v4844_v21 }
 0x662   : > { %4962 = vmatprep.mubr.f32.mxu0 %v16079_v25  ;;  %5032 = vmatprep.mubr.f32.mxu1 %v16081_v35  ;;  %v16157_v48 = vpack.c.bf16 %v4889_v40, %v4888_v44  ;;  %v4890_v2 = vld [vmem:[#allocation11 + $0x5c0] sm:$0xff]  ;;  %18176 = vst [vmem:[#allocation86_spill] sm:$0xff] %v16161_v30  ;;  %v4875_v40 = vld [vmem:[#allocation11 + $0x548] sm:$0xff]  ;;  %18180 = vst [vmem:[#allocation90_spill] sm:$0xff] %v16173_v18 }
 0x663   : > { %18174 = vst [vmem:[#allocation84_spill] sm:$0xff] %v16155_v47  ;;  %v4874_v22 = vld [vmem:[#allocation11 + $0x540] sm:$0xff]  ;;  %18184 = vst [vmem:[#allocation94_spill] sm:$0xff] %v16185_v11 }
 0x664   : > { %12208 = vmatpush3.bf16.msra.mxu0 %v16135_v60  ;;  %12240 = vmatpush3.bf16.msra.mxu1 %v16137_v23  ;;  %18175 = vst [vmem:[#allocation85_spill] sm:$0xff] %v16157_v48  ;;  %v4859_v60 = vld [vmem:[#allocation11 + $0x4c8] sm:$0xff]  ;;  %v16175_v62 = vpack.c.bf16 %v4875_v40, %v4874_v22  ;;  %v4846_v22 = vld [vmem:[#allocation11 + $0x460] sm:$0xff] }
 0x665   : > { %12210 = vmatprep.subr.bf16.mxu0 %v16141_v59  ;;  %12242 = vmatprep.subr.bf16.mxu1 %v16143_v32  ;;  %v4891_v23 = vld [vmem:[#allocation11 + $0x5c8] sm:$0xff]  ;;  %v16167_v44 = vpack.c.bf16 %v4859_v60, %v4858_v63  ;;  %v4860_v32 = vld [vmem:[#allocation11 + $0x4d0] sm:$0xff] }
 0x666   : > { %v16169_v0 = vpack.c.bf16 %v4891_v23, %v4890_v2  ;;  %v4892_v59 = vld [vmem:[#allocation11 + $0x5d0] sm:$0xff]  ;;  %18181 = vst [vmem:[#allocation91_spill] sm:$0xff] %v16175_v62  ;;  %v4877_v23 = vld [vmem:[#allocation11 + $0x558] sm:$0xff]  ;;  %v4847_v40 = vld [vmem:[#allocation11 + $0x468] sm:$0xff] }
 0x667   : > { %18178 = vst [vmem:[#allocation88_spill] sm:$0xff] %v16167_v44  ;;  %v4876_v60 = vld [vmem:[#allocation11 + $0x550] sm:$0xff]  ;;  %v16197_v21 = vpack.c.bf16 %v4847_v40, %v4846_v22 }
 0x668   : > { %12212 = vmatpush3.bf16.msra.mxu0 %v16149_v27  ;;  %12244 = vmatpush3.bf16.msra.mxu1 %v16151_v31  ;;  %18179 = vst [vmem:[#allocation89_spill] sm:$0xff] %v16169_v0  ;;  %v4861_v27 = vld [vmem:[#allocation11 + $0x4d8] sm:$0xff]  ;;  %v16187_v36 = vpack.c.bf16 %v4877_v23, %v4876_v60  ;;  %v4848_v60 = vld [vmem:[#allocation11 + $0x470] sm:$0xff] }
 0x669   : > { %12214 = vmatprep.subr.bf16.mxu0 %v16155_v47  ;;  %12246 = vmatprep.subr.bf16.mxu1 %v16157_v48  ;;  %v4893_v31 = vld [vmem:[#allocation11 + $0x5d8] sm:$0xff]  ;;  %v16179_v2 = vpack.c.bf16 %v4861_v27, %v4860_v32  ;;  %v4862_v48 = vld [vmem:[#allocation11 + $0x4e0] sm:$0xff]  ;;  %18188 = vst [vmem:[#allocation98_spill] sm:$0xff] %v16197_v21 }
 0x66a   : > { %v16181_v63 = vpack.c.bf16 %v4893_v31, %v4892_v59  ;;  %v4894_v47 = vld [vmem:[#allocation11 + $0x5e0] sm:$0xff]  ;;  %18185 = vst [vmem:[#allocation95_spill] sm:$0xff] %v16187_v36  ;;  %v4879_v31 = vld [vmem:[#allocation11 + $0x568] sm:$0xff]  ;;  %v4849_v23 = vld [vmem:[#allocation11 + $0x478] sm:$0xff] }
 0x66b   : > { %18182 = vst [vmem:[#allocation92_spill] sm:$0xff] %v16179_v2  ;;  %v4878_v27 = vld [vmem:[#allocation11 + $0x560] sm:$0xff]  ;;  %v16209_v22 = vpack.c.bf16 %v4849_v23, %v4848_v60 }
 0x66c   : > { %12216 = vmatpush3.bf16.msra.mxu0 %v16161_v30  ;;  %12248 = vmatpush3.bf16.msra.mxu1 %v16163_v56  ;;  %18183 = vst [vmem:[#allocation93_spill] sm:$0xff] %v16181_v63  ;;  %v4863_v30 = vld [vmem:[#allocation11 + $0x4e8] sm:$0xff]  ;;  %v16199_v9 = vpack.c.bf16 %v4879_v31, %v4878_v27  ;;  %v5073_v27 = vld [vmem:[#allocation11 + $0x700] sm:$0xff] }
 0x66d   : > { %12218 = vmatprep.subr.bf16.mxu0 %v16167_v44  ;;  %12250 = vmatprep.subr.bf16.mxu1 %v16169_v0  ;;  %v4895_v56 = vld [vmem:[#allocation11 + $0x5e8] sm:$0xff]  ;;  %v16191_v59 = vpack.c.bf16 %v4863_v30, %v4862_v48  ;;  %v4864_v0 = vld [vmem:[#allocation11 + $0x4f0] sm:$0xff]  ;;  %18191 = vst [vmem:[#allocation101_spill] sm:$0xff] %v16209_v22 }
 0x66e   : > { %v16193_v32 = vpack.c.bf16 %v4895_v56, %v4894_v47  ;;  %v4896_v44 = vld [vmem:[#allocation11 + $0x5f0] sm:$0xff]  ;;  %18189 = vst [vmem:[#allocation99_spill] sm:$0xff] %v16199_v9  ;;  %v4881_v56 = vld [vmem:[#allocation11 + $0x578] sm:$0xff]  ;;  %v5074_v31 = vld [vmem:[#allocation11 + $0x708] sm:$0xff] }
 0x66f   : > { %18186 = vst [vmem:[#allocation96_spill] sm:$0xff] %v16191_v59  ;;  %v4880_v30 = vld [vmem:[#allocation11 + $0x570] sm:$0xff] }
 0x670   : > { %12220 = vmatpush3.bf16.msra.mxu0 %v16173_v18  ;;  %12252 = vmatpush3.bf16.msra.mxu1 %v16175_v62  ;;  %18187 = vst [vmem:[#allocation97_spill] sm:$0xff] %v16193_v32  ;;  %v4865_v18 = vld [vmem:[#allocation11 + $0x4f8] sm:$0xff]  ;;  %v16211_v40 = vpack.c.bf16 %v4881_v56, %v4880_v30 }
 0x671   : > { %12222 = vmatprep.subr.bf16.mxu0 %v16179_v2  ;;  %12254 = vmatprep.subr.bf16.mxu1 %v16181_v63  ;;  %v4897_v62 = vld [vmem:[#allocation11 + $0x5f8] sm:$0xff]  ;;  %v16203_v47 = vpack.c.bf16 %v4865_v18, %v4864_v0  ;;  %v5057_v63 = vld [vmem:[#allocation11 + $0x680] sm:$0xff] }
 0x672   : > { %v16205_v48 = vpack.c.bf16 %v4897_v62, %v4896_v44  ;;  %v5089_v2 = vld [vmem:[#allocation11 + $0x780] sm:$0xff]  ;;  %v5042_v62 = vld [vmem:[#allocation11 + $0x608] sm:$0xff]  ;;  %v5076_v56 = vld [vmem:[#allocation11 + $0x718] sm:$0xff] }
 0x673   : > { %v5041_v18 = vld [vmem:[#allocation11 + $0x600] sm:$0xff] }
 0x674   : > { %12224 = vmatpush3.bf16.msra.mxu0 %v16185_v11  ;;  %12256 = vmatpush3.bf16.msra.mxu1 %v16187_v36  ;;  %18190 = vst [vmem:[#allocation100_spill] sm:$0xff] %v16205_v48  ;;  %v5058_v11 = vld [vmem:[#allocation11 + $0x688] sm:$0xff]  ;;  %v16221_v60 = vpack.c.bf16 %v5042_v62, %v5041_v18  ;;  %v5093_v18 = vld [vmem:[#allocation11 + $0x7a0] sm:$0xff] }
 0x675   : > { %12226 = vmatprep.subr.bf16.mxu0 %v16191_v59  ;;  %12258 = vmatprep.subr.bf16.mxu1 %v16193_v32  ;;  %v5090_v36 = vld [vmem:[#allocation11 + $0x788] sm:$0xff]  ;;  %v16215_v44 = vpack.c.bf16 %v5058_v11, %v5057_v63  ;;  %v5059_v32 = vld [vmem:[#allocation11 + $0x690] sm:$0xff]  ;;  %v5044_v11 = vld [vmem:[#allocation11 + $0x618] sm:$0xff] }
 0x676   : > { %v16217_v0 = vpack.c.bf16 %v5090_v36, %v5089_v2  ;;  %v5091_v59 = vld [vmem:[#allocation11 + $0x790] sm:$0xff]  ;;  %18193 = vst [vmem:[#allocation103_spill] sm:$0xff] %v16221_v60  ;;  %v16225_v2 = vpack.c.bf16 %v5074_v31, %v5073_v27  ;;  %v5094_v62 = vld [vmem:[#allocation11 + $0x7a8] sm:$0xff]  ;;  %v5077_v31 = vld [vmem:[#allocation11 + $0x720] sm:$0xff] }
 0x677   : > { %v5043_v63 = vld [vmem:[#allocation11 + $0x610] sm:$0xff] }
 0x678   : > { %12228 = vmatpush3.bf16.msra.mxu0 %v16197_v21  ;;  %12260 = vmatpush3.bf16.msra.mxu1 %v16199_v9  ;;  %18192 = vst [vmem:[#allocation102_spill] sm:$0xff] %v16217_v0  ;;  %v5060_v21 = vld [vmem:[#allocation11 + $0x698] sm:$0xff]  ;;  %18194 = vst [vmem:[#allocation104_spill] sm:$0xff] %v16225_v2  ;;  %v5075_v36 = vld [vmem:[#allocation11 + $0x710] sm:$0xff]  ;;  %v16235_v27 = vpack.c.bf16 %v5044_v11, %v5043_v63 }
 0x679   : > { %12230 = vmatprep.subr.bf16.mxu0 %v16203_v47  ;;  %12262 = vmatprep.subr.bf16.mxu1 %v16205_v48  ;;  %v5092_v9 = vld [vmem:[#allocation11 + $0x798] sm:$0xff]  ;;  %v16227_v23 = vpack.c.bf16 %v5060_v21, %v5059_v32  ;;  %v5061_v48 = vld [vmem:[#allocation11 + $0x6a0] sm:$0xff]  ;;  %v5063_v63 = vld [vmem:[#allocation11 + $0x6b0] sm:$0xff] }
 0x67a   : > { %v16229_v30 = vpack.c.bf16 %v5092_v9, %v5091_v59  ;;  %18197 = vst [vmem:[#allocation107_spill] sm:$0xff] %v16235_v27  ;;  %v16239_v59 = vpack.c.bf16 %v5076_v56, %v5075_v36  ;;  %v5045_v21 = vld [vmem:[#allocation11 + $0x620] sm:$0xff]  ;;  %v5046_v9 = vld [vmem:[#allocation11 + $0x628] sm:$0xff]  ;;  %v5064_v11 = vld [vmem:[#allocation11 + $0x6b8] sm:$0xff] }
 0x67b   : > { %18195 = vst [vmem:[#allocation105_spill] sm:$0xff] %v16227_v23  ;;  %v5047_v36 = vld [vmem:[#allocation11 + $0x630] sm:$0xff]  ;;  %v5048_v56 = vld [vmem:[#allocation11 + $0x638] sm:$0xff] }
 0x67c   : > { %12232 = vmatpush3.bf16.msra.mxu0 %v16209_v22  ;;  %12264 = vmatpush3.bf16.msra.mxu1 %v16211_v40  ;;  %18196 = vst [vmem:[#allocation106_spill] sm:$0xff] %v16229_v30  ;;  %v5062_v22 = vld [vmem:[#allocation11 + $0x6a8] sm:$0xff]  ;;  %18198 = vst [vmem:[#allocation108_spill] sm:$0xff] %v16239_v59 }
 0x67d   : > { %12266 = vmatprep.subr.bf16.mxu0 %v16215_v44  ;;  %12298 = vmatprep.subr.bf16.mxu1 %v16217_v0  ;;  %v16241_v32 = vpack.c.bf16 %v5062_v22, %v5061_v48  ;;  %v5095_v0 = vld [vmem:[#allocation11 + $0x7b0] sm:$0xff]  ;;  %v16254_v22 = vpack.c.bf16 %v5064_v11, %v5063_v63  ;;  %v5049_v63 = vld [vmem:[#allocation11 + $0x640] sm:$0xff] }
 0x67f   : > { %4963 = vmatmul.mubr.f32.vlgmr.msra.gmra.mrb[46].mxu0 %v16069_v41  ;;  %5033 = vmatmul.mubr.f32.vlgmr.msra.gmra.mrb[62].mxu1 %v16071_v12  ;;  %18199 = vst [vmem:[#allocation109_spill] sm:$0xff] %v16241_v32  ;;  %18203 = vst [vmem:[#allocation113_spill] sm:$0xff] %v16254_v22 }
 0x680   : > { %12268 = vmatpush3.bf16.msra.mxu0 %v16221_v60  ;;  %5169 = vmatprep.mubr.f32.mxu0 %v16005_v42  ;;  %v16245_v60 = vpack.c.bf16 %v5094_v62, %v5093_v18  ;;  %v5078_v42 = vld [vmem:[#allocation11 + $0x728] sm:$0xff]  ;;  %v5079_v18 = vld [vmem:[#allocation11 + $0x730] sm:$0xff] }
 0x681   : > { %12300 = vmatpush3.bf16.msra.mxu1 %v16225_v2  ;;  %5239 = vmatprep.mubr.f32.mxu1 %v16007_v19  ;;  %v5096_v2 = vld [vmem:[#allocation11 + $0x7b8] sm:$0xff]  ;;  %v16248_v19 = vpack.c.bf16 %v5046_v9, %v5045_v21  ;;  %v16252_v48 = vpack.c.bf16 %v5078_v42, %v5077_v31  ;;  %v5097_v21 = vld [vmem:[#allocation11 + $0x7c0] sm:$0xff]  ;;  %v5098_v9 = vld [vmem:[#allocation11 + $0x7c8] sm:$0xff] }
 0x682   : > { %12270 = vmatprep.subr.bf16.mxu0 %v16227_v23  ;;  %12302 = vmatprep.subr.bf16.mxu1 %v16229_v30  ;;  %18200 = vst [vmem:[#allocation110_spill] sm:$0xff] %v16245_v60  ;;  %v16257_v62 = vpack.c.bf16 %v5096_v2, %v5095_v0  ;;  %v5080_v30 = vld [vmem:[#allocation11 + $0x738] sm:$0xff]  ;;  %v5065_v23 = vld [vmem:[#allocation11 + $0x6c0] sm:$0xff]  ;;  %v5050_v0 = vld [vmem:[#allocation11 + $0x648] sm:$0xff]  ;;  %v16269_v11 = vpack.c.bf16 %v5098_v9, %v5097_v21 }
 0x683   : > { %18201 = vst [vmem:[#allocation111_spill] sm:$0xff] %v16248_v19  ;;  %18202 = vst [vmem:[#allocation112_spill] sm:$0xff] %v16252_v48  ;;  %v16264_v31 = vpack.c.bf16 %v5080_v30, %v5079_v18  ;;  %v5081_v2 = vld [vmem:[#allocation11 + $0x740] sm:$0xff]  ;;  %v5052_v18 = vld [vmem:[#allocation11 + $0x658] sm:$0xff] }
 0x684   : > { %12272 = vmatpush3.bf16.msra.mxu0 %v16235_v27  ;;  %18204 = vst [vmem:[#allocation114_spill] sm:$0xff] %v16257_v62  ;;  %v5066_v27 = vld [vmem:[#allocation11 + $0x6c8] sm:$0xff]  ;;  %18208 = vst [vmem:[#allocation118_spill] sm:$0xff] %v16269_v11  ;;  %v5083_v21 = vld [vmem:[#allocation11 + $0x750] sm:$0xff] }
 0x685   : > { %12304 = vmatpush3.bf16.msra.mxu1 %v16239_v59  ;;  %12274 = vmatprep.subr.bf16.mxu0 %v16241_v32  ;;  %v16260_v59 = vpack.c.bf16 %v5048_v56, %v5047_v36  ;;  %18206 = vst [vmem:[#allocation116_spill] sm:$0xff] %v16264_v31  ;;  %v16266_v42 = vpack.c.bf16 %v5066_v27, %v5065_v23  ;;  %v5067_v32 = vld [vmem:[#allocation11 + $0x6d0] sm:$0xff]  ;;  %v5100_v56 = vld [vmem:[#allocation11 + $0x7d8] sm:$0xff] }
 0x686   : > { %12306 = vmatprep.subr.bf16.mxu1 %v16245_v60  ;;  %v5082_v60 = vld [vmem:[#allocation11 + $0x748] sm:$0xff]  ;;  %v5099_v36 = vld [vmem:[#allocation11 + $0x7d0] sm:$0xff] }
 0x687   : > { %18205 = vst [vmem:[#allocation115_spill] sm:$0xff] %v16260_v59  ;;  %18207 = vst [vmem:[#allocation117_spill] sm:$0xff] %v16266_v42  ;;  %v16276_v23 = vpack.c.bf16 %v5082_v60, %v5081_v2  ;;  %v5051_v27 = vld [vmem:[#allocation11 + $0x650] sm:$0xff]  ;;  %v16281_v9 = vpack.c.bf16 %v5100_v56, %v5099_v36  ;;  %v5054_v2 = vld [vmem:[#allocation11 + $0x668] sm:$0xff] }
 0x688   : > { %12276 = vmatpush3.bf16.msra.mxu0 %v16248_v19  ;;  %v5068_v19 = vld [vmem:[#allocation11 + $0x6d8] sm:$0xff]  ;;  %v5085_v36 = vld [vmem:[#allocation11 + $0x760] sm:$0xff] }
 0x689   : > { %12308 = vmatpush3.bf16.msra.mxu1 %v16252_v48  ;;  %12278 = vmatprep.subr.bf16.mxu0 %v16254_v22  ;;  %v16272_v48 = vpack.c.bf16 %v5050_v0, %v5049_v63  ;;  %18210 = vst [vmem:[#allocation120_spill] sm:$0xff] %v16276_v23  ;;  %v16278_v30 = vpack.c.bf16 %v5068_v19, %v5067_v32  ;;  %18212 = vst [vmem:[#allocation122_spill] sm:$0xff] %v16281_v9  ;;  %v5069_v22 = vld [vmem:[#allocation11 + $0x6e0] sm:$0xff]  ;;  %v5102_v0 = vld [vmem:[#allocation11 + $0x7e8] sm:$0xff] }
 0x68a   : > { %12310 = vmatprep.subr.bf16.mxu1 %v16257_v62  ;;  %v5084_v62 = vld [vmem:[#allocation11 + $0x758] sm:$0xff]  ;;  %v5101_v63 = vld [vmem:[#allocation11 + $0x7e0] sm:$0xff] }
 0x68b   : > { %18209 = vst [vmem:[#allocation119_spill] sm:$0xff] %v16272_v48  ;;  %18211 = vst [vmem:[#allocation121_spill] sm:$0xff] %v16278_v30  ;;  %v16288_v60 = vpack.c.bf16 %v5084_v62, %v5083_v21  ;;  %v5053_v19 = vld [vmem:[#allocation11 + $0x660] sm:$0xff]  ;;  %v16293_v56 = vpack.c.bf16 %v5102_v0, %v5101_v63  ;;  %v5055_v62 = vld [vmem:[#allocation11 + $0x670] sm:$0xff] }
 0x68c   : > { %12280 = vmatpush3.bf16.msra.mxu0 %v16260_v59  ;;  %v5070_v59 = vld [vmem:[#allocation11 + $0x6e8] sm:$0xff]  ;;  %v5056_v21 = vld [vmem:[#allocation11 + $0x678] sm:$0xff]  ;;  %v5087_v63 = vld [vmem:[#allocation11 + $0x770] sm:$0xff] }
 0x68d   : > { %12312 = vmatpush3.bf16.msra.mxu1 %v16264_v31  ;;  %12282 = vmatprep.subr.bf16.mxu0 %v16266_v42  ;;  %v16284_v31 = vpack.c.bf16 %v5052_v18, %v5051_v27  ;;  %18214 = vst [vmem:[#allocation124_spill] sm:$0xff] %v16288_v60  ;;  %v16290_v32 = vpack.c.bf16 %v5070_v59, %v5069_v22  ;;  %18216 = vst [vmem:[#allocation126_spill] sm:$0xff] %v16293_v56  ;;  %v5071_v42 = vld [vmem:[#allocation11 + $0x6f0] sm:$0xff]  ;;  %v5104_v18 = vld [vmem:[#allocation11 + $0x7f8] sm:$0xff] }
 0x68e   : > { %12314 = vmatprep.subr.bf16.mxu1 %v16269_v11  ;;  %v5086_v11 = vld [vmem:[#allocation11 + $0x768] sm:$0xff]  ;;  %v5103_v27 = vld [vmem:[#allocation11 + $0x7f0] sm:$0xff] }
 0x68f   : > { %18213 = vst [vmem:[#allocation123_spill] sm:$0xff] %v16284_v31  ;;  %18215 = vst [vmem:[#allocation125_spill] sm:$0xff] %v16290_v32  ;;  %v16300_v59 = vpack.c.bf16 %v5086_v11, %v5085_v36  ;;  %v16305_v0 = vpack.c.bf16 %v5104_v18, %v5103_v27  ;;  %v5247_v11 = vld [vmem:[#allocation11 + $0x800] sm:$0xff]  ;;  %v5248_v36 = vld [vmem:[#allocation11 + $0x808] sm:$0xff] }
 0x690   : > { %12284 = vmatpush3.bf16.msra.mxu0 %v16272_v48  ;;  %v5072_v48 = vld [vmem:[#allocation11 + $0x6f8] sm:$0xff]  ;;  %v5279_v18 = vld [vmem:[#allocation11 + $0x900] sm:$0xff] }
 0x691   : > { %12316 = vmatpush3.bf16.msra.mxu1 %v16276_v23  ;;  %12286 = vmatprep.subr.bf16.mxu0 %v16278_v30  ;;  %v16296_v23 = vpack.c.bf16 %v5054_v2, %v5053_v19  ;;  %v16302_v22 = vpack.c.bf16 %v5072_v48, %v5071_v42  ;;  %18219 = vst [vmem:[#allocation129_spill] sm:$0xff] %v16305_v0  ;;  %v5263_v30 = vld [vmem:[#allocation11 + $0x880] sm:$0xff]  ;;  %v5296_v2 = vld [vmem:[#allocation11 + $0x988] sm:$0xff] }
 0x692   : > { %12318 = vmatprep.subr.bf16.mxu1 %v16281_v9  ;;  %v5088_v9 = vld [vmem:[#allocation11 + $0x778] sm:$0xff]  ;;  %v5295_v19 = vld [vmem:[#allocation11 + $0x980] sm:$0xff] }
 0x693   : > { %18217 = vst [vmem:[#allocation127_spill] sm:$0xff] %v16296_v23  ;;  %18218 = vst [vmem:[#allocation128_spill] sm:$0xff] %v16302_v22  ;;  %v16312_v48 = vpack.c.bf16 %v5088_v9, %v5087_v63  ;;  %v16317_v27 = vpack.c.bf16 %v5296_v2, %v5295_v19  ;;  %v5250_v9 = vld [vmem:[#allocation11 + $0x818] sm:$0xff]  ;;  %v5281_v63 = vld [vmem:[#allocation11 + $0x910] sm:$0xff] }
 0x694   : > { %12288 = vmatpush3.bf16.msra.mxu0 %v16284_v31  ;;  %v5264_v31 = vld [vmem:[#allocation11 + $0x888] sm:$0xff]  ;;  %v5282_v2 = vld [vmem:[#allocation11 + $0x918] sm:$0xff] }
 0x695   : > { %12320 = vmatpush3.bf16.msra.mxu1 %v16288_v60  ;;  %12290 = vmatprep.subr.bf16.mxu0 %v16290_v32  ;;  %v16308_v60 = vpack.c.bf16 %v5056_v21, %v5055_v62  ;;  %18221 = vst [vmem:[#allocation131_spill] sm:$0xff] %v16312_v48  ;;  %v16314_v42 = vpack.c.bf16 %v5264_v31, %v5263_v30  ;;  %v5265_v32 = vld [vmem:[#allocation11 + $0x890] sm:$0xff] }
 0x696   : > { %12322 = vmatprep.subr.bf16.mxu1 %v16293_v56  ;;  %v5280_v56 = vld [vmem:[#allocation11 + $0x908] sm:$0xff]  ;;  %v16320_v62 = vpack.c.bf16 %v5248_v36, %v5247_v11  ;;  %v5297_v21 = vld [vmem:[#allocation11 + $0x990] sm:$0xff]  ;;  %v5299_v36 = vld [vmem:[#allocation11 + $0x9a0] sm:$0xff] }
 0x697   : > { %18220 = vst [vmem:[#allocation130_spill] sm:$0xff] %v16308_v60  ;;  %v16324_v31 = vpack.c.bf16 %v5280_v56, %v5279_v18  ;;  %v5249_v30 = vld [vmem:[#allocation11 + $0x810] sm:$0xff]  ;;  %v5251_v18 = vld [vmem:[#allocation11 + $0x820] sm:$0xff] }
 0x698   : > { %12292 = vmatpush3.bf16.msra.mxu0 %v16296_v23  ;;  %v5266_v23 = vld [vmem:[#allocation11 + $0x898] sm:$0xff]  ;;  %v16334_v56 = vpack.c.bf16 %v5250_v9, %v5249_v30  ;;  %v5269_v30 = vld [vmem:[#allocation11 + $0x8b0] sm:$0xff] }
 0x699   : > { %12324 = vmatpush3.bf16.msra.mxu1 %v16300_v59  ;;  %12294 = vmatprep.subr.bf16.mxu0 %v16302_v22  ;;  %v5298_v22 = vld [vmem:[#allocation11 + $0x998] sm:$0xff]  ;;  %18222 = vst [vmem:[#allocation132_spill] sm:$0xff] %v16324_v31  ;;  %v16327_v19 = vpack.c.bf16 %v5266_v23, %v5265_v32  ;;  %v16338_v23 = vpack.c.bf16 %v5282_v2, %v5281_v63  ;;  %v5285_v2 = vld [vmem:[#allocation11 + $0x930] sm:$0xff] }
 0x69a   : > { %12326 = vmatprep.subr.bf16.mxu1 %v16305_v0  ;;  %v5267_v0 = vld [vmem:[#allocation11 + $0x8a0] sm:$0xff]  ;;  %v16330_v11 = vpack.c.bf16 %v5298_v22, %v5297_v21  ;;  %18225 = vst [vmem:[#allocation135_spill] sm:$0xff] %v16334_v56  ;;  %v5284_v21 = vld [vmem:[#allocation11 + $0x928] sm:$0xff]  ;;  %v5270_v9 = vld [vmem:[#allocation11 + $0x8b8] sm:$0xff] }
 0x69b   : > { %18223 = vst [vmem:[#allocation133_spill] sm:$0xff] %v16327_v19  ;;  %18226 = vst [vmem:[#allocation136_spill] sm:$0xff] %v16338_v23  ;;  %v5283_v22 = vld [vmem:[#allocation11 + $0x920] sm:$0xff]  ;;  %v5254_v63 = vld [vmem:[#allocation11 + $0x838] sm:$0xff] }
 0x69c   : > { %12296 = vmatpush3.bf16.msra.mxu0 %v16308_v60  ;;  %v5268_v60 = vld [vmem:[#allocation11 + $0x8a8] sm:$0xff]  ;;  %18224 = vst [vmem:[#allocation134_spill] sm:$0xff] %v16330_v11 }
 0x69d   : > { %12328 = vmatpush3.bf16.msra.mxu1 %v16312_v48  ;;  %12330 = vmatprep.subr.bf16.mxu0 %v16314_v42  ;;  %v5300_v48 = vld [vmem:[#allocation11 + $0x9a8] sm:$0xff]  ;;  %v16340_v32 = vpack.c.bf16 %v5268_v60, %v5267_v0  ;;  %v16354_v0 = vpack.c.bf16 %v5270_v9, %v5269_v30  ;;  %v5255_v30 = vld [vmem:[#allocation11 + $0x840] sm:$0xff] }
 0x69e   : > { %12362 = vmatprep.subr.bf16.mxu1 %v16317_v27  ;;  %v5287_v9 = vld [vmem:[#allocation11 + $0x940] sm:$0xff] }
 0x69f   : > { %5170 = vmatmul.mubr.f32.vlgmr.msra.gmra.mrb[48].mxu0 %v15997_v37  ;;  %18227 = vst [vmem:[#allocation137_spill] sm:$0xff] %v16340_v32  ;;  %v5252_v37 = vld [vmem:[#allocation11 + $0x828] sm:$0xff]  ;;  %18231 = vst [vmem:[#allocation141_spill] sm:$0xff] %v16354_v0 }
 0x6a0   : > { %5240 = vmatmul.mubr.f32.vlgmr.msra.gmra.mrb[64].mxu1 %v15999_v6  ;;  %12332 = vmatpush3.bf16.msra.mxu0 %v16320_v62  ;;  %v16344_v6 = vpack.c.bf16 %v5300_v48, %v5299_v36  ;;  %v16348_v60 = vpack.c.bf16 %v5252_v37, %v5251_v18  ;;  %v5253_v48 = vld [vmem:[#allocation11 + $0x830] sm:$0xff]  ;;  %v5303_v18 = vld [vmem:[#allocation11 + $0x9c0] sm:$0xff]  ;;  %v5304_v37 = vld [vmem:[#allocation11 + $0x9c8] sm:$0xff] }
 0x6a1   : > { %5375 = vmatprep.mubr.f32.mxu0 %v16045_v49  ;;  %12364 = vmatpush3.bf16.msra.mxu1 %v16324_v31  ;;  %v5301_v49 = vld [vmem:[#allocation11 + $0x9b0] sm:$0xff]  ;;  %v5302_v31 = vld [vmem:[#allocation11 + $0x9b8] sm:$0xff] }
 0x6a2   : > { %5445 = vmatprep.mubr.f32.mxu1 %v16047_v5  ;;  %12334 = vmatprep.subr.bf16.mxu0 %v16327_v19  ;;  %18228 = vst [vmem:[#allocation138_spill] sm:$0xff] %v16344_v6  ;;  %18229 = vst [vmem:[#allocation139_spill] sm:$0xff] %v16348_v60  ;;  %v16352_v5 = vpack.c.bf16 %v5284_v21, %v5283_v22  ;;  %v16357_v36 = vpack.c.bf16 %v5302_v31, %v5301_v49  ;;  %v5271_v19 = vld [vmem:[#allocation11 + $0x8c0] sm:$0xff]  ;;  %v5256_v31 = vld [vmem:[#allocation11 + $0x848] sm:$0xff] }
 0x6a3   : > { %12366 = vmatprep.subr.bf16.mxu1 %v16330_v11  ;;  %v5286_v11 = vld [vmem:[#allocation11 + $0x938] sm:$0xff]  ;;  %v16369_v49 = vpack.c.bf16 %v5304_v37, %v5303_v18  ;;  %v5289_v18 = vld [vmem:[#allocation11 + $0x950] sm:$0xff] }
 0x6a4   : > { %12336 = vmatpush3.bf16.msra.mxu0 %v16334_v56  ;;  %18230 = vst [vmem:[#allocation140_spill] sm:$0xff] %v16352_v5  ;;  %18232 = vst [vmem:[#allocation142_spill] sm:$0xff] %v16357_v36  ;;  %v5272_v56 = vld [vmem:[#allocation11 + $0x8c8] sm:$0xff]  ;;  %v16364_v22 = vpack.c.bf16 %v5286_v11, %v5285_v2  ;;  %v5258_v2 = vld [vmem:[#allocation11 + $0x858] sm:$0xff] }
 0x6a5   : > { %12368 = vmatpush3.bf16.msra.mxu1 %v16338_v23  ;;  %12338 = vmatprep.subr.bf16.mxu0 %v16340_v32  ;;  %v16360_v23 = vpack.c.bf16 %v5254_v63, %v5253_v48  ;;  %v16366_v21 = vpack.c.bf16 %v5272_v56, %v5271_v19  ;;  %18236 = vst [vmem:[#allocation146_spill] sm:$0xff] %v16369_v49  ;;  %v5273_v32 = vld [vmem:[#allocation11 + $0x8d0] sm:$0xff]  ;;  %v5306_v63 = vld [vmem:[#allocation11 + $0x9d8] sm:$0xff] }
 0x6a6   : > { %12370 = vmatprep.subr.bf16.mxu1 %v16344_v6  ;;  %18234 = vst [vmem:[#allocation144_spill] sm:$0xff] %v16364_v22  ;;  %v5288_v6 = vld [vmem:[#allocation11 + $0x948] sm:$0xff]  ;;  %v5305_v48 = vld [vmem:[#allocation11 + $0x9d0] sm:$0xff] }
 0x6a7   : > { %18233 = vst [vmem:[#allocation143_spill] sm:$0xff] %v16360_v23  ;;  %18235 = vst [vmem:[#allocation145_spill] sm:$0xff] %v16366_v21  ;;  %v16376_v19 = vpack.c.bf16 %v5288_v6, %v5287_v9  ;;  %v5257_v56 = vld [vmem:[#allocation11 + $0x850] sm:$0xff]  ;;  %v16381_v37 = vpack.c.bf16 %v5306_v63, %v5305_v48  ;;  %v5260_v9 = vld [vmem:[#allocation11 + $0x868] sm:$0xff] }
 0x6a8   : > { %12340 = vmatpush3.bf16.msra.mxu0 %v16348_v60  ;;  %v5274_v60 = vld [vmem:[#allocation11 + $0x8d8] sm:$0xff]  ;;  %v5291_v48 = vld [vmem:[#allocation11 + $0x960] sm:$0xff] }
 0x6a9   : > { %12372 = vmatpush3.bf16.msra.mxu1 %v16352_v5  ;;  %12342 = vmatprep.subr.bf16.mxu0 %v16354_v0  ;;  %v16372_v5 = vpack.c.bf16 %v5256_v31, %v5255_v30  ;;  %18238 = vst [vmem:[#allocation148_spill] sm:$0xff] %v16376_v19  ;;  %v16378_v11 = vpack.c.bf16 %v5274_v60, %v5273_v32  ;;  %18240 = vst [vmem:[#allocation150_spill] sm:$0xff] %v16381_v37  ;;  %v5275_v0 = vld [vmem:[#allocation11 + $0x8e0] sm:$0xff]  ;;  %v5308_v31 = vld [vmem:[#allocation11 + $0x9e8] sm:$0xff] }
 0x6aa   : > { %12374 = vmatprep.subr.bf16.mxu1 %v16357_v36  ;;  %v5290_v36 = vld [vmem:[#allocation11 + $0x958] sm:$0xff]  ;;  %v5307_v30 = vld [vmem:[#allocation11 + $0x9e0] sm:$0xff] }
 0x6ab   : > { %18237 = vst [vmem:[#allocation147_spill] sm:$0xff] %v16372_v5  ;;  %18239 = vst [vmem:[#allocation149_spill] sm:$0xff] %v16378_v11  ;;  %v16388_v32 = vpack.c.bf16 %v5290_v36, %v5289_v18  ;;  %v5259_v60 = vld [vmem:[#allocation11 + $0x860] sm:$0xff]  ;;  %v16393_v63 = vpack.c.bf16 %v5308_v31, %v5307_v30  ;;  %v5261_v36 = vld [vmem:[#allocation11 + $0x870] sm:$0xff] }
 0x6ac   : > { %12344 = vmatpush3.bf16.msra.mxu0 %v16360_v23  ;;  %v5276_v23 = vld [vmem:[#allocation11 + $0x8e8] sm:$0xff]  ;;  %v5262_v18 = vld [vmem:[#allocation11 + $0x878] sm:$0xff]  ;;  %v5293_v30 = vld [vmem:[#allocation11 + $0x970] sm:$0xff] }
 0x6ad   : > { %12376 = vmatpush3.bf16.msra.mxu1 %v16364_v22  ;;  %12346 = vmatprep.subr.bf16.mxu0 %v16366_v21  ;;  %v16384_v22 = vpack.c.bf16 %v5258_v2, %v5257_v56  ;;  %18242 = vst [vmem:[#allocation152_spill] sm:$0xff] %v16388_v32  ;;  %v16390_v6 = vpack.c.bf16 %v5276_v23, %v5275_v0  ;;  %18244 = vst [vmem:[#allocation154_spill] sm:$0xff] %v16393_v63  ;;  %v5277_v21 = vld [vmem:[#allocation11 + $0x8f0] sm:$0xff]  ;;  %v5310_v2 = vld [vmem:[#allocation11 + $0x9f8] sm:$0xff] }
 0x6ae   : > { %12378 = vmatprep.subr.bf16.mxu1 %v16369_v49  ;;  %v5292_v49 = vld [vmem:[#allocation11 + $0x968] sm:$0xff]  ;;  %v5309_v56 = vld [vmem:[#allocation11 + $0x9f0] sm:$0xff] }
 0x6af   : > { %18241 = vst [vmem:[#allocation151_spill] sm:$0xff] %v16384_v22  ;;  %18243 = vst [vmem:[#allocation153_spill] sm:$0xff] %v16390_v6  ;;  %v16400_v23 = vpack.c.bf16 %v5292_v49, %v5291_v48  ;;  %v16405_v31 = vpack.c.bf16 %v5310_v2, %v5309_v56  ;;  %v5453_v49 = vld [vmem:[#allocation11 + $0xa00] sm:$0xff]  ;;  %v5454_v48 = vld [vmem:[#allocation11 + $0xa08] sm:$0xff] }
 0x6b0   : > { %12348 = vmatpush3.bf16.msra.mxu0 %v16372_v5  ;;  %v5278_v5 = vld [vmem:[#allocation11 + $0x8f8] sm:$0xff]  ;;  %v5485_v2 = vld [vmem:[#allocation11 + $0xb00] sm:$0xff] }
 0x6b1   : > { %12380 = vmatpush3.bf16.msra.mxu1 %v16376_v19  ;;  %12350 = vmatprep.subr.bf16.mxu0 %v16378_v11  ;;  %v16396_v19 = vpack.c.bf16 %v5260_v9, %v5259_v60  ;;  %v16402_v0 = vpack.c.bf16 %v5278_v5, %v5277_v21  ;;  %18247 = vst [vmem:[#allocation157_spill] sm:$0xff] %v16405_v31  ;;  %v5469_v11 = vld [vmem:[#allocation11 + $0xa80] sm:$0xff]  ;;  %v5502_v9 = vld [vmem:[#allocation11 + $0xb88] sm:$0xff] }
 0x6b2   : > { %12382 = vmatprep.subr.bf16.mxu1 %v16381_v37  ;;  %v5294_v37 = vld [vmem:[#allocation11 + $0x978] sm:$0xff]  ;;  %v5501_v60 = vld [vmem:[#allocation11 + $0xb80] sm:$0xff] }
 0x6b3   : > { %18245 = vst [vmem:[#allocation155_spill] sm:$0xff] %v16396_v19  ;;  %18246 = vst [vmem:[#allocation156_spill] sm:$0xff] %v16402_v0  ;;  %v16412_v5 = vpack.c.bf16 %v5294_v37, %v5293_v30  ;;  %v16417_v56 = vpack.c.bf16 %v5502_v9, %v5501_v60  ;;  %v5456_v37 = vld [vmem:[#allocation11 + $0xa18] sm:$0xff]  ;;  %v5487_v30 = vld [vmem:[#allocation11 + $0xb10] sm:$0xff] }
 0x6b4   : > { %12352 = vmatpush3.bf16.msra.mxu0 %v16384_v22  ;;  %v5470_v22 = vld [vmem:[#allocation11 + $0xa88] sm:$0xff]  ;;  %v5488_v9 = vld [vmem:[#allocation11 + $0xb18] sm:$0xff] }
 0x6b5   : > { %12384 = vmatpush3.bf16.msra.mxu1 %v16388_v32  ;;  %12354 = vmatprep.subr.bf16.mxu0 %v16390_v6  ;;  %v16408_v32 = vpack.c.bf16 %v5262_v18, %v5261_v36  ;;  %18249 = vst [vmem:[#allocation159_spill] sm:$0xff] %v16412_v5  ;;  %v16414_v21 = vpack.c.bf16 %v5470_v22, %v5469_v11  ;;  %v5471_v6 = vld [vmem:[#allocation11 + $0xa90] sm:$0xff] }
 0x6b6   : > { %12386 = vmatprep.subr.bf16.mxu1 %v16393_v63  ;;  %v5486_v63 = vld [vmem:[#allocation11 + $0xb08] sm:$0xff]  ;;  %v16420_v36 = vpack.c.bf16 %v5454_v48, %v5453_v49  ;;  %v5503_v18 = vld [vmem:[#allocation11 + $0xb90] sm:$0xff]  ;;  %v5505_v48 = vld [vmem:[#allocation11 + $0xba0] sm:$0xff] }
 0x6b7   : > { %18248 = vst [vmem:[#allocation158_spill] sm:$0xff] %v16408_v32  ;;  %v16424_v22 = vpack.c.bf16 %v5486_v63, %v5485_v2  ;;  %v5455_v11 = vld [vmem:[#allocation11 + $0xa10] sm:$0xff]  ;;  %v5457_v2 = vld [vmem:[#allocation11 + $0xa20] sm:$0xff] }
 0x6b8   : > { %12356 = vmatpush3.bf16.msra.mxu0 %v16396_v19  ;;  %v5472_v19 = vld [vmem:[#allocation11 + $0xa98] sm:$0xff]  ;;  %v16434_v63 = vpack.c.bf16 %v5456_v37, %v5455_v11  ;;  %v5475_v11 = vld [vmem:[#allocation11 + $0xab0] sm:$0xff] }
 0x6b9   : > { %12388 = vmatpush3.bf16.msra.mxu1 %v16400_v23  ;;  %12358 = vmatprep.subr.bf16.mxu0 %v16402_v0  ;;  %v5504_v0 = vld [vmem:[#allocation11 + $0xb98] sm:$0xff]  ;;  %18250 = vst [vmem:[#allocation160_spill] sm:$0xff] %v16424_v22  ;;  %v16427_v60 = vpack.c.bf16 %v5472_v19, %v5471_v6  ;;  %v16438_v19 = vpack.c.bf16 %v5488_v9, %v5487_v30  ;;  %v5491_v9 = vld [vmem:[#allocation11 + $0xb30] sm:$0xff] }
 0x6ba   : > { %12390 = vmatprep.subr.bf16.mxu1 %v16405_v31  ;;  %v5473_v31 = vld [vmem:[#allocation11 + $0xaa0] sm:$0xff]  ;;  %v16430_v49 = vpack.c.bf16 %v5504_v0, %v5503_v18  ;;  %18253 = vst [vmem:[#allocation163_spill] sm:$0xff] %v16434_v63  ;;  %v5490_v18 = vld [vmem:[#allocation11 + $0xb28] sm:$0xff]  ;;  %v5476_v37 = vld [vmem:[#allocation11 + $0xab8] sm:$0xff] }
 0x6bb   : > { %18251 = vst [vmem:[#allocation161_spill] sm:$0xff] %v16427_v60  ;;  %18254 = vst [vmem:[#allocation164_spill] sm:$0xff] %v16438_v19  ;;  %v5489_v0 = vld [vmem:[#allocation11 + $0xb20] sm:$0xff]  ;;  %v5460_v30 = vld [vmem:[#allocation11 + $0xa38] sm:$0xff] }
 0x6bc   : > { %12360 = vmatpush3.bf16.msra.mxu0 %v16408_v32  ;;  %v5474_v32 = vld [vmem:[#allocation11 + $0xaa8] sm:$0xff]  ;;  %18252 = vst [vmem:[#allocation162_spill] sm:$0xff] %v16430_v49 }
 0x6bd   : > { %12392 = vmatpush3.bf16.msra.mxu1 %v16412_v5  ;;  %12394 = vmatprep.subr.bf16.mxu0 %v16414_v21  ;;  %v5506_v5 = vld [vmem:[#allocation11 + $0xba8] sm:$0xff]  ;;  %v16440_v6 = vpack.c.bf16 %v5474_v32, %v5473_v31  ;;  %v16454_v31 = vpack.c.bf16 %v5476_v37, %v5475_v11  ;;  %v5461_v11 = vld [vmem:[#allocation11 + $0xa40] sm:$0xff] }
 0x6be   : > { %12426 = vmatprep.subr.bf16.mxu1 %v16417_v56  ;;  %v5493_v37 = vld [vmem:[#allocation11 + $0xb40] sm:$0xff] }
 0x6bf   : > { %5376 = vmatmul.mubr.f32.vlgmr.msra.gmra.mrb[50].mxu0 %v16035_v58  ;;  %18255 = vst [vmem:[#allocation165_spill] sm:$0xff] %v16440_v6  ;;  %v5458_v58 = vld [vmem:[#allocation11 + $0xa28] sm:$0xff]  ;;  %18259 = vst [vmem:[#allocation169_spill] sm:$0xff] %v16454_v31 }
 0x6c0   : > { %5446 = vmatmul.mubr.f32.vlgmr.msra.gmra.mrb[66].mxu1 %v16037_v51  ;;  %12396 = vmatpush3.bf16.msra.mxu0 %v16420_v36  ;;  %v16444_v51 = vpack.c.bf16 %v5506_v5, %v5505_v48  ;;  %v16448_v32 = vpack.c.bf16 %v5458_v58, %v5457_v2  ;;  %v5459_v5 = vld [vmem:[#allocation11 + $0xa30] sm:$0xff]  ;;  %v5509_v2 = vld [vmem:[#allocation11 + $0xbc0] sm:$0xff]  ;;  %v5510_v58 = vld [vmem:[#allocation11 + $0xbc8] sm:$0xff] }
 0x6c1   : > { %5581 = vmatprep.mubr.f32.mxu0 %v16079_v25  ;;  %12428 = vmatpush3.bf16.msra.mxu1 %v16424_v22  ;;  %v5507_v25 = vld [vmem:[#allocation11 + $0xbb0] sm:$0xff]  ;;  %v5508_v22 = vld [vmem:[#allocation11 + $0xbb8] sm:$0xff] }
 0x6c2   : > { %5651 = vmatprep.mubr.f32.mxu1 %v16081_v35  ;;  %12398 = vmatprep.subr.bf16.mxu0 %v16427_v60  ;;  %18256 = vst [vmem:[#allocation166_spill] sm:$0xff] %v16444_v51  ;;  %18257 = vst [vmem:[#allocation167_spill] sm:$0xff] %v16448_v32  ;;  %v16452_v35 = vpack.c.bf16 %v5490_v18, %v5489_v0  ;;  %v16457_v48 = vpack.c.bf16 %v5508_v22, %v5507_v25  ;;  %v5477_v60 = vld [vmem:[#allocation11 + $0xac0] sm:$0xff]  ;;  %v5462_v22 = vld [vmem:[#allocation11 + $0xa48] sm:$0xff] }
 0x6c3   : > { %12430 = vmatprep.subr.bf16.mxu1 %v16430_v49  ;;  %v5492_v49 = vld [vmem:[#allocation11 + $0xb38] sm:$0xff]  ;;  %v16469_v25 = vpack.c.bf16 %v5510_v58, %v5509_v2  ;;  %v5495_v2 = vld [vmem:[#allocation11 + $0xb50] sm:$0xff] }
 0x6c4   : > { %12400 = vmatpush3.bf16.msra.mxu0 %v16434_v63  ;;  %18258 = vst [vmem:[#allocation168_spill] sm:$0xff] %v16452_v35  ;;  %18260 = vst [vmem:[#allocation170_spill] sm:$0xff] %v16457_v48  ;;  %v5478_v63 = vld [vmem:[#allocation11 + $0xac8] sm:$0xff]  ;;  %v16464_v0 = vpack.c.bf16 %v5492_v49, %v5491_v9  ;;  %v5464_v9 = vld [vmem:[#allocation11 + $0xa58] sm:$0xff] }
 0x6c5   : > { %12432 = vmatpush3.bf16.msra.mxu1 %v16438_v19  ;;  %12402 = vmatprep.subr.bf16.mxu0 %v16440_v6  ;;  %v16460_v19 = vpack.c.bf16 %v5460_v30, %v5459_v5  ;;  %v16466_v18 = vpack.c.bf16 %v5478_v63, %v5477_v60  ;;  %18264 = vst [vmem:[#allocation174_spill] sm:$0xff] %v16469_v25  ;;  %v5479_v6 = vld [vmem:[#allocation11 + $0xad0] sm:$0xff]  ;;  %v5512_v30 = vld [vmem:[#allocation11 + $0xbd8] sm:$0xff] }
 0x6c6   : > { %12434 = vmatprep.subr.bf16.mxu1 %v16444_v51  ;;  %18262 = vst [vmem:[#allocation172_spill] sm:$0xff] %v16464_v0  ;;  %v5494_v51 = vld [vmem:[#allocation11 + $0xb48] sm:$0xff]  ;;  %v5511_v5 = vld [vmem:[#allocation11 + $0xbd0] sm:$0xff] }
 0x6c7   : > { %18261 = vst [vmem:[#allocation171_spill] sm:$0xff] %v16460_v19  ;;  %18263 = vst [vmem:[#allocation173_spill] sm:$0xff] %v16466_v18  ;;  %v16476_v60 = vpack.c.bf16 %v5494_v51, %v5493_v37  ;;  %v5463_v63 = vld [vmem:[#allocation11 + $0xa50] sm:$0xff]  ;;  %v16481_v58 = vpack.c.bf16 %v5512_v30, %v5511_v5  ;;  %v5466_v37 = vld [vmem:[#allocation11 + $0xa68] sm:$0xff] }
 0x6c8   : > { %12404 = vmatpush3.bf16.msra.mxu0 %v16448_v32  ;;  %v5480_v32 = vld [vmem:[#allocation11 + $0xad8] sm:$0xff]  ;;  %v5497_v5 = vld [vmem:[#allocation11 + $0xb60] sm:$0xff] }
 0x6c9   : > { %12436 = vmatpush3.bf16.msra.mxu1 %v16452_v35  ;;  %12406 = vmatprep.subr.bf16.mxu0 %v16454_v31  ;;  %v16472_v35 = vpack.c.bf16 %v5462_v22, %v5461_v11  ;;  %18266 = vst [vmem:[#allocation176_spill] sm:$0xff] %v16476_v60  ;;  %v16478_v49 = vpack.c.bf16 %v5480_v32, %v5479_v6  ;;  %18267 = vst [vmem:[#allocation177_spill] sm:$0xff] %v16481_v58  ;;  %v5481_v31 = vld [vmem:[#allocation11 + $0xae0] sm:$0xff]  ;;  %v5514_v22 = vld [vmem:[#allocation11 + $0xbe8] sm:$0xff] }
 0x6ca   : > { %12438 = vmatprep.subr.bf16.mxu1 %v16457_v48  ;;  %v5496_v48 = vld [vmem:[#allocation11 + $0xb58] sm:$0xff]  ;;  %v5513_v11 = vld [vmem:[#allocation11 + $0xbe0] sm:$0xff] }
 0x6cb   : > { %18265 = vst [vmem:[#allocation175_spill] sm:$0xff] %v16472_v35  ;;  %v16488_v6 = vpack.c.bf16 %v5496_v48, %v5495_v2  ;;  %v5465_v32 = vld [vmem:[#allocation11 + $0xa60] sm:$0xff]  ;;  %v16493_v30 = vpack.c.bf16 %v5514_v22, %v5513_v11  ;;  %v5467_v48 = vld [vmem:[#allocation11 + $0xa70] sm:$0xff]  ;;  %v5468_v2 = vld [vmem:[#allocation11 + $0xa78] sm:$0xff] }
 0x6cc   : > { %12408 = vmatpush3.bf16.msra.mxu0 %v16460_v19  ;;  %v5482_v19 = vld [vmem:[#allocation11 + $0xae8] sm:$0xff]  ;;  %v5499_v22 = vld [vmem:[#allocation11 + $0xb70] sm:$0xff] }
 0x6cd   : > { %12440 = vmatpush3.bf16.msra.mxu1 %v16464_v0  ;;  %12410 = vmatprep.subr.bf16.mxu0 %v16466_v18  ;;  %v16484_v0 = vpack.c.bf16 %v5464_v9, %v5463_v63  ;;  %v16490_v51 = vpack.c.bf16 %v5482_v19, %v5481_v31  ;;  %v5483_v18 = vld [vmem:[#allocation11 + $0xaf0] sm:$0xff]  ;;  %v5516_v9 = vld [vmem:[#allocation11 + $0xbf8] sm:$0xff] }
 0x6ce   : > { %12442 = vmatprep.subr.bf16.mxu1 %v16469_v25  ;;  %v5498_v25 = vld [vmem:[#allocation11 + $0xb68] sm:$0xff]  ;;  %v5515_v63 = vld [vmem:[#allocation11 + $0xbf0] sm:$0xff] }
 0x6cf   : > { %v16500_v19 = vpack.c.bf16 %v5498_v25, %v5497_v5  ;;  %v16505_v11 = vpack.c.bf16 %v5516_v9, %v5515_v63 }
 0x6d0   : > { %12412 = vmatpush3.bf16.msra.mxu0 %v16472_v35  ;;  %v5484_v35 = vld [vmem:[#allocation11 + $0xaf8] sm:$0xff] }
 0x6d1   : > { %12444 = vmatpush3.bf16.msra.mxu1 %v16476_v60  ;;  %12414 = vmatprep.subr.bf16.mxu0 %v16478_v49  ;;  %v16496_v60 = vpack.c.bf16 %v5466_v37, %v5465_v32  ;;  %v16502_v31 = vpack.c.bf16 %v5484_v35, %v5483_v18  ;;  %v16508_v32 = vpack.c.bf16 %v5468_v2, %v5467_v48  ;;  %v5661_v35 = vld [vmem:[#allocation10 + $0x18] sm:$0xff] }
 0x6d2   : > { %12446 = vmatprep.subr.bf16.mxu1 %v16481_v58  ;;  %v5500_v58 = vld [vmem:[#allocation11 + $0xb78] sm:$0xff] }
 0x6d3   : > { %v16512_v25 = vpack.c.bf16 %v5500_v58, %v5499_v22 }
 0x6d4   : > { %12416 = vmatpush3.bf16.msra.mxu0 %v16484_v0 }
 0x6d5   : > { %12448 = vmatpush3.bf16.msra.mxu1 %v16488_v6  ;;  %12418 = vmatprep.subr.bf16.mxu0 %v16490_v51 }
 0x6d6   : > { %12450 = vmatprep.subr.bf16.mxu1 %v16493_v30 }
 0x6d8   : > { %12420 = vmatpush3.bf16.msra.mxu0 %v16496_v60 }
 0x6d9   : > { %12452 = vmatpush3.bf16.msra.mxu1 %v16500_v19  ;;  %12422 = vmatprep.subr.bf16.mxu0 %v16502_v31 }
 0x6da   : > { %12454 = vmatprep.subr.bf16.mxu1 %v16505_v11 }
 0x6dc   : > { %12424 = vmatpush3.bf16.msra.mxu0 %v16508_v32 }
 0x6dd   : > { %12456 = vmatpush3.bf16.msra.mxu1 %v16512_v25  ;;  %12458 = vmatprep.subr.bf16.mxu0 %v15837_v54 }
 0x6de   : > { %12466 = vmatprep.subr.bf16.mxu1 %v15839_v13 }
 0x6df   : > { %5582 = vmatmul.mubr.f32.vlgmr.msra.gmra.mrb[52].mxu0 %v16069_v41  ;;  %v5808_v41 = vld [vmem:[#allocation10 + $0x20] sm:$0xff] }
 0x6e0   : > { %5652 = vmatmul.mubr.f32.vlgmr.msra.gmra.mrb[68].mxu1 %v16071_v12  ;;  %12460 = vmatpush1.bf16.msra.mxu0 %v15833_v57 }
 0x6e1   : > { %12468 = vmatpush1.bf16.msra.mxu1 %v15835_v16  ;;  %12462 = vmatprep.subr.bf16.mxu0 %v15861_v45 }
 0x6e2   : > { %12470 = vmatprep.subr.bf16.mxu1 %v15863_v14  ;;  %5729 = vmatprep.mubr.f32.mxu0 %v17835_v7 }
 0x6e3   : > { %5800 = vmatprep.mubr.f32.mxu1 %v17835_v7 }
 0x6e4   : > { %12464 = vmatpush1.bf16.msra.mxu0 %v15857_v10 }
 0x6e5   : > { %12472 = vmatpush1.bf16.msra.mxu1 %v15859_v53  ;;  %12474 = vmatprep.subr.bf16.mxu0 %v15837_v54 }
 0x6e6   : > { %12482 = vmatprep.subr.bf16.mxu1 %v15839_v13 }
 0x6e7   : > { %8938 = vmatmul.mubr.msk.f32.vlgmr.msra.gmra.mrb[54].mxu0 %vm3976_vm0, %v5661_v35 }
 0x6e8   : > { %8939 = vmatmul.mubr.msk.f32.vlgmr.msra.gmra.mrb[70].mxu1 %vm3976_vm0, %v5661_v35  ;;  %12476 = vmatpush1.bf16.msra.mxu0 %v15833_v57 }
 0x6e9   : > { %12484 = vmatpush1.bf16.msra.mxu1 %v15835_v16  ;;  %12478 = vmatprep.subr.bf16.mxu0 %v15861_v45 }
 0x6ea   : > { %12486 = vmatprep.subr.bf16.mxu1 %v15863_v14  ;;  %5876 = vmatprep.mubr.f32.mxu0 %v17835_v7 }
 0x6eb   : > { %5947 = vmatprep.mubr.f32.mxu1 %v17835_v7 }
 0x6ec   : > { %12480 = vmatpush1.bf16.msra.mxu0 %v15857_v10 }
 0x6ed   : > { %12488 = vmatpush1.bf16.msra.mxu1 %v15859_v53  ;;  %12490 = vmatprep.subr.bf16.mxu0 %v15837_v54  ;;  %v5955_v54 = vld [vmem:[#allocation10 + $0x28] sm:$0xff] }
 0x6ee   : > { %12498 = vmatprep.subr.bf16.mxu1 %v15839_v13  ;;  %v18270_v13 = vld [vmem:[#allocation31_spill] sm:$0xff] }
 0x6ef   : > { %8940 = vmatmul.mubr.msk.f32.vlgmr.msra.gmra.mrb[56].mxu0 %vm3976_vm0, %v5808_v41 }
 0x6f0   : > { %8941 = vmatmul.mubr.msk.f32.vlgmr.msra.gmra.mrb[72].mxu1 %vm3976_vm0, %v5808_v41  ;;  %12492 = vmatpush1.bf16.msra.mxu0 %v15833_v57  ;;  %v18268_v57 = vld [vmem:[#allocation29_spill] sm:$0xff] }
 0x6f1   : > { %12500 = vmatpush1.bf16.msra.mxu1 %v15835_v16  ;;  %12494 = vmatprep.subr.bf16.mxu0 %v15861_v45  ;;  %v18269_v16 = vld [vmem:[#allocation30_spill] sm:$0xff] }
 0x6f2   : > { %12502 = vmatprep.subr.bf16.mxu1 %v15863_v14  ;;  %6023 = vmatprep.mubr.f32.mxu0 %v17835_v7  ;;  %v18273_v45 = vld [vmem:[#allocation34_spill] sm:$0xff]  ;;  %v18274_v14 = vld [vmem:[#allocation35_spill] sm:$0xff] }
 0x6f3   : > { %6094 = vmatprep.mubr.f32.mxu1 %v17835_v7 }
 0x6f4   : > { %12496 = vmatpush1.bf16.msra.mxu0 %v15857_v10  ;;  %v18271_v10 = vld [vmem:[#allocation32_spill] sm:$0xff] }
 0x6f5   : > { %12504 = vmatpush1.bf16.msra.mxu1 %v15859_v53  ;;  %12506 = vmatprep.subr.bf16.mxu0 %v15889_v17  ;;  %v18272_v53 = vld [vmem:[#allocation33_spill] sm:$0xff]  ;;  %v18275_v17 = vld [vmem:[#allocation36_spill] sm:$0xff] }
 0x6f6   : > { %12538 = vmatprep.subr.bf16.mxu1 %v15891_v39 }
 0x6f7   : > { %8942 = vmatmul.mubr.msk.f32.vlgmr.msra.gmra.mrb[58].mxu0 %vm3976_vm0, %v5955_v54 }
 0x6f8   : > { %8943 = vmatmul.mubr.msk.f32.vlgmr.msra.gmra.mrb[74].mxu1 %vm3976_vm0, %v5955_v54  ;;  %12508 = vmatpush3.bf16.msra.mxu0 %v15897_v46 }
 0x6f9   : > { %12540 = vmatpush3.bf16.msra.mxu1 %v15899_v34  ;;  %12510 = vmatprep.subr.bf16.mxu0 %v15903_v43  ;;  %v18276_v34 = vld [vmem:[#allocation37_spill] sm:$0xff] }
 0x6fa   : > { %12542 = vmatprep.subr.bf16.mxu1 %v15905_v55 }
 0x6fc   : > { %12512 = vmatpush3.bf16.msra.mxu0 %v15911_v52 }
 0x6fd   : > { %12544 = vmatpush3.bf16.msra.mxu1 %v15913_v3  ;;  %12514 = vmatprep.subr.bf16.mxu0 %v15917_v38  ;;  %v18277_v38 = vld [vmem:[#allocation38_spill] sm:$0xff] }
 0x6fe   : > { %12546 = vmatprep.subr.bf16.mxu1 %v15919_v26  ;;  %v18278_v26 = vld [vmem:[#allocation39_spill] sm:$0xff] }
 0x700   : > { %12516 = vmatpush3.bf16.msra.mxu0 %v15923_v24  ;;  %v18279_v24 = vld [vmem:[#allocation40_spill] sm:$0xff] }
 0x701   : > { %12548 = vmatpush3.bf16.msra.mxu1 %v15925_v4  ;;  %12518 = vmatprep.subr.bf16.mxu0 %v15929_v28  ;;  %v18280_v28 = vld [vmem:[#allocation41_spill] sm:$0xff] }
 0x702   : > { %12550 = vmatprep.subr.bf16.mxu1 %v15931_v8 }
 0x704   : > { %12520 = vmatpush3.bf16.msra.mxu0 %v15935_v1 }
 0x705   : > { %12552 = vmatpush3.bf16.msra.mxu1 %v15937_v50  ;;  %12522 = vmatprep.subr.bf16.mxu0 %v15941_v15  ;;  %v16589_v50 = vld [vmem:[#allocation13] ss:$0 sm:$0xff] }
 0x706   : > { %12554 = vmatprep.subr.bf16.mxu1 %v15943_v33 }
 0x708   : > { %12524 = vmatpush3.bf16.msra.mxu0 %v15947_v20 }
 0x709   : > { %12556 = vmatpush3.bf16.msra.mxu1 %v15949_v29  ;;  %12526 = vmatprep.subr.bf16.mxu0 %v15953_v61 }
 0x70a   : > { %12558 = vmatprep.subr.bf16.mxu1 %v18268_v57 }
 0x70c   : > { %12528 = vmatpush3.bf16.msra.mxu0 %v18269_v16 }
 0x70d   : > { %12560 = vmatpush3.bf16.msra.mxu1 %v18270_v13  ;;  %12530 = vmatprep.subr.bf16.mxu0 %v18271_v10 }
 0x70e   : > { %12562 = vmatprep.subr.bf16.mxu1 %v18272_v53 }
 0x710   : > { %12532 = vmatpush3.bf16.msra.mxu0 %v18273_v45 }
 0x711   : > { %12564 = vmatpush3.bf16.msra.mxu1 %v18274_v14  ;;  %12534 = vmatprep.subr.bf16.mxu0 %v18275_v17 }
 0x712   : > { %v9155_v39 = vpop.f32.mrb[42].mxu0  ;;  %v9190_v46 = vpop.f32.mrb[58].mxu1  ;;  %12566 = vmatprep.subr.bf16.mxu1 %v18276_v34 }
 0x713   : > { %v9156_v43 = vpop.f32.mrb[43].mxu0  ;;  %v9191_v55 = vpop.f32.mrb[59].mxu1 }
 0x714   : > { %v9157_v52 = vadd.f32 %v9156_v43, %v9155_v39  ;;  %v9192_v3 = vadd.f32 %v9191_v55, %v9190_v46  ;;  %12536 = vmatpush3.bf16.msra.mxu0 %v18277_v38 }
 0x715   : > { %12568 = vmatpush3.bf16.msra.mxu1 %v18278_v26  ;;  %12570 = vmatprep.subr.bf16.mxu0 %v18279_v24 }
 0x716   : > { %v4617_v4 = vadd.f32 %v9192_v3, %v9157_v52  ;;  %12602 = vmatprep.subr.bf16.mxu1 %v18280_v28 }
 0x718   : > { %v4626_v61 = vadd.f32 %v16589_v50, %v4617_v4 }
 0x732   : > { %v9225_v8 = vpop.f32.mrb[44].mxu0  ;;  %v9260_v1 = vpop.f32.mrb[60].mxu1 }
 0x733   : > { %v9226_v15 = vpop.f32.mrb[45].mxu0  ;;  %v9261_v33 = vpop.f32.mrb[61].mxu1 }
 0x734   : > { %v9227_v20 = vadd.f32 %v9226_v15, %v9225_v8  ;;  %v9262_v29 = vadd.f32 %v9261_v33, %v9260_v1 }
 0x736   : > { %v4829_v12 = vadd.f32 %v9262_v29, %v9227_v20 }
 0x738   : > { %v4832_v18 = vadd.f32 %v4829_v12, %v4626_v61 }
 0x752   : > { %v9295_v58 = vpop.f32.mrb[46].mxu0  ;;  %v9330_v37 = vpop.f32.mrb[62].mxu1 }
 0x753   : > { %v9296_v5 = vpop.f32.mrb[47].mxu0  ;;  %v9331_v63 = vpop.f32.mrb[63].mxu1 }
 0x754   : > { %v9297_v9 = vadd.f32 %v9296_v5, %v9295_v58  ;;  %v9332_v48 = vadd.f32 %v9331_v63, %v9330_v37  ;;  %v18282_v58 = vld [vmem:[#allocation43_spill] sm:$0xff]  ;;  %v18283_v37 = vld [vmem:[#allocation44_spill] sm:$0xff]  ;;  %v18284_v5 = vld [vmem:[#allocation45_spill] sm:$0xff] }
 0x755   : > { %v18285_v63 = vld [vmem:[#allocation46_spill] sm:$0xff] }
 0x756   : > { %v5035_v2 = vadd.f32 %v9332_v48, %v9297_v9  ;;  %v18286_v48 = vld [vmem:[#allocation47_spill] sm:$0xff] }
 0x758   : > { %v5038_v22 = vadd.f32 %v5035_v2, %v4832_v18  ;;  %v18281_v18 = vld [vmem:[#allocation42_spill] sm:$0xff]  ;;  %v18287_v2 = vld [vmem:[#allocation48_spill] sm:$0xff] }
 0x75a   : > { %v5039_v15 = vmax.f32 %v5038_v22, 0.0 }
 0x772   : > { %v9365_v35 = vpop.f32.mrb[48].mxu0 }
 0x773   : > { %v9400_v41 = vpop.f32.mrb[64].mxu1  ;;  %v9366_v54 = vpop.f32.mrb[49].mxu0 }
 0x774   : > { %v9367_v57 = vadd.f32 %v9366_v54, %v9365_v35  ;;  %v9401_v16 = vpop.f32.mrb[65].mxu1 }
 0x775   : > { %v9402_v13 = vadd.f32 %v9401_v16, %v9400_v41  ;;  %v18288_v41 = vld [vmem:[#allocation49_spill] sm:$0xff]  ;;  %v18290_v16 = vld [vmem:[#allocation51_spill] sm:$0xff] }
 0x777   : > { %v5242_v10 = vadd.f32 %v9402_v13, %v9367_v57  ;;  %v18289_v57 = vld [vmem:[#allocation50_spill] sm:$0xff]  ;;  %v18291_v13 = vld [vmem:[#allocation52_spill] sm:$0xff] }
 0x779   : > { %v5245_v34 = vadd.f32 %v16589_v50, %v5242_v10  ;;  %v18292_v10 = vld [vmem:[#allocation53_spill] sm:$0xff] }
 0x792   : > { %v9435_v53 = vpop.f32.mrb[50].mxu0 }
 0x793   : > { %v9470_v45 = vpop.f32.mrb[66].mxu1  ;;  %v9436_v14 = vpop.f32.mrb[51].mxu0 }
 0x794   : > { %v9437_v17 = vadd.f32 %v9436_v14, %v9435_v53  ;;  %v9471_v39 = vpop.f32.mrb[67].mxu1  ;;  %v18293_v53 = vld [vmem:[#allocation54_spill] sm:$0xff]  ;;  %v18294_v14 = vld [vmem:[#allocation55_spill] sm:$0xff] }
 0x795   : > { %v9472_v46 = vadd.f32 %v9471_v39, %v9470_v45 }
 0x797   : > { %v5448_v43 = vadd.f32 %v9472_v46, %v9437_v17  ;;  %v18295_v17 = vld [vmem:[#allocation56_spill] sm:$0xff] }
 0x799   : > { %v5451_v55 = vadd.f32 %v5448_v43, %v5245_v34  ;;  %v18296_v34 = vld [vmem:[#allocation57_spill] sm:$0xff] }
 0x7b2   : > { %v9505_v52 = vpop.f32.mrb[52].mxu0 }
 0x7b3   : > { %v9540_v3 = vpop.f32.mrb[68].mxu1  ;;  %v9506_v38 = vpop.f32.mrb[53].mxu0 }
 0x7b4   : > { %v9507_v26 = vadd.f32 %v9506_v38, %v9505_v52  ;;  %v9541_v24 = vpop.f32.mrb[69].mxu1  ;;  %v18298_v52 = vld [vmem:[#allocation59_spill] sm:$0xff]  ;;  %v18300_v38 = vld [vmem:[#allocation61_spill] sm:$0xff] }
 0x7b5   : > { %v9542_v4 = vadd.f32 %v9541_v24, %v9540_v3  ;;  %v18299_v3 = vld [vmem:[#allocation60_spill] sm:$0xff]  ;;  %v18302_v24 = vld [vmem:[#allocation63_spill] sm:$0xff] }
 0x7b7   : > { %v5654_v28 = vadd.f32 %v9542_v4, %v9507_v26  ;;  %v18301_v26 = vld [vmem:[#allocation62_spill] sm:$0xff]  ;;  %v18303_v4 = vld [vmem:[#allocation64_spill] sm:$0xff] }
 0x7b9   : > { %v5657_v8 = vadd.f32 %v5654_v28, %v5451_v55  ;;  %v18297_v55 = vld [vmem:[#allocation58_spill] sm:$0xff]  ;;  %v18304_v28 = vld [vmem:[#allocation65_spill] sm:$0xff] }
 0x7ba   : > { %v16593_v1 = vpop.f32.mrb[54].mxu0 }
 0x7bb   : > { %v5658_v33 = vmax.f32 %v5657_v8, 0.0  ;;  %v16595_v20 = vpop.f32.mrb[70].mxu1  ;;  %v16597_v29 = vpop.f32.mrb[55].mxu0  ;;  %v18305_v8 = vld [vmem:[#allocation66_spill] sm:$0xff] }
 0x7bc   : > { %v16599_v61 = vpop.f32.mrb[71].mxu1  ;;  %6165 = vmatprep.mubr.f32.mxu0 %v16597_v29 }
 0x7bd   : > { %v16602_v12 = vmax.f32 %v5039_v15, %v5658_v33  ;;  %6235 = vmatprep.mubr.f32.mxu1 %v16599_v61  ;;  %6166 = vmatmul.mubr.f32.vlgmr.msra.gmra.mrb[60].mxu0 %v16593_v1  ;;  %v18306_v15 = vld [vmem:[#allocation67_spill] sm:$0xff]  ;;  %v18307_v33 = vld [vmem:[#allocation68_spill] sm:$0xff] }
 0x7be   : > { %6236 = vmatmul.mubr.f32.vlgmr.msra.gmra.mrb[76].mxu1 %v16595_v20  ;;  %12572 = vmatpush3.bf16.msra.mxu0 %v18281_v18  ;;  %v18308_v18 = vld [vmem:[#allocation69_spill] sm:$0xff] }
 0x7bf   : > { %12604 = vmatpush3.bf16.msra.mxu1 %v18282_v58  ;;  %12574 = vmatprep.subr.bf16.mxu0 %v18283_v37  ;;  %v18309_v58 = vld [vmem:[#allocation70_spill] sm:$0xff]  ;;  %v18310_v37 = vld [vmem:[#allocation71_spill] sm:$0xff] }
 0x7c0   : > { %12606 = vmatprep.subr.bf16.mxu1 %v18284_v5  ;;  %v18311_v5 = vld [vmem:[#allocation72_spill] sm:$0xff] }
 0x7c2   : > { %12576 = vmatpush3.bf16.msra.mxu0 %v18285_v63  ;;  %v16612_v9 = vpop.f32.mrb[56].mxu0  ;;  %v18312_v63 = vld [vmem:[#allocation73_spill] sm:$0xff] }
 0x7c3   : > { %12608 = vmatpush3.bf16.msra.mxu1 %v18286_v48  ;;  %12578 = vmatprep.subr.bf16.mxu0 %v18287_v2  ;;  %v16616_v22 = vpop.f32.mrb[72].mxu1  ;;  %v16618_v35 = vpop.f32.mrb[57].mxu0  ;;  %v18313_v48 = vld [vmem:[#allocation74_spill] sm:$0xff]  ;;  %v18314_v2 = vld [vmem:[#allocation75_spill] sm:$0xff] }
 0x7c4   : > { %12610 = vmatprep.subr.bf16.mxu1 %v18288_v41  ;;  %v16621_v54 = vpop.f32.mrb[73].mxu1  ;;  %6306 = vmatprep.mubr.f32.mxu0 %v16618_v35  ;;  %v18315_v41 = vld [vmem:[#allocation76_spill] sm:$0xff] }
 0x7c5   : > { %6376 = vmatprep.mubr.f32.mxu1 %v16621_v54 }
 0x7c6   : > { %12580 = vmatpush3.bf16.msra.mxu0 %v18289_v57  ;;  %v18316_v57 = vld [vmem:[#allocation77_spill] sm:$0xff] }
 0x7c7   : > { %12612 = vmatpush3.bf16.msra.mxu1 %v18290_v16  ;;  %12582 = vmatprep.subr.bf16.mxu0 %v18291_v13  ;;  %v18317_v16 = vld [vmem:[#allocation78_spill] sm:$0xff]  ;;  %v18318_v13 = vld [vmem:[#allocation79_spill] sm:$0xff] }
 0x7c8   : > { %12614 = vmatprep.subr.bf16.mxu1 %v18292_v10  ;;  %v18319_v10 = vld [vmem:[#allocation80_spill] sm:$0xff] }
 0x7ca   : > { %12584 = vmatpush3.bf16.msra.mxu0 %v18293_v53  ;;  %v16630_v45 = vpop.f32.mrb[58].mxu0  ;;  %v18320_v53 = vld [vmem:[#allocation81_spill] sm:$0xff] }
 0x7cb   : > { %12616 = vmatpush3.bf16.msra.mxu1 %v18294_v14  ;;  %12586 = vmatprep.subr.bf16.mxu0 %v18295_v17  ;;  %v16634_v39 = vpop.f32.mrb[74].mxu1  ;;  %v16636_v46 = vpop.f32.mrb[59].mxu0  ;;  %v18321_v14 = vld [vmem:[#allocation82_spill] sm:$0xff]  ;;  %v18322_v17 = vld [vmem:[#allocation83_spill] sm:$0xff] }
 0x7cc   : > { %12618 = vmatprep.subr.bf16.mxu1 %v18296_v34  ;;  %v16639_v43 = vpop.f32.mrb[75].mxu1  ;;  %v18323_v34 = vld [vmem:[#allocation84_spill] sm:$0xff] }
 0x7ce   : > { %12588 = vmatpush3.bf16.msra.mxu0 %v18297_v55  ;;  %v18324_v55 = vld [vmem:[#allocation85_spill] sm:$0xff] }
 0x7cf   : > { %12620 = vmatpush3.bf16.msra.mxu1 %v18298_v52  ;;  %12590 = vmatprep.subr.bf16.mxu0 %v18299_v3  ;;  %v18325_v52 = vld [vmem:[#allocation86_spill] sm:$0xff]  ;;  %v18326_v3 = vld [vmem:[#allocation87_spill] sm:$0xff] }
 0x7d0   : > { %12622 = vmatprep.subr.bf16.mxu1 %v18300_v38  ;;  %v18327_v38 = vld [vmem:[#allocation88_spill] sm:$0xff] }
 0x7d2   : > { %12592 = vmatpush3.bf16.msra.mxu0 %v18301_v26  ;;  %v18328_v26 = vld [vmem:[#allocation89_spill] sm:$0xff] }
 0x7d3   : > { %12624 = vmatpush3.bf16.msra.mxu1 %v18302_v24  ;;  %12594 = vmatprep.subr.bf16.mxu0 %v18303_v4  ;;  %v18329_v24 = vld [vmem:[#allocation90_spill] sm:$0xff]  ;;  %v18330_v4 = vld [vmem:[#allocation91_spill] sm:$0xff] }
 0x7d4   : > { %12626 = vmatprep.subr.bf16.mxu1 %v18304_v28  ;;  %v18331_v28 = vld [vmem:[#allocation92_spill] sm:$0xff] }
 0x7d6   : > { %12596 = vmatpush3.bf16.msra.mxu0 %v18305_v8  ;;  %v18332_v8 = vld [vmem:[#allocation93_spill] sm:$0xff] }
 0x7d7   : > { %12628 = vmatpush3.bf16.msra.mxu1 %v18306_v15  ;;  %12598 = vmatprep.subr.bf16.mxu0 %v18307_v33  ;;  %v18333_v15 = vld [vmem:[#allocation94_spill] sm:$0xff]  ;;  %v18334_v33 = vld [vmem:[#allocation95_spill] sm:$0xff] }
 0x7d8   : > { %12630 = vmatprep.subr.bf16.mxu1 %v18308_v18  ;;  %v18335_v18 = vld [vmem:[#allocation96_spill] sm:$0xff] }
 0x7da   : > { %12600 = vmatpush3.bf16.msra.mxu0 %v18309_v58  ;;  %v18336_v58 = vld [vmem:[#allocation97_spill] sm:$0xff] }
 0x7db   : > { %12632 = vmatpush3.bf16.msra.mxu1 %v18310_v37  ;;  %12634 = vmatprep.subr.bf16.mxu0 %v18311_v5  ;;  %v18337_v37 = vld [vmem:[#allocation98_spill] sm:$0xff]  ;;  %v18338_v5 = vld [vmem:[#allocation99_spill] sm:$0xff] }
 0x7dc   : > { %12666 = vmatprep.subr.bf16.mxu1 %v18312_v63  ;;  %v18339_v63 = vld [vmem:[#allocation100_spill] sm:$0xff] }
 0x7dd   : > { %6307 = vmatmul.mubr.f32.vlgmr.msra.gmra.mrb[62].mxu0 %v16612_v9 }
 0x7de   : > { %6377 = vmatmul.mubr.f32.vlgmr.msra.gmra.mrb[78].mxu1 %v16616_v22  ;;  %12636 = vmatpush3.bf16.msra.mxu0 %v18313_v48  ;;  %v18340_v48 = vld [vmem:[#allocation101_spill] sm:$0xff] }
 0x7df   : > { %12668 = vmatpush3.bf16.msra.mxu1 %v18314_v2  ;;  %12638 = vmatprep.subr.bf16.mxu0 %v18315_v41  ;;  %v18341_v2 = vld [vmem:[#allocation102_spill] sm:$0xff]  ;;  %v18342_v41 = vld [vmem:[#allocation103_spill] sm:$0xff] }
 0x7e0   : > { %12670 = vmatprep.subr.bf16.mxu1 %v18316_v57  ;;  %6447 = vmatprep.mubr.f32.mxu0 %v16636_v46  ;;  %v18343_v57 = vld [vmem:[#allocation104_spill] sm:$0xff] }
 0x7e1   : > { %6517 = vmatprep.mubr.f32.mxu1 %v16639_v43 }
 0x7e2   : > { %12640 = vmatpush3.bf16.msra.mxu0 %v18317_v16  ;;  %v18345_v16 = vld [vmem:[#allocation106_spill] sm:$0xff] }
 0x7e3   : > { %12672 = vmatpush3.bf16.msra.mxu1 %v18318_v13  ;;  %12642 = vmatprep.subr.bf16.mxu0 %v18319_v10  ;;  %v18348_v13 = vld [vmem:[#allocation109_spill] sm:$0xff]  ;;  %v18349_v10 = vld [vmem:[#allocation110_spill] sm:$0xff] }
 0x7e4   : > { %12674 = vmatprep.subr.bf16.mxu1 %v18320_v53  ;;  %v18350_v53 = vld [vmem:[#allocation111_spill] sm:$0xff] }
 0x7e6   : > { %12644 = vmatpush3.bf16.msra.mxu0 %v18321_v14  ;;  %v18351_v14 = vld [vmem:[#allocation112_spill] sm:$0xff] }
 0x7e7   : > { %12676 = vmatpush3.bf16.msra.mxu1 %v18322_v17  ;;  %12646 = vmatprep.subr.bf16.mxu0 %v18323_v34  ;;  %v18353_v17 = vld [vmem:[#allocation114_spill] sm:$0xff]  ;;  %v18355_v34 = vld [vmem:[#allocation116_spill] sm:$0xff] }
 0x7e8   : > { %12678 = vmatprep.subr.bf16.mxu1 %v18324_v55  ;;  %v18356_v55 = vld [vmem:[#allocation117_spill] sm:$0xff] }
 0x7ea   : > { %12648 = vmatpush3.bf16.msra.mxu0 %v18325_v52  ;;  %v18357_v52 = vld [vmem:[#allocation118_spill] sm:$0xff] }
 0x7eb   : > { %12680 = vmatpush3.bf16.msra.mxu1 %v18326_v3  ;;  %12650 = vmatprep.subr.bf16.mxu0 %v18327_v38  ;;  %v18358_v3 = vld [vmem:[#allocation119_spill] sm:$0xff]  ;;  %v18359_v38 = vld [vmem:[#allocation120_spill] sm:$0xff] }
 0x7ec   : > { %12682 = vmatprep.subr.bf16.mxu1 %v18328_v26  ;;  %v18360_v26 = vld [vmem:[#allocation121_spill] sm:$0xff] }
 0x7ee   : > { %12652 = vmatpush3.bf16.msra.mxu0 %v18329_v24  ;;  %v18361_v24 = vld [vmem:[#allocation122_spill] sm:$0xff] }
 0x7ef   : > { %12684 = vmatpush3.bf16.msra.mxu1 %v18330_v4  ;;  %12654 = vmatprep.subr.bf16.mxu0 %v18331_v28  ;;  %v18362_v4 = vld [vmem:[#allocation123_spill] sm:$0xff]  ;;  %v18363_v28 = vld [vmem:[#allocation124_spill] sm:$0xff] }
 0x7f0   : > { %12686 = vmatprep.subr.bf16.mxu1 %v18332_v8  ;;  %v18364_v8 = vld [vmem:[#allocation125_spill] sm:$0xff] }
 0x7f2   : > { %12656 = vmatpush3.bf16.msra.mxu0 %v18333_v15  ;;  %v18365_v15 = vld [vmem:[#allocation126_spill] sm:$0xff] }
 0x7f3   : > { %12688 = vmatpush3.bf16.msra.mxu1 %v18334_v33  ;;  %12658 = vmatprep.subr.bf16.mxu0 %v18335_v18  ;;  %v18366_v33 = vld [vmem:[#allocation127_spill] sm:$0xff]  ;;  %v18367_v18 = vld [vmem:[#allocation128_spill] sm:$0xff] }
 0x7f4   : > { %12690 = vmatprep.subr.bf16.mxu1 %v18336_v58  ;;  %v18368_v58 = vld [vmem:[#allocation129_spill] sm:$0xff] }
 0x7f6   : > { %12660 = vmatpush3.bf16.msra.mxu0 %v18337_v37  ;;  %v18369_v37 = vld [vmem:[#allocation130_spill] sm:$0xff] }
 0x7f7   : > { %12692 = vmatpush3.bf16.msra.mxu1 %v18338_v5  ;;  %12662 = vmatprep.subr.bf16.mxu0 %v16203_v47  ;;  %v18344_v47 = vld [vmem:[#allocation105_spill] sm:$0xff]  ;;  %v18370_v5 = vld [vmem:[#allocation131_spill] sm:$0xff] }
 0x7f8   : > { %12694 = vmatprep.subr.bf16.mxu1 %v18339_v63  ;;  %v18372_v63 = vld [vmem:[#allocation133_spill] sm:$0xff] }
 0x7fa   : > { %12664 = vmatpush3.bf16.msra.mxu0 %v18340_v48  ;;  %v18373_v48 = vld [vmem:[#allocation134_spill] sm:$0xff] }
 0x7fb   : > { %12696 = vmatpush3.bf16.msra.mxu1 %v16211_v40  ;;  %12698 = vmatprep.subr.bf16.mxu0 %v16215_v44  ;;  %v18346_v40 = vld [vmem:[#allocation107_spill] sm:$0xff]  ;;  %v18347_v44 = vld [vmem:[#allocation108_spill] sm:$0xff] }
 0x7fc   : > { %12730 = vmatprep.subr.bf16.mxu1 %v18341_v2  ;;  %v18374_v2 = vld [vmem:[#allocation135_spill] sm:$0xff] }
 0x7fd   : > { %6448 = vmatmul.mubr.f32.vlgmr.msra.gmra.mrb[64].mxu0 %v16630_v45 }
 0x7fe   : > { %6518 = vmatmul.mubr.f32.vlgmr.msra.gmra.mrb[80].mxu1 %v16634_v39  ;;  %12700 = vmatpush3.bf16.msra.mxu0 %v18342_v41  ;;  %v18381_v41 = vld [vmem:[#allocation142_spill] sm:$0xff] }
 0x7ff   : > { %6590 = vmatprep.mubr.f32.mxu0 %v16597_v29  ;;  %12732 = vmatpush3.bf16.msra.mxu1 %v18343_v57  ;;  %v18352_v29 = vld [vmem:[#allocation113_spill] sm:$0xff]  ;;  %v18383_v57 = vld [vmem:[#allocation144_spill] sm:$0xff] }
 0x800   : > { %6660 = vmatprep.mubr.f32.mxu1 %v16599_v61  ;;  %12702 = vmatprep.subr.bf16.mxu0 %v18344_v47  ;;  %v18354_v61 = vld [vmem:[#allocation115_spill] sm:$0xff]  ;;  %v18384_v47 = vld [vmem:[#allocation145_spill] sm:$0xff] }
 0x801   : > { %12734 = vmatprep.subr.bf16.mxu1 %v18345_v16  ;;  %v18385_v16 = vld [vmem:[#allocation146_spill] sm:$0xff] }
 0x802   : > { %12704 = vmatpush3.bf16.msra.mxu0 %v18346_v40  ;;  %v18386_v40 = vld [vmem:[#allocation147_spill] sm:$0xff] }
 0x803   : > { %12736 = vmatpush3.bf16.msra.mxu1 %v18347_v44  ;;  %12706 = vmatprep.subr.bf16.mxu0 %v18348_v13  ;;  %v18387_v44 = vld [vmem:[#allocation148_spill] sm:$0xff]  ;;  %v18388_v13 = vld [vmem:[#allocation149_spill] sm:$0xff] }
 0x804   : > { %12738 = vmatprep.subr.bf16.mxu1 %v18349_v10  ;;  %v18389_v10 = vld [vmem:[#allocation150_spill] sm:$0xff] }
 0x806   : > { %12708 = vmatpush3.bf16.msra.mxu0 %v18350_v53  ;;  %v18390_v53 = vld [vmem:[#allocation151_spill] sm:$0xff] }
 0x807   : > { %12740 = vmatpush3.bf16.msra.mxu1 %v18351_v14  ;;  %12710 = vmatprep.subr.bf16.mxu0 %v18352_v29  ;;  %v18391_v14 = vld [vmem:[#allocation152_spill] sm:$0xff]  ;;  %v18392_v29 = vld [vmem:[#allocation153_spill] sm:$0xff] }
 0x808   : > { %12742 = vmatprep.subr.bf16.mxu1 %v18353_v17  ;;  %v18393_v17 = vld [vmem:[#allocation154_spill] sm:$0xff] }
 0x80a   : > { %12712 = vmatpush3.bf16.msra.mxu0 %v18354_v61  ;;  %v18394_v61 = vld [vmem:[#allocation155_spill] sm:$0xff] }
 0x80b   : > { %12744 = vmatpush3.bf16.msra.mxu1 %v18355_v34  ;;  %12714 = vmatprep.subr.bf16.mxu0 %v18356_v55  ;;  %v18395_v34 = vld [vmem:[#allocation156_spill] sm:$0xff]  ;;  %v18396_v55 = vld [vmem:[#allocation157_spill] sm:$0xff] }
 0x80c   : > { %12746 = vmatprep.subr.bf16.mxu1 %v18357_v52  ;;  %v18397_v52 = vld [vmem:[#allocation158_spill] sm:$0xff] }
 0x80e   : > { %12716 = vmatpush3.bf16.msra.mxu0 %v18358_v3  ;;  %v18398_v3 = vld [vmem:[#allocation159_spill] sm:$0xff] }
 0x80f   : > { %12748 = vmatpush3.bf16.msra.mxu1 %v18359_v38  ;;  %12718 = vmatprep.subr.bf16.mxu0 %v18360_v26  ;;  %v18400_v38 = vld [vmem:[#allocation161_spill] sm:$0xff]  ;;  %v18401_v26 = vld [vmem:[#allocation162_spill] sm:$0xff] }
 0x810   : > { %12750 = vmatprep.subr.bf16.mxu1 %v18361_v24  ;;  %v18402_v24 = vld [vmem:[#allocation163_spill] sm:$0xff] }
 0x812   : > { %12720 = vmatpush3.bf16.msra.mxu0 %v18362_v4  ;;  %v18409_v4 = vld [vmem:[#allocation170_spill] sm:$0xff] }
 0x813   : > { %12752 = vmatpush3.bf16.msra.mxu1 %v18363_v28  ;;  %12722 = vmatprep.subr.bf16.mxu0 %v18364_v8  ;;  %v18411_v28 = vld [vmem:[#allocation172_spill] sm:$0xff]  ;;  %v18412_v8 = vld [vmem:[#allocation173_spill] sm:$0xff] }
 0x814   : > { %12754 = vmatprep.subr.bf16.mxu1 %v18365_v15  ;;  %v18413_v15 = vld [vmem:[#allocation174_spill] sm:$0xff] }
 0x816   : > { %12724 = vmatpush3.bf16.msra.mxu0 %v18366_v33  ;;  %v18414_v33 = vld [vmem:[#allocation175_spill] sm:$0xff] }
 0x817   : > { %12756 = vmatpush3.bf16.msra.mxu1 %v16300_v59  ;;  %12726 = vmatprep.subr.bf16.mxu0 %v18367_v18  ;;  %v18371_v59 = vld [vmem:[#allocation132_spill] sm:$0xff] }
 0x818   : > { %12758 = vmatprep.subr.bf16.mxu1 %v18368_v58  ;;  %v18415_v18 = vld [vmem:[#allocation176_spill] sm:$0xff]  ;;  %v18416_v58 = vld [vmem:[#allocation177_spill] sm:$0xff] }
 0x81a   : > { %12728 = vmatpush3.bf16.msra.mxu0 %v18369_v37 }
 0x81b   : > { %12760 = vmatpush3.bf16.msra.mxu1 %v18370_v5  ;;  %12762 = vmatprep.subr.bf16.mxu0 %v16314_v42  ;;  %v18375_v42 = vld [vmem:[#allocation136_spill] sm:$0xff] }
 0x81c   : > { %12794 = vmatprep.subr.bf16.mxu1 %v16317_v27  ;;  %v18376_v27 = vld [vmem:[#allocation137_spill] sm:$0xff] }
 0x81d   : > { %6591 = vmatmul.mubr.f32.vlgmr.msra.gmra.mrb[66].mxu0 %v16593_v1  ;;  %v18377_v1 = vld [vmem:[#allocation138_spill] sm:$0xff] }
 0x81e   : > { %6661 = vmatmul.mubr.f32.vlgmr.msra.gmra.mrb[82].mxu1 %v16595_v20  ;;  %12764 = vmatpush3.bf16.msra.mxu0 %v16320_v62  ;;  %v18378_v20 = vld [vmem:[#allocation139_spill] sm:$0xff]  ;;  %v18379_v62 = vld [vmem:[#allocation140_spill] sm:$0xff] }
 0x81f   : > { %6731 = vmatprep.mubr.f32.mxu0 %v16618_v35  ;;  %12796 = vmatpush3.bf16.msra.mxu1 %v18371_v59  ;;  %v18380_v35 = vld [vmem:[#allocation141_spill] sm:$0xff] }
 0x820   : > { %6801 = vmatprep.mubr.f32.mxu1 %v16621_v54  ;;  %12766 = vmatprep.subr.bf16.mxu0 %v18372_v63  ;;  %v18382_v54 = vld [vmem:[#allocation143_spill] sm:$0xff] }
 0x821   : > { %12798 = vmatprep.subr.bf16.mxu1 %v18373_v48 }
 0x822   : > { %12768 = vmatpush3.bf16.msra.mxu0 %v18374_v2 }
 0x823   : > { %12800 = vmatpush3.bf16.msra.mxu1 %v18375_v42  ;;  %12770 = vmatprep.subr.bf16.mxu0 %v18376_v27 }
 0x824   : > { %12802 = vmatprep.subr.bf16.mxu1 %v18377_v1 }
 0x826   : > { %12772 = vmatpush3.bf16.msra.mxu0 %v18378_v20 }
 0x827   : > { %12804 = vmatpush3.bf16.msra.mxu1 %v18379_v62  ;;  %12774 = vmatprep.subr.bf16.mxu0 %v18380_v35 }
 0x828   : > { %12806 = vmatprep.subr.bf16.mxu1 %v18381_v41 }
 0x82a   : > { %12776 = vmatpush3.bf16.msra.mxu0 %v18382_v54 }
 0x82b   : > { %12808 = vmatpush3.bf16.msra.mxu1 %v18383_v57  ;;  %12778 = vmatprep.subr.bf16.mxu0 %v18384_v47 }
 0x82c   : > { %12810 = vmatprep.subr.bf16.mxu1 %v18385_v16 }
 0x82e   : > { %12780 = vmatpush3.bf16.msra.mxu0 %v18386_v40 }
 0x82f   : > { %12812 = vmatpush3.bf16.msra.mxu1 %v18387_v44  ;;  %12782 = vmatprep.subr.bf16.mxu0 %v18388_v13 }
 0x830   : > { %12814 = vmatprep.subr.bf16.mxu1 %v18389_v10 }
 0x832   : > { %12784 = vmatpush3.bf16.msra.mxu0 %v18390_v53 }
 0x833   : > { %12816 = vmatpush3.bf16.msra.mxu1 %v18391_v14  ;;  %12786 = vmatprep.subr.bf16.mxu0 %v18392_v29 }
 0x834   : > { %12818 = vmatprep.subr.bf16.mxu1 %v18393_v17 }
 0x836   : > { %12788 = vmatpush3.bf16.msra.mxu0 %v18394_v61 }
 0x837   : > { %12820 = vmatpush3.bf16.msra.mxu1 %v16400_v23  ;;  %12790 = vmatprep.subr.bf16.mxu0 %v18395_v34  ;;  %v18399_v23 = vld [vmem:[#allocation160_spill] sm:$0xff] }
 0x838   : > { %12822 = vmatprep.subr.bf16.mxu1 %v18396_v55 }
 0x83a   : > { %12792 = vmatpush3.bf16.msra.mxu0 %v18397_v52 }
 0x83b   : > { %12824 = vmatpush3.bf16.msra.mxu1 %v18398_v3  ;;  %12826 = vmatprep.subr.bf16.mxu0 %v16414_v21  ;;  %v18403_v21 = vld [vmem:[#allocation164_spill] sm:$0xff] }
 0x83c   : > { %12858 = vmatprep.subr.bf16.mxu1 %v16417_v56  ;;  %v18404_v56 = vld [vmem:[#allocation165_spill] sm:$0xff] }
 0x83d   : > { %6732 = vmatmul.mubr.f32.vlgmr.msra.gmra.mrb[68].mxu0 %v16612_v9  ;;  %v18405_v9 = vld [vmem:[#allocation166_spill] sm:$0xff] }
 0x83e   : > { %6802 = vmatmul.mubr.f32.vlgmr.msra.gmra.mrb[84].mxu1 %v16616_v22  ;;  %12828 = vmatpush3.bf16.msra.mxu0 %v16420_v36  ;;  %v18406_v22 = vld [vmem:[#allocation167_spill] sm:$0xff]  ;;  %v18407_v36 = vld [vmem:[#allocation168_spill] sm:$0xff] }
 0x83f   : > { %6872 = vmatprep.mubr.f32.mxu0 %v16636_v46  ;;  %12860 = vmatpush3.bf16.msra.mxu1 %v18399_v23  ;;  %v18408_v46 = vld [vmem:[#allocation169_spill] sm:$0xff] }
 0x840   : > { %6942 = vmatprep.mubr.f32.mxu1 %v16639_v43  ;;  %12830 = vmatprep.subr.bf16.mxu0 %v18400_v38  ;;  %v18410_v43 = vld [vmem:[#allocation171_spill] sm:$0xff] }
 0x841   : > { %12862 = vmatprep.subr.bf16.mxu1 %v18401_v26 }
 0x842   : > { %12832 = vmatpush3.bf16.msra.mxu0 %v18402_v24 }
 0x843   : > { %12864 = vmatpush3.bf16.msra.mxu1 %v18403_v21  ;;  %12834 = vmatprep.subr.bf16.mxu0 %v18404_v56 }
 0x844   : > { %12866 = vmatprep.subr.bf16.mxu1 %v18405_v9 }
 0x846   : > { %12836 = vmatpush3.bf16.msra.mxu0 %v18406_v22  ;;  %v7177_v22 = vld [vmem:[#allocation16] sm:$0xff] }
 0x847   : > { %12868 = vmatpush3.bf16.msra.mxu1 %v18407_v36  ;;  %12838 = vmatprep.subr.bf16.mxu0 %v18408_v46  ;;  %v7178_v36 = vld [vmem:[#allocation16 + $0x8] sm:$0xff] }
 0x848   : > { %12870 = vmatprep.subr.bf16.mxu1 %v18409_v4  ;;  %v6952_v4 = vld [vmem:[#allocation14] sm:$0xf] }
 0x84a   : > { %12840 = vmatpush3.bf16.msra.mxu0 %v18410_v43  ;;  %v7028_v43 = vld [vmem:[#allocation14 + $0x4] sm:$0xf] }
 0x84b   : > { %12872 = vmatpush3.bf16.msra.mxu1 %v18411_v28  ;;  %12842 = vmatprep.subr.bf16.mxu0 %v18412_v8  ;;  %v7448_v28 = vld [vmem:[#allocation16 + $0x180] sm:$0xff]  ;;  %v16814_v8 = vpack.c.bf16 %v7178_v36, %v7177_v22 }
 0x84c   : > { %12874 = vmatprep.subr.bf16.mxu1 %v18413_v15  ;;  %v7179_v15 = vld [vmem:[#allocation16 + $0x10] sm:$0xff] }
 0x84e   : > { %12844 = vmatpush3.bf16.msra.mxu0 %v18414_v33  ;;  %v7180_v33 = vld [vmem:[#allocation16 + $0x18] sm:$0xff] }
 0x84f   : > { %12876 = vmatpush3.bf16.msra.mxu1 %v18415_v18  ;;  %12846 = vmatprep.subr.bf16.mxu0 %v16478_v49  ;;  %v7103_v18 = vld [vmem:[#allocation14 + $0x8] sm:$0xf] }
 0x850   : > { %12878 = vmatprep.subr.bf16.mxu1 %v18416_v58 }
 0x852   : > { %12848 = vmatpush3.bf16.msra.mxu0 %v16484_v0 }
 0x853   : > { %12880 = vmatpush3.bf16.msra.mxu1 %v16488_v6  ;;  %12850 = vmatprep.subr.bf16.mxu0 %v16490_v51 }
 0x854   : > { %12882 = vmatprep.subr.bf16.mxu1 %v16493_v30 }
 0x856   : > { %12852 = vmatpush3.bf16.msra.mxu0 %v16496_v60 }
 0x857   : > { %12884 = vmatpush3.bf16.msra.mxu1 %v16500_v19  ;;  %12854 = vmatprep.subr.bf16.mxu0 %v16502_v31 }
 0x858   : > { %12886 = vmatprep.subr.bf16.mxu1 %v16505_v11 }
 0x85a   : > { %12856 = vmatpush3.bf16.msra.mxu0 %v16508_v32 }
 0x85b   : > { %12888 = vmatpush3.bf16.msra.mxu1 %v16512_v25  ;;  %10475 = vmatprep.subr.mxu0 %v17835_v7 }
 0x85c   : > { %10480 = vmatprep.subr.mxu1 %v17835_v7 }
 0x85d   : > { %6873 = vmatmul.mubr.f32.vlgmr.msra.gmra.mrb[70].mxu0 %v16630_v45 }
 0x85e   : > { %6943 = vmatmul.mubr.f32.vlgmr.msra.gmra.mrb[86].mxu1 %v16634_v39  ;;  %10477 = vmatprep.mubr.msk.f32.mxu0 %vm14064_vm1, %v17835_v7 }
 0x85f   : > { %10482 = vmatprep.mubr.msk.f32.mxu1 %vm14064_vm1, %v17835_v7 }
 0x890   : > { %v9575_v0 = vpop.f32.mrb[60].mxu0 }
 0x891   : > { %v9610_v60 = vpop.f32.mrb[76].mxu1  ;;  %v9576_v49 = vpop.f32.mrb[61].mxu0 }
 0x892   : > { %v9577_v6 = vadd.f32 %v9576_v49, %v9575_v0  ;;  %v9611_v51 = vpop.f32.mrb[77].mxu1  ;;  %v14065_v0 = vmov 0.0|0.0   ;;  %v7451_v49 = vld [vmem:[#allocation16 + $0x198] sm:$0xff] }
 0x893   : > { %v9612_v30 = vadd.f32 %v9611_v51, %v9610_v60  ;;  %v7450_v60 = vld [vmem:[#allocation16 + $0x190] sm:$0xff]  ;;  %v7181_v51 = vld [vmem:[#allocation16 + $0x20] sm:$0xff] }
 0x895   : > { %v6238_v19 = vadd.f32 %v9612_v30, %v9577_v6  ;;  %v16827_v6 = vpack.c.bf16 %v7180_v33, %v7179_v15  ;;  %v7182_v30 = vld [vmem:[#allocation16 + $0x28] sm:$0xff] }
 0x896   : > { %v7276_v33 = vld [vmem:[#allocation16 + $0xa8] sm:$0xff] }
 0x897   : > { %v6241_v59 = vadd.f32 %v16589_v50, %v6238_v19  ;;  %v16832_v19 = vpack.c.bf16 %v7451_v49, %v7450_v60  ;;  %v7541_v60 = vld [vmem:[#allocation16 + $0x228] sm:$0xff] }
 0x8b0   : > { %v9645_v31 = vpop.f32.mrb[62].mxu0 }
 0x8b1   : > { %v9680_v11 = vpop.f32.mrb[78].mxu1  ;;  %v9646_v32 = vpop.f32.mrb[63].mxu0 }
 0x8b2   : > { %v9647_v37 = vadd.f32 %v9646_v32, %v9645_v31  ;;  %v9681_v25 = vpop.f32.mrb[79].mxu1  ;;  %v7452_v31 = vld [vmem:[#allocation16 + $0x1a0] sm:$0xff]  ;;  %v16840_v32 = vpack.c.bf16 %v7182_v30, %v7181_v51 }
 0x8b3   : > { %v9682_v5 = vadd.f32 %v9681_v25, %v9680_v11  ;;  %v7453_v11 = vld [vmem:[#allocation16 + $0x1a8] sm:$0xff]  ;;  %v7184_v25 = vld [vmem:[#allocation16 + $0x38] sm:$0xff] }
 0x8b5   : > { %v6379_v63 = vadd.f32 %v9682_v5, %v9647_v37  ;;  %v7183_v37 = vld [vmem:[#allocation16 + $0x30] sm:$0xff]  ;;  %v16844_v5 = vpack.c.bf16 %v7453_v11, %v7452_v31 }
 0x8b6   : > { %v7277_v11 = vld [vmem:[#allocation16 + $0xb0] sm:$0xff] }
 0x8b7   : > { %v6382_v48 = vadd.f32 %v6379_v63, %v6241_v59  ;;  %v7454_v59 = vld [vmem:[#allocation16 + $0x1b0] sm:$0xff]  ;;  %v7455_v63 = vld [vmem:[#allocation16 + $0x1b8] sm:$0xff] }
 0x8d0   : > { %v9715_v45 = vpop.f32.mrb[64].mxu0 }
 0x8d1   : > { %v9750_v39 = vpop.f32.mrb[80].mxu1  ;;  %v9716_v2 = vpop.f32.mrb[65].mxu0 }
 0x8d2   : > { %v9717_v42 = vadd.f32 %v9716_v2, %v9715_v45  ;;  %v9751_v27 = vpop.f32.mrb[81].mxu1  ;;  %v7185_v45 = vld [vmem:[#allocation16 + $0x40] sm:$0xff]  ;;  %v16852_v2 = vpack.c.bf16 %v7455_v63, %v7454_v59  ;;  %v7543_v59 = vld [vmem:[#allocation16 + $0x238] sm:$0xff] }
 0x8d3   : > { %v9752_v1 = vadd.f32 %v9751_v27, %v9750_v39  ;;  %v7186_v39 = vld [vmem:[#allocation16 + $0x48] sm:$0xff] }
 0x8d4   : > { %v7457_v27 = vld [vmem:[#allocation16 + $0x1c8] sm:$0xff] }
 0x8d5   : > { %v6520_v20 = vadd.f32 %v9752_v1, %v9717_v42  ;;  %v7456_v42 = vld [vmem:[#allocation16 + $0x1c0] sm:$0xff]  ;;  %v16856_v1 = vpack.c.bf16 %v7186_v39, %v7185_v45 }
 0x8d6   : > { %v7279_v39 = vld [vmem:[#allocation16 + $0xc0] sm:$0xff] }
 0x8d7   : > { %v6523_v62 = vadd.f32 %v6520_v20, %v6382_v48  ;;  %v16848_v48 = vpack.c.bf16 %v7184_v25, %v7183_v37  ;;  %v7187_v20 = vld [vmem:[#allocation16 + $0x50] sm:$0xff]  ;;  %v7278_v37 = vld [vmem:[#allocation16 + $0xb8] sm:$0xff] }
 0x8d8   : > { %v7542_v25 = vld [vmem:[#allocation16 + $0x230] sm:$0xff]  ;;  %v16921_v63 = vpack.c.bf16 %v7278_v37, %v7277_v11  ;;  %v7362_v11 = vld [vmem:[#allocation16 + $0x118] sm:$0xff] }
 0x8d9   : > { %v6524_v35 = vmax.f32 %v6523_v62, 0.0  ;;  %v7188_v62 = vld [vmem:[#allocation16 + $0x58] sm:$0xff]  ;;  %v16923_v45 = vpack.c.bf16 %v7543_v59, %v7542_v25  ;;  %v7626_v37 = vld [vmem:[#allocation16 + $0x290] sm:$0xff] }
 0x8da   : > { %v7627_v25 = vld [vmem:[#allocation16 + $0x298] sm:$0xff] }
 0x8db   : > { %v6525_v41 = vmax.f32 %v16602_v12, %v6524_v35  ;;  %v16860_v35 = vpack.c.bf16 %v7457_v27, %v7456_v42  ;;  %v7280_v42 = vld [vmem:[#allocation16 + $0xc8] sm:$0xff]  ;;  %v7544_v27 = vld [vmem:[#allocation16 + $0x240] sm:$0xff] }
 0x8f0   : > { %v9785_v54 = vpop.f32.mrb[66].mxu0 }
 0x8f1   : > { %v9820_v57 = vpop.f32.mrb[82].mxu1  ;;  %v9786_v47 = vpop.f32.mrb[67].mxu0 }
 0x8f2   : > { %v9787_v16 = vadd.f32 %v9786_v47, %v9785_v54  ;;  %v9821_v40 = vpop.f32.mrb[83].mxu1  ;;  %v7459_v54 = vld [vmem:[#allocation16 + $0x1d8] sm:$0xff]  ;;  %v7189_v47 = vld [vmem:[#allocation16 + $0x60] sm:$0xff] }
 0x8f3   : > { %v9822_v44 = vadd.f32 %v9821_v40, %v9820_v57  ;;  %v16864_v57 = vpack.c.bf16 %v7188_v62, %v7187_v20  ;;  %v7545_v20 = vld [vmem:[#allocation16 + $0x248] sm:$0xff]  ;;  %v16929_v62 = vpack.c.bf16 %v7280_v42, %v7279_v39  ;;  %v16973_v39 = vpack.c.bf16 %v7627_v25, %v7626_v37  ;;  %v7363_v42 = vld [vmem:[#allocation16 + $0x120] sm:$0xff] }
 0x8f5   : > { %v6663_v13 = vadd.f32 %v9822_v44, %v9787_v16  ;;  %v7190_v16 = vld [vmem:[#allocation16 + $0x68] sm:$0xff]  ;;  %v7460_v44 = vld [vmem:[#allocation16 + $0x1e0] sm:$0xff] }
 0x8f7   : > { %v6666_v34 = vadd.f32 %v16589_v50, %v6663_v13  ;;  %v7449_v50 = vld [vmem:[#allocation16 + $0x188] sm:$0xff] }
 0x8f8   : > { %v16820_v58 = vpack.c.bf16 %v7449_v50, %v7448_v28  ;;  %v7461_v13 = vld [vmem:[#allocation16 + $0x1e8] sm:$0xff]  ;;  %v7275_v50 = vld [vmem:[#allocation16 + $0xa0] sm:$0xff] }
 0x8f9   : > { %v16913_v30 = vpack.c.bf16 %v7276_v33, %v7275_v50  ;;  %v7360_v50 = vld [vmem:[#allocation16 + $0x108] sm:$0xff] }
 0x8fa   : > { %v7625_v33 = vld [vmem:[#allocation16 + $0x288] sm:$0xff] }
 0x910   : > { %v9855_v10 = vpop.f32.mrb[68].mxu0 }
 0x911   : > { %v9890_v53 = vpop.f32.mrb[84].mxu1  ;;  %v9856_v14 = vpop.f32.mrb[69].mxu0 }
 0x912   : > { %v9857_v29 = vadd.f32 %v9856_v14, %v9855_v10  ;;  %v9891_v17 = vpop.f32.mrb[85].mxu1  ;;  %v16872_v10 = vpack.c.bf16 %v7190_v16, %v7189_v47  ;;  %v7192_v14 = vld [vmem:[#allocation16 + $0x78] sm:$0xff]  ;;  %v7546_v16 = vld [vmem:[#allocation16 + $0x250] sm:$0xff] }
 0x913   : > { %v9892_v61 = vadd.f32 %v9891_v17, %v9890_v53  ;;  %v7191_v53 = vld [vmem:[#allocation16 + $0x70] sm:$0xff]  ;;  %v7282_v47 = vld [vmem:[#allocation16 + $0xd8] sm:$0xff] }
 0x914   : > { %v7462_v17 = vld [vmem:[#allocation16 + $0x1f0] sm:$0xff] }
 0x915   : > { %v6804_v55 = vadd.f32 %v9892_v61, %v9857_v29  ;;  %v16876_v29 = vpack.c.bf16 %v7461_v13, %v7460_v44  ;;  %v7463_v61 = vld [vmem:[#allocation16 + $0x1f8] sm:$0xff] }
 0x916   : > { %v7547_v44 = vld [vmem:[#allocation16 + $0x258] sm:$0xff] }
 0x917   : > { %v6807_v52 = vadd.f32 %v6804_v55, %v6666_v34  ;;  %v16880_v34 = vpack.c.bf16 %v7192_v14, %v7191_v53  ;;  %v16884_v55 = vpack.c.bf16 %v7463_v61, %v7462_v17  ;;  %v16939_v53 = vpack.c.bf16 %v7547_v44, %v7546_v16  ;;  %v7283_v14 = vld [vmem:[#allocation16 + $0xe0] sm:$0xff]  ;;  %v7284_v17 = vld [vmem:[#allocation16 + $0xe8] sm:$0xff]  ;;  %v7365_v16 = vld [vmem:[#allocation16 + $0x130] sm:$0xff] }
 0x918   : > { %v7548_v61 = vld [vmem:[#allocation16 + $0x260] sm:$0xff]  ;;  %v7366_v44 = vld [vmem:[#allocation16 + $0x138] sm:$0xff] }
 0x930   : > { %v9925_v3 = vpop.f32.mrb[70].mxu0 }
 0x931   : > { %v9960_v23 = vpop.f32.mrb[86].mxu1  ;;  %v9926_v12 = vpop.f32.mrb[71].mxu0 }
 0x932   : > { %v9927_v38 = vadd.f32 %v9926_v12, %v9925_v3  ;;  %v9961_v26 = vpop.f32.mrb[87].mxu1  ;;  %v7272_v3 = vld [vmem:[#allocation16 + $0x88] sm:$0xff] }
 0x933   : > { %v9962_v24 = vadd.f32 %v9961_v26, %v9960_v23  ;;  %v7536_v23 = vld [vmem:[#allocation16 + $0x200] sm:$0xff]  ;;  %v7537_v12 = vld [vmem:[#allocation16 + $0x208] sm:$0xff] }
 0x934   : > { %v16893_v26 = vpack.c.bf16 %v7537_v12, %v7536_v23  ;;  %v7285_v12 = vld [vmem:[#allocation16 + $0xf0] sm:$0xff] }
 0x935   : > { %v6945_v21 = vadd.f32 %v9962_v24, %v9927_v38  ;;  %v7273_v24 = vld [vmem:[#allocation16 + $0x90] sm:$0xff] }
 0x937   : > { %v6948_v56 = vadd.f32 %v6945_v21, %v6807_v52  ;;  %v7271_v52 = vld [vmem:[#allocation16 + $0x80] sm:$0xff]  ;;  %v7274_v21 = vld [vmem:[#allocation16 + $0x98] sm:$0xff] }
 0x938   : > { %v16891_v38 = vpack.c.bf16 %v7272_v3, %v7271_v52  ;;  %v7549_v52 = vld [vmem:[#allocation16 + $0x268] sm:$0xff]  ;;  %v16945_v3 = vpack.c.bf16 %v7284_v17, %v7283_v14  ;;  %v7630_v14 = vld [vmem:[#allocation16 + $0x2b0] sm:$0xff]  ;;  %v7631_v17 = vld [vmem:[#allocation16 + $0x2b8] sm:$0xff] }
 0x939   : > { %v6949_v9 = vmax.f32 %v6948_v56, 0.0  ;;  %v7538_v56 = vld [vmem:[#allocation16 + $0x210] sm:$0xff]  ;;  %v16947_v23 = vpack.c.bf16 %v7549_v52, %v7548_v61  ;;  %v16991_v61 = vpack.c.bf16 %v7366_v44, %v7365_v16  ;;  %v16993_v52 = vpack.c.bf16 %v7631_v17, %v7630_v14  ;;  %v7374_v17 = vld [vmem:[#allocation16 + $0x178] sm:$0xff] }
 0x93a   : > { %v7373_v14 = vld [vmem:[#allocation16 + $0x170] sm:$0xff] }
 0x93b   : > { %v16810_v46 = vmax.f32 %v6525_v41, %v6949_v9  ;;  %v7458_v41 = vld [vmem:[#allocation16 + $0x1d0] sm:$0xff]  ;;  %v7539_v9 = vld [vmem:[#allocation16 + $0x218] sm:$0xff] }
 0x93c   : > { %v16868_v40 = vpack.c.bf16 %v7459_v54, %v7458_v41  ;;  %v16901_v28 = vpack.c.bf16 %v7539_v9, %v7538_v56  ;;  %v16931_v41 = vpack.c.bf16 %v7545_v20, %v7544_v27  ;;  %v7281_v54 = vld [vmem:[#allocation16 + $0xd0] sm:$0xff]  ;;  %v7551_v56 = vld [vmem:[#allocation16 + $0x278] sm:$0xff]  ;;  %v7364_v27 = vld [vmem:[#allocation16 + $0x128] sm:$0xff] }
 0x93d   : > { %10476 = vmatpush3.msra.mxu0 %v16810_v46  ;;  %10481 = vmatpush3.msra.mxu1 %v16810_v46  ;;  %v16937_v13 = vpack.c.bf16 %v7282_v47, %v7281_v54  ;;  %v7628_v20 = vld [vmem:[#allocation16 + $0x2a0] sm:$0xff]  ;;  %v7629_v54 = vld [vmem:[#allocation16 + $0x2a8] sm:$0xff] }
 0x93e   : > { %10478 = vmatmul.mubr.msk.f32.vlgmr.msra.gmra.mrb[72].mxu0 %vm6953_vm2, %v6952_v4  ;;  %10485 = vmatprep.subr.mxu0 %v17835_v7  ;;  %v16985_v47 = vpack.c.bf16 %v7629_v54, %v7628_v20  ;;  %v7636_v20 = vld [vmem:[#allocation16 + $0x2e0] sm:$0xff]  ;;  %v7637_v54 = vld [vmem:[#allocation16 + $0x2e8] sm:$0xff] }
 0x93f   : > { %10486 = vmatpush3.msra.mxu0 %v16810_v46  ;;  %10483 = vmatmul.mubr.msk.f32.vlgmr.msra.gmra.mrb[88].mxu1 %vm6953_vm2, %v7028_v43  ;;  %v16899_v43 = vpack.c.bf16 %v7274_v21, %v7273_v24  ;;  %v7286_v24 = vld [vmem:[#allocation16 + $0xf8] sm:$0xff]  ;;  %v7550_v21 = vld [vmem:[#allocation16 + $0x270] sm:$0xff]  ;;  %v17017_v44 = vpack.c.bf16 %v7637_v54, %v7636_v20 }
 0x940   : > { %10487 = vmatprep.mubr.msk.f32.mxu0 %vm14064_vm1, %v17835_v7  ;;  %12889 = vmatprep.subr.bf16.mxu1 %v14065_v0  ;;  %v16953_v9 = vpack.c.bf16 %v7286_v24, %v7285_v12  ;;  %v7367_v12 = vld [vmem:[#allocation16 + $0x140] sm:$0xff]  ;;  %v7368_v24 = vld [vmem:[#allocation16 + $0x148] sm:$0xff] }
 0x941   : > { %12961 = vmatprep.subr.bf16.mxu0 %v14065_v0  ;;  %12891 = vmatpush3.bf16.msra.mxu1 %v16814_v8 }
 0x942   : > { %10488 = vmatmul.mubr.msk.f32.vlgmr.msra.gmra.mrb[74].mxu0 %vm6953_vm2, %v7103_v18  ;;  %12892 = vmatprep.subr.bf16.mxu1 %v14065_v0  ;;  %v7540_v18 = vld [vmem:[#allocation16 + $0x220] sm:$0xff] }
 0x943   : > { %12963 = vmatpush3.bf16.msra.mxu0 %v16820_v58  ;;  %10522 = vmatprep.mubr.msk.f32.mxu1 %vm14064_vm1, %v17835_v7  ;;  %v16915_v31 = vpack.c.bf16 %v7541_v60, %v7540_v18 }
 0x944   : > { %12964 = vmatprep.subr.bf16.mxu0 %v14065_v0  ;;  %10627 = vmatprep.mubr.msk.f32.mxu0 %vm14064_vm1, %v17835_v7 }
 0x945   : > { %12894 = vmatpush3.bf16.msra.mxu1 %v16827_v6 }
 0x946   : > { %12895 = vmatprep.subr.bf16.mxu1 %v14065_v0 }
 0x947   : > { %12966 = vmatpush3.bf16.msra.mxu0 %v16832_v19 }
 0x948   : > { %12967 = vmatprep.subr.bf16.mxu0 %v14065_v0 }
 0x949   : > { %12897 = vmatpush3.bf16.msra.mxu1 %v16840_v32 }
 0x94a   : > { %12898 = vmatprep.subr.bf16.mxu1 %v14065_v0 }
 0x94b   : > { %12969 = vmatpush3.bf16.msra.mxu0 %v16844_v5 }
 0x94c   : > { %12970 = vmatprep.subr.bf16.mxu0 %v14065_v0 }
 0x94d   : > { %12900 = vmatpush3.bf16.msra.mxu1 %v16848_v48 }
 0x94e   : > { %12901 = vmatprep.subr.bf16.mxu1 %v14065_v0 }
 0x94f   : > { %12972 = vmatpush3.bf16.msra.mxu0 %v16852_v2 }
 0x950   : > { %12973 = vmatprep.subr.bf16.mxu0 %v14065_v0 }
 0x951   : > { %12903 = vmatpush3.bf16.msra.mxu1 %v16856_v1 }
 0x952   : > { %12904 = vmatprep.subr.bf16.mxu1 %v14065_v0 }
 0x953   : > { %12975 = vmatpush3.bf16.msra.mxu0 %v16860_v35 }
 0x954   : > { %12976 = vmatprep.subr.bf16.mxu0 %v14065_v0 }
 0x955   : > { %12906 = vmatpush3.bf16.msra.mxu1 %v16864_v57 }
 0x956   : > { %12907 = vmatprep.subr.bf16.mxu1 %v14065_v0 }
 0x957   : > { %12978 = vmatpush3.bf16.msra.mxu0 %v16868_v40 }
 0x958   : > { %12979 = vmatprep.subr.bf16.mxu0 %v14065_v0 }
 0x959   : > { %12909 = vmatpush3.bf16.msra.mxu1 %v16872_v10 }
 0x95a   : > { %12910 = vmatprep.subr.bf16.mxu1 %v14065_v0 }
 0x95b   : > { %12981 = vmatpush3.bf16.msra.mxu0 %v16876_v29 }
 0x95c   : > { %12982 = vmatprep.subr.bf16.mxu0 %v14065_v0 }
 0x95d   : > { %12912 = vmatpush3.bf16.msra.mxu1 %v16880_v34 }
 0x95e   : > { %12913 = vmatprep.subr.bf16.mxu1 %v14065_v0 }
 0x95f   : > { %12984 = vmatpush3.bf16.msra.mxu0 %v16884_v55 }
 0x960   : > { %12985 = vmatprep.subr.bf16.mxu0 %v14065_v0 }
 0xa11   : > { %v7023_v22 = vpop.f32.mrb[72].mxu0 }
 0xa12   : > { %10523 = vmatmul.mubr.f32.vlgmr.msra.gmra.mrb[90].mxu1 %v7023_v22  ;;  %10628 = vmatmul.mubr.f32.vlgmr.msra.gmra.mrb[76].mxu0 %v7023_v22  ;;  %v10479_v36 = vpop.f32.mrb[73].mxu0  ;;  %v16895_v4 = vpop.f32.mrb[88].mxu1  ;;  %v16955_v22 = vpack.c.bf16 %v7551_v56, %v7550_v21  ;;  %v7632_v21 = vld [vmem:[#allocation16 + $0x2c0] sm:$0xff]  ;;  %v7633_v56 = vld [vmem:[#allocation16 + $0x2c8] sm:$0xff] }
 0xa13   : > { %12915 = vmatpush3.bf16.msra.mxu1 %v16891_v38  ;;  %12987 = vmatpush3.bf16.msra.mxu0 %v16893_v26  ;;  %v10484_v15 = vpop.f32.mrb[89].mxu1  ;;  %v7359_v36 = vld [vmem:[#allocation16 + $0x100] sm:$0xff] }
 0xa14   : > { %12916 = vmatprep.subr.bf16.mxu1 %v14065_v0  ;;  %12988 = vmatprep.subr.bf16.mxu0 %v14065_v0  ;;  %v7624_v15 = vld [vmem:[#allocation16 + $0x280] sm:$0xff]  ;;  %v16961_v18 = vpack.c.bf16 %v7360_v50, %v7359_v36  ;;  %v16999_v36 = vpack.c.bf16 %v7368_v24, %v7367_v12  ;;  %v17001_v50 = vpack.c.bf16 %v7633_v56, %v7632_v21  ;;  %v7638_v12 = vld [vmem:[#allocation16 + $0x2f0] sm:$0xff]  ;;  %v7639_v24 = vld [vmem:[#allocation16 + $0x2f8] sm:$0xff] }
 0xa15   : > { %10557 = vmatprep.mubr.msk.f32.mxu1 %vm14064_vm1, %v17835_v7  ;;  %10662 = vmatprep.mubr.msk.f32.mxu0 %vm14064_vm1, %v17835_v7  ;;  %v16909_v49 = vpop.f32.mrb[74].mxu0  ;;  %v16963_v60 = vpack.c.bf16 %v7625_v33, %v7624_v15  ;;  %v7369_v15 = vld [vmem:[#allocation16 + $0x150] sm:$0xff]  ;;  %v7370_v33 = vld [vmem:[#allocation16 + $0x158] sm:$0xff]  ;;  %v17023_v21 = vpack.c.bf16 %v7374_v17, %v7373_v14  ;;  %v17025_v56 = vpack.c.bf16 %v7639_v24, %v7638_v12  ;;  %v8953_v14 = vld [vmem:[%s18417_s3 + $0x90] sm:$0xff] }
 0xa16   : > { %v10489_v51 = vpop.f32.mrb[75].mxu0  ;;  %v17007_v37 = vpack.c.bf16 %v7370_v33, %v7369_v15  ;;  %v7714_v15 = vld [vmem:[#allocation14 + $0xc] sm:$0xf]  ;;  %v7789_v33 = vld [vmem:[#allocation14 + $0x10] sm:$0xf]  ;;  %v8954_v17 = vld [vmem:[%s18417_s3 + $0x98] sm:$0xff] }
 0xa17   : > { %12918 = vmatpush3.bf16.msra.mxu1 %v16899_v43  ;;  %12990 = vmatpush3.bf16.msra.mxu0 %v16901_v28  ;;  %v7361_v51 = vld [vmem:[#allocation16 + $0x110] sm:$0xff]  ;;  %v13205_v12 = vpack.c.bf16 %v8954_v17, %v8953_v14  ;;  %v8993_v14 = vld [vmem:[%s18417_s3 + $0x1d0] sm:$0xff] }
 0xa18   : > { %12919 = vmatprep.subr.bf16.mxu1 %v14065_v0  ;;  %12991 = vmatprep.subr.bf16.mxu0 %v14065_v0  ;;  %v16971_v59 = vpack.c.bf16 %v7362_v11, %v7361_v51  ;;  %v7634_v51 = vld [vmem:[#allocation16 + $0x2d0] sm:$0xff]  ;;  %v7635_v11 = vld [vmem:[#allocation16 + $0x2d8] sm:$0xff] }
 0xa19   : > { %v17009_v25 = vpack.c.bf16 %v7635_v11, %v7634_v51  ;;  %v8955_v24 = vld [vmem:[%s18417_s3 + $0xa0] sm:$0xff]  ;;  %v8994_v17 = vld [vmem:[%s18417_s3 + $0x1d8] sm:$0xff] }
 0xa1b   : > { %12921 = vmatpush3.bf16.msra.mxu1 %v16913_v30  ;;  %12993 = vmatpush3.bf16.msra.mxu0 %v16915_v31 }
 0xa1c   : > { %12922 = vmatprep.subr.bf16.mxu1 %v14065_v0  ;;  %12994 = vmatprep.subr.bf16.mxu0 %v14065_v0 }
 0xa1f   : > { %12924 = vmatpush3.bf16.msra.mxu1 %v16921_v63  ;;  %12996 = vmatpush3.bf16.msra.mxu0 %v16923_v45 }
 0xa20   : > { %12925 = vmatprep.subr.bf16.mxu1 %v14065_v0  ;;  %12997 = vmatprep.subr.bf16.mxu0 %v14065_v0 }
 0xa23   : > { %12927 = vmatpush3.bf16.msra.mxu1 %v16929_v62  ;;  %12999 = vmatpush3.bf16.msra.mxu0 %v16931_v41 }
 0xa24   : > { %12928 = vmatprep.subr.bf16.mxu1 %v14065_v0  ;;  %13000 = vmatprep.subr.bf16.mxu0 %v14065_v0 }
 0xa27   : > { %12930 = vmatpush3.bf16.msra.mxu1 %v16937_v13  ;;  %13002 = vmatpush3.bf16.msra.mxu0 %v16939_v53 }
 0xa28   : > { %12931 = vmatprep.subr.bf16.mxu1 %v14065_v0  ;;  %13003 = vmatprep.subr.bf16.mxu0 %v14065_v0 }
 0xa2b   : > { %12933 = vmatpush3.bf16.msra.mxu1 %v16945_v3  ;;  %13005 = vmatpush3.bf16.msra.mxu0 %v16947_v23 }
 0xa2c   : > { %12934 = vmatprep.subr.bf16.mxu1 %v14065_v0  ;;  %13006 = vmatprep.subr.bf16.mxu0 %v14065_v0 }
 0xa2f   : > { %12936 = vmatpush3.bf16.msra.mxu1 %v16953_v9  ;;  %13008 = vmatpush3.bf16.msra.mxu0 %v16955_v22 }
 0xa30   : > { %12937 = vmatprep.subr.bf16.mxu1 %v14065_v0  ;;  %13009 = vmatprep.subr.bf16.mxu0 %v14065_v0 }
 0xa32   : > { %10558 = vmatmul.mubr.f32.vlgmr.msra.gmra.mrb[90].mxu1 %v16895_v4  ;;  %10663 = vmatmul.mubr.f32.vlgmr.msra.gmra.mrb[76].mxu0 %v16895_v4  ;;  %v16983_v4 = vpack.c.bf16 %v7364_v27, %v7363_v42  ;;  %v7371_v42 = vld [vmem:[#allocation16 + $0x160] sm:$0xff]  ;;  %v7372_v27 = vld [vmem:[#allocation16 + $0x168] sm:$0xff] }
 0xa33   : > { %12939 = vmatpush3.bf16.msra.mxu1 %v16961_v18  ;;  %13011 = vmatpush3.bf16.msra.mxu0 %v16963_v60  ;;  %v17015_v16 = vpack.c.bf16 %v7372_v27, %v7371_v42  ;;  %v8951_v42 = vld [vmem:[%s18417_s3 + $0x80] sm:$0xff]  ;;  %v8952_v27 = vld [vmem:[%s18417_s3 + $0x88] sm:$0xff] }
 0xa34   : > { %12940 = vmatprep.subr.bf16.mxu1 %v14065_v0  ;;  %13012 = vmatprep.subr.bf16.mxu0 %v14065_v0 }
 0xa35   : > { %10592 = vmatprep.mubr.msk.f32.mxu1 %vm14064_vm1, %v17835_v7  ;;  %10697 = vmatprep.mubr.msk.f32.mxu0 %vm14064_vm1, %v17835_v7 }
 0xa37   : > { %12942 = vmatpush3.bf16.msra.mxu1 %v16971_v59  ;;  %13014 = vmatpush3.bf16.msra.mxu0 %v16973_v39 }
 0xa38   : > { %12943 = vmatprep.subr.bf16.mxu1 %v14065_v0  ;;  %13015 = vmatprep.subr.bf16.mxu0 %v14065_v0 }
 0xa3b   : > { %12945 = vmatpush3.bf16.msra.mxu1 %v16983_v4  ;;  %13017 = vmatpush3.bf16.msra.mxu0 %v16985_v47 }
 0xa3c   : > { %12946 = vmatprep.subr.bf16.mxu1 %v14065_v0  ;;  %13018 = vmatprep.subr.bf16.mxu0 %v14065_v0 }
 0xa3f   : > { %12948 = vmatpush3.bf16.msra.mxu1 %v16991_v61  ;;  %13020 = vmatpush3.bf16.msra.mxu0 %v16993_v52 }
 0xa40   : > { %12949 = vmatprep.subr.bf16.mxu1 %v14065_v0  ;;  %13021 = vmatprep.subr.bf16.mxu0 %v14065_v0 }
 0xa43   : > { %12951 = vmatpush3.bf16.msra.mxu1 %v16999_v36  ;;  %13023 = vmatpush3.bf16.msra.mxu0 %v17001_v50 }
 0xa44   : > { %12952 = vmatprep.subr.bf16.mxu1 %v14065_v0  ;;  %13024 = vmatprep.subr.bf16.mxu0 %v14065_v0 }
 0xa47   : > { %12954 = vmatpush3.bf16.msra.mxu1 %v17007_v37  ;;  %13026 = vmatpush3.bf16.msra.mxu0 %v17009_v25 }
 0xa48   : > { %12955 = vmatprep.subr.bf16.mxu1 %v14065_v0  ;;  %13027 = vmatprep.subr.bf16.mxu0 %v14065_v0 }
 0xa4b   : > { %12957 = vmatpush3.bf16.msra.mxu1 %v17015_v16  ;;  %13029 = vmatpush3.bf16.msra.mxu0 %v17017_v44 }
 0xa4c   : > { %12958 = vmatprep.subr.bf16.mxu1 %v14065_v0  ;;  %13030 = vmatprep.subr.bf16.mxu0 %v14065_v0 }
 0xa4f   : > { %12960 = vmatpush3.bf16.msra.mxu1 %v17023_v21  ;;  %13032 = vmatpush3.bf16.msra.mxu0 %v17025_v56 }
 0xa50   : > { %10700 = vmatprep.subr.mxu1 %v17835_v7  ;;  %10705 = vmatprep.subr.mxu0 %v17835_v7 }
 0xa52   : > { %10593 = vmatmul.mubr.f32.vlgmr.msra.gmra.mrb[90].mxu1 %v16909_v49  ;;  %10698 = vmatmul.mubr.f32.vlgmr.msra.gmra.mrb[76].mxu0 %v16909_v49  ;;  %v7864_v49 = vld [vmem:[#allocation14 + $0x14] sm:$0xf] }
 0xa53   : > { %10701 = vmatpush3.msra.mxu1 %v16810_v46  ;;  %10706 = vmatpush3.msra.mxu0 %v16810_v46 }
 0xa54   : > { %10702 = vmatprep.mubr.msk.f32.mxu1 %vm14064_vm1, %v17835_v7  ;;  %10710 = vmatprep.subr.mxu1 %v17835_v7 }
 0xa55   : > { %10707 = vmatprep.mubr.msk.f32.mxu0 %vm14064_vm1, %v17835_v7  ;;  %13033 = vmatprep.subr.bf16.mxu0 %v14065_v0 }
 0xa56   : > { %10703 = vmatmul.mubr.msk.f32.vlgmr.msra.gmra.mrb[92].mxu1 %vm6953_vm2, %v7714_v15  ;;  %10708 = vmatmul.mubr.msk.f32.vlgmr.msra.gmra.mrb[78].mxu0 %vm6953_vm2, %v7789_v33  ;;  %v8957_v15 = vld [vmem:[%s18417_s3 + $0xb0] sm:$0xff]  ;;  %v8958_v33 = vld [vmem:[%s18417_s3 + $0xb8] sm:$0xff] }
 0xa57   : > { %10711 = vmatpush3.msra.mxu1 %v16810_v46  ;;  %10712 = vmatprep.mubr.msk.f32.mxu1 %vm14064_vm1, %v17835_v7  ;;  %v17086_v46 = vld [vmem:[#allocation17] ss:$0 sm:$0xff] }
 0xa58   : > { %13105 = vmatprep.subr.bf16.mxu1 %v14065_v0  ;;  %13035 = vmatpush3.bf16.msra.mxu0 %v16814_v8 }
 0xa59   : > { %13036 = vmatprep.subr.bf16.mxu0 %v14065_v0  ;;  %10747 = vmatprep.mubr.msk.f32.mxu0 %vm14064_vm1, %v17835_v7 }
 0xa5a   : > { %10713 = vmatmul.mubr.msk.f32.vlgmr.msra.gmra.mrb[94].mxu1 %vm6953_vm2, %v7864_v49  ;;  %v13211_v49 = vpack.c.bf16 %v8958_v33, %v8957_v15  ;;  %v8997_v15 = vld [vmem:[%s18417_s3 + $0x1f0] sm:$0xff]  ;;  %v8998_v33 = vld [vmem:[%s18417_s3 + $0x1f8] sm:$0xff] }
 0xa5b   : > { %13107 = vmatpush3.bf16.msra.mxu1 %v16820_v58  ;;  %10852 = vmatprep.mubr.msk.f32.mxu1 %vm14064_vm1, %v17835_v7 }
 0xa5c   : > { %13108 = vmatprep.subr.bf16.mxu1 %v14065_v0  ;;  %13038 = vmatpush3.bf16.msra.mxu0 %v16827_v6 }
 0xa5d   : > { %13039 = vmatprep.subr.bf16.mxu0 %v14065_v0 }
 0xa5f   : > { %13110 = vmatpush3.bf16.msra.mxu1 %v16832_v19 }
 0xa60   : > { %13111 = vmatprep.subr.bf16.mxu1 %v14065_v0  ;;  %13041 = vmatpush3.bf16.msra.mxu0 %v16840_v32 }
 0xa61   : > { %13042 = vmatprep.subr.bf16.mxu0 %v14065_v0 }
 0xa63   : > { %13113 = vmatpush3.bf16.msra.mxu1 %v16844_v5 }
 0xa64   : > { %13114 = vmatprep.subr.bf16.mxu1 %v14065_v0  ;;  %13044 = vmatpush3.bf16.msra.mxu0 %v16848_v48 }
 0xa65   : > { %13045 = vmatprep.subr.bf16.mxu0 %v14065_v0 }
 0xa67   : > { %13116 = vmatpush3.bf16.msra.mxu1 %v16852_v2 }
 0xa68   : > { %13117 = vmatprep.subr.bf16.mxu1 %v14065_v0  ;;  %13047 = vmatpush3.bf16.msra.mxu0 %v16856_v1 }
 0xa69   : > { %13048 = vmatprep.subr.bf16.mxu0 %v14065_v0 }
 0xa6b   : > { %13119 = vmatpush3.bf16.msra.mxu1 %v16860_v35 }
 0xa6c   : > { %13120 = vmatprep.subr.bf16.mxu1 %v14065_v0  ;;  %13050 = vmatpush3.bf16.msra.mxu0 %v16864_v57 }
 0xa6d   : > { %13051 = vmatprep.subr.bf16.mxu0 %v14065_v0 }
 0xa6f   : > { %13122 = vmatpush3.bf16.msra.mxu1 %v16868_v40 }
 0xa70   : > { %13123 = vmatprep.subr.bf16.mxu1 %v14065_v0  ;;  %13053 = vmatpush3.bf16.msra.mxu0 %v16872_v10 }
 0xa71   : > { %13054 = vmatprep.subr.bf16.mxu0 %v14065_v0 }
 0xa73   : > { %13125 = vmatpush3.bf16.msra.mxu1 %v16876_v29 }
 0xa74   : > { %13126 = vmatprep.subr.bf16.mxu1 %v14065_v0  ;;  %13056 = vmatpush3.bf16.msra.mxu0 %v16880_v34 }
 0xa75   : > { %13057 = vmatprep.subr.bf16.mxu0 %v14065_v0 }
 0xa77   : > { %13128 = vmatpush3.bf16.msra.mxu1 %v16884_v55  ;;  %v8369_v55 = vld [vmem:[%s18417_s3] sm:$0xff] }
 0xa78   : > { %13129 = vmatprep.subr.bf16.mxu1 %v14065_v0 }
 0xb25   : > { %v7441_v8 = vpop.f32.mrb[90].mxu1  ;;  %v7706_v58 = vpop.f32.mrb[76].mxu0 }
 0xb26   : > { %v13337_v6 = vadd.f32 %v17086_v46, %v7441_v8  ;;  %v13338_v19 = vadd.f32 %v17086_v46, %v7706_v58  ;;  %v10594_v32 = vpop.f32.mrb[91].mxu1  ;;  %v10699_v5 = vpop.f32.mrb[77].mxu0  ;;  %v8960_v8 = vld [vmem:[%s18417_s3 + $0xc8] sm:$0xff] }
 0xb27   : > { %v8963_v5 = vld [vmem:[%s18417_s3 + $0xe0] sm:$0xff] }
 0xb28   : > { %v7446_v48 = vmax.f32 %v13337_v6, 0.0  ;;  %v7711_v2 = vmax.f32 %v13338_v19, 0.0  ;;  %v8961_v6 = vld [vmem:[%s18417_s3 + $0xd0] sm:$0xff]  ;;  %v8962_v19 = vld [vmem:[%s18417_s3 + $0xd8] sm:$0xff] }
 0xb29   : > { %v7784_v1 = vpop.f32.mrb[92].mxu1  ;;  %v7859_v35 = vpop.f32.mrb[78].mxu0  ;;  %v13217_v32 = vpack.c.bf16 %v8962_v19, %v8961_v6 }
 0xb2a   : > { %v17090_v57 = vmax.f32 %v7446_v48, %v7711_v2  ;;  %10748 = vmatmul.mubr.f32.vlgmr.msra.gmra.mrb[80].mxu0 %v7784_v1  ;;  %10853 = vmatmul.mubr.f32.vlgmr.msra.gmra.mrb[96].mxu1 %v7784_v1  ;;  %v10704_v40 = vpop.f32.mrb[93].mxu1  ;;  %v10709_v10 = vpop.f32.mrb[79].mxu0  ;;  %v8964_v48 = vld [vmem:[%s18417_s3 + $0xe8] sm:$0xff]  ;;  %v8965_v1 = vld [vmem:[%s18417_s3 + $0xf0] sm:$0xff] }
 0xb2b   : > { %13059 = vmatpush3.bf16.msra.mxu0 %v16891_v38  ;;  %13131 = vmatpush3.bf16.msra.mxu1 %v16893_v26  ;;  %v8370_v38 = vld [vmem:[%s18417_s3 + $0x8] sm:$0xff]  ;;  %v13220_v2 = vpack.c.bf16 %v8964_v48, %v8963_v5  ;;  %v8967_v40 = vld [vmem:[%s18417_s3 + $0x100] sm:$0xff] }
 0xb2c   : > { %13060 = vmatprep.subr.bf16.mxu0 %v14065_v0  ;;  %13132 = vmatprep.subr.bf16.mxu1 %v14065_v0  ;;  %v13178_v26 = vpack.c.bf16 %v8370_v38, %v8369_v55  ;;  %v8968_v10 = vld [vmem:[%s18417_s3 + $0x108] sm:$0xff]  ;;  %v8969_v55 = vld [vmem:[%s18417_s3 + $0x110] sm:$0xff]  ;;  %v8970_v38 = vld [vmem:[%s18417_s3 + $0x118] sm:$0xff] }
 0xb2d   : > { %10782 = vmatprep.mubr.msk.f32.mxu0 %vm14064_vm1, %v17835_v7  ;;  %10887 = vmatprep.mubr.msk.f32.mxu1 %vm14064_vm1, %v17835_v7  ;;  %v17100_v29 = vpop.f32.mrb[94].mxu1 }
 0xb2e   : > { %v10714_v34 = vpop.f32.mrb[95].mxu1 }
 0xb2f   : > { %13062 = vmatpush3.bf16.msra.mxu0 %v16899_v43  ;;  %13134 = vmatpush3.bf16.msra.mxu1 %v16901_v28  ;;  %v8371_v43 = vld [vmem:[%s18417_s3 + $0x10] sm:$0xff]  ;;  %v8372_v28 = vld [vmem:[%s18417_s3 + $0x18] sm:$0xff] }
 0xb30   : > { %13063 = vmatprep.subr.bf16.mxu0 %v14065_v0  ;;  %13135 = vmatprep.subr.bf16.mxu1 %v14065_v0 }
 0xb33   : > { %13065 = vmatpush3.bf16.msra.mxu0 %v16913_v30  ;;  %13137 = vmatpush3.bf16.msra.mxu1 %v16915_v31  ;;  %v13181_v30 = vpack.c.bf16 %v8372_v28, %v8371_v43  ;;  %v8373_v31 = vld [vmem:[%s18417_s3 + $0x20] sm:$0xff]  ;;  %v8972_v28 = vld [vmem:[%s18417_s3 + $0x128] sm:$0xff] }
 0xb34   : > { %13066 = vmatprep.subr.bf16.mxu0 %v14065_v0  ;;  %13138 = vmatprep.subr.bf16.mxu1 %v14065_v0  ;;  %v8971_v43 = vld [vmem:[%s18417_s3 + $0x120] sm:$0xff] }
 0xb37   : > { %13068 = vmatpush3.bf16.msra.mxu0 %v16921_v63  ;;  %13140 = vmatpush3.bf16.msra.mxu1 %v16923_v45  ;;  %v8374_v63 = vld [vmem:[%s18417_s3 + $0x28] sm:$0xff] }
 0xb38   : > { %13069 = vmatprep.subr.bf16.mxu0 %v14065_v0  ;;  %13141 = vmatprep.subr.bf16.mxu1 %v14065_v0  ;;  %v13184_v45 = vpack.c.bf16 %v8374_v63, %v8373_v31  ;;  %v8973_v31 = vld [vmem:[%s18417_s3 + $0x130] sm:$0xff]  ;;  %v8974_v63 = vld [vmem:[%s18417_s3 + $0x138] sm:$0xff] }
 0xb3b   : > { %13071 = vmatpush3.bf16.msra.mxu0 %v16929_v62  ;;  %13143 = vmatpush3.bf16.msra.mxu1 %v16931_v41  ;;  %v8375_v62 = vld [vmem:[%s18417_s3 + $0x30] sm:$0xff]  ;;  %v8376_v41 = vld [vmem:[%s18417_s3 + $0x38] sm:$0xff] }
 0xb3c   : > { %13072 = vmatprep.subr.bf16.mxu0 %v14065_v0  ;;  %13144 = vmatprep.subr.bf16.mxu1 %v14065_v0 }
 0xb3f   : > { %13074 = vmatpush3.bf16.msra.mxu0 %v16937_v13  ;;  %13146 = vmatpush3.bf16.msra.mxu1 %v16939_v53  ;;  %v13187_v13 = vpack.c.bf16 %v8376_v41, %v8375_v62  ;;  %v8377_v53 = vld [vmem:[%s18417_s3 + $0x40] sm:$0xff]  ;;  %v8976_v41 = vld [vmem:[%s18417_s3 + $0x148] sm:$0xff] }
 0xb40   : > { %13075 = vmatprep.subr.bf16.mxu0 %v14065_v0  ;;  %13147 = vmatprep.subr.bf16.mxu1 %v14065_v0  ;;  %v8975_v62 = vld [vmem:[%s18417_s3 + $0x140] sm:$0xff] }
 0xb43   : > { %13077 = vmatpush3.bf16.msra.mxu0 %v16945_v3  ;;  %13149 = vmatpush3.bf16.msra.mxu1 %v16947_v23  ;;  %v8378_v3 = vld [vmem:[%s18417_s3 + $0x48] sm:$0xff] }
 0xb44   : > { %13078 = vmatprep.subr.bf16.mxu0 %v14065_v0  ;;  %13150 = vmatprep.subr.bf16.mxu1 %v14065_v0  ;;  %v13190_v23 = vpack.c.bf16 %v8378_v3, %v8377_v53  ;;  %v8977_v53 = vld [vmem:[%s18417_s3 + $0x150] sm:$0xff]  ;;  %v8978_v3 = vld [vmem:[%s18417_s3 + $0x158] sm:$0xff] }
 0xb47   : > { %13080 = vmatpush3.bf16.msra.mxu0 %v16953_v9  ;;  %13152 = vmatpush3.bf16.msra.mxu1 %v16955_v22  ;;  %v8379_v9 = vld [vmem:[%s18417_s3 + $0x50] sm:$0xff]  ;;  %v8380_v22 = vld [vmem:[%s18417_s3 + $0x58] sm:$0xff] }
 0xb48   : > { %13081 = vmatprep.subr.bf16.mxu0 %v14065_v0  ;;  %13153 = vmatprep.subr.bf16.mxu1 %v14065_v0 }
 0xb4a   : > { %10783 = vmatmul.mubr.f32.vlgmr.msra.gmra.mrb[80].mxu0 %v7859_v35  ;;  %10888 = vmatmul.mubr.f32.vlgmr.msra.gmra.mrb[96].mxu1 %v7859_v35  ;;  %v8966_v35 = vld [vmem:[%s18417_s3 + $0xf8] sm:$0xff] }
 0xb4b   : > { %13083 = vmatpush3.bf16.msra.mxu0 %v16961_v18  ;;  %13155 = vmatpush3.bf16.msra.mxu1 %v16963_v60  ;;  %v13193_v18 = vpack.c.bf16 %v8380_v22, %v8379_v9  ;;  %v8381_v60 = vld [vmem:[%s18417_s3 + $0x60] sm:$0xff]  ;;  %v8980_v22 = vld [vmem:[%s18417_s3 + $0x168] sm:$0xff] }
 0xb4c   : > { %13084 = vmatprep.subr.bf16.mxu0 %v14065_v0  ;;  %13156 = vmatprep.subr.bf16.mxu1 %v14065_v0  ;;  %v8979_v9 = vld [vmem:[%s18417_s3 + $0x160] sm:$0xff] }
 0xb4d   : > { %10817 = vmatprep.mubr.msk.f32.mxu0 %vm14064_vm1, %v17835_v7  ;;  %10922 = vmatprep.mubr.msk.f32.mxu1 %vm14064_vm1, %v17835_v7 }
 0xb4f   : > { %13086 = vmatpush3.bf16.msra.mxu0 %v16971_v59  ;;  %13158 = vmatpush3.bf16.msra.mxu1 %v16973_v39  ;;  %v8382_v59 = vld [vmem:[%s18417_s3 + $0x68] sm:$0xff] }
 0xb50   : > { %13087 = vmatprep.subr.bf16.mxu0 %v14065_v0  ;;  %13159 = vmatprep.subr.bf16.mxu1 %v14065_v0  ;;  %v13196_v39 = vpack.c.bf16 %v8382_v59, %v8381_v60  ;;  %v8981_v60 = vld [vmem:[%s18417_s3 + $0x170] sm:$0xff]  ;;  %v8982_v59 = vld [vmem:[%s18417_s3 + $0x178] sm:$0xff] }
 0xb53   : > { %13089 = vmatpush3.bf16.msra.mxu0 %v16983_v4  ;;  %13161 = vmatpush3.bf16.msra.mxu1 %v16985_v47  ;;  %v8383_v4 = vld [vmem:[%s18417_s3 + $0x70] sm:$0xff]  ;;  %v8384_v47 = vld [vmem:[%s18417_s3 + $0x78] sm:$0xff] }
 0xb54   : > { %13090 = vmatprep.subr.bf16.mxu0 %v14065_v0  ;;  %13162 = vmatprep.subr.bf16.mxu1 %v14065_v0 }
 0xb57   : > { %13092 = vmatpush3.bf16.msra.mxu0 %v16991_v61  ;;  %13164 = vmatpush3.bf16.msra.mxu1 %v16993_v52  ;;  %v13199_v61 = vpack.c.bf16 %v8384_v47, %v8383_v4  ;;  %v8983_v4 = vld [vmem:[%s18417_s3 + $0x180] sm:$0xff]  ;;  %v8984_v47 = vld [vmem:[%s18417_s3 + $0x188] sm:$0xff] }
 0xb58   : > { %13093 = vmatprep.subr.bf16.mxu0 %v14065_v0  ;;  %13165 = vmatprep.subr.bf16.mxu1 %v14065_v0 }
 0xb5b   : > { %13095 = vmatpush3.bf16.msra.mxu0 %v16999_v36  ;;  %13167 = vmatpush3.bf16.msra.mxu1 %v17001_v50 }
 0xb5c   : > { %13096 = vmatprep.subr.bf16.mxu0 %v14065_v0  ;;  %13168 = vmatprep.subr.bf16.mxu1 %v14065_v0 }
 0xb5f   : > { %13098 = vmatpush3.bf16.msra.mxu0 %v17007_v37  ;;  %13170 = vmatpush3.bf16.msra.mxu1 %v17009_v25 }
 0xb60   : > { %13099 = vmatprep.subr.bf16.mxu0 %v14065_v0  ;;  %13171 = vmatprep.subr.bf16.mxu1 %v14065_v0 }
 0xb63   : > { %13101 = vmatpush3.bf16.msra.mxu0 %v17015_v16  ;;  %13173 = vmatpush3.bf16.msra.mxu1 %v17017_v44  ;;  %v13202_v16 = vpack.c.bf16 %v8952_v27, %v8951_v42  ;;  %v8989_v42 = vld [vmem:[%s18417_s3 + $0x1b0] sm:$0xff] }
 0xb64   : > { %13102 = vmatprep.subr.bf16.mxu0 %v14065_v0  ;;  %13174 = vmatprep.subr.bf16.mxu1 %v14065_v0 }
 0xb67   : > { %13104 = vmatpush3.bf16.msra.mxu0 %v17023_v21  ;;  %13176 = vmatpush3.bf16.msra.mxu1 %v17025_v56  ;;  %v8956_v21 = vld [vmem:[%s18417_s3 + $0xa8] sm:$0xff] }
 0xb68   : > { %13177 = vmatprep.subr.bf16.mxu0 %v14065_v0  ;;  %v13208_v56 = vpack.c.bf16 %v8956_v21, %v8955_v24  ;;  %v8995_v24 = vld [vmem:[%s18417_s3 + $0x1e0] sm:$0xff]  ;;  %v8996_v21 = vld [vmem:[%s18417_s3 + $0x1e8] sm:$0xff] }
 0xb6a   : > { %10818 = vmatmul.mubr.f32.vlgmr.msra.gmra.mrb[80].mxu0 %v17100_v29  ;;  %10923 = vmatmul.mubr.f32.vlgmr.msra.gmra.mrb[96].mxu1 %v17100_v29  ;;  %v13226_v29 = vpack.c.bf16 %v8968_v10, %v8967_v40 }
 0xb6b   : > { %13179 = vmatpush3.bf16.msra.mxu0 %v13178_v26  ;;  %10957 = vmatprep.mubr.msk.f32.mxu0 %vm14064_vm1, %v17835_v7  ;;  %v13229_v26 = vpack.c.bf16 %v8970_v38, %v8969_v55 }
 0xb6c   : > { %13180 = vmatprep.subr.bf16.mxu0 %v14065_v0 }
 0xb6f   : > { %13182 = vmatpush3.bf16.msra.mxu0 %v13181_v30  ;;  %v13232_v30 = vpack.c.bf16 %v8972_v28, %v8971_v43 }
 0xb70   : > { %13183 = vmatprep.subr.bf16.mxu0 %v14065_v0 }
 0xb73   : > { %13185 = vmatpush3.bf16.msra.mxu0 %v13184_v45  ;;  %v13235_v45 = vpack.c.bf16 %v8974_v63, %v8973_v31 }
 0xb74   : > { %13186 = vmatprep.subr.bf16.mxu0 %v14065_v0 }
 0xb77   : > { %13188 = vmatpush3.bf16.msra.mxu0 %v13187_v13  ;;  %v13238_v13 = vpack.c.bf16 %v8976_v41, %v8975_v62 }
 0xb78   : > { %13189 = vmatprep.subr.bf16.mxu0 %v14065_v0 }
 0xb7b   : > { %13191 = vmatpush3.bf16.msra.mxu0 %v13190_v23  ;;  %v13241_v23 = vpack.c.bf16 %v8978_v3, %v8977_v53 }
 0xb7c   : > { %13192 = vmatprep.subr.bf16.mxu0 %v14065_v0 }
 0xb7f   : > { %13194 = vmatpush3.bf16.msra.mxu0 %v13193_v18  ;;  %v13244_v18 = vpack.c.bf16 %v8980_v22, %v8979_v9 }
 0xb80   : > { %13195 = vmatprep.subr.bf16.mxu0 %v14065_v0 }
 0xb83   : > { %13197 = vmatpush3.bf16.msra.mxu0 %v13196_v39  ;;  %v13247_v39 = vpack.c.bf16 %v8982_v59, %v8981_v60 }
 0xb84   : > { %13198 = vmatprep.subr.bf16.mxu0 %v14065_v0 }
 0xb87   : > { %13200 = vmatpush3.bf16.msra.mxu0 %v13199_v61  ;;  %v13250_v61 = vpack.c.bf16 %v8984_v47, %v8983_v4 }
 0xb88   : > { %13201 = vmatprep.subr.bf16.mxu0 %v14065_v0 }
 0xc3d   : > { %v8146_v52 = vpop.f32.mrb[80].mxu0  ;;  %v8361_v36 = vpop.f32.mrb[96].mxu1 }
 0xc3e   : > { %v13339_v50 = vadd.f32 %v17086_v46, %v8146_v52  ;;  %v13340_v51 = vadd.f32 %v17086_v46, %v8361_v36  ;;  %v10819_v11 = vpop.f32.mrb[81].mxu0  ;;  %v10924_v37 = vpop.f32.mrb[97].mxu1  ;;  %v8959_v46 = vld [vmem:[%s18417_s3 + $0xc0] sm:$0xff]  ;;  %v8985_v36 = vld [vmem:[%s18417_s3 + $0x190] sm:$0xff] }
 0xc3f   : > { %v13214_v58 = vpack.c.bf16 %v8960_v8, %v8959_v46  ;;  %v8987_v11 = vld [vmem:[%s18417_s3 + $0x1a0] sm:$0xff]  ;;  %v8988_v37 = vld [vmem:[%s18417_s3 + $0x1a8] sm:$0xff]  ;;  %v8368_v8 = vld [vmem:[#allocation19] sm:$0x1] }
 0xc40   : > { %v8151_v25 = vmax.f32 %v13339_v50, 0.0  ;;  %v8366_v54 = vmax.f32 %v13340_v51, 0.0  ;;  %v8986_v50 = vld [vmem:[%s18417_s3 + $0x198] sm:$0xff] }
 0xc41   : > { %v13253_v51 = vpack.c.bf16 %v8986_v50, %v8985_v36 }
 0xc42   : > { %v8152_v20 = vmax.f32 %v17090_v57, %v8151_v25  ;;  %v13223_v57 = vpack.c.bf16 %v8966_v35, %v8965_v1  ;;  %v13256_v25 = vpack.c.bf16 %v8988_v37, %v8987_v11 }
 0xc44   : > { %v17234_v44 = vmax.f32 %v8152_v20, %v8366_v54  ;;  %v8991_v20 = vld [vmem:[%s18417_s3 + $0x1c0] sm:$0xff]  ;;  %v8992_v54 = vld [vmem:[%s18417_s3 + $0x1c8] sm:$0xff] }
 0xc46   : > { %10958 = vmatmul.mubr.f32.vlgmr.msra.gmra.mrb[82].mxu0 %v17234_v44  ;;  %v8474_v34 = vrot.slane %v17234_v44, 1  ;;  %v8564_v52 = vrot.slane %v17234_v44, 2  ;;  %v8654_v46 = vrot.slane %v17234_v44, 3 }
 0xc47   : > { %13203 = vmatpush3.bf16.msra.mxu0 %v13202_v16  ;;  %10992 = vmatprep.mubr.msk.f32.mxu0 %vm14064_vm1, %v17835_v7  ;;  %v13262_v16 = vpack.c.bf16 %v8992_v54, %v8991_v20 }
 0xc48   : > { %13204 = vmatprep.subr.bf16.mxu0 %v14065_v0 }
 0xc4b   : > { %13206 = vmatpush3.bf16.msra.mxu0 %v13205_v12  ;;  %v13265_v12 = vpack.c.bf16 %v8994_v17, %v8993_v14 }
 0xc4c   : > { %13207 = vmatprep.subr.bf16.mxu0 %v14065_v0 }
 0xc4f   : > { %13209 = vmatpush3.bf16.msra.mxu0 %v13208_v56  ;;  %v13268_v56 = vpack.c.bf16 %v8996_v21, %v8995_v24 }
 0xc50   : > { %13210 = vmatprep.subr.bf16.mxu0 %v14065_v0 }
 0xc53   : > { %13212 = vmatpush3.bf16.msra.mxu0 %v13211_v49  ;;  %v13271_v49 = vpack.c.bf16 %v8998_v33, %v8997_v15 }
 0xc54   : > { %13213 = vmatprep.subr.bf16.mxu0 %v14065_v0 }
 0xc57   : > { %13215 = vmatpush3.bf16.msra.mxu0 %v13214_v58 }
 0xc58   : > { %13216 = vmatprep.subr.bf16.mxu0 %v14065_v0 }
 0xc5b   : > { %13218 = vmatpush3.bf16.msra.mxu0 %v13217_v32 }
 0xc5c   : > { %13219 = vmatprep.subr.bf16.mxu0 %v14065_v0 }
 0xc5f   : > { %13221 = vmatpush3.bf16.msra.mxu0 %v13220_v2 }
 0xc60   : > { %13222 = vmatprep.subr.bf16.mxu0 %v14065_v0 }
 0xc63   : > { %13224 = vmatpush3.bf16.msra.mxu0 %v13223_v57 }
 0xc64   : > { %13225 = vmatprep.subr.bf16.mxu0 %v14065_v0 }
 0xc66   : > { %10993 = vmatmul.mubr.f32.vlgmr.msra.gmra.mrb[82].mxu0 %v8474_v34 }
 0xc67   : > { %13227 = vmatpush3.bf16.msra.mxu0 %v13226_v29  ;;  %11027 = vmatprep.mubr.msk.f32.mxu0 %vm14064_vm1, %v17835_v7 }
 0xc68   : > { %13228 = vmatprep.subr.bf16.mxu0 %v14065_v0 }
 0xc6b   : > { %13230 = vmatpush3.bf16.msra.mxu0 %v13229_v26 }
 0xc6c   : > { %13231 = vmatprep.subr.bf16.mxu0 %v14065_v0 }
 0xc6f   : > { %13233 = vmatpush3.bf16.msra.mxu0 %v13232_v30 }
 0xc70   : > { %13234 = vmatprep.subr.bf16.mxu0 %v14065_v0 }
 0xc73   : > { %13236 = vmatpush3.bf16.msra.mxu0 %v13235_v45 }
 0xc74   : > { %13237 = vmatprep.subr.bf16.mxu0 %v14065_v0 }
 0xc77   : > { %13239 = vmatpush3.bf16.msra.mxu0 %v13238_v13 }
 0xc78   : > { %13240 = vmatprep.subr.bf16.mxu0 %v14065_v0 }
 0xc7b   : > { %13242 = vmatpush3.bf16.msra.mxu0 %v13241_v23 }
 0xc7c   : > { %13243 = vmatprep.subr.bf16.mxu0 %v14065_v0 }
 0xc7f   : > { %13245 = vmatpush3.bf16.msra.mxu0 %v13244_v18 }
 0xc80   : > { %13246 = vmatprep.subr.bf16.mxu0 %v14065_v0 }
 0xc83   : > { %13248 = vmatpush3.bf16.msra.mxu0 %v13247_v39 }
 0xc84   : > { %13249 = vmatprep.subr.bf16.mxu0 %v14065_v0 }
 0xc86   : > { %11028 = vmatmul.mubr.f32.vlgmr.msra.gmra.mrb[82].mxu0 %v8564_v52 }
 0xc87   : > { %13251 = vmatpush3.bf16.msra.mxu0 %v13250_v61  ;;  %11062 = vmatprep.mubr.msk.f32.mxu0 %vm14064_vm1, %v17835_v7  ;;  %v8990_v7 = vld [vmem:[%s18417_s3 + $0x1b8] sm:$0xff] }
 0xc88   : > { %13252 = vmatprep.subr.bf16.mxu0 %v14065_v0  ;;  %v13259_v27 = vpack.c.bf16 %v8990_v7, %v8989_v42 }
 0xc8b   : > { %13254 = vmatpush3.bf16.msra.mxu0 %v13253_v51 }
 0xc8c   : > { %13255 = vmatprep.subr.bf16.mxu0 %v14065_v0 }
 0xc8f   : > { %13257 = vmatpush3.bf16.msra.mxu0 %v13256_v25 }
 0xc90   : > { %13258 = vmatprep.subr.bf16.mxu0 %v14065_v0 }
 0xc93   : > { %13260 = vmatpush3.bf16.msra.mxu0 %v13259_v27 }
 0xc94   : > { %13261 = vmatprep.subr.bf16.mxu0 %v14065_v0 }
 0xc97   : > { %13263 = vmatpush3.bf16.msra.mxu0 %v13262_v16 }
 0xc98   : > { %13264 = vmatprep.subr.bf16.mxu0 %v14065_v0 }
 0xc9b   : > { %13266 = vmatpush3.bf16.msra.mxu0 %v13265_v12 }
 0xc9c   : > { %13267 = vmatprep.subr.bf16.mxu0 %v14065_v0 }
 0xc9f   : > { %13269 = vmatpush3.bf16.msra.mxu0 %v13268_v56 }
 0xca0   : > { %13270 = vmatprep.subr.bf16.mxu0 %v14065_v0 }
 0xca3   : > { %13272 = vmatpush3.bf16.msra.mxu0 %v13271_v49 }
 0xca6   : > { %11063 = vmatmul.mubr.f32.vlgmr.msra.gmra.mrb[82].mxu0 %v8654_v46 }
 0xd79   : > { %v8722_v58 = vpop.f32.mrb[82].mxu0 }
 0xd7a   : > { %v13341_v6 = vadd.f32 %v8722_v58, %v8368_v8  ;;  %v11064_v19 = vpop.f32.mrb[83].mxu0 }
 0xd7c   : > { %8728 = vst.msk [vmem:[%s567_s13] sm:$0x1] %vm8727_vm3, %v13341_v6 }
 0xd7d   : > { %13971 = shalt.err (!%p13968_p3)
}
 0xd7e   : > { %s13972_s28 = scalar_lea.hbm %s17412_s26, 16  ;;  %s13976_s13 = scalar_lea.hbm %s18418_s2, 32 }
 0xd7f   : > { %p13973_p5 = scmp.ne.s32.totalorder %s17412_s26, %s13972_s28  ;;  %p13977_p9 = scmp.lt.u32.totalorder %s17412_s26, %s18418_s2 }
 0xd80   : > { %p13978_p12 = scmp.lt.u32.totalorder %s13976_s13, %s13972_s28  ;;  %p13980_p13 = scmp.lt.u32.totalorder %s13972_s28, %s17412_s26 }
 0xd81   : > { %p13974_p7 = pnand %p13973_p5, %p18419_p0 }
 0xd82   : > { %p13979_p1 = por %p13978_p12, %p13977_p9 }
 0xd83   : > { %p13975_p6 = pneg %p13974_p7 }
 0xd84   : > { %p13981_p2 = por %p13980_p13, %p13979_p1 }
 0xd86   : > { %p13982_p8 = pnand %p13981_p2, %p13975_p6 }
 0xd88   : > { %13985 = shalt.err (!%p13982_p8)
}
 0xd89   : > { %13534 = dma.vmem_to_hbm [thread:$0]  (%p18419_p0), %s17414_s12, 16, %s17412_s26, %s8730_s17  }
 0xd8a PF: > { %s8754_s10 = sand.u32 1, %s14032_s21   ;;  %p18420_p4 = scmp.ne.s32.totalorder %s17801_s29, 0 }
 0xd8b   : > { %p18421_p10 = scmp.ge.s32.totalorder %s14044_s24, 2  ;;  %s8755_s27 = scalar_lea.sflag [#allocation4], %s8754_s10 }
 0xd8d   : > { %p13572_p11 = pnand %p18421_p10, %p18420_p4 }
 0xd8f   : > { %14027 = dma.done.wait (!%p13572_p11), %s8755_s27, 16  }
 0xd90   : > { %14029 = vsyncadd (!%p13572_p11), %s8755_s27, 4294967280  ;;  %p30_p3 = scmp.ge.s32.totalorder %s14415_s25, 4   ;;  %s18422_s21 = smov %s14036_s22 }
 0xd91   : > { %s18423_s22 = smov %s14040_s23  ;;  %s18424_s23 = smov %s14426_s14 }
 0xd92   : > { %s18425_s24 = smov %s14415_s25  ;;  %32 = sbr.rel (!%p30_p3) target bundleno = 17 (0x11), region = 186 }
 0xd99   :  { %8759 = vsyncpa [#allocation3], 1 }
 0xd9a   :  { %8761 = vsyncpa [#allocation3 + $0x1], 1 }
 0xd9b   :  { %8762 = vsyncpa [#allocation6], 1 }
 0xd9c   :  { %8763 = vsyncpa [#allocation9], 1 }
 0xd9d   :  { %8764 = vsyncpa [#allocation12], 1 }
 0xd9e   :  { %8765 = vsyncpa [#allocation15], 1 }
 0xd9f   :  { %8766 = vsyncpa [#allocation18], 1 }
 0xda0   :  { %8767 = vsyncpa [#allocation4], 1 }
 0xda1   :  { %8769 = vsyncpa [#allocation4 + $0x1], 1 }

</bundles_post_ra>
